<compile_context>
chip_gen: v7x
topology: tpu7x:2x2x1
jax: 0.10.0
libtpu: 0.0.40
codegen_flags: <defaults>
</compile_context>

<pallas_src>
import jax
import jax.numpy as jnp
from jax.experimental import pallas as pl
from jax.experimental.pallas import tpu as pltpu


# ----------------------------------------------------------------------------
# Fused Pallas kernel: 6 x GraphConvolution (+ReLU on first 5) + L2 normalize
# ----------------------------------------------------------------------------
def _gcn_fused_kernel(x_ref, adj_ref, *rest):
    """Fused GCN forward.

    x_ref:   (N, F_in)   f32 node features
    adj_ref: (N, N)      f32 adjacency
    rest:    (w1, b1, ..., w6, b6, o_ref); weights bf16, biases f32
    o_ref:   (N, nclass) f32 output
    """
    o_ref = rest[-1]
    wb_refs = rest[:-1]
    n_layers = len(wb_refs) // 2

    adj = adj_ref[...].astype(jnp.bfloat16)       # (N, N)
    h = x_ref[...]                                # (N, F_in) f32, stays on-chip

    for i in range(n_layers):
        w = wb_refs[2 * i][...]                   # (F_in, F_out) bf16
        b = wb_refs[2 * i + 1][...]               # (1, F_out)    f32
        # Reassociated: adj @ (h @ W) == (adj @ h) @ W.  The hoisted adj @ h is
        # a trivial N x N x F_in matmul; the heavy matmul is a single bf16 MXU
        # pass per layer with f32 accumulation.
        y = jnp.dot(adj, h.astype(jnp.bfloat16),
                    preferred_element_type=jnp.float32)        # (N, F_in) f32
        h = jnp.dot(y.astype(jnp.bfloat16), w,
                    preferred_element_type=jnp.float32) + b    # (N, F_out) f32
        if i < n_layers - 1:
            h = jnp.maximum(h, 0.0)               # ReLU on gc1..gc5
        # (dropout: identity at inference)

    # F.normalize(x, p=2, dim=1, eps=1e-12): row-wise L2 normalization.
    norm = jnp.sqrt(jnp.sum(h * h, axis=1, keepdims=True))
    inv = pl.reciprocal(jnp.maximum(norm, 1e-12), approx=False)
    o_ref[...] = (h * inv).astype(o_ref.dtype)


def gcn_forward(params, x, adj):
    """Fused GCN forward pass as a single pallas_call."""
    n, nfeat = x.shape
    nclass = params[-1][0].shape[1]

    args = [x, adj]
    in_specs = [
        pl.BlockSpec((n, nfeat), lambda i: (0, 0)),   # x  (fully resident)
        pl.BlockSpec((n, n), lambda i: (0, 0)),       # adj (fully resident)
    ]
    for (w, b) in params:
        args.append(w)                                # bf16 weight
        args.append(b)                                # f32 bias
        in_specs.append(pl.BlockSpec(w.shape, lambda i: (0, 0)))
        in_specs.append(pl.BlockSpec(b.shape, lambda i: (0, 0)))

    return pl.pallas_call(
        _gcn_fused_kernel,
        out_shape=jax.ShapeDtypeStruct((n, nclass), jnp.float32),
        grid=(1,),
        in_specs=in_specs,
        out_specs=pl.BlockSpec((n, nclass), lambda i: (0, 0)),
        compiler_params=pltpu.CompilerParams(
            dimension_semantics=("arbitrary",),
            # ~7.6 MiB bf16 weights (x2 buffering) fully VMEM-resident; stays
            # well under the v7x 64 MiB physical VMEM with headroom.
            vmem_limit_bytes=40 * 1024 * 1024),
    )(*args)


# ----------------------------------------------------------------------------
# Parameter init (mirrors GraphConvolution.reset_parameters:
# uniform(-stdv, stdv) with stdv = 1/sqrt(out_features)).  Weights are stored
# in bf16 (streamed to the MXU as bf16 with f32 accumulation); biases in f32.
# ----------------------------------------------------------------------------
def init_gc_params(key, f_in, f_out):
    kw, kb = jax.random.split(key)
    stdv = 1.0 / jnp.sqrt(jnp.float32(f_out))
    w = jax.random.uniform(kw, (f_in, f_out), jnp.float32, -stdv, stdv)
    b = jax.random.uniform(kb, (1, f_out), jnp.float32, -stdv, stdv)
    return w.astype(jnp.bfloat16), b


def init_gcn_params(key, nfeat, nclass):
    dims = [nfeat, 512, 1024, 1024, 1024, 1024, nclass]
    keys = jax.random.split(key, 6)
    return [init_gc_params(keys[i], dims[i], dims[i + 1]) for i in range(6)]


# ----------------------------------------------------------------------------
# Pure-JAX reference (mirrors the kernel's bf16-input / f32-accum math)
# ----------------------------------------------------------------------------
def gcn_reference(params, x, adj):
    adj_bf = adj.astype(jnp.bfloat16)
    h = x
    for i, (w, b) in enumerate(params):
        y = jnp.dot(adj_bf, h.astype(jnp.bfloat16),
                    preferred_element_type=jnp.float32)
        h = jnp.dot(y.astype(jnp.bfloat16), w,
                    preferred_element_type=jnp.float32) + b
        if i < len(params) - 1:
            h = jnp.maximum(h, 0.0)
    norm = jnp.sqrt(jnp.sum(h * h, axis=1, keepdims=True))
    return h / jnp.maximum(norm, 1e-12)


# ----------------------------------------------------------------------------
# Main
# ----------------------------------------------------------------------------
if __name__ == "__main__":
    N_NODES = 16     # number of graph nodes
    NFEAT = 128      # input feature dim
    NCLASS = 64      # output class embedding dim
    DROPOUT = 0.5    # unused at inference (identity)

    key = jax.random.PRNGKey(0)
    k_x, k_adj, k_params = jax.random.split(key, 3)

    x = jax.random.normal(k_x, (N_NODES, NFEAT), jnp.float32)

    # Symmetric row-normalized adjacency (typical GCN preprocessing).
    a = jax.random.uniform(k_adj, (N_NODES, N_NODES), jnp.float32)
    a = (a + a.T) * 0.5 + jnp.eye(N_NODES, dtype=jnp.float32)
    adj = a / jnp.sum(a, axis=1, keepdims=True)

    params = init_gcn_params(k_params, NFEAT, NCLASS)

    out = jax.jit(gcn_forward)(params, x, adj)
    out = jax.block_until_ready(out)

    ref = gcn_reference(params, x, adj)
    assert out.shape == (N_NODES, NCLASS)
    assert jnp.allclose(out, ref, atol=1e-2, rtol=1e-2), float(
        jnp.max(jnp.abs(out - ref)))

    print("KERNEL_OK")
</pallas_src>

<mosaic_0001>
module attributes {stable_mosaic.version = 11 : i64} {
  func.func @_gcn_fused_kernel(%arg0: i32, %arg1: memref<16x128xf32, #tpu.memory_space<vmem>>, %arg2: memref<16x16xf32, #tpu.memory_space<vmem>>, %arg3: memref<128x512xbf16, #tpu.memory_space<vmem>>, %arg4: memref<1x512xf32, #tpu.memory_space<vmem>>, %arg5: memref<512x1024xbf16, #tpu.memory_space<vmem>>, %arg6: memref<1x1024xf32, #tpu.memory_space<vmem>>, %arg7: memref<1024x1024xbf16, #tpu.memory_space<vmem>>, %arg8: memref<1x1024xf32, #tpu.memory_space<vmem>>, %arg9: memref<1024x1024xbf16, #tpu.memory_space<vmem>>, %arg10: memref<1x1024xf32, #tpu.memory_space<vmem>>, %arg11: memref<1024x1024xbf16, #tpu.memory_space<vmem>>, %arg12: memref<1x1024xf32, #tpu.memory_space<vmem>>, %arg13: memref<1024x64xbf16, #tpu.memory_space<vmem>>, %arg14: memref<1x64xf32, #tpu.memory_space<vmem>>, %arg15: memref<16x64xf32, #tpu.memory_space<vmem>>) attributes {dimension_semantics = [#tpu.dimension_semantics<arbitrary>], iteration_bounds = array<i64: 1>, scalar_prefetch = 0 : i64, scratch_operands = 0 : i64, tpu.core_type = #tpu.core_type<tc>, window_params = [{pipeline_mode = #tpu.pipeline_mode<synchronous>, transform_indices = @transform_0, window_bounds = array<i64: 16, 128>}, {pipeline_mode = #tpu.pipeline_mode<synchronous>, transform_indices = @transform_1, window_bounds = array<i64: 16, 16>}, {pipeline_mode = #tpu.pipeline_mode<synchronous>, transform_indices = @transform_2, window_bounds = array<i64: 128, 512>}, {pipeline_mode = #tpu.pipeline_mode<synchronous>, transform_indices = @transform_3, window_bounds = array<i64: 1, 512>}, {pipeline_mode = #tpu.pipeline_mode<synchronous>, transform_indices = @transform_4, window_bounds = array<i64: 512, 1024>}, {pipeline_mode = #tpu.pipeline_mode<synchronous>, transform_indices = @transform_5, window_bounds = array<i64: 1, 1024>}, {pipeline_mode = #tpu.pipeline_mode<synchronous>, transform_indices = @transform_6, window_bounds = array<i64: 1024, 1024>}, {pipeline_mode = #tpu.pipeline_mode<synchronous>, transform_indices = @transform_7, window_bounds = array<i64: 1, 1024>}, {pipeline_mode = #tpu.pipeline_mode<synchronous>, transform_indices = @transform_8, window_bounds = array<i64: 1024, 1024>}, {pipeline_mode = #tpu.pipeline_mode<synchronous>, transform_indices = @transform_9, window_bounds = array<i64: 1, 1024>}, {pipeline_mode = #tpu.pipeline_mode<synchronous>, transform_indices = @transform_10, window_bounds = array<i64: 1024, 1024>}, {pipeline_mode = #tpu.pipeline_mode<synchronous>, transform_indices = @transform_11, window_bounds = array<i64: 1, 1024>}, {pipeline_mode = #tpu.pipeline_mode<synchronous>, transform_indices = @transform_12, window_bounds = array<i64: 1024, 64>}, {pipeline_mode = #tpu.pipeline_mode<synchronous>, transform_indices = @transform_13, window_bounds = array<i64: 1, 64>}, {pipeline_mode = #tpu.pipeline_mode<synchronous>, transform_indices = @transform_14, window_bounds = array<i64: 16, 64>}]} {
    %c0 = arith.constant 0 : index
    %c0_0 = arith.constant 0 : index
    %0 = vector.load %arg2[%c0, %c0_0] : memref<16x16xf32, #tpu.memory_space<vmem>>, vector<16x16xf32>
    %1 = arith.truncf %0 : vector<16x16xf32> to vector<16x16xbf16>
    %c0_1 = arith.constant 0 : index
    %c0_2 = arith.constant 0 : index
    %2 = vector.load %arg1[%c0_1, %c0_2] : memref<16x128xf32, #tpu.memory_space<vmem>>, vector<16x128xf32>
    %c0_3 = arith.constant 0 : index
    %c0_4 = arith.constant 0 : index
    %3 = vector.load %arg3[%c0_3, %c0_4] : memref<128x512xbf16, #tpu.memory_space<vmem>>, vector<128x512xbf16>
    %c0_5 = arith.constant 0 : index
    %c0_6 = arith.constant 0 : index
    %4 = vector.load %arg4[%c0_5, %c0_6] : memref<1x512xf32, #tpu.memory_space<vmem>>, vector<1x512xf32>
    %5 = arith.truncf %2 : vector<16x128xf32> to vector<16x128xbf16>
    %cst = arith.constant dense<0.000000e+00> : vector<16x128xf32>
    %6 = tpu.matmul %1, %5, %cst {dimension_numbers = #tpu.dot_dimension_numbers<[1], [0], [0], [1], [0, 0, 1, 1], [], []>} : vector<16x16xbf16>, vector<16x128xbf16>, vector<16x128xf32> -> vector<16x128xf32>
    %7 = arith.truncf %6 : vector<16x128xf32> to vector<16x128xbf16>
    %cst_7 = arith.constant dense<0.000000e+00> : vector<16x512xf32>
    %8 = tpu.matmul %7, %3, %cst_7 {dimension_numbers = #tpu.dot_dimension_numbers<[1], [0], [0], [1], [0, 0, 1, 1], [], []>} : vector<16x128xbf16>, vector<128x512xbf16>, vector<16x512xf32> -> vector<16x512xf32>
    %9 = vector.broadcast %4 : vector<1x512xf32> to vector<16x512xf32>
    %10 = arith.addf %8, %9 : vector<16x512xf32>
    %cst_8 = arith.constant 0.000000e+00 : f32
    %11 = vector.broadcast %cst_8 : f32 to vector<16x512xf32>
    %12 = arith.maximumf %10, %11 : vector<16x512xf32>
    %c0_9 = arith.constant 0 : index
    %c0_10 = arith.constant 0 : index
    %13 = vector.load %arg5[%c0_9, %c0_10] : memref<512x1024xbf16, #tpu.memory_space<vmem>>, vector<512x1024xbf16>
    %c0_11 = arith.constant 0 : index
    %c0_12 = arith.constant 0 : index
    %14 = vector.load %arg6[%c0_11, %c0_12] : memref<1x1024xf32, #tpu.memory_space<vmem>>, vector<1x1024xf32>
    %15 = arith.truncf %12 : vector<16x512xf32> to vector<16x512xbf16>
    %cst_13 = arith.constant dense<0.000000e+00> : vector<16x512xf32>
    %16 = tpu.matmul %1, %15, %cst_13 {dimension_numbers = #tpu.dot_dimension_numbers<[1], [0], [0], [1], [0, 0, 1, 1], [], []>} : vector<16x16xbf16>, vector<16x512xbf16>, vector<16x512xf32> -> vector<16x512xf32>
    %17 = arith.truncf %16 : vector<16x512xf32> to vector<16x512xbf16>
    %cst_14 = arith.constant dense<0.000000e+00> : vector<16x1024xf32>
    %18 = tpu.matmul %17, %13, %cst_14 {dimension_numbers = #tpu.dot_dimension_numbers<[1], [0], [0], [1], [0, 0, 1, 1], [], []>} : vector<16x512xbf16>, vector<512x1024xbf16>, vector<16x1024xf32> -> vector<16x1024xf32>
    %19 = vector.broadcast %14 : vector<1x1024xf32> to vector<16x1024xf32>
    %20 = arith.addf %18, %19 : vector<16x1024xf32>
    %cst_15 = arith.constant 0.000000e+00 : f32
    %21 = vector.broadcast %cst_15 : f32 to vector<16x1024xf32>
    %22 = arith.maximumf %20, %21 : vector<16x1024xf32>
    %c0_16 = arith.constant 0 : index
    %c0_17 = arith.constant 0 : index
    %23 = vector.load %arg7[%c0_16, %c0_17] : memref<1024x1024xbf16, #tpu.memory_space<vmem>>, vector<1024x1024xbf16>
    %c0_18 = arith.constant 0 : index
    %c0_19 = arith.constant 0 : index
    %24 = vector.load %arg8[%c0_18, %c0_19] : memref<1x1024xf32, #tpu.memory_space<vmem>>, vector<1x1024xf32>
    %25 = arith.truncf %22 : vector<16x1024xf32> to vector<16x1024xbf16>
    %cst_20 = arith.constant dense<0.000000e+00> : vector<16x1024xf32>
    %26 = tpu.matmul %1, %25, %cst_20 {dimension_numbers = #tpu.dot_dimension_numbers<[1], [0], [0], [1], [0, 0, 1, 1], [], []>} : vector<16x16xbf16>, vector<16x1024xbf16>, vector<16x1024xf32> -> vector<16x1024xf32>
    %27 = arith.truncf %26 : vector<16x1024xf32> to vector<16x1024xbf16>
    %cst_21 = arith.constant dense<0.000000e+00> : vector<16x1024xf32>
    %28 = tpu.matmul %27, %23, %cst_21 {dimension_numbers = #tpu.dot_dimension_numbers<[1], [0], [0], [1], [0, 0, 1, 1], [], []>} : vector<16x1024xbf16>, vector<1024x1024xbf16>, vector<16x1024xf32> -> vector<16x1024xf32>
    %29 = vector.broadcast %24 : vector<1x1024xf32> to vector<16x1024xf32>
    %30 = arith.addf %28, %29 : vector<16x1024xf32>
    %cst_22 = arith.constant 0.000000e+00 : f32
    %31 = vector.broadcast %cst_22 : f32 to vector<16x1024xf32>
    %32 = arith.maximumf %30, %31 : vector<16x1024xf32>
    %c0_23 = arith.constant 0 : index
    %c0_24 = arith.constant 0 : index
    %33 = vector.load %arg9[%c0_23, %c0_24] : memref<1024x1024xbf16, #tpu.memory_space<vmem>>, vector<1024x1024xbf16>
    %c0_25 = arith.constant 0 : index
    %c0_26 = arith.constant 0 : index
    %34 = vector.load %arg10[%c0_25, %c0_26] : memref<1x1024xf32, #tpu.memory_space<vmem>>, vector<1x1024xf32>
    %35 = arith.truncf %32 : vector<16x1024xf32> to vector<16x1024xbf16>
    %cst_27 = arith.constant dense<0.000000e+00> : vector<16x1024xf32>
    %36 = tpu.matmul %1, %35, %cst_27 {dimension_numbers = #tpu.dot_dimension_numbers<[1], [0], [0], [1], [0, 0, 1, 1], [], []>} : vector<16x16xbf16>, vector<16x1024xbf16>, vector<16x1024xf32> -> vector<16x1024xf32>
    %37 = arith.truncf %36 : vector<16x1024xf32> to vector<16x1024xbf16>
    %cst_28 = arith.constant dense<0.000000e+00> : vector<16x1024xf32>
    %38 = tpu.matmul %37, %33, %cst_28 {dimension_numbers = #tpu.dot_dimension_numbers<[1], [0], [0], [1], [0, 0, 1, 1], [], []>} : vector<16x1024xbf16>, vector<1024x1024xbf16>, vector<16x1024xf32> -> vector<16x1024xf32>
    %39 = vector.broadcast %34 : vector<1x1024xf32> to vector<16x1024xf32>
    %40 = arith.addf %38, %39 : vector<16x1024xf32>
    %cst_29 = arith.constant 0.000000e+00 : f32
    %41 = vector.broadcast %cst_29 : f32 to vector<16x1024xf32>
    %42 = arith.maximumf %40, %41 : vector<16x1024xf32>
    %c0_30 = arith.constant 0 : index
    %c0_31 = arith.constant 0 : index
    %43 = vector.load %arg11[%c0_30, %c0_31] : memref<1024x1024xbf16, #tpu.memory_space<vmem>>, vector<1024x1024xbf16>
    %c0_32 = arith.constant 0 : index
    %c0_33 = arith.constant 0 : index
    %44 = vector.load %arg12[%c0_32, %c0_33] : memref<1x1024xf32, #tpu.memory_space<vmem>>, vector<1x1024xf32>
    %45 = arith.truncf %42 : vector<16x1024xf32> to vector<16x1024xbf16>
    %cst_34 = arith.constant dense<0.000000e+00> : vector<16x1024xf32>
    %46 = tpu.matmul %1, %45, %cst_34 {dimension_numbers = #tpu.dot_dimension_numbers<[1], [0], [0], [1], [0, 0, 1, 1], [], []>} : vector<16x16xbf16>, vector<16x1024xbf16>, vector<16x1024xf32> -> vector<16x1024xf32>
    %47 = arith.truncf %46 : vector<16x1024xf32> to vector<16x1024xbf16>
    %cst_35 = arith.constant dense<0.000000e+00> : vector<16x1024xf32>
    %48 = tpu.matmul %47, %43, %cst_35 {dimension_numbers = #tpu.dot_dimension_numbers<[1], [0], [0], [1], [0, 0, 1, 1], [], []>} : vector<16x1024xbf16>, vector<1024x1024xbf16>, vector<16x1024xf32> -> vector<16x1024xf32>
    %49 = vector.broadcast %44 : vector<1x1024xf32> to vector<16x1024xf32>
    %50 = arith.addf %48, %49 : vector<16x1024xf32>
    %cst_36 = arith.constant 0.000000e+00 : f32
    %51 = vector.broadcast %cst_36 : f32 to vector<16x1024xf32>
    %52 = arith.maximumf %50, %51 : vector<16x1024xf32>
    %c0_37 = arith.constant 0 : index
    %c0_38 = arith.constant 0 : index
    %53 = vector.load %arg13[%c0_37, %c0_38] : memref<1024x64xbf16, #tpu.memory_space<vmem>>, vector<1024x64xbf16>
    %c0_39 = arith.constant 0 : index
    %c0_40 = arith.constant 0 : index
    %54 = vector.load %arg14[%c0_39, %c0_40] : memref<1x64xf32, #tpu.memory_space<vmem>>, vector<1x64xf32>
    %55 = arith.truncf %52 : vector<16x1024xf32> to vector<16x1024xbf16>
    %cst_41 = arith.constant dense<0.000000e+00> : vector<16x1024xf32>
    %56 = tpu.matmul %1, %55, %cst_41 {dimension_numbers = #tpu.dot_dimension_numbers<[1], [0], [0], [1], [0, 0, 1, 1], [], []>} : vector<16x16xbf16>, vector<16x1024xbf16>, vector<16x1024xf32> -> vector<16x1024xf32>
    %57 = arith.truncf %56 : vector<16x1024xf32> to vector<16x1024xbf16>
    %cst_42 = arith.constant dense<0.000000e+00> : vector<16x64xf32>
    %58 = tpu.matmul %57, %53, %cst_42 {dimension_numbers = #tpu.dot_dimension_numbers<[1], [0], [0], [1], [0, 0, 1, 1], [], []>} : vector<16x1024xbf16>, vector<1024x64xbf16>, vector<16x64xf32> -> vector<16x64xf32>
    %59 = vector.broadcast %54 : vector<1x64xf32> to vector<16x64xf32>
    %60 = arith.addf %58, %59 : vector<16x64xf32>
    %61 = arith.mulf %60, %60 : vector<16x64xf32>
    %cst_43 = arith.constant dense<0.000000e+00> : vector<16xf32>
    %62 = vector.multi_reduction <add>, %61, %cst_43 [1] : vector<16x64xf32> to vector<16xf32>
    %63 = vector.shape_cast %62 : vector<16xf32> to vector<16x1xf32>
    %64 = math.sqrt %63 : vector<16x1xf32>
    %cst_44 = arith.constant 9.99999996E-13 : f32
    %65 = vector.broadcast %cst_44 : f32 to vector<16x1xf32>
    %66 = arith.maximumf %64, %65 : vector<16x1xf32>
    %67 = tpu.reciprocal %66 : vector<16x1xf32> -> vector<16x1xf32>
    %68 = vector.broadcast %67 : vector<16x1xf32> to vector<16x64xf32>
    %69 = arith.mulf %60, %68 : vector<16x64xf32>
    %c0_45 = arith.constant 0 : index
    %c0_46 = arith.constant 0 : index
    %70 = vector.load %arg15[%c0_45, %c0_46] : memref<16x64xf32, #tpu.memory_space<vmem>>, vector<16x64xf32>
    tpu.vector_store %arg15[%c0_45, %c0_46], %69 {strides = array<i32>} : memref<16x64xf32, #tpu.memory_space<vmem>>, vector<16x64xf32>,
    return
  }
  func.func @transform_0(%arg0: i32) -> (i32, i32) {
    %c0_i32 = arith.constant 0 : i32
    %c0_i32_0 = arith.constant 0 : i32
    %c0_i32_1 = arith.constant 0 : i32
    return %c0_i32, %c0_i32_0 : i32, i32
  }
  func.func @transform_1(%arg0: i32) -> (i32, i32) {
    %c0_i32 = arith.constant 0 : i32
    %c0_i32_0 = arith.constant 0 : i32
    %c0_i32_1 = arith.constant 0 : i32
    return %c0_i32, %c0_i32_0 : i32, i32
  }
  func.func @transform_2(%arg0: i32) -> (i32, i32) {
    %c0_i32 = arith.constant 0 : i32
    %c0_i32_0 = arith.constant 0 : i32
    %c0_i32_1 = arith.constant 0 : i32
    return %c0_i32, %c0_i32_0 : i32, i32
  }
  func.func @transform_3(%arg0: i32) -> (i32, i32) {
    %c0_i32 = arith.constant 0 : i32
    %c0_i32_0 = arith.constant 0 : i32
    %c0_i32_1 = arith.constant 0 : i32
    return %c0_i32, %c0_i32_0 : i32, i32
  }
  func.func @transform_4(%arg0: i32) -> (i32, i32) {
    %c0_i32 = arith.constant 0 : i32
    %c0_i32_0 = arith.constant 0 : i32
    %c0_i32_1 = arith.constant 0 : i32
    return %c0_i32, %c0_i32_0 : i32, i32
  }
  func.func @transform_5(%arg0: i32) -> (i32, i32) {
    %c0_i32 = arith.constant 0 : i32
    %c0_i32_0 = arith.constant 0 : i32
    %c0_i32_1 = arith.constant 0 : i32
    return %c0_i32, %c0_i32_0 : i32, i32
  }
  func.func @transform_6(%arg0: i32) -> (i32, i32) {
    %c0_i32 = arith.constant 0 : i32
    %c0_i32_0 = arith.constant 0 : i32
    %c0_i32_1 = arith.constant 0 : i32
    return %c0_i32, %c0_i32_0 : i32, i32
  }
  func.func @transform_7(%arg0: i32) -> (i32, i32) {
    %c0_i32 = arith.constant 0 : i32
    %c0_i32_0 = arith.constant 0 : i32
    %c0_i32_1 = arith.constant 0 : i32
    return %c0_i32, %c0_i32_0 : i32, i32
  }
  func.func @transform_8(%arg0: i32) -> (i32, i32) {
    %c0_i32 = arith.constant 0 : i32
    %c0_i32_0 = arith.constant 0 : i32
    %c0_i32_1 = arith.constant 0 : i32
    return %c0_i32, %c0_i32_0 : i32, i32
  }
  func.func @transform_9(%arg0: i32) -> (i32, i32) {
    %c0_i32 = arith.constant 0 : i32
    %c0_i32_0 = arith.constant 0 : i32
    %c0_i32_1 = arith.constant 0 : i32
    return %c0_i32, %c0_i32_0 : i32, i32
  }
  func.func @transform_10(%arg0: i32) -> (i32, i32) {
    %c0_i32 = arith.constant 0 : i32
    %c0_i32_0 = arith.constant 0 : i32
    %c0_i32_1 = arith.constant 0 : i32
    return %c0_i32, %c0_i32_0 : i32, i32
  }
  func.func @transform_11(%arg0: i32) -> (i32, i32) {
    %c0_i32 = arith.constant 0 : i32
    %c0_i32_0 = arith.constant 0 : i32
    %c0_i32_1 = arith.constant 0 : i32
    return %c0_i32, %c0_i32_0 : i32, i32
  }
  func.func @transform_12(%arg0: i32) -> (i32, i32) {
    %c0_i32 = arith.constant 0 : i32
    %c0_i32_0 = arith.constant 0 : i32
    %c0_i32_1 = arith.constant 0 : i32
    return %c0_i32, %c0_i32_0 : i32, i32
  }
  func.func @transform_13(%arg0: i32) -> (i32, i32) {
    %c0_i32 = arith.constant 0 : i32
    %c0_i32_0 = arith.constant 0 : i32
    %c0_i32_1 = arith.constant 0 : i32
    return %c0_i32, %c0_i32_0 : i32, i32
  }
  func.func @transform_14(%arg0: i32) -> (i32, i32) {
    %c0_i32 = arith.constant 0 : i32
    %c0_i32_0 = arith.constant 0 : i32
    %c0_i32_1 = arith.constant 0 : i32
    return %c0_i32, %c0_i32_0 : i32, i32
  }
}

</mosaic_0001>

<bundles_post_ra>
// kernel: gcn_forward.1
= control target key start
LH: loop header
LB: loop body
LE: loop exit
PB: predicated region body
PF: predicated region fallthrough
CT: control target
= control target key end

     0   :  { %19 = vsyncpa [#allocation3], 0  ;;  %s19107_s0 = inlined_call_operand.hbm [shape: f32[16,128], index: 0, kind: input, shape index: {}]   ;;  %s19108_s1 = inlined_call_operand.hbm [shape: f32[16,16], index: 1, kind: input, shape index: {}]   ;;  %s19109_s2 = inlined_call_operand.hbm [shape: bf16[128,512], index: 2, kind: input, shape index: {}]   ;;  %s19110_s3 = inlined_call_operand.hbm [shape: f32[1,512], index: 3, kind: input, shape index: {}]   ;;  %s19111_s4 = inlined_call_operand.hbm [shape: bf16[512,1024], index: 4, kind: input, shape index: {}]   ;;  %s19112_s5 = inlined_call_operand.hbm [shape: f32[1,1024], index: 5, kind: input, shape index: {}]   ;;  %s19113_s6 = inlined_call_operand.hbm [shape: bf16[1024,1024], index: 6, kind: input, shape index: {}]   ;;  %s19114_s7 = inlined_call_operand.hbm [shape: f32[1,1024], index: 7, kind: input, shape index: {}]   ;;  %s19115_s8 = inlined_call_operand.hbm [shape: bf16[1024,1024], index: 8, kind: input, shape index: {}]   ;;  %s19116_s9 = inlined_call_operand.hbm [shape: f32[1,1024], index: 9, kind: input, shape index: {}]   ;;  %s19117_s10 = inlined_call_operand.hbm [shape: bf16[1024,1024], index: 10, kind: input, shape index: {}]   ;;  %s19118_s11 = inlined_call_operand.hbm [shape: f32[1,1024], index: 11, kind: input, shape index: {}]   ;;  %s19119_s12 = inlined_call_operand.vmem [shape: bf16[1024,64], index: 12, kind: input, shape index: {}]   ;;  %s19120_s13 = inlined_call_operand.hbm [shape: f32[1,64], index: 13, kind: input, shape index: {}]   ;;  %s19121_s14 = inlined_call_operand.hbm [shape: f32[16,64], index: 14, kind: output, shape index: {}]  }
   0x1   :  { %20 = vsyncpa [#allocation6], 0 }
   0x2   :  { %21 = vsyncpa [#allocation9], 0 }
   0x3   :  { %22 = vsyncpa [#allocation12], 0 }
   0x4   :  { %23 = vsyncpa [#allocation15], 0 }
   0x5   :  { %24 = vsyncpa [#allocation18], 0 }
   0x6   :  { %25 = vsyncpa [#allocation21], 0 }
   0x7   :  { %26 = vsyncpa [#allocation4], 0  ;;  %s18243_s29 = smov [#allocation5]   ;;  %s18244_s15 = smov [#allocation8]  }
   0x8   :  { %s44_s30 = sshll.u32 %s18243_s29, 4  ;;  %s69_s16 = sshll.u32 %s18244_s15, 4  ;;  %s45_s30 = int_to_ptr.vmem [resolvable:$true] %s44_s30  ;;  %s70_s16 = int_to_ptr.vmem [resolvable:$true] %s69_s16 }
   0x9   :  { %s17919_s19 = scalar_lea.hbm %s19108_s1, 256 }
   0xa   :  { %p17920_p0 = scmp.ne.s32.totalorder %s19108_s1, %s17919_s19  ;;  %p17923_p1 = scmp.lt.u32.totalorder %s17919_s19, %s19108_s1 }
   0xc   :  { %p17925_p2 = pnand %p17923_p1, %p17920_p0 }
   0xe   :  { %17928 = shalt.err (!%p17925_p2)
}
   0xf   :  { %s17929_s24 = scalar_lea.vmem %s45_s30, 256  ;;  %p17934_p4 = scmp.lt.s32.totalorder %s45_s30, %s45_s30 }
  0x10   :  { %p17930_p3 = scmp.ne.s32.totalorder %s45_s30, %s17929_s24  ;;  %p17935_p5 = scmp.lt.s32.totalorder %s17929_s24, %s17929_s24 }
  0x12   :  { %p17936_p6 = por %p17935_p5, %p17934_p4 }
  0x14   :  { %p17937_p7 = pnand %p17936_p6, %p17930_p3 }
  0x16   :  { %17940 = shalt.err (!%p17937_p7)
}
  0x17   :  { %s18245_s25 = smov 128   ;;  %s18246_s26 = smov 8  }
  0x18   :  { %50 = dma.hbm_to_vmem [thread:$0]  %s19108_s1, 256, %s45_s30, [#allocation6], %s18245_s25, %s18245_s25, %s18246_s26  }
  0x19   :  { %s17941_s17 = scalar_lea.hbm %s19110_s3, 64 }
  0x1a   :  { %p17942_p8 = scmp.ne.s32.totalorder %s19110_s3, %s17941_s17  ;;  %p17945_p9 = scmp.lt.u32.totalorder %s17941_s17, %s19110_s3 }
  0x1c   :  { %p17947_p10 = pnand %p17945_p9, %p17942_p8 }
  0x1e   :  { %17950 = shalt.err (!%p17947_p10)
}
  0x1f   :  { %s17951_s22 = scalar_lea.vmem %s70_s16, 64  ;;  %p17956_p12 = scmp.lt.s32.totalorder %s70_s16, %s70_s16 }
  0x20   :  { %p17952_p11 = scmp.ne.s32.totalorder %s70_s16, %s17951_s22  ;;  %p17957_p13 = scmp.lt.s32.totalorder %s17951_s22, %s17951_s22 }
  0x22   :  { %p17958_p0 = por %p17957_p13, %p17956_p12 }
  0x24   :  { %p17959_p1 = pnand %p17958_p0, %p17952_p11 }
  0x26   :  { %17962 = shalt.err (!%p17959_p1)
}
  0x27   :  { %72 = dma.hbm_to_vmem [thread:$0]  %s19110_s3, 64, %s70_s16, [#allocation9]  }
  0x28   :  { %s18247_s23 = smov [#allocation11]   ;;  %s18248_s27 = smov [#allocation14]  }
  0x29   :  { %s91_s24 = sshll.u32 %s18247_s23, 4  ;;  %s113_s28 = sshll.u32 %s18248_s27, 4  ;;  %s92_s24 = int_to_ptr.vmem [resolvable:$true] %s91_s24  ;;  %s114_s28 = int_to_ptr.vmem [resolvable:$true] %s113_s28 }
  0x2a   :  { %s17963_s17 = scalar_lea.hbm %s19112_s5, 128 }
  0x2b   :  { %p17964_p2 = scmp.ne.s32.totalorder %s19112_s5, %s17963_s17  ;;  %p17967_p3 = scmp.lt.u32.totalorder %s17963_s17, %s19112_s5 }
  0x2d   :  { %p17969_p4 = pnand %p17967_p3, %p17964_p2 }
  0x2f   :  { %17972 = shalt.err (!%p17969_p4)
}
  0x30   :  { %s17973_s3 = scalar_lea.vmem %s92_s24, 128  ;;  %p17978_p6 = scmp.lt.s32.totalorder %s92_s24, %s92_s24 }
  0x31   :  { %p17974_p5 = scmp.ne.s32.totalorder %s92_s24, %s17973_s3  ;;  %p17979_p7 = scmp.lt.s32.totalorder %s17973_s3, %s17973_s3 }
  0x33   :  { %p17980_p8 = por %p17979_p7, %p17978_p6 }
  0x35   :  { %p17981_p9 = pnand %p17980_p8, %p17974_p5 }
  0x37   :  { %17984 = shalt.err (!%p17981_p9)
}
  0x38   :  { %94 = dma.hbm_to_vmem [thread:$0]  %s19112_s5, 128, %s92_s24, [#allocation12]  }
  0x39   :  { %s17985_s23 = scalar_lea.hbm %s19114_s7, 128 }
  0x3a   :  { %p17986_p10 = scmp.ne.s32.totalorder %s19114_s7, %s17985_s23  ;;  %p17989_p11 = scmp.lt.u32.totalorder %s17985_s23, %s19114_s7 }
  0x3c   :  { %p17991_p12 = pnand %p17989_p11, %p17986_p10 }
  0x3e   :  { %17994 = shalt.err (!%p17991_p12)
}
  0x3f   :  { %s17995_s18 = scalar_lea.vmem %s114_s28, 128  ;;  %p18000_p0 = scmp.lt.s32.totalorder %s114_s28, %s114_s28 }
  0x40   :  { %p17996_p13 = scmp.ne.s32.totalorder %s114_s28, %s17995_s18  ;;  %p18001_p1 = scmp.lt.s32.totalorder %s17995_s18, %s17995_s18 }
  0x42   :  { %p18002_p2 = por %p18001_p1, %p18000_p0 }
  0x44   :  { %p18003_p3 = pnand %p18002_p2, %p17996_p13 }
  0x46   :  { %18006 = shalt.err (!%p18003_p3)
}
  0x47   :  { %116 = dma.hbm_to_vmem [thread:$0]  %s19114_s7, 128, %s114_s28, [#allocation15]  }
  0x48   :  { %s18249_s19 = smov [#allocation17]   ;;  %s18250_s21 = smov [#allocation20]  }
  0x49   :  { %s135_s20 = sshll.u32 %s18249_s19, 4  ;;  %s157_s3 = sshll.u32 %s18250_s21, 4  ;;  %s136_s20 = int_to_ptr.vmem [resolvable:$true] %s135_s20  ;;  %s158_s3 = int_to_ptr.vmem [resolvable:$true] %s157_s3 }
  0x4a   :  { %s18007_s1 = scalar_lea.hbm %s19116_s9, 128 }
  0x4b   :  { %p18008_p4 = scmp.ne.s32.totalorder %s19116_s9, %s18007_s1  ;;  %p18011_p5 = scmp.lt.u32.totalorder %s18007_s1, %s19116_s9 }
  0x4d   :  { %p18013_p6 = pnand %p18011_p5, %p18008_p4 }
  0x4f   :  { %18016 = shalt.err (!%p18013_p6)
}
  0x50   :  { %s18017_s7 = scalar_lea.vmem %s136_s20, 128  ;;  %p18022_p8 = scmp.lt.s32.totalorder %s136_s20, %s136_s20 }
  0x51   :  { %p18018_p7 = scmp.ne.s32.totalorder %s136_s20, %s18017_s7  ;;  %p18023_p9 = scmp.lt.s32.totalorder %s18017_s7, %s18017_s7 }
  0x53   :  { %p18024_p10 = por %p18023_p9, %p18022_p8 }
  0x55   :  { %p18025_p11 = pnand %p18024_p10, %p18018_p7 }
  0x57   :  { %18028 = shalt.err (!%p18025_p11)
}
  0x58   :  { %138 = dma.hbm_to_vmem [thread:$0]  %s19116_s9, 128, %s136_s20, [#allocation18]  }
  0x59   :  { %s18029_s5 = scalar_lea.hbm %s19118_s11, 128 }
  0x5a   :  { %p18030_p12 = scmp.ne.s32.totalorder %s19118_s11, %s18029_s5  ;;  %p18033_p13 = scmp.lt.u32.totalorder %s18029_s5, %s19118_s11 }
  0x5c   :  { %p18035_p0 = pnand %p18033_p13, %p18030_p12 }
  0x5e   :  { %18038 = shalt.err (!%p18035_p0)
}
  0x5f   :  { %s18039_s22 = scalar_lea.vmem %s158_s3, 128  ;;  %p18044_p2 = scmp.lt.s32.totalorder %s158_s3, %s158_s3 }
  0x60   :  { %p18040_p1 = scmp.ne.s32.totalorder %s158_s3, %s18039_s22  ;;  %p18045_p3 = scmp.lt.s32.totalorder %s18039_s22, %s18039_s22 }
  0x62   :  { %p18046_p4 = por %p18045_p3, %p18044_p2 }
  0x64   :  { %p18047_p5 = pnand %p18046_p4, %p18040_p1 }
  0x66   :  { %18050 = shalt.err (!%p18047_p5)
}
  0x67   :  { %160 = dma.hbm_to_vmem [thread:$0]  %s19118_s11, 128, %s158_s3, [#allocation21]  }
  0x68   :  { %s18251_s1 = smov [#allocation2]   ;;  %s18252_s23 = smov [#allocation7]  }
  0x69   :  { %s32_s30 = sshll.u32 %s18251_s1, 4  ;;  %s56_s27 = sshll.u32 %s18252_s23, 4  ;;  %s33_s30 = int_to_ptr.vmem [resolvable:$true] %s32_s30  ;;  %s18416_s27 = int_to_ptr.vmem [resolvable:$true] %s56_s27 }
  0x6a   :  { %s18051_s28 = scalar_lea.hbm %s19107_s0, 256 }
  0x6b   :  { %p18052_p6 = scmp.ne.s32.totalorder %s19107_s0, %s18051_s28  ;;  %p18055_p7 = scmp.lt.u32.totalorder %s18051_s28, %s19107_s0 }
  0x6d   :  { %p18057_p8 = pnand %p18055_p7, %p18052_p6 }
  0x6f   :  { %18060 = shalt.err (!%p18057_p8)
}
  0x70   :  { %s18061_s11 = scalar_lea.vmem %s33_s30, 256  ;;  %p18066_p10 = scmp.lt.s32.totalorder %s33_s30, %s33_s30 }
  0x71   :  { %p18062_p9 = scmp.ne.s32.totalorder %s33_s30, %s18061_s11  ;;  %p18067_p11 = scmp.lt.s32.totalorder %s18061_s11, %s18061_s11 }
  0x73   :  { %p18068_p12 = por %p18067_p11, %p18066_p10 }
  0x75   :  { %p18069_p13 = pnand %p18068_p12, %p18062_p9 }
  0x77   :  { %18072 = shalt.err (!%p18069_p13)
}
  0x78   :  { %38 = dma.hbm_to_vmem [thread:$0]  %s19107_s0, 256, %s33_s30, [#allocation3], %s18245_s25, %s18245_s25, %s18246_s26  }
  0x79   :  { %s18073_s16 = scalar_lea.hbm %s19109_s2, 4096 }
  0x7a   :  { %p18074_p0 = scmp.ne.s32.totalorder %s19109_s2, %s18073_s16  ;;  %p18077_p1 = scmp.lt.u32.totalorder %s18073_s16, %s19109_s2 }
  0x7c   :  { %p18079_p2 = pnand %p18077_p1, %p18074_p0 }
  0x7e   :  { %18082 = shalt.err (!%p18079_p2)
}
  0x7f   :  { %s18083_s23 = scalar_lea.vmem %s18416_s27, 4096  ;;  %p18088_p4 = scmp.lt.s32.totalorder %s18416_s27, %s18416_s27 }
  0x80   :  { %p18084_p3 = scmp.ne.s32.totalorder %s18416_s27, %s18083_s23  ;;  %p18089_p5 = scmp.lt.s32.totalorder %s18083_s23, %s18083_s23 }
  0x82   :  { %p18090_p6 = por %p18089_p5, %p18088_p4 }
  0x84   :  { %p18091_p7 = pnand %p18090_p6, %p18084_p3 }
  0x86   :  { %18094 = shalt.err (!%p18091_p7)
}
  0x87   :  { %s18253_s0 = smov 256   ;;  %s18254_s30 = smov 16  }
  0x88   :  { %62 = dma.hbm_to_vmem [thread:$0]  %s19109_s2, 4096, %s18416_s27, [#allocation6], %s18253_s0, %s18253_s0, %s18254_s30  }
  0x89   :  { %s18255_s28 = smov [#allocation10]   ;;  %s18095_s5 = scalar_lea.hbm %s19111_s4, 32768 }
  0x8a   :  { %s78_s15 = sshll.u32 %s18255_s28, 4  ;;  %p18096_p8 = scmp.ne.s32.totalorder %s19111_s4, %s18095_s5  ;;  %s79_s15 = int_to_ptr.vmem [resolvable:$true] %s78_s15 }
  0x8b   :  { %p18099_p9 = scmp.lt.u32.totalorder %s18095_s5, %s19111_s4 }
  0x8d   :  { %p18101_p10 = pnand %p18099_p9, %p18096_p8 }
  0x8f   :  { %18104 = shalt.err (!%p18101_p10)
}
  0x90   :  { %s18105_s21 = scalar_lea.vmem %s79_s15, 32768  ;;  %p18110_p12 = scmp.lt.s32.totalorder %s79_s15, %s79_s15 }
  0x91   :  { %p18106_p11 = scmp.ne.s32.totalorder %s79_s15, %s18105_s21  ;;  %p18111_p13 = scmp.lt.s32.totalorder %s18105_s21, %s18105_s21 }
  0x93   :  { %p18112_p0 = por %p18111_p13, %p18110_p12 }
  0x95   :  { %p18113_p1 = pnand %p18112_p0, %p18106_p11 }
  0x97   :  { %18116 = shalt.err (!%p18113_p1)
}
  0x98   :  { %s18256_s2 = smov 512   ;;  %s18257_s27 = smov 32  }
  0x99   :  { %84 = dma.hbm_to_vmem [thread:$0]  %s19111_s4, 32768, %s79_s15, [#allocation9], %s18256_s2, %s18256_s2, %s18257_s27  }
  0x9a   :  { %s18258_s9 = smov [#allocation13]   ;;  %s18259_s1 = smov [#allocation16]  }
  0x9b   :  { %s100_s20 = sshll.u32 %s18258_s9, 4  ;;  %s122_s23 = sshll.u32 %s18259_s1, 4  ;;  %s101_s20 = int_to_ptr.vmem [resolvable:$true] %s100_s20  ;;  %s123_s23 = int_to_ptr.vmem [resolvable:$true] %s122_s23 }
  0x9c   :  { %s18117_s29 = scalar_lea.hbm %s19113_s6, 65536 }
  0x9d   :  { %p18118_p2 = scmp.ne.s32.totalorder %s19113_s6, %s18117_s29  ;;  %p18121_p3 = scmp.lt.u32.totalorder %s18117_s29, %s19113_s6 }
  0x9f   :  { %p18123_p4 = pnand %p18121_p3, %p18118_p2 }
  0xa1   :  { %18126 = shalt.err (!%p18123_p4)
}
  0xa2   :  { %s18127_s4 = scalar_lea.vmem %s101_s20, 65536  ;;  %p18132_p6 = scmp.lt.s32.totalorder %s101_s20, %s101_s20 }
  0xa3   :  { %p18128_p5 = scmp.ne.s32.totalorder %s101_s20, %s18127_s4  ;;  %p18133_p7 = scmp.lt.s32.totalorder %s18127_s4, %s18127_s4 }
  0xa5   :  { %p18134_p8 = por %p18133_p7, %p18132_p6 }
  0xa7   :  { %p18135_p9 = pnand %p18134_p8, %p18128_p5 }
  0xa9   :  { %18138 = shalt.err (!%p18135_p9)
}
  0xaa   :  { %106 = dma.hbm_to_vmem [thread:$0]  %s19113_s6, 65536, %s101_s20, [#allocation12], %s18256_s2, %s18256_s2, %s18257_s27  }
  0xab   :  { %s18139_s24 = scalar_lea.hbm %s19115_s8, 65536 }
  0xac   :  { %p18140_p10 = scmp.ne.s32.totalorder %s19115_s8, %s18139_s24  ;;  %p18143_p11 = scmp.lt.u32.totalorder %s18139_s24, %s19115_s8 }
  0xae   :  { %p18145_p12 = pnand %p18143_p11, %p18140_p10 }
  0xb0   :  { %18148 = shalt.err (!%p18145_p12)
}
  0xb1   :  { %s18149_s9 = scalar_lea.vmem %s123_s23, 65536  ;;  %p18154_p0 = scmp.lt.s32.totalorder %s123_s23, %s123_s23 }
  0xb2   :  { %p18150_p13 = scmp.ne.s32.totalorder %s123_s23, %s18149_s9  ;;  %p18155_p1 = scmp.lt.s32.totalorder %s18149_s9, %s18149_s9 }
  0xb4   :  { %p18156_p2 = por %p18155_p1, %p18154_p0 }
  0xb6   :  { %p18157_p3 = pnand %p18156_p2, %p18150_p13 }
  0xb8   :  { %18160 = shalt.err (!%p18157_p3)
}
  0xb9   :  { %128 = dma.hbm_to_vmem [thread:$0]  %s19115_s8, 65536, %s123_s23, [#allocation15], %s18256_s2, %s18256_s2, %s18257_s27  }
  0xba   :  { %s18260_s1 = smov [#allocation19]   ;;  %s18261_s30 = smov [#allocation22]  }
  0xbb   :  { %s144_s0 = sshll.u32 %s18260_s1, 4  ;;  %s169_s29 = sshll.u32 %s18261_s30, 4  ;;  %s145_s0 = int_to_ptr.vmem [resolvable:$true] %s144_s0  ;;  %s170_s29 = int_to_ptr.vmem [resolvable:$true] %s169_s29 }
  0xbc   :  { %s18161_s17 = scalar_lea.hbm %s19117_s10, 65536 }
  0xbd   :  { %p18162_p4 = scmp.ne.s32.totalorder %s19117_s10, %s18161_s17  ;;  %p18165_p5 = scmp.lt.u32.totalorder %s18161_s17, %s19117_s10 }
  0xbf   :  { %p18167_p6 = pnand %p18165_p5, %p18162_p4 }
  0xc1   :  { %18170 = shalt.err (!%p18167_p6)
}
  0xc2   :  { %s18171_s8 = scalar_lea.vmem %s145_s0, 65536  ;;  %p18176_p8 = scmp.lt.s32.totalorder %s145_s0, %s145_s0 }
  0xc3   :  { %p18172_p7 = scmp.ne.s32.totalorder %s145_s0, %s18171_s8  ;;  %p18177_p9 = scmp.lt.s32.totalorder %s18171_s8, %s18171_s8 }
  0xc5   :  { %p18178_p10 = por %p18177_p9, %p18176_p8 }
  0xc7   :  { %p18179_p11 = pnand %p18178_p10, %p18172_p7 }
  0xc9   :  { %18182 = shalt.err (!%p18179_p11)
}
  0xca   :  { %150 = dma.hbm_to_vmem [thread:$0]  %s19117_s10, 65536, %s145_s0, [#allocation18], %s18256_s2, %s18256_s2, %s18257_s27  }
  0xcb   :  { %s18183_s19 = scalar_lea.hbm %s19120_s13, 16 }
  0xcc   :  { %p18184_p12 = scmp.ne.s32.totalorder %s19120_s13, %s18183_s19  ;;  %p18187_p13 = scmp.lt.u32.totalorder %s18183_s19, %s19120_s13 }
  0xce   :  { %p18189_p0 = pnand %p18187_p13, %p18184_p12 }
  0xd0   :  { %18192 = shalt.err (!%p18189_p0)
}
  0xd1   :  { %s18193_s6 = scalar_lea.vmem %s170_s29, 16  ;;  %s18197_s20 = scalar_lea.vmem %s170_s29, 32 }
  0xd2   :  { %p18194_p1 = scmp.ne.s32.totalorder %s170_s29, %s18193_s6  ;;  %p18198_p2 = scmp.lt.s32.totalorder %s170_s29, %s170_s29 }
  0xd3   :  { %p18199_p3 = scmp.lt.s32.totalorder %s18197_s20, %s18193_s6 }
  0xd5   :  { %p18200_p4 = por %p18199_p3, %p18198_p2 }
  0xd7   :  { %p18201_p5 = pnand %p18200_p4, %p18194_p1 }
  0xd9   :  { %18204 = shalt.err (!%p18201_p5)
}
  0xda   :  { %172 = dma.hbm_to_vmem [thread:$0]  %s19120_s13, 16, %s170_s29, [#allocation21]  }
  0xdb   :  { %18227 = dma.done.wait [#allocation3], 256  }
  0xdc   :  { %18228 = vsyncadd [#allocation3], 4294967040 }
  0xdd   :  { %18229 = dma.done.wait [#allocation6], 4352  }
  0xde   :  { %18230 = vsyncadd [#allocation6], 4294962944 }
  0xdf   :  { %18231 = dma.done.wait [#allocation9], 32832  }
  0xe0   :  { %18232 = vsyncadd [#allocation9], 4294934464 }
  0xe1   :  { %18233 = dma.done.wait [#allocation12], 65664  }
  0xe2   :  { %18234 = vsyncadd [#allocation12], 4294901632 }
  0xe3   :  { %18235 = dma.done.wait [#allocation15], 65664  }
  0xe4   :  { %18236 = vsyncadd [#allocation15], 4294901632 }
  0xe5   :  { %18237 = dma.done.wait [#allocation18], 65664  }
  0xe6   :  { %18238 = vsyncadd [#allocation18], 4294901632 }
  0xe7   :  { %18239 = dma.done.wait [#allocation21], 144  }
  0xe8   :  { %18240 = vsyncadd [#allocation21], 4294967152  ;;  %v18262_v0 = vmov 0.0   ;;  %vm18263_vm0 = vmmov 0   ;;  %v216_v1 = vld [vmem:[#allocation2] sm:$0xff]  ;;  %v217_v2 = vld [vmem:[#allocation2 + $0x8] sm:$0xff]  ;;  %v299_v45 = vlaneseq }
  0xe9   :  { %17546 = vmatprep.subr.bf16.mxu0 %v18262_v0  ;;  %17548 = vmatprep.mubr.msk.bf16.mxu0 %vm18263_vm0, %v18262_v0  ;;  %v213_v3 = vld [vmem:[#allocation5] sm:$0xff]  ;;  %v251_v4 = vpack.c.bf16 %v217_v2, %v216_v1  ;;  %v214_v5 = vld [vmem:[#allocation5 + $0x8] sm:$0xff]  ;;  %vm252_vm1 = vcmask 130048   ;;  %v18264_v39 = vmov 0   ;;  %v250_v49 = vld [vmem:[#allocation8] sm:$0xf] }
  0xea   :  { %v18522_v6 = vpack.c.bf16 %v214_v5, %v213_v3  ;;  %v17799_v7 = vld [vmem:[#allocation7 + $0x4] ss:$16 sps:$4 sm:$0xff]   ;;  %v17801_v8 = vld [vmem:[#allocation7 + $0x8] ss:$16 sps:$4 sm:$0xff]   ;;  %v17803_v9 = vld [vmem:[#allocation7 + $0xc] ss:$16 sps:$4 sm:$0xff]   ;;  %511 = vmatprep.mubr.bf16.mxu1 %v18264_v39 }
  0xeb   :  { %17547 = vmatpush3.bf16.msra.mxu0 %v251_v4  ;;  %v17804_v10 = vld [vmem:[#allocation7] ss:$16 sps:$4 sm:$0xff]   ;;  %479 = vmatprep.subr.bf16.mxu1 %v17799_v7  ;;  %v17805_v11 = vld [vmem:[#allocation7 + $0x24] ss:$16 sps:$4 sm:$0xff]   ;;  %v17807_v12 = vld [vmem:[#allocation7 + $0x28] ss:$16 sps:$4 sm:$0xff]  }
  0xec   :  { %522 = vmatprep.subr.bf16.mxu0 %v17803_v9  ;;  %480 = vmatpush1.bf16.msra.mxu1 %v17804_v10  ;;  %v17809_v13 = vld [vmem:[#allocation7 + $0x2c] ss:$16 sps:$4 sm:$0xff]   ;;  %v17810_v14 = vld [vmem:[#allocation7 + $0x20] ss:$16 sps:$4 sm:$0xff]   ;;  %v17811_v15 = vld [vmem:[#allocation7 + $0x44] ss:$16 sps:$4 sm:$0xff]  }
  0xed   :  { %481 = vmatprep.subr.bf16.mxu1 %v17805_v11  ;;  %v17815_v16 = vld [vmem:[#allocation7 + $0x4c] ss:$16 sps:$4 sm:$0xff]   ;;  %v17816_v17 = vld [vmem:[#allocation7 + $0x40] ss:$16 sps:$4 sm:$0xff]   ;;  %v17817_v18 = vld [vmem:[#allocation7 + $0x64] ss:$16 sps:$4 sm:$0xff]  }
  0xee   :  { %17549 = vmatmul.mubr.msk.bf16.vlgmr.msra.gmra.mrb[0].mxu0 %vm252_vm1, %v18522_v6  ;;  %v17813_v19 = vld [vmem:[#allocation7 + $0x48] ss:$16 sps:$4 sm:$0xff]   ;;  %v17821_v20 = vld [vmem:[#allocation7 + $0x6c] ss:$16 sps:$4 sm:$0xff]   ;;  %v17822_v21 = vld [vmem:[#allocation7 + $0x60] ss:$16 sps:$4 sm:$0xff]  }
  0xef   :  { %523 = vmatpush1.bf16.msra.mxu0 %v17801_v8  ;;  %v17823_v22 = vld [vmem:[#allocation7 + $0x84] ss:$16 sps:$4 sm:$0xff]   ;;  %v17819_v23 = vld [vmem:[#allocation7 + $0x68] ss:$16 sps:$4 sm:$0xff]   ;;  %v17827_v24 = vld [vmem:[#allocation7 + $0x8c] ss:$16 sps:$4 sm:$0xff]   ;;  %554 = vmatprep.mubr.bf16.mxu0 %v18264_v39 }
  0xf0   :  { %524 = vmatprep.subr.bf16.mxu0 %v17809_v13  ;;  %482 = vmatpush1.bf16.msra.mxu1 %v17810_v14  ;;  %v17828_v25 = vld [vmem:[#allocation7 + $0x80] ss:$16 sps:$4 sm:$0xff]   ;;  %v17829_v26 = vld [vmem:[#allocation7 + $0xa4] ss:$16 sps:$4 sm:$0xff]   ;;  %v17825_v27 = vld [vmem:[#allocation7 + $0x88] ss:$16 sps:$4 sm:$0xff]  }
  0xf1   :  { %483 = vmatprep.subr.bf16.mxu1 %v17811_v15  ;;  %v17833_v28 = vld [vmem:[#allocation7 + $0xac] ss:$16 sps:$4 sm:$0xff]   ;;  %v17834_v29 = vld [vmem:[#allocation7 + $0xa0] ss:$16 sps:$4 sm:$0xff]   ;;  %v17835_v30 = vld [vmem:[#allocation7 + $0xc4] ss:$16 sps:$4 sm:$0xff]  }
  0xf2   :  { %v17831_v31 = vld [vmem:[#allocation7 + $0xa8] ss:$16 sps:$4 sm:$0xff]   ;;  %v17839_v32 = vld [vmem:[#allocation7 + $0xcc] ss:$16 sps:$4 sm:$0xff]   ;;  %v17840_v33 = vld [vmem:[#allocation7 + $0xc0] ss:$16 sps:$4 sm:$0xff]  }
  0xf3   :  { %525 = vmatpush1.bf16.msra.mxu0 %v17807_v12  ;;  %v17837_v34 = vld [vmem:[#allocation7 + $0xc8] ss:$16 sps:$4 sm:$0xff]   ;;  %v17841_v35 = vld [vmem:[#allocation7 + $0xe4] ss:$16 sps:$4 sm:$0xff]   ;;  %v17845_v36 = vld [vmem:[#allocation7 + $0xec] ss:$16 sps:$4 sm:$0xff]  }
  0xf4   :  { %526 = vmatprep.subr.bf16.mxu0 %v17815_v16  ;;  %484 = vmatpush1.bf16.msra.mxu1 %v17816_v17  ;;  %v17843_v37 = vld [vmem:[#allocation7 + $0xe8] ss:$16 sps:$4 sm:$0xff]   ;;  %v17846_v38 = vld [vmem:[#allocation7 + $0xe0] ss:$16 sps:$4 sm:$0xff]   ;;  %v18530_v46 = vshrl.u32 %v299_v45, 7  ;;  %vm15496_vm2 = vcmask 523264  }
  0xf5   :  { %485 = vmatprep.subr.bf16.mxu1 %v17817_v18  ;;  %v573_v9 = vld [vmem:[#allocation10] sm:$0xff]  ;;  %v574_v15 = vld [vmem:[#allocation10 + $0x8] sm:$0xff] }
  0xf6   :  { %v18533_v47 = vsub.s32 0, %v18530_v46  ;;  %v18536_v48 = vsub.s32 2, %v18530_v46  ;;  %v18539_v50 = vsub.s32 1, %v18530_v46  ;;  %v18542_v51 = vsub.s32 3, %v18530_v46  ;;  %v577_v10 = vld [vmem:[#allocation10 + $0x20] sm:$0xff]  ;;  %v578_v16 = vld [vmem:[#allocation10 + $0x28] sm:$0xff] }
  0xf7   :  { %527 = vmatpush1.bf16.msra.mxu0 %v17813_v19  ;;  %v601_v45 = vld [vmem:[#allocation10 + $0xe0] sm:$0xff] }
  0xf8   :  { %528 = vmatprep.subr.bf16.mxu0 %v17821_v20  ;;  %486 = vmatpush1.bf16.msra.mxu1 %v17822_v21  ;;  %v302_v52 = vrot.slane %v250_v49, %v18533_v47  ;;  %v310_v53 = vrot.slane %v250_v49, %v18536_v48  ;;  %v306_v54 = vrot.slane %v250_v49, %v18539_v50 }
  0xf9   :  { %487 = vmatprep.subr.bf16.mxu1 %v17823_v22  ;;  %v314_v55 = vrot.slane %v250_v49, %v18542_v51  ;;  %v598_v49 = vld [vmem:[#allocation10 + $0xc8] sm:$0xff] }
  0xfb   :  { %529 = vmatpush1.bf16.msra.mxu0 %v17819_v23 }
  0xfc   :  { %530 = vmatprep.subr.bf16.mxu0 %v17827_v24  ;;  %488 = vmatpush1.bf16.msra.mxu1 %v17828_v25  ;;  %v15584_v25 = vcombine.high %v573_v9, %v577_v10 }
  0xfd   :  { %489 = vmatprep.subr.bf16.mxu1 %v17829_v26  ;;  %v15586_v26 = vcombine.high %v574_v15, %v578_v16 }
  0xff   :  { %531 = vmatpush1.bf16.msra.mxu0 %v17825_v27  ;;  %v581_v27 = vld [vmem:[#allocation10 + $0x40] sm:$0xff] }
 0x100   :  { %532 = vmatprep.subr.bf16.mxu0 %v17833_v28  ;;  %490 = vmatpush1.bf16.msra.mxu1 %v17834_v29  ;;  %v585_v28 = vld [vmem:[#allocation10 + $0x60] sm:$0xff]  ;;  %v582_v29 = vld [vmem:[#allocation10 + $0x48] sm:$0xff] }
 0x101   :  { %491 = vmatprep.subr.bf16.mxu1 %v17835_v30  ;;  %v586_v30 = vld [vmem:[#allocation10 + $0x68] sm:$0xff] }
 0x103   :  { %533 = vmatpush1.bf16.msra.mxu0 %v17831_v31  ;;  %v15583_v31 = vcombine.low %v573_v9, %v577_v10  ;;  %v621_v10 = vld [vmem:[#allocation10 + $0x180] sm:$0xff] }
 0x104   :  { %534 = vmatprep.subr.bf16.mxu0 %v17839_v32  ;;  %492 = vmatpush1.bf16.msra.mxu1 %v17840_v33  ;;  %v15585_v32 = vcombine.low %v574_v15, %v578_v16  ;;  %v15592_v33 = vcombine.high %v581_v27, %v585_v28 }
 0x105   :  { %493 = vmatprep.subr.bf16.mxu1 %v17841_v35  ;;  %v589_v35 = vld [vmem:[#allocation10 + $0x80] sm:$0xff] }
 0x107   :  { %535 = vmatpush1.bf16.msra.mxu0 %v17837_v34  ;;  %v15594_v34 = vcombine.high %v582_v29, %v586_v30 }
 0x108   :  { %536 = vmatprep.subr.bf16.mxu0 %v17845_v36  ;;  %494 = vmatpush1.bf16.msra.mxu1 %v17846_v38  ;;  %v593_v36 = vld [vmem:[#allocation10 + $0xa0] sm:$0xff]  ;;  %v594_v38 = vld [vmem:[#allocation10 + $0xa8] sm:$0xff] }
 0x10b   :  { %537 = vmatpush1.bf16.msra.mxu0 %v17843_v37  ;;  %v590_v37 = vld [vmem:[#allocation10 + $0x88] sm:$0xff] }
 0x1c1   :  { %v290_v40 = vpop.f32.mrb[0].mxu0 }
 0x1c2   :  { %v17550_v41 = vpop.f32.mrb[1].mxu0 }
 0x1c3   :  { %v293_v42 = vpop.f32.mrb[2].mxu0  ;;  %v15593_v41 = vcombine.low %v582_v29, %v586_v30  ;;  %v642_v29 = vld [vmem:[#allocation10 + $0x228] sm:$0xff] }
 0x1c4   :  { %v297_v43 = vpack.c.bf16 %v293_v42, %v290_v40  ;;  %v17551_v44 = vpop.f32.mrb[3].mxu0  ;;  %v15591_v40 = vcombine.low %v581_v27, %v585_v28  ;;  %v15600_v42 = vcombine.high %v589_v35, %v593_v36  ;;  %v641_v27 = vld [vmem:[#allocation10 + $0x220] sm:$0xff]  ;;  %v638_v28 = vld [vmem:[#allocation10 + $0x208] sm:$0xff] }
 0x1c5   :  { %v597_v44 = vld [vmem:[#allocation10 + $0xc0] sm:$0xff] }
 0x1c6   :  { %512 = vmatmul.mubr.bf16.vlgmr.msra.gmra.mrb[0].mxu1 %v297_v43  ;;  %555 = vmatmul.mubr.bf16.vlgmr.msra.gmra.mrb[4].mxu0 %v297_v43  ;;  %v15602_v43 = vcombine.high %v590_v37, %v594_v38 }
 0x1c7   :  { %866 = vmatprep.mubr.bf16.mxu1 %v18264_v39  ;;  %909 = vmatprep.mubr.bf16.mxu0 %v18264_v39 }
 0x299   :  { %v513_v56 = vpop.f32.mrb[0].mxu1  ;;  %v556_v57 = vpop.f32.mrb[4].mxu0 }
 0x29a   :  { %v514_v58 = vadd.f32 %v513_v56, %v302_v52  ;;  %v557_v59 = vadd.f32 %v556_v57, %v310_v53  ;;  %v515_v60 = vpop.f32.mrb[1].mxu1  ;;  %v558_v61 = vpop.f32.mrb[5].mxu0  ;;  %v605_v57 = vld [vmem:[#allocation10 + $0x100] sm:$0xff] }
 0x29b   :  { %v516_v62 = vadd.f32 %v515_v60, %v306_v54  ;;  %v559_v63 = vadd.f32 %v558_v61, %v314_v55  ;;  %v517_v0 = vpop.f32.mrb[2].mxu1  ;;  %v560_v1 = vpop.f32.mrb[6].mxu0  ;;  %v610_v60 = vld [vmem:[#allocation10 + $0x128] sm:$0xff]  ;;  %v15607_v61 = vcombine.low %v597_v44, %v601_v45 }
 0x29c   :  { %v518_v2 = vadd.f32 %v517_v0, %v302_v52  ;;  %v561_v3 = vadd.f32 %v560_v1, %v310_v53  ;;  %v519_v4 = vpop.f32.mrb[3].mxu1  ;;  %v562_v5 = vpop.f32.mrb[7].mxu0  ;;  %v565_v11 = vmax.f32 %v514_v58, 0.0  ;;  %v567_v12 = vmax.f32 %v557_v59, 0.0  ;;  %v602_v52 = vld [vmem:[#allocation10 + $0xe8] sm:$0xff]  ;;  %v609_v58 = vld [vmem:[#allocation10 + $0x120] sm:$0xff] }
 0x29d   :  { %v520_v7 = vadd.f32 %v519_v4, %v306_v54  ;;  %v563_v8 = vadd.f32 %v562_v5, %v314_v55  ;;  %v566_v17 = vmax.f32 %v516_v62, 0.0  ;;  %v568_v18 = vmax.f32 %v559_v63, 0.0  ;;  %v606_v59 = vld [vmem:[#allocation10 + $0x108] sm:$0xff]  ;;  %v613_v1 = vld [vmem:[#allocation10 + $0x140] sm:$0xff] }
 0x29e   :  { %v569_v13 = vmax.f32 %v518_v2, 0.0  ;;  %v571_v14 = vmax.f32 %v561_v3, 0.0  ;;  %v15599_v53 = vcombine.low %v589_v35, %v593_v36  ;;  %v15601_v54 = vcombine.low %v590_v37, %v594_v38  ;;  %v617_v2 = vld [vmem:[#allocation10 + $0x160] sm:$0xff]  ;;  %v614_v3 = vld [vmem:[#allocation10 + $0x148] sm:$0xff] }
 0x29f   :  { %v570_v19 = vmax.f32 %v520_v7, 0.0  ;;  %v572_v20 = vmax.f32 %v563_v8, 0.0  ;;  %v15608_v55 = vcombine.high %v597_v44, %v601_v45  ;;  %v15610_v56 = vcombine.high %v598_v49, %v602_v52  ;;  %v618_v4 = vld [vmem:[#allocation10 + $0x168] sm:$0xff]  ;;  %v649_v35 = vld [vmem:[#allocation10 + $0x260] sm:$0xff] }
 0x2a0   :  { %v830_v21 = vpack.c.bf16 %v569_v13, %v565_v11  ;;  %v832_v22 = vpack.c.bf16 %v571_v14, %v567_v12  ;;  %v15609_v62 = vcombine.low %v598_v49, %v602_v52  ;;  %v15616_v63 = vcombine.high %v605_v57, %v609_v58  ;;  %v625_v11 = vld [vmem:[#allocation10 + $0x1a0] sm:$0xff]  ;;  %v622_v12 = vld [vmem:[#allocation10 + $0x188] sm:$0xff] }
 0x2a1   :  { %v831_v23 = vpack.c.bf16 %v570_v19, %v566_v17  ;;  %v833_v24 = vpack.c.bf16 %v572_v20, %v568_v18  ;;  %v15618_v0 = vcombine.high %v606_v59, %v610_v60  ;;  %v15615_v5 = vcombine.low %v605_v57, %v609_v58  ;;  %v626_v13 = vld [vmem:[#allocation10 + $0x1a8] sm:$0xff]  ;;  %v629_v18 = vld [vmem:[#allocation10 + $0x1c0] sm:$0xff] }
 0x2a2   :  { %v15617_v7 = vcombine.low %v606_v59, %v610_v60  ;;  %v15624_v8 = vcombine.high %v613_v1, %v617_v2  ;;  %v15626_v9 = vcombine.high %v614_v3, %v618_v4  ;;  %v15623_v14 = vcombine.low %v613_v1, %v617_v2  ;;  %v633_v19 = vld [vmem:[#allocation10 + $0x1e0] sm:$0xff]  ;;  %v630_v20 = vld [vmem:[#allocation10 + $0x1c8] sm:$0xff] }
 0x2a3   :  { %834 = vmatprep.subr.bf16.mxu1 %v831_v23  ;;  %877 = vmatprep.subr.bf16.mxu0 %v833_v24  ;;  %v15625_v15 = vcombine.low %v614_v3, %v618_v4  ;;  %v15632_v16 = vcombine.high %v621_v10, %v625_v11  ;;  %v15634_v17 = vcombine.high %v622_v12, %v626_v13  ;;  %v646_v36 = vld [vmem:[#allocation10 + $0x248] sm:$0xff]  ;;  %v657_v44 = vld [vmem:[#allocation10 + $0x2a0] sm:$0xff] }
 0x2a4   :  { %835 = vmatpush1.bf16.msra.mxu1 %v830_v21  ;;  %878 = vmatpush1.bf16.msra.mxu0 %v832_v22  ;;  %v634_v21 = vld [vmem:[#allocation10 + $0x1e8] sm:$0xff]  ;;  %v15631_v22 = vcombine.low %v621_v10, %v625_v11  ;;  %v15633_v23 = vcombine.low %v622_v12, %v626_v13  ;;  %v15640_v24 = vcombine.high %v629_v18, %v633_v19  ;;  %v665_v57 = vld [vmem:[#allocation10 + $0x2e0] sm:$0xff] }
 0x2a5   :  { %2245 = vmatprep.subr.bf16.mxu1 %v15584_v25  ;;  %2331 = vmatprep.subr.bf16.mxu0 %v15586_v26  ;;  %v15642_v25 = vcombine.high %v630_v20, %v634_v21  ;;  %v637_v26 = vld [vmem:[#allocation10 + $0x200] sm:$0xff]  ;;  %v15639_v30 = vcombine.low %v629_v18, %v633_v19  ;;  %v650_v37 = vld [vmem:[#allocation10 + $0x268] sm:$0xff] }
 0x2a6   :  { %v15647_v38 = vcombine.low %v637_v26, %v641_v27  ;;  %v654_v45 = vld [vmem:[#allocation10 + $0x288] sm:$0xff]  ;;  %v673_v1 = vld [vmem:[#allocation10 + $0x320] sm:$0xff] }
 0x2a7   :  { %15581 = vmatmul.mubr.msk.bf16.vlgmr.msra.gmra.mrb[4].mxu1 %vm252_vm1, %v18522_v6  ;;  %15582 = vmatmul.mubr.msk.bf16.vlgmr.msra.gmra.mrb[8].mxu0 %vm252_vm1, %v18522_v6  ;;  %v658_v49 = vld [vmem:[#allocation10 + $0x2a8] sm:$0xff]  ;;  %v681_v10 = vld [vmem:[#allocation10 + $0x360] sm:$0xff] }
 0x2a8   :  { %2246 = vmatpush1.bf16.msra.mxu1 %v15583_v31  ;;  %2332 = vmatpush1.bf16.msra.mxu0 %v15585_v32  ;;  %v15641_v31 = vcombine.low %v630_v20, %v634_v21  ;;  %v15648_v32 = vcombine.high %v637_v26, %v641_v27  ;;  %v662_v58 = vld [vmem:[#allocation10 + $0x2c8] sm:$0xff]  ;;  %v689_v18 = vld [vmem:[#allocation10 + $0x3a0] sm:$0xff] }
 0x2a9   :  { %2247 = vmatprep.subr.bf16.mxu1 %v15592_v33  ;;  %2333 = vmatprep.subr.bf16.mxu0 %v15594_v34  ;;  %v15650_v33 = vcombine.high %v638_v28, %v642_v29  ;;  %v645_v34 = vld [vmem:[#allocation10 + $0x240] sm:$0xff]  ;;  %v666_v59 = vld [vmem:[#allocation10 + $0x2e8] sm:$0xff] }
 0x2aa   :  { %v15655_v52 = vcombine.low %v645_v34, %v649_v35  ;;  %v670_v2 = vld [vmem:[#allocation10 + $0x308] sm:$0xff]  ;;  %v693_v27 = vld [vmem:[#allocation10 + $0x3c0] sm:$0xff] }
 0x2ab   :  { %v674_v3 = vld [vmem:[#allocation10 + $0x328] sm:$0xff] }
 0x2ac   :  { %2248 = vmatpush1.bf16.msra.mxu1 %v15591_v40  ;;  %2334 = vmatpush1.bf16.msra.mxu0 %v15593_v41  ;;  %v15649_v40 = vcombine.low %v638_v28, %v642_v29  ;;  %v15656_v41 = vcombine.high %v645_v34, %v649_v35  ;;  %v678_v11 = vld [vmem:[#allocation10 + $0x348] sm:$0xff]  ;;  %v697_v28 = vld [vmem:[#allocation10 + $0x3e0] sm:$0xff] }
 0x2ad   :  { %2249 = vmatprep.subr.bf16.mxu1 %v15600_v42  ;;  %2335 = vmatprep.subr.bf16.mxu0 %v15602_v43  ;;  %v15658_v42 = vcombine.high %v646_v36, %v650_v37  ;;  %v653_v43 = vld [vmem:[#allocation10 + $0x280] sm:$0xff]  ;;  %v682_v12 = vld [vmem:[#allocation10 + $0x368] sm:$0xff] }
 0x2ae   :  { %v15663_v60 = vcombine.low %v653_v43, %v657_v44  ;;  %v686_v19 = vld [vmem:[#allocation10 + $0x388] sm:$0xff]  ;;  %v701_v35 = vld [vmem:[#allocation10 + $0x400] sm:$0xff] }
 0x2af   :  { %v690_v20 = vld [vmem:[#allocation10 + $0x3a8] sm:$0xff] }
 0x2b0   :  { %2250 = vmatpush1.bf16.msra.mxu1 %v15599_v53  ;;  %2336 = vmatpush1.bf16.msra.mxu0 %v15601_v54  ;;  %v15657_v53 = vcombine.low %v646_v36, %v650_v37  ;;  %v15664_v54 = vcombine.high %v653_v43, %v657_v44  ;;  %v15697_v26 = vcombine.low %v686_v19, %v690_v20  ;;  %v694_v29 = vld [vmem:[#allocation10 + $0x3c8] sm:$0xff]  ;;  %v705_v36 = vld [vmem:[#allocation10 + $0x420] sm:$0xff] }
 0x2b1   :  { %2251 = vmatprep.subr.bf16.mxu1 %v15608_v55  ;;  %2337 = vmatprep.subr.bf16.mxu0 %v15610_v56  ;;  %v15666_v55 = vcombine.high %v654_v45, %v658_v49  ;;  %v661_v56 = vld [vmem:[#allocation10 + $0x2c0] sm:$0xff]  ;;  %v702_v37 = vld [vmem:[#allocation10 + $0x408] sm:$0xff] }
 0x2b2   :  { %v15671_v4 = vcombine.low %v661_v56, %v665_v57 }
 0x2b4   :  { %2252 = vmatpush1.bf16.msra.mxu1 %v15607_v61  ;;  %2338 = vmatpush1.bf16.msra.mxu0 %v15609_v62  ;;  %v15665_v61 = vcombine.low %v654_v45, %v658_v49  ;;  %v15672_v62 = vcombine.high %v661_v56, %v665_v57  ;;  %v710_v56 = vld [vmem:[#allocation10 + $0x448] sm:$0xff] }
 0x2b5   :  { %2253 = vmatprep.subr.bf16.mxu1 %v15616_v63  ;;  %2339 = vmatprep.subr.bf16.mxu0 %v15618_v0  ;;  %v15674_v63 = vcombine.high %v662_v58, %v666_v59  ;;  %v669_v0 = vld [vmem:[#allocation10 + $0x300] sm:$0xff]  ;;  %v714_v57 = vld [vmem:[#allocation10 + $0x468] sm:$0xff] }
 0x2b6   :  { %v15679_v13 = vcombine.low %v669_v0, %v673_v1 }
 0x2b8   :  { %2254 = vmatpush1.bf16.msra.mxu1 %v15615_v5  ;;  %2340 = vmatpush1.bf16.msra.mxu0 %v15617_v7  ;;  %v15673_v5 = vcombine.low %v662_v58, %v666_v59  ;;  %v15680_v7 = vcombine.high %v669_v0, %v673_v1 }
 0x2b9   :  { %2255 = vmatprep.subr.bf16.mxu1 %v15624_v8  ;;  %2341 = vmatprep.subr.bf16.mxu0 %v15626_v9  ;;  %v15682_v8 = vcombine.high %v670_v2, %v674_v3  ;;  %v677_v9 = vld [vmem:[#allocation10 + $0x340] sm:$0xff] }
 0x2ba   :  { %v15687_v21 = vcombine.low %v677_v9, %v681_v10 }
 0x2bc   :  { %2256 = vmatpush1.bf16.msra.mxu1 %v15623_v14  ;;  %2342 = vmatpush1.bf16.msra.mxu0 %v15625_v15  ;;  %v15681_v14 = vcombine.low %v670_v2, %v674_v3  ;;  %v15688_v15 = vcombine.high %v677_v9, %v681_v10  ;;  %v15722_v2 = vcombine.high %v710_v56, %v714_v57  ;;  %v717_v3 = vld [vmem:[#allocation10 + $0x480] sm:$0xff] }
 0x2bd   :  { %2257 = vmatprep.subr.bf16.mxu1 %v15632_v16  ;;  %2343 = vmatprep.subr.bf16.mxu0 %v15634_v17  ;;  %v15690_v16 = vcombine.high %v678_v11, %v682_v12  ;;  %v685_v17 = vld [vmem:[#allocation10 + $0x380] sm:$0xff]  ;;  %v15721_v9 = vcombine.low %v710_v56, %v714_v57 }
 0x2c0   :  { %2258 = vmatpush1.bf16.msra.mxu1 %v15631_v22  ;;  %2344 = vmatpush1.bf16.msra.mxu0 %v15633_v23  ;;  %v15689_v22 = vcombine.low %v678_v11, %v682_v12  ;;  %v15696_v23 = vcombine.high %v685_v17, %v689_v18  ;;  %v725_v12 = vld [vmem:[#allocation10 + $0x4c0] sm:$0xff] }
 0x2c1   :  { %2259 = vmatprep.subr.bf16.mxu1 %v15640_v24  ;;  %2345 = vmatprep.subr.bf16.mxu0 %v15642_v25  ;;  %v15698_v24 = vcombine.high %v686_v19, %v690_v20  ;;  %v15695_v25 = vcombine.low %v685_v17, %v689_v18  ;;  %v733_v20 = vld [vmem:[#allocation10 + $0x500] sm:$0xff] }
 0x2c4   :  { %2260 = vmatpush1.bf16.msra.mxu1 %v15639_v30  ;;  %2346 = vmatpush1.bf16.msra.mxu0 %v15641_v31  ;;  %v15704_v30 = vcombine.high %v693_v27, %v697_v28  ;;  %v698_v31 = vld [vmem:[#allocation10 + $0x3e8] sm:$0xff] }
 0x2c5   :  { %2261 = vmatprep.subr.bf16.mxu1 %v15648_v32  ;;  %2347 = vmatprep.subr.bf16.mxu0 %v15650_v33  ;;  %v15703_v32 = vcombine.low %v693_v27, %v697_v28  ;;  %v15705_v33 = vcombine.low %v694_v29, %v698_v31  ;;  %v15706_v34 = vcombine.high %v694_v29, %v698_v31  ;;  %v741_v28 = vld [vmem:[#allocation10 + $0x540] sm:$0xff]  ;;  %v746_v31 = vld [vmem:[#allocation10 + $0x568] sm:$0xff] }
 0x2c6   :  { %v745_v29 = vld [vmem:[#allocation10 + $0x560] sm:$0xff] }
 0x2c8   :  { %2262 = vmatpush1.bf16.msra.mxu1 %v15647_v38  ;;  %2348 = vmatpush1.bf16.msra.mxu0 %v15649_v40  ;;  %v15712_v38 = vcombine.high %v701_v35, %v705_v36  ;;  %v706_v40 = vld [vmem:[#allocation10 + $0x428] sm:$0xff] }
 0x2c9   :  { %2263 = vmatprep.subr.bf16.mxu1 %v15656_v41  ;;  %2349 = vmatprep.subr.bf16.mxu0 %v15658_v42  ;;  %v15711_v41 = vcombine.low %v701_v35, %v705_v36  ;;  %v15713_v42 = vcombine.low %v702_v37, %v706_v40  ;;  %v15714_v43 = vcombine.high %v702_v37, %v706_v40  ;;  %v749_v36 = vld [vmem:[#allocation10 + $0x580] sm:$0xff]  ;;  %v754_v40 = vld [vmem:[#allocation10 + $0x5a8] sm:$0xff] }
 0x2ca   :  { %v753_v37 = vld [vmem:[#allocation10 + $0x5a0] sm:$0xff] }
 0x2cc   :  { %2264 = vmatpush1.bf16.msra.mxu1 %v15655_v52  ;;  %2350 = vmatpush1.bf16.msra.mxu0 %v15657_v53  ;;  %v709_v52 = vld [vmem:[#allocation10 + $0x440] sm:$0xff] }
 0x2cd   :  { %2265 = vmatprep.subr.bf16.mxu1 %v15664_v54  ;;  %2351 = vmatprep.subr.bf16.mxu0 %v15666_v55  ;;  %v713_v55 = vld [vmem:[#allocation10 + $0x460] sm:$0xff] }
 0x2ce   :  { %v15720_v1 = vcombine.high %v709_v52, %v713_v55 }
 0x2d0   :  { %2266 = vmatpush1.bf16.msra.mxu1 %v15663_v60  ;;  %2352 = vmatpush1.bf16.msra.mxu0 %v15665_v61 }
 0x2d1   :  { %2267 = vmatprep.subr.bf16.mxu1 %v15672_v62  ;;  %2353 = vmatprep.subr.bf16.mxu0 %v15674_v63 }
 0x2d4   :  { %2268 = vmatpush1.bf16.msra.mxu1 %v15671_v4  ;;  %2354 = vmatpush1.bf16.msra.mxu0 %v15673_v5  ;;  %v721_v4 = vld [vmem:[#allocation10 + $0x4a0] sm:$0xff]  ;;  %v718_v5 = vld [vmem:[#allocation10 + $0x488] sm:$0xff] }
 0x2d5   :  { %2269 = vmatprep.subr.bf16.mxu1 %v15680_v7  ;;  %2355 = vmatprep.subr.bf16.mxu0 %v15682_v8  ;;  %v722_v7 = vld [vmem:[#allocation10 + $0x4a8] sm:$0xff]  ;;  %v15719_v8 = vcombine.low %v709_v52, %v713_v55  ;;  %v15728_v10 = vcombine.high %v717_v3, %v721_v4 }
 0x2d6   :  { %v15730_v11 = vcombine.high %v718_v5, %v722_v7  ;;  %v15729_v17 = vcombine.low %v718_v5, %v722_v7  ;;  %v758_v52 = vld [vmem:[#allocation10 + $0x5c8] sm:$0xff]  ;;  %v773_v7 = vld [vmem:[#allocation10 + $0x640] sm:$0xff] }
 0x2d8   :  { %2270 = vmatpush1.bf16.msra.mxu1 %v15679_v13  ;;  %2356 = vmatpush1.bf16.msra.mxu0 %v15681_v14  ;;  %v729_v13 = vld [vmem:[#allocation10 + $0x4e0] sm:$0xff]  ;;  %v726_v14 = vld [vmem:[#allocation10 + $0x4c8] sm:$0xff] }
 0x2d9   :  { %2271 = vmatprep.subr.bf16.mxu1 %v15688_v15  ;;  %2357 = vmatprep.subr.bf16.mxu0 %v15690_v16  ;;  %v730_v15 = vld [vmem:[#allocation10 + $0x4e8] sm:$0xff]  ;;  %v15727_v16 = vcombine.low %v717_v3, %v721_v4  ;;  %v15736_v18 = vcombine.high %v725_v12, %v729_v13 }
 0x2da   :  { %v15738_v19 = vcombine.high %v726_v14, %v730_v15 }
 0x2dc   :  { %2272 = vmatpush1.bf16.msra.mxu1 %v15687_v21  ;;  %2358 = vmatpush1.bf16.msra.mxu0 %v15689_v22  ;;  %v737_v21 = vld [vmem:[#allocation10 + $0x520] sm:$0xff]  ;;  %v734_v22 = vld [vmem:[#allocation10 + $0x508] sm:$0xff] }
 0x2dd   :  { %2273 = vmatprep.subr.bf16.mxu1 %v15696_v23  ;;  %2359 = vmatprep.subr.bf16.mxu0 %v15698_v24  ;;  %v738_v23 = vld [vmem:[#allocation10 + $0x528] sm:$0xff]  ;;  %v15735_v24 = vcombine.low %v725_v12, %v729_v13 }
 0x2de   :  { %v15746_v27 = vcombine.high %v734_v22, %v738_v23 }
 0x2e0   :  { %2274 = vmatpush1.bf16.msra.mxu1 %v15695_v25  ;;  %2360 = vmatpush1.bf16.msra.mxu0 %v15697_v26  ;;  %v15737_v25 = vcombine.low %v726_v14, %v730_v15  ;;  %v15744_v26 = vcombine.high %v733_v20, %v737_v21  ;;  %v781_v15 = vld [vmem:[#allocation10 + $0x680] sm:$0xff] }
 0x2e1   :  { %2275 = vmatprep.subr.bf16.mxu1 %v15704_v30  ;;  %2361 = vmatprep.subr.bf16.mxu0 %v15706_v34  ;;  %v742_v30 = vld [vmem:[#allocation10 + $0x548] sm:$0xff]  ;;  %v15752_v34 = vcombine.high %v741_v28, %v745_v29 }
 0x2e2   :  { %v15754_v35 = vcombine.high %v742_v30, %v746_v31 }
 0x2e4   :  { %2276 = vmatpush1.bf16.msra.mxu1 %v15703_v32  ;;  %2362 = vmatpush1.bf16.msra.mxu0 %v15705_v33  ;;  %v15743_v32 = vcombine.low %v733_v20, %v737_v21  ;;  %v15745_v33 = vcombine.low %v734_v22, %v738_v23  ;;  %v789_v23 = vld [vmem:[#allocation10 + $0x6c0] sm:$0xff] }
 0x2e5   :  { %2288 = vmatprep.subr.bf16.mxu1 %v15712_v38  ;;  %2374 = vmatprep.subr.bf16.mxu0 %v15714_v43  ;;  %v750_v38 = vld [vmem:[#allocation10 + $0x588] sm:$0xff]  ;;  %v15760_v43 = vcombine.high %v749_v36, %v753_v37 }
 0x2e6   :  { %v15761_v55 = vcombine.low %v750_v38, %v754_v40 }
 0x37a   :  { %v868_v44 = vpop.f32.mrb[4].mxu1  ;;  %v911_v45 = vpop.f32.mrb[8].mxu0 }
 0x37b   :  { %v870_v49 = vpop.f32.mrb[5].mxu1  ;;  %v913_v53 = vpop.f32.mrb[9].mxu0 }
 0x37c   :  { %v872_v54 = vpop.f32.mrb[6].mxu1  ;;  %v915_v58 = vpop.f32.mrb[10].mxu0 }
 0x37d   :  { %v18552_v59 = vpack.c.bf16 %v872_v54, %v868_v44  ;;  %v874_v60 = vpop.f32.mrb[7].mxu1  ;;  %v18554_v61 = vpack.c.bf16 %v915_v58, %v911_v45  ;;  %v917_v62 = vpop.f32.mrb[11].mxu0  ;;  %v15762_v44 = vcombine.high %v750_v38, %v754_v40  ;;  %v757_v45 = vld [vmem:[#allocation10 + $0x5c0] sm:$0xff]  ;;  %v15759_v54 = vcombine.low %v749_v36, %v753_v37 }
 0x37e   :  { %v18556_v63 = vpack.c.bf16 %v874_v60, %v870_v49  ;;  %v18558_v0 = vpack.c.bf16 %v917_v62, %v913_v53  ;;  %v761_v49 = vld [vmem:[#allocation10 + $0x5e0] sm:$0xff]  ;;  %v762_v53 = vld [vmem:[#allocation10 + $0x5e8] sm:$0xff] }
 0x37f   :  { %v15768_v56 = vcombine.high %v757_v45, %v761_v49  ;;  %v15770_v57 = vcombine.high %v758_v52, %v762_v53  ;;  %v765_v58 = vld [vmem:[#allocation10 + $0x600] sm:$0xff]  ;;  %v766_v62 = vld [vmem:[#allocation10 + $0x608] sm:$0xff]  ;;  %v15769_v3 = vcombine.low %v758_v52, %v762_v53 }
 0x380   :  { %2277 = vmatprep.mubr.bf16.mxu1 %v18556_v63  ;;  %2363 = vmatprep.mubr.bf16.mxu0 %v18556_v63  ;;  %v769_v60 = vld [vmem:[#allocation10 + $0x620] sm:$0xff] }
 0x381   :  { %2278 = vmatmul.mubr.bf16.vlgmr.msra.gmra.mrb[8].mxu1 %v18552_v59  ;;  %2364 = vmatmul.mubr.bf16.vlgmr.msra.gmra.mrb[12].mxu0 %v18552_v59  ;;  %v15776_v4 = vcombine.high %v765_v58, %v769_v60  ;;  %v805_v40 = vld [vmem:[#allocation10 + $0x740] sm:$0xff] }
 0x382   :  { %2289 = vmatpush1.bf16.msra.mxu1 %v15711_v41  ;;  %2375 = vmatpush1.bf16.msra.mxu0 %v15713_v42  ;;  %v15751_v41 = vcombine.low %v741_v28, %v745_v29  ;;  %v15753_v42 = vcombine.low %v742_v30, %v746_v31  ;;  %v797_v31 = vld [vmem:[#allocation10 + $0x700] sm:$0xff] }
 0x383   :  { %2290 = vmatprep.subr.bf16.mxu1 %v15720_v1  ;;  %2376 = vmatprep.subr.bf16.mxu0 %v15722_v2  ;;  %v770_v1 = vld [vmem:[#allocation10 + $0x628] sm:$0xff]  ;;  %v15767_v2 = vcombine.low %v757_v45, %v761_v49  ;;  %v813_v53 = vld [vmem:[#allocation10 + $0x780] sm:$0xff] }
 0x384   :  { %2320 = vmatprep.mubr.bf16.mxu1 %v18558_v0  ;;  %2406 = vmatprep.mubr.bf16.mxu0 %v18558_v0  ;;  %v15778_v5 = vcombine.high %v766_v62, %v770_v1  ;;  %v15777_v12 = vcombine.low %v766_v62, %v770_v1  ;;  %v821_v1 = vld [vmem:[#allocation10 + $0x7c0] sm:$0xff] }
 0x386   :  { %2291 = vmatpush1.bf16.msra.mxu1 %v15719_v8  ;;  %2377 = vmatpush1.bf16.msra.mxu0 %v15721_v9  ;;  %v777_v8 = vld [vmem:[#allocation10 + $0x660] sm:$0xff]  ;;  %v774_v9 = vld [vmem:[#allocation10 + $0x648] sm:$0xff] }
 0x387   :  { %2292 = vmatprep.subr.bf16.mxu1 %v15728_v10  ;;  %2378 = vmatprep.subr.bf16.mxu0 %v15730_v11  ;;  %v778_v10 = vld [vmem:[#allocation10 + $0x668] sm:$0xff]  ;;  %v15775_v11 = vcombine.low %v765_v58, %v769_v60  ;;  %v15784_v13 = vcombine.high %v773_v7, %v777_v8 }
 0x388   :  { %v15786_v14 = vcombine.high %v774_v9, %v778_v10  ;;  %v15785_v20 = vcombine.low %v774_v9, %v778_v10  ;;  %v575_v10 = vld [vmem:[#allocation10 + $0x10] sm:$0xff] }
 0x38a   :  { %2293 = vmatpush1.bf16.msra.mxu1 %v15727_v16  ;;  %2379 = vmatpush1.bf16.msra.mxu0 %v15729_v17  ;;  %v785_v16 = vld [vmem:[#allocation10 + $0x6a0] sm:$0xff]  ;;  %v782_v17 = vld [vmem:[#allocation10 + $0x688] sm:$0xff] }
 0x38b   :  { %2294 = vmatprep.subr.bf16.mxu1 %v15736_v18  ;;  %2380 = vmatprep.subr.bf16.mxu0 %v15738_v19  ;;  %v786_v18 = vld [vmem:[#allocation10 + $0x6a8] sm:$0xff]  ;;  %v15783_v19 = vcombine.low %v773_v7, %v777_v8  ;;  %v15792_v21 = vcombine.high %v781_v15, %v785_v16 }
 0x38c   :  { %v15794_v22 = vcombine.high %v782_v17, %v786_v18  ;;  %v15793_v28 = vcombine.low %v782_v17, %v786_v18  ;;  %v583_v18 = vld [vmem:[#allocation10 + $0x50] sm:$0xff] }
 0x38e   :  { %2295 = vmatpush1.bf16.msra.mxu1 %v15735_v24  ;;  %2381 = vmatpush1.bf16.msra.mxu0 %v15737_v25  ;;  %v793_v24 = vld [vmem:[#allocation10 + $0x6e0] sm:$0xff]  ;;  %v790_v25 = vld [vmem:[#allocation10 + $0x6c8] sm:$0xff] }
 0x38f   :  { %2296 = vmatprep.subr.bf16.mxu1 %v15744_v26  ;;  %2382 = vmatprep.subr.bf16.mxu0 %v15746_v27  ;;  %v794_v26 = vld [vmem:[#allocation10 + $0x6e8] sm:$0xff]  ;;  %v15791_v27 = vcombine.low %v781_v15, %v785_v16  ;;  %v15800_v29 = vcombine.high %v789_v23, %v793_v24 }
 0x390   :  { %v15802_v30 = vcombine.high %v790_v25, %v794_v26  ;;  %v15801_v36 = vcombine.low %v790_v25, %v794_v26  ;;  %v591_v26 = vld [vmem:[#allocation10 + $0x90] sm:$0xff] }
 0x392   :  { %2297 = vmatpush1.bf16.msra.mxu1 %v15743_v32  ;;  %2383 = vmatpush1.bf16.msra.mxu0 %v15745_v33  ;;  %v801_v32 = vld [vmem:[#allocation10 + $0x720] sm:$0xff]  ;;  %v798_v33 = vld [vmem:[#allocation10 + $0x708] sm:$0xff] }
 0x393   :  { %2298 = vmatprep.subr.bf16.mxu1 %v15752_v34  ;;  %2384 = vmatprep.subr.bf16.mxu0 %v15754_v35  ;;  %v802_v34 = vld [vmem:[#allocation10 + $0x728] sm:$0xff]  ;;  %v15799_v35 = vcombine.low %v789_v23, %v793_v24  ;;  %v15808_v37 = vcombine.high %v797_v31, %v801_v32 }
 0x394   :  { %v15810_v38 = vcombine.high %v798_v33, %v802_v34  ;;  %v15809_v45 = vcombine.low %v798_v33, %v802_v34  ;;  %v599_v34 = vld [vmem:[#allocation10 + $0xd0] sm:$0xff] }
 0x396   :  { %2299 = vmatpush1.bf16.msra.mxu1 %v15751_v41  ;;  %2385 = vmatpush1.bf16.msra.mxu0 %v15753_v42  ;;  %v809_v41 = vld [vmem:[#allocation10 + $0x760] sm:$0xff]  ;;  %v806_v42 = vld [vmem:[#allocation10 + $0x748] sm:$0xff] }
 0x397   :  { %2300 = vmatprep.subr.bf16.mxu1 %v15760_v43  ;;  %2386 = vmatprep.subr.bf16.mxu0 %v15762_v44  ;;  %v810_v43 = vld [vmem:[#allocation10 + $0x768] sm:$0xff]  ;;  %v15807_v44 = vcombine.low %v797_v31, %v801_v32  ;;  %v15816_v49 = vcombine.high %v805_v40, %v809_v41 }
 0x398   :  { %v15818_v52 = vcombine.high %v806_v42, %v810_v43  ;;  %v15817_v58 = vcombine.low %v806_v42, %v810_v43  ;;  %v607_v43 = vld [vmem:[#allocation10 + $0x110] sm:$0xff] }
 0x39a   :  { %2301 = vmatpush1.bf16.msra.mxu1 %v15759_v54  ;;  %2387 = vmatpush1.bf16.msra.mxu0 %v15761_v55  ;;  %v817_v54 = vld [vmem:[#allocation10 + $0x7a0] sm:$0xff]  ;;  %v814_v55 = vld [vmem:[#allocation10 + $0x788] sm:$0xff] }
 0x39b   :  { %2302 = vmatprep.subr.bf16.mxu1 %v15768_v56  ;;  %2388 = vmatprep.subr.bf16.mxu0 %v15770_v57  ;;  %v818_v56 = vld [vmem:[#allocation10 + $0x7a8] sm:$0xff]  ;;  %v15815_v57 = vcombine.low %v805_v40, %v809_v41  ;;  %v15824_v60 = vcombine.high %v813_v53, %v817_v54 }
 0x39c   :  { %v15826_v62 = vcombine.high %v814_v55, %v818_v56  ;;  %v15825_v7 = vcombine.low %v814_v55, %v818_v56  ;;  %v615_v55 = vld [vmem:[#allocation10 + $0x150] sm:$0xff] }
 0x39d   :  { %v619_v56 = vld [vmem:[#allocation10 + $0x170] sm:$0xff] }
 0x39e   :  { %2303 = vmatpush1.bf16.msra.mxu1 %v15767_v2  ;;  %2389 = vmatpush1.bf16.msra.mxu0 %v15769_v3  ;;  %v825_v2 = vld [vmem:[#allocation10 + $0x7e0] sm:$0xff]  ;;  %v822_v3 = vld [vmem:[#allocation10 + $0x7c8] sm:$0xff] }
 0x39f   :  { %2304 = vmatprep.subr.bf16.mxu1 %v15776_v4  ;;  %2390 = vmatprep.subr.bf16.mxu0 %v15778_v5  ;;  %v826_v4 = vld [vmem:[#allocation10 + $0x7e8] sm:$0xff]  ;;  %v15823_v5 = vcombine.low %v813_v53, %v817_v54  ;;  %v15832_v8 = vcombine.high %v821_v1, %v825_v2 }
 0x3a0   :  { %v15834_v9 = vcombine.high %v822_v3, %v826_v4  ;;  %v15833_v15 = vcombine.low %v822_v3, %v826_v4  ;;  %v623_v3 = vld [vmem:[#allocation10 + $0x190] sm:$0xff] }
 0x3a1   :  { %v627_v4 = vld [vmem:[#allocation10 + $0x1b0] sm:$0xff] }
 0x3a2   :  { %2305 = vmatpush1.bf16.msra.mxu1 %v15775_v11  ;;  %2391 = vmatpush1.bf16.msra.mxu0 %v15777_v12  ;;  %v579_v11 = vld [vmem:[#allocation10 + $0x30] sm:$0xff]  ;;  %v576_v12 = vld [vmem:[#allocation10 + $0x18] sm:$0xff] }
 0x3a3   :  { %2306 = vmatprep.subr.bf16.mxu1 %v15784_v13  ;;  %2392 = vmatprep.subr.bf16.mxu0 %v15786_v14  ;;  %v580_v13 = vld [vmem:[#allocation10 + $0x38] sm:$0xff]  ;;  %v15831_v14 = vcombine.low %v821_v1, %v825_v2  ;;  %v15588_v16 = vcombine.high %v575_v10, %v579_v11  ;;  %v15628_v1 = vcombine.high %v615_v55, %v619_v56 }
 0x3a4   :  { %v15590_v17 = vcombine.high %v576_v12, %v580_v13  ;;  %v15589_v23 = vcombine.low %v576_v12, %v580_v13  ;;  %v631_v12 = vld [vmem:[#allocation10 + $0x1d0] sm:$0xff] }
 0x3a5   :  { %v635_v13 = vld [vmem:[#allocation10 + $0x1f0] sm:$0xff] }
 0x3a6   :  { %2307 = vmatpush1.bf16.msra.mxu1 %v15783_v19  ;;  %2393 = vmatpush1.bf16.msra.mxu0 %v15785_v20  ;;  %v587_v19 = vld [vmem:[#allocation10 + $0x70] sm:$0xff]  ;;  %v584_v20 = vld [vmem:[#allocation10 + $0x58] sm:$0xff] }
 0x3a7   :  { %2308 = vmatprep.subr.bf16.mxu1 %v15792_v21  ;;  %2394 = vmatprep.subr.bf16.mxu0 %v15794_v22  ;;  %v588_v21 = vld [vmem:[#allocation10 + $0x78] sm:$0xff]  ;;  %v15587_v22 = vcombine.low %v575_v10, %v579_v11  ;;  %v15596_v24 = vcombine.high %v583_v18, %v587_v19  ;;  %v15636_v10 = vcombine.high %v623_v3, %v627_v4 }
 0x3a8   :  { %v15598_v25 = vcombine.high %v584_v20, %v588_v21  ;;  %v15597_v31 = vcombine.low %v584_v20, %v588_v21  ;;  %v639_v20 = vld [vmem:[#allocation10 + $0x210] sm:$0xff] }
 0x3a9   :  { %v643_v21 = vld [vmem:[#allocation10 + $0x230] sm:$0xff] }
 0x3aa   :  { %2309 = vmatpush1.bf16.msra.mxu1 %v15791_v27  ;;  %2395 = vmatpush1.bf16.msra.mxu0 %v15793_v28  ;;  %v595_v27 = vld [vmem:[#allocation10 + $0xb0] sm:$0xff]  ;;  %v592_v28 = vld [vmem:[#allocation10 + $0x98] sm:$0xff] }
 0x3ab   :  { %2310 = vmatprep.subr.bf16.mxu1 %v15800_v29  ;;  %2396 = vmatprep.subr.bf16.mxu0 %v15802_v30  ;;  %v596_v29 = vld [vmem:[#allocation10 + $0xb8] sm:$0xff]  ;;  %v15595_v30 = vcombine.low %v583_v18, %v587_v19  ;;  %v15604_v32 = vcombine.high %v591_v26, %v595_v27  ;;  %v15644_v18 = vcombine.high %v631_v12, %v635_v13 }
 0x3ac   :  { %v15606_v33 = vcombine.high %v592_v28, %v596_v29  ;;  %v15605_v40 = vcombine.low %v592_v28, %v596_v29  ;;  %v647_v28 = vld [vmem:[#allocation10 + $0x250] sm:$0xff] }
 0x3ad   :  { %v651_v29 = vld [vmem:[#allocation10 + $0x270] sm:$0xff] }
 0x3ae   :  { %2311 = vmatpush1.bf16.msra.mxu1 %v15799_v35  ;;  %2397 = vmatpush1.bf16.msra.mxu0 %v15801_v36  ;;  %v603_v35 = vld [vmem:[#allocation10 + $0xf0] sm:$0xff]  ;;  %v600_v36 = vld [vmem:[#allocation10 + $0xd8] sm:$0xff] }
 0x3af   :  { %2312 = vmatprep.subr.bf16.mxu1 %v15808_v37  ;;  %2398 = vmatprep.subr.bf16.mxu0 %v15810_v38  ;;  %v604_v37 = vld [vmem:[#allocation10 + $0xf8] sm:$0xff]  ;;  %v15603_v38 = vcombine.low %v591_v26, %v595_v27  ;;  %v15612_v41 = vcombine.high %v599_v34, %v603_v35  ;;  %v15652_v26 = vcombine.high %v639_v20, %v643_v21 }
 0x3b0   :  { %v15614_v42 = vcombine.high %v600_v36, %v604_v37 }
 0x3b2   :  { %2313 = vmatpush1.bf16.msra.mxu1 %v15807_v44  ;;  %2399 = vmatpush1.bf16.msra.mxu0 %v15809_v45  ;;  %v611_v44 = vld [vmem:[#allocation10 + $0x130] sm:$0xff]  ;;  %v612_v45 = vld [vmem:[#allocation10 + $0x138] sm:$0xff] }
 0x3b3   :  { %2314 = vmatprep.subr.bf16.mxu1 %v15816_v49  ;;  %2400 = vmatprep.subr.bf16.mxu0 %v15818_v52  ;;  %v15611_v49 = vcombine.low %v599_v34, %v603_v35  ;;  %v15613_v52 = vcombine.low %v600_v36, %v604_v37  ;;  %v15620_v53 = vcombine.high %v607_v43, %v611_v44  ;;  %v655_v36 = vld [vmem:[#allocation10 + $0x290] sm:$0xff] }
 0x3b4   :  { %v15660_v34 = vcombine.high %v647_v28, %v651_v29  ;;  %v659_v37 = vld [vmem:[#allocation10 + $0x2b0] sm:$0xff] }
 0x3b6   :  { %2315 = vmatpush1.bf16.msra.mxu1 %v15815_v57  ;;  %2401 = vmatpush1.bf16.msra.mxu0 %v15817_v58  ;;  %v616_v57 = vld [vmem:[#allocation10 + $0x158] sm:$0xff] }
 0x3b7   :  { %2316 = vmatprep.subr.bf16.mxu1 %v15824_v60  ;;  %2402 = vmatprep.subr.bf16.mxu0 %v15826_v62  ;;  %v620_v58 = vld [vmem:[#allocation10 + $0x178] sm:$0xff]  ;;  %v15619_v60 = vcombine.low %v607_v43, %v611_v44  ;;  %v15668_v43 = vcombine.high %v655_v36, %v659_v37 }
 0x3b8   :  { %v15630_v2 = vcombine.high %v616_v57, %v620_v58 }
 0x3ba   :  { %2317 = vmatpush1.bf16.msra.mxu1 %v15823_v5  ;;  %2403 = vmatpush1.bf16.msra.mxu0 %v15825_v7  ;;  %v624_v5 = vld [vmem:[#allocation10 + $0x198] sm:$0xff] }
 0x3bb   :  { %2318 = vmatprep.subr.bf16.mxu1 %v15832_v8  ;;  %2404 = vmatprep.subr.bf16.mxu0 %v15834_v9  ;;  %v628_v7 = vld [vmem:[#allocation10 + $0x1b8] sm:$0xff]  ;;  %v15627_v8 = vcombine.low %v615_v55, %v619_v56  ;;  %v15629_v9 = vcombine.low %v616_v57, %v620_v58  ;;  %v671_v57 = vld [vmem:[#allocation10 + $0x310] sm:$0xff] }
 0x3bc   :  { %v15638_v11 = vcombine.high %v624_v5, %v628_v7  ;;  %v675_v58 = vld [vmem:[#allocation10 + $0x330] sm:$0xff] }
 0x3be   :  { %2319 = vmatpush1.bf16.msra.mxu1 %v15831_v14  ;;  %2405 = vmatpush1.bf16.msra.mxu0 %v15833_v15  ;;  %v632_v14 = vld [vmem:[#allocation10 + $0x1d8] sm:$0xff] }
 0x3bf   :  { %2417 = vmatprep.subr.bf16.mxu1 %v15588_v16  ;;  %2503 = vmatprep.subr.bf16.mxu0 %v15590_v17  ;;  %v636_v15 = vld [vmem:[#allocation10 + $0x1f8] sm:$0xff]  ;;  %v15635_v16 = vcombine.low %v623_v3, %v627_v4  ;;  %v15637_v17 = vcombine.low %v624_v5, %v628_v7  ;;  %v15684_v3 = vcombine.high %v671_v57, %v675_v58  ;;  %v679_v5 = vld [vmem:[#allocation10 + $0x350] sm:$0xff] }
 0x3c0   :  { %v15646_v19 = vcombine.high %v632_v14, %v636_v15  ;;  %v683_v7 = vld [vmem:[#allocation10 + $0x370] sm:$0xff] }
 0x3c1   :  { %2321 = vmatmul.mubr.bf16.vlgmr.msra.gmra.mrb[8].mxu1 %v18554_v61  ;;  %2407 = vmatmul.mubr.bf16.vlgmr.msra.gmra.mrb[12].mxu0 %v18554_v61 }
 0x3c2   :  { %2418 = vmatpush1.bf16.msra.mxu1 %v15587_v22  ;;  %2449 = vmatprep.mubr.bf16.mxu1 %v18556_v63  ;;  %v640_v22 = vld [vmem:[#allocation10 + $0x218] sm:$0xff] }
 0x3c3   :  { %2504 = vmatpush1.bf16.msra.mxu0 %v15589_v23  ;;  %2535 = vmatprep.mubr.bf16.mxu0 %v18556_v63  ;;  %v608_v63 = vld [vmem:[#allocation10 + $0x118] sm:$0xff] }
 0x3c4   :  { %2419 = vmatprep.subr.bf16.mxu1 %v15596_v24  ;;  %2505 = vmatprep.subr.bf16.mxu0 %v15598_v25  ;;  %v15622_v54 = vcombine.high %v608_v63, %v612_v45  ;;  %v15621_v62 = vcombine.low %v608_v63, %v612_v45  ;;  %v644_v23 = vld [vmem:[#allocation10 + $0x238] sm:$0xff]  ;;  %v15643_v24 = vcombine.low %v631_v12, %v635_v13  ;;  %v663_v63 = vld [vmem:[#allocation10 + $0x2d0] sm:$0xff] }
 0x3c5   :  { %v15645_v25 = vcombine.low %v632_v14, %v636_v15  ;;  %v15654_v27 = vcombine.high %v640_v22, %v644_v23  ;;  %v667_v45 = vld [vmem:[#allocation10 + $0x2f0] sm:$0xff]  ;;  %v15692_v12 = vcombine.high %v679_v5, %v683_v7 }
 0x3c6   :  { %2420 = vmatpush1.bf16.msra.mxu1 %v15595_v30  ;;  %v648_v30 = vld [vmem:[#allocation10 + $0x258] sm:$0xff]  ;;  %v15676_v55 = vcombine.high %v663_v63, %v667_v45  ;;  %v687_v14 = vld [vmem:[#allocation10 + $0x390] sm:$0xff] }
 0x3c7   :  { %2506 = vmatpush1.bf16.msra.mxu0 %v15597_v31  ;;  %2421 = vmatprep.subr.bf16.mxu1 %v15604_v32  ;;  %v652_v31 = vld [vmem:[#allocation10 + $0x278] sm:$0xff]  ;;  %v15651_v32 = vcombine.low %v639_v20, %v643_v21  ;;  %v691_v15 = vld [vmem:[#allocation10 + $0x3b0] sm:$0xff] }
 0x3c8   :  { %2507 = vmatprep.subr.bf16.mxu0 %v15606_v33  ;;  %v15653_v33 = vcombine.low %v640_v22, %v644_v23  ;;  %v15662_v35 = vcombine.high %v648_v30, %v652_v31  ;;  %v15700_v20 = vcombine.high %v687_v14, %v691_v15  ;;  %v695_v22 = vld [vmem:[#allocation10 + $0x3d0] sm:$0xff] }
 0x3c9   :  { %v699_v23 = vld [vmem:[#allocation10 + $0x3f0] sm:$0xff] }
 0x3ca   :  { %2422 = vmatpush1.bf16.msra.mxu1 %v15603_v38  ;;  %v656_v38 = vld [vmem:[#allocation10 + $0x298] sm:$0xff] }
 0x3cb   :  { %2508 = vmatpush1.bf16.msra.mxu0 %v15605_v40  ;;  %2423 = vmatprep.subr.bf16.mxu1 %v15612_v41  ;;  %v660_v40 = vld [vmem:[#allocation10 + $0x2b8] sm:$0xff]  ;;  %v15659_v41 = vcombine.low %v647_v28, %v651_v29  ;;  %v15708_v28 = vcombine.high %v695_v22, %v699_v23 }
 0x3cc   :  { %2509 = vmatprep.subr.bf16.mxu0 %v15614_v42  ;;  %v15661_v42 = vcombine.low %v648_v30, %v652_v31  ;;  %v15670_v44 = vcombine.high %v656_v38, %v660_v40  ;;  %v703_v30 = vld [vmem:[#allocation10 + $0x410] sm:$0xff] }
 0x3cd   :  { %v707_v31 = vld [vmem:[#allocation10 + $0x430] sm:$0xff] }
 0x3ce   :  { %2424 = vmatpush1.bf16.msra.mxu1 %v15611_v49  ;;  %v664_v49 = vld [vmem:[#allocation10 + $0x2d8] sm:$0xff] }
 0x3cf   :  { %2510 = vmatpush1.bf16.msra.mxu0 %v15613_v52  ;;  %2425 = vmatprep.subr.bf16.mxu1 %v15620_v53  ;;  %v668_v52 = vld [vmem:[#allocation10 + $0x2f8] sm:$0xff]  ;;  %v15667_v53 = vcombine.low %v655_v36, %v659_v37  ;;  %v15716_v36 = vcombine.high %v703_v30, %v707_v31 }
 0x3d0   :  { %2511 = vmatprep.subr.bf16.mxu0 %v15622_v54  ;;  %v15669_v54 = vcombine.low %v656_v38, %v660_v40  ;;  %v15678_v56 = vcombine.high %v664_v49, %v668_v52  ;;  %v711_v38 = vld [vmem:[#allocation10 + $0x450] sm:$0xff] }
 0x3d1   :  { %v715_v40 = vld [vmem:[#allocation10 + $0x470] sm:$0xff] }
 0x3d2   :  { %2426 = vmatpush1.bf16.msra.mxu1 %v15619_v60  ;;  %v672_v60 = vld [vmem:[#allocation10 + $0x318] sm:$0xff] }
 0x3d3   :  { %2512 = vmatpush1.bf16.msra.mxu0 %v15621_v62  ;;  %2427 = vmatprep.subr.bf16.mxu1 %v15628_v1  ;;  %v676_v62 = vld [vmem:[#allocation10 + $0x338] sm:$0xff]  ;;  %v15675_v1 = vcombine.low %v663_v63, %v667_v45  ;;  %v15724_v63 = vcombine.high %v711_v38, %v715_v40  ;;  %v719_v45 = vld [vmem:[#allocation10 + $0x490] sm:$0xff] }
 0x3d4   :  { %2513 = vmatprep.subr.bf16.mxu0 %v15630_v2  ;;  %v15677_v2 = vcombine.low %v664_v49, %v668_v52  ;;  %v15686_v4 = vcombine.high %v672_v60, %v676_v62  ;;  %v723_v49 = vld [vmem:[#allocation10 + $0x4b0] sm:$0xff] }
 0x3d6   :  { %2428 = vmatpush1.bf16.msra.mxu1 %v15627_v8  ;;  %v680_v8 = vld [vmem:[#allocation10 + $0x358] sm:$0xff] }
 0x3d7   :  { %2514 = vmatpush1.bf16.msra.mxu0 %v15629_v9  ;;  %2429 = vmatprep.subr.bf16.mxu1 %v15636_v10  ;;  %v684_v9 = vld [vmem:[#allocation10 + $0x378] sm:$0xff]  ;;  %v15683_v10 = vcombine.low %v671_v57, %v675_v58  ;;  %v15732_v57 = vcombine.high %v719_v45, %v723_v49 }
 0x3d8   :  { %2515 = vmatprep.subr.bf16.mxu0 %v15638_v11  ;;  %v15685_v11 = vcombine.low %v672_v60, %v676_v62  ;;  %v15694_v13 = vcombine.high %v680_v8, %v684_v9  ;;  %v727_v60 = vld [vmem:[#allocation10 + $0x4d0] sm:$0xff] }
 0x3d9   :  { %v731_v62 = vld [vmem:[#allocation10 + $0x4f0] sm:$0xff] }
 0x3da   :  { %2430 = vmatpush1.bf16.msra.mxu1 %v15635_v16  ;;  %v688_v16 = vld [vmem:[#allocation10 + $0x398] sm:$0xff] }
 0x3db   :  { %2516 = vmatpush1.bf16.msra.mxu0 %v15637_v17  ;;  %2431 = vmatprep.subr.bf16.mxu1 %v15644_v18  ;;  %v692_v17 = vld [vmem:[#allocation10 + $0x3b8] sm:$0xff]  ;;  %v15691_v18 = vcombine.low %v679_v5, %v683_v7  ;;  %v735_v7 = vld [vmem:[#allocation10 + $0x510] sm:$0xff] }
 0x3dc   :  { %2517 = vmatprep.subr.bf16.mxu0 %v15646_v19  ;;  %v15693_v19 = vcombine.low %v680_v8, %v684_v9  ;;  %v15702_v21 = vcombine.high %v688_v16, %v692_v17  ;;  %v739_v8 = vld [vmem:[#allocation10 + $0x530] sm:$0xff]  ;;  %v736_v9 = vld [vmem:[#allocation10 + $0x518] sm:$0xff] }
 0x3de   :  { %2432 = vmatpush1.bf16.msra.mxu1 %v15643_v24  ;;  %v696_v24 = vld [vmem:[#allocation10 + $0x3d8] sm:$0xff] }
 0x3df   :  { %2518 = vmatpush1.bf16.msra.mxu0 %v15645_v25  ;;  %2433 = vmatprep.subr.bf16.mxu1 %v15652_v26  ;;  %v700_v25 = vld [vmem:[#allocation10 + $0x3f8] sm:$0xff]  ;;  %v15699_v26 = vcombine.low %v687_v14, %v691_v15  ;;  %v743_v14 = vld [vmem:[#allocation10 + $0x550] sm:$0xff] }
 0x3e0   :  { %2519 = vmatprep.subr.bf16.mxu0 %v15654_v27  ;;  %v15701_v27 = vcombine.low %v688_v16, %v692_v17  ;;  %v15710_v29 = vcombine.high %v696_v24, %v700_v25  ;;  %v747_v15 = vld [vmem:[#allocation10 + $0x570] sm:$0xff]  ;;  %v744_v16 = vld [vmem:[#allocation10 + $0x558] sm:$0xff] }
 0x3e1   :  { %v748_v17 = vld [vmem:[#allocation10 + $0x578] sm:$0xff] }
 0x3e2   :  { %2434 = vmatpush1.bf16.msra.mxu1 %v15651_v32  ;;  %v704_v32 = vld [vmem:[#allocation10 + $0x418] sm:$0xff] }
 0x3e3   :  { %2520 = vmatpush1.bf16.msra.mxu0 %v15653_v33  ;;  %2435 = vmatprep.subr.bf16.mxu1 %v15660_v34  ;;  %v708_v33 = vld [vmem:[#allocation10 + $0x438] sm:$0xff]  ;;  %v15707_v34 = vcombine.low %v695_v22, %v699_v23  ;;  %v751_v22 = vld [vmem:[#allocation10 + $0x590] sm:$0xff] }
 0x3e4   :  { %2521 = vmatprep.subr.bf16.mxu0 %v15662_v35  ;;  %v15709_v35 = vcombine.low %v696_v24, %v700_v25  ;;  %v15718_v37 = vcombine.high %v704_v32, %v708_v33  ;;  %v755_v23 = vld [vmem:[#allocation10 + $0x5b0] sm:$0xff]  ;;  %v752_v24 = vld [vmem:[#allocation10 + $0x598] sm:$0xff] }
 0x3e5   :  { %v756_v25 = vld [vmem:[#allocation10 + $0x5b8] sm:$0xff] }
 0x3e6   :  { %2436 = vmatpush1.bf16.msra.mxu1 %v15659_v41  ;;  %v15715_v41 = vcombine.low %v703_v30, %v707_v31  ;;  %v759_v30 = vld [vmem:[#allocation10 + $0x5d0] sm:$0xff] }
 0x3e7   :  { %2522 = vmatpush1.bf16.msra.mxu0 %v15661_v42  ;;  %2437 = vmatprep.subr.bf16.mxu1 %v15668_v43  ;;  %v712_v42 = vld [vmem:[#allocation10 + $0x458] sm:$0xff]  ;;  %v763_v31 = vld [vmem:[#allocation10 + $0x5f0] sm:$0xff] }
 0x3e8   :  { %2523 = vmatprep.subr.bf16.mxu0 %v15670_v44  ;;  %v716_v43 = vld [vmem:[#allocation10 + $0x478] sm:$0xff]  ;;  %v15717_v44 = vcombine.low %v704_v32, %v708_v33 }
 0x3e9   :  { %v15726_v52 = vcombine.high %v712_v42, %v716_v43  ;;  %v760_v32 = vld [vmem:[#allocation10 + $0x5d8] sm:$0xff] }
 0x3ea   :  { %2438 = vmatpush1.bf16.msra.mxu1 %v15667_v53  ;;  %v720_v53 = vld [vmem:[#allocation10 + $0x498] sm:$0xff] }
 0x3eb   :  { %2524 = vmatpush1.bf16.msra.mxu0 %v15669_v54  ;;  %2439 = vmatprep.subr.bf16.mxu1 %v15676_v55  ;;  %v724_v54 = vld [vmem:[#allocation10 + $0x4b8] sm:$0xff]  ;;  %v15723_v55 = vcombine.low %v711_v38, %v715_v40  ;;  %v767_v38 = vld [vmem:[#allocation10 + $0x610] sm:$0xff] }
 0x3ec   :  { %2525 = vmatprep.subr.bf16.mxu0 %v15678_v56  ;;  %v15725_v56 = vcombine.low %v712_v42, %v716_v43  ;;  %v15734_v58 = vcombine.high %v720_v53, %v724_v54  ;;  %v764_v33 = vld [vmem:[#allocation10 + $0x5f8] sm:$0xff]  ;;  %v771_v40 = vld [vmem:[#allocation10 + $0x630] sm:$0xff]  ;;  %v15771_v43 = vcombine.low %v759_v30, %v763_v31 }
 0x3ed   :  { %v772_v42 = vld [vmem:[#allocation10 + $0x638] sm:$0xff] }
 0x3ee   :  { %2440 = vmatpush1.bf16.msra.mxu1 %v15675_v1  ;;  %v728_v1 = vld [vmem:[#allocation10 + $0x4d8] sm:$0xff] }
 0x3ef   :  { %2526 = vmatpush1.bf16.msra.mxu0 %v15677_v2  ;;  %2441 = vmatprep.subr.bf16.mxu1 %v15684_v3  ;;  %v732_v2 = vld [vmem:[#allocation10 + $0x4f8] sm:$0xff]  ;;  %v15731_v3 = vcombine.low %v719_v45, %v723_v49  ;;  %v775_v49 = vld [vmem:[#allocation10 + $0x650] sm:$0xff] }
 0x3f0   :  { %2527 = vmatprep.subr.bf16.mxu0 %v15686_v4  ;;  %v15740_v4 = vcombine.high %v727_v60, %v731_v62  ;;  %v15742_v5 = vcombine.high %v728_v1, %v732_v2 }
 0x3f2   :  { %2442 = vmatpush1.bf16.msra.mxu1 %v15683_v10  ;;  %v740_v10 = vld [vmem:[#allocation10 + $0x538] sm:$0xff] }
 0x3f3   :  { %2528 = vmatpush1.bf16.msra.mxu0 %v15685_v11  ;;  %2443 = vmatprep.subr.bf16.mxu1 %v15692_v12  ;;  %v15741_v11 = vcombine.low %v728_v1, %v732_v2  ;;  %v15748_v12 = vcombine.high %v735_v7, %v739_v8  ;;  %v784_v1 = vld [vmem:[#allocation10 + $0x698] sm:$0xff] }
 0x3f4   :  { %2529 = vmatprep.subr.bf16.mxu0 %v15694_v13  ;;  %v15750_v13 = vcombine.high %v736_v9, %v740_v10  ;;  %v788_v2 = vld [vmem:[#allocation10 + $0x6b8] sm:$0xff] }
 0x3f6   :  { %2444 = vmatpush1.bf16.msra.mxu1 %v15691_v18  ;;  %v15747_v18 = vcombine.low %v735_v7, %v739_v8  ;;  %v791_v7 = vld [vmem:[#allocation10 + $0x6d0] sm:$0xff] }
 0x3f7   :  { %2530 = vmatpush1.bf16.msra.mxu0 %v15693_v19  ;;  %2445 = vmatprep.subr.bf16.mxu1 %v15700_v20  ;;  %v15749_v19 = vcombine.low %v736_v9, %v740_v10  ;;  %v15756_v20 = vcombine.high %v743_v14, %v747_v15  ;;  %v795_v8 = vld [vmem:[#allocation10 + $0x6f0] sm:$0xff]  ;;  %v792_v9 = vld [vmem:[#allocation10 + $0x6d8] sm:$0xff] }
 0x3f8   :  { %2531 = vmatprep.subr.bf16.mxu0 %v15702_v21  ;;  %v15758_v21 = vcombine.high %v744_v16, %v748_v17  ;;  %v796_v10 = vld [vmem:[#allocation10 + $0x6f8] sm:$0xff] }
 0x3fa   :  { %2446 = vmatpush1.bf16.msra.mxu1 %v15699_v26  ;;  %v15755_v26 = vcombine.low %v743_v14, %v747_v15  ;;  %v799_v14 = vld [vmem:[#allocation10 + $0x710] sm:$0xff] }
 0x3fb   :  { %2532 = vmatpush1.bf16.msra.mxu0 %v15701_v27  ;;  %2447 = vmatprep.subr.bf16.mxu1 %v15708_v28  ;;  %v15757_v27 = vcombine.low %v744_v16, %v748_v17  ;;  %v15764_v28 = vcombine.high %v751_v22, %v755_v23  ;;  %v803_v15 = vld [vmem:[#allocation10 + $0x730] sm:$0xff]  ;;  %v800_v16 = vld [vmem:[#allocation10 + $0x718] sm:$0xff] }
 0x3fc   :  { %2533 = vmatprep.subr.bf16.mxu0 %v15710_v29  ;;  %v15766_v29 = vcombine.high %v752_v24, %v756_v25  ;;  %v804_v17 = vld [vmem:[#allocation10 + $0x738] sm:$0xff] }
 0x3fe   :  { %2448 = vmatpush1.bf16.msra.mxu1 %v15707_v34  ;;  %v15763_v34 = vcombine.low %v751_v22, %v755_v23  ;;  %v807_v22 = vld [vmem:[#allocation10 + $0x750] sm:$0xff] }
 0x3ff   :  { %2534 = vmatpush1.bf16.msra.mxu0 %v15709_v35  ;;  %2460 = vmatprep.subr.bf16.mxu1 %v15716_v36  ;;  %v15765_v35 = vcombine.low %v752_v24, %v756_v25  ;;  %v15772_v36 = vcombine.high %v759_v30, %v763_v31  ;;  %v811_v23 = vld [vmem:[#allocation10 + $0x770] sm:$0xff]  ;;  %v808_v24 = vld [vmem:[#allocation10 + $0x758] sm:$0xff] }
 0x400   :  { %2546 = vmatprep.subr.bf16.mxu0 %v15718_v37  ;;  %v15774_v37 = vcombine.high %v760_v32, %v764_v33  ;;  %v812_v25 = vld [vmem:[#allocation10 + $0x778] sm:$0xff]  ;;  %v815_v30 = vld [vmem:[#allocation10 + $0x790] sm:$0xff] }
 0x401   :  { %2450 = vmatmul.mubr.bf16.vlgmr.msra.gmra.mrb[12].mxu1 %v18552_v59  ;;  %v819_v31 = vld [vmem:[#allocation10 + $0x7b0] sm:$0xff] }
 0x402   :  { %2536 = vmatmul.mubr.bf16.vlgmr.msra.gmra.mrb[16].mxu0 %v18552_v59  ;;  %2461 = vmatpush1.bf16.msra.mxu1 %v15715_v41  ;;  %v15733_v59 = vcombine.low %v720_v53, %v724_v54  ;;  %v768_v41 = vld [vmem:[#allocation10 + $0x618] sm:$0xff] }
 0x403   :  { %2492 = vmatprep.mubr.bf16.mxu1 %v18558_v0  ;;  %2547 = vmatpush1.bf16.msra.mxu0 %v15717_v44  ;;  %v15773_v44 = vcombine.low %v760_v32, %v764_v33  ;;  %v15782_v45 = vcombine.high %v768_v41, %v772_v42  ;;  %v776_v53 = vld [vmem:[#allocation10 + $0x658] sm:$0xff] }
 0x404   :  { %2578 = vmatprep.mubr.bf16.mxu0 %v18558_v0  ;;  %2462 = vmatprep.subr.bf16.mxu1 %v15724_v63  ;;  %v15739_v0 = vcombine.low %v727_v60, %v731_v62  ;;  %v15780_v63 = vcombine.high %v767_v38, %v771_v40  ;;  %v780_v54 = vld [vmem:[#allocation10 + $0x678] sm:$0xff]  ;;  %v783_v60 = vld [vmem:[#allocation10 + $0x690] sm:$0xff] }
 0x405   :  { %2548 = vmatprep.subr.bf16.mxu0 %v15726_v52  ;;  %v779_v52 = vld [vmem:[#allocation10 + $0x670] sm:$0xff]  ;;  %v816_v32 = vld [vmem:[#allocation10 + $0x798] sm:$0xff] }
 0x406   :  { %2463 = vmatpush1.bf16.msra.mxu1 %v15723_v55  ;;  %v15779_v55 = vcombine.low %v767_v38, %v771_v40  ;;  %v787_v62 = vld [vmem:[#allocation10 + $0x6b0] sm:$0xff]  ;;  %v820_v33 = vld [vmem:[#allocation10 + $0x7b8] sm:$0xff] }
 0x407   :  { %2549 = vmatpush1.bf16.msra.mxu0 %v15725_v56  ;;  %2464 = vmatprep.subr.bf16.mxu1 %v15732_v57  ;;  %v15781_v56 = vcombine.low %v768_v41, %v772_v42  ;;  %v15788_v57 = vcombine.high %v775_v49, %v779_v52  ;;  %v823_v38 = vld [vmem:[#allocation10 + $0x7d0] sm:$0xff]  ;;  %v824_v41 = vld [vmem:[#allocation10 + $0x7d8] sm:$0xff] }
 0x408   :  { %2550 = vmatprep.subr.bf16.mxu0 %v15734_v58  ;;  %v15790_v58 = vcombine.high %v776_v53, %v780_v54  ;;  %v827_v40 = vld [vmem:[#allocation10 + $0x7f0] sm:$0xff]  ;;  %v828_v42 = vld [vmem:[#allocation10 + $0x7f8] sm:$0xff] }
 0x40a   :  { %2465 = vmatpush1.bf16.msra.mxu1 %v15731_v3  ;;  %v15787_v3 = vcombine.low %v775_v49, %v779_v52  ;;  %v15835_v49 = vcombine.low %v823_v38, %v827_v40  ;;  %v15837_v52 = vcombine.low %v824_v41, %v828_v42 }
 0x40b   :  { %2551 = vmatpush1.bf16.msra.mxu0 %v15733_v59  ;;  %2466 = vmatprep.subr.bf16.mxu1 %v15740_v4  ;;  %v15789_v59 = vcombine.low %v776_v53, %v780_v54  ;;  %v15796_v4 = vcombine.high %v783_v60, %v787_v62  ;;  %v829_v53 = vld [vmem:[#allocation11] sm:$0xff] }
 0x40c   :  { %2552 = vmatprep.subr.bf16.mxu0 %v15742_v5  ;;  %v15798_v5 = vcombine.high %v784_v1, %v788_v2  ;;  %v928_v54 = vrot.slane %v829_v53, %v18533_v47 }
 0x40e   :  { %2467 = vmatpush1.bf16.msra.mxu1 %v15739_v0  ;;  %v15795_v0 = vcombine.low %v783_v60, %v787_v62 }
 0x40f   :  { %2553 = vmatpush1.bf16.msra.mxu0 %v15741_v11  ;;  %2468 = vmatprep.subr.bf16.mxu1 %v15748_v12  ;;  %v15797_v11 = vcombine.low %v784_v1, %v788_v2  ;;  %v15804_v12 = vcombine.high %v791_v7, %v795_v8 }
 0x410   :  { %2554 = vmatprep.subr.bf16.mxu0 %v15750_v13  ;;  %v15806_v13 = vcombine.high %v792_v9, %v796_v10 }
 0x412   :  { %2469 = vmatpush1.bf16.msra.mxu1 %v15747_v18  ;;  %v15803_v18 = vcombine.low %v791_v7, %v795_v8 }
 0x413   :  { %2555 = vmatpush1.bf16.msra.mxu0 %v15749_v19  ;;  %2470 = vmatprep.subr.bf16.mxu1 %v15756_v20  ;;  %v15805_v19 = vcombine.low %v792_v9, %v796_v10  ;;  %v15812_v20 = vcombine.high %v799_v14, %v803_v15 }
 0x414   :  { %2556 = vmatprep.subr.bf16.mxu0 %v15758_v21  ;;  %v15814_v21 = vcombine.high %v800_v16, %v804_v17 }
 0x416   :  { %2471 = vmatpush1.bf16.msra.mxu1 %v15755_v26  ;;  %v15811_v26 = vcombine.low %v799_v14, %v803_v15 }
 0x417   :  { %2557 = vmatpush1.bf16.msra.mxu0 %v15757_v27  ;;  %2472 = vmatprep.subr.bf16.mxu1 %v15764_v28  ;;  %v15813_v27 = vcombine.low %v800_v16, %v804_v17  ;;  %v15820_v28 = vcombine.high %v807_v22, %v811_v23 }
 0x418   :  { %2558 = vmatprep.subr.bf16.mxu0 %v15766_v29  ;;  %v15822_v29 = vcombine.high %v808_v24, %v812_v25 }
 0x41a   :  { %2473 = vmatpush1.bf16.msra.mxu1 %v15763_v34  ;;  %v15819_v34 = vcombine.low %v807_v22, %v811_v23 }
 0x41b   :  { %2559 = vmatpush1.bf16.msra.mxu0 %v15765_v35  ;;  %2474 = vmatprep.subr.bf16.mxu1 %v15772_v36  ;;  %v15821_v35 = vcombine.low %v808_v24, %v812_v25  ;;  %v15828_v36 = vcombine.high %v815_v30, %v819_v31  ;;  %v18589_v24 = vsub.s32 4, %v18530_v46  ;;  %v18592_v25 = vsub.s32 6, %v18530_v46 }
 0x41c   :  { %2560 = vmatprep.subr.bf16.mxu0 %v15774_v37  ;;  %v15830_v37 = vcombine.high %v816_v32, %v820_v33 }
 0x41e   :  { %2475 = vmatpush1.bf16.msra.mxu1 %v15771_v43  ;;  %v15827_v43 = vcombine.low %v815_v30, %v819_v31 }
 0x41f   :  { %2561 = vmatpush1.bf16.msra.mxu0 %v15773_v44  ;;  %2476 = vmatprep.subr.bf16.mxu1 %v15780_v63  ;;  %v15829_v44 = vcombine.low %v816_v32, %v820_v33  ;;  %v15836_v63 = vcombine.high %v823_v38, %v827_v40 }
 0x420   :  { %2562 = vmatprep.subr.bf16.mxu0 %v15782_v45  ;;  %v15838_v45 = vcombine.high %v824_v41, %v828_v42 }
 0x422   :  { %2477 = vmatpush1.bf16.msra.mxu1 %v15779_v55  ;;  %v936_v55 = vrot.slane %v829_v53, %v18536_v48 }
 0x423   :  { %2563 = vmatpush1.bf16.msra.mxu0 %v15781_v56  ;;  %2478 = vmatprep.subr.bf16.mxu1 %v15788_v57  ;;  %v932_v56 = vrot.slane %v829_v53, %v18539_v50  ;;  %v940_v57 = vrot.slane %v829_v53, %v18542_v51 }
 0x424   :  { %2564 = vmatprep.subr.bf16.mxu0 %v15790_v58 }
 0x426   :  { %2479 = vmatpush1.bf16.msra.mxu1 %v15787_v3 }
 0x427   :  { %2565 = vmatpush1.bf16.msra.mxu0 %v15789_v59  ;;  %2480 = vmatprep.subr.bf16.mxu1 %v15796_v4 }
 0x428   :  { %2566 = vmatprep.subr.bf16.mxu0 %v15798_v5 }
 0x42a   :  { %2481 = vmatpush1.bf16.msra.mxu1 %v15795_v0 }
 0x42b   :  { %2567 = vmatpush1.bf16.msra.mxu0 %v15797_v11  ;;  %2482 = vmatprep.subr.bf16.mxu1 %v15804_v12 }
 0x42c   :  { %2568 = vmatprep.subr.bf16.mxu0 %v15806_v13 }
 0x42e   :  { %2483 = vmatpush1.bf16.msra.mxu1 %v15803_v18 }
 0x42f   :  { %2569 = vmatpush1.bf16.msra.mxu0 %v15805_v19  ;;  %2484 = vmatprep.subr.bf16.mxu1 %v15812_v20 }
 0x430   :  { %2570 = vmatprep.subr.bf16.mxu0 %v15814_v21 }
 0x432   :  { %2485 = vmatpush1.bf16.msra.mxu1 %v15811_v26  ;;  %v18595_v26 = vsub.s32 5, %v18530_v46 }
 0x433   :  { %2571 = vmatpush1.bf16.msra.mxu0 %v15813_v27  ;;  %2486 = vmatprep.subr.bf16.mxu1 %v15820_v28  ;;  %v18598_v27 = vsub.s32 7, %v18530_v46  ;;  %v944_v28 = vrot.slane %v829_v53, %v18589_v24 }
 0x434   :  { %2572 = vmatprep.subr.bf16.mxu0 %v15822_v29  ;;  %v952_v29 = vrot.slane %v829_v53, %v18592_v25  ;;  %v948_v30 = vrot.slane %v829_v53, %v18595_v26 }
 0x435   :  { %v956_v31 = vrot.slane %v829_v53, %v18598_v27  ;;  %v2609_v53 = vld [vmem:[#allocation13 + $0x20] sm:$0xff] }
 0x436   :  { %2487 = vmatpush1.bf16.msra.mxu1 %v15819_v34 }
 0x437   :  { %2573 = vmatpush1.bf16.msra.mxu0 %v15821_v35  ;;  %2488 = vmatprep.subr.bf16.mxu1 %v15828_v36 }
 0x438   :  { %2574 = vmatprep.subr.bf16.mxu0 %v15830_v37 }
 0x43a   :  { %2489 = vmatpush1.bf16.msra.mxu1 %v15827_v43 }
 0x43b   :  { %2575 = vmatpush1.bf16.msra.mxu0 %v15829_v44  ;;  %2490 = vmatprep.subr.bf16.mxu1 %v15836_v63 }
 0x43c   :  { %2576 = vmatprep.subr.bf16.mxu0 %v15838_v45 }
 0x43e   :  { %2491 = vmatpush1.bf16.msra.mxu1 %v15835_v49 }
 0x43f   :  { %2577 = vmatpush1.bf16.msra.mxu0 %v15837_v52 }
 0x441   :  { %2493 = vmatmul.mubr.bf16.vlgmr.msra.gmra.mrb[12].mxu1 %v18554_v61 }
 0x442   :  { %2579 = vmatmul.mubr.bf16.vlgmr.msra.gmra.mrb[16].mxu0 %v18554_v61  ;;  %3158 = vmatprep.mubr.bf16.mxu1 %v18264_v39 }
 0x443   :  { %3201 = vmatprep.mubr.bf16.mxu0 %v18264_v39 }
 0x494   :  { %v2322_v58 = vpop.f32.mrb[8].mxu1  ;;  %v2408_v60 = vpop.f32.mrb[12].mxu0 }
 0x495   :  { %v17552_v62 = vadd.f32 %v2322_v58, %v928_v54  ;;  %v17556_v1 = vadd.f32 %v2408_v60, %v936_v55  ;;  %v2324_v2 = vpop.f32.mrb[9].mxu1  ;;  %v2410_v3 = vpop.f32.mrb[13].mxu0 }
 0x496   :  { %v17553_v61 = vadd.f32 %v2324_v2, %v932_v56  ;;  %v17557_v59 = vadd.f32 %v2410_v3, %v940_v57  ;;  %v2326_v4 = vpop.f32.mrb[10].mxu1  ;;  %v2412_v5 = vpop.f32.mrb[14].mxu0 }
 0x497   :  { %v17554_v7 = vadd.f32 %v2326_v4, %v928_v54  ;;  %v17558_v8 = vadd.f32 %v2412_v5, %v936_v55  ;;  %v2328_v9 = vpop.f32.mrb[11].mxu1  ;;  %v2414_v10 = vpop.f32.mrb[15].mxu0  ;;  %v2589_v12 = vmax.f32 %v17552_v62, 0.0  ;;  %v2591_v13 = vmax.f32 %v17556_v1, 0.0  ;;  %v2605_v55 = vld [vmem:[#allocation13] sm:$0xff]  ;;  %v2606_v62 = vld [vmem:[#allocation13 + $0x8] sm:$0xff] }
 0x498   :  { %v17555_v0 = vadd.f32 %v2328_v9, %v932_v56  ;;  %v17559_v11 = vadd.f32 %v2414_v10, %v940_v57  ;;  %v2590_v16 = vmax.f32 %v17553_v61, 0.0  ;;  %v2592_v17 = vmax.f32 %v17557_v59, 0.0  ;;  %v2610_v1 = vld [vmem:[#allocation13 + $0x28] sm:$0xff]  ;;  %v2613_v9 = vld [vmem:[#allocation13 + $0x40] sm:$0xff] }
 0x499   :  { %v2597_v14 = vmax.f32 %v17554_v7, 0.0  ;;  %v2599_v15 = vmax.f32 %v17558_v8, 0.0  ;;  %v15844_v5 = vcombine.high %v2605_v55, %v2609_v53  ;;  %v15846_v8 = vcombine.high %v2606_v62, %v2610_v1  ;;  %v2617_v10 = vld [vmem:[#allocation13 + $0x60] sm:$0xff] }
 0x49a   :  { %v2598_v18 = vmax.f32 %v17555_v0, 0.0  ;;  %v2600_v19 = vmax.f32 %v17559_v11, 0.0  ;;  %v2614_v0 = vld [vmem:[#allocation13 + $0x48] sm:$0xff] }
 0x49b   :  { %v3118_v20 = vpack.c.bf16 %v2597_v14, %v2589_v12  ;;  %v3120_v21 = vpack.c.bf16 %v2599_v15, %v2591_v13  ;;  %v2618_v11 = vld [vmem:[#allocation13 + $0x68] sm:$0xff]  ;;  %v15843_v12 = vcombine.low %v2605_v55, %v2609_v53  ;;  %v15845_v13 = vcombine.low %v2606_v62, %v2610_v1 }
 0x49c   :  { %v3119_v22 = vpack.c.bf16 %v2598_v18, %v2590_v16  ;;  %v3121_v23 = vpack.c.bf16 %v2600_v19, %v2592_v17  ;;  %v15852_v14 = vcombine.high %v2613_v9, %v2617_v10  ;;  %v15854_v15 = vcombine.high %v2614_v0, %v2618_v11  ;;  %v2621_v16 = vld [vmem:[#allocation13 + $0x80] sm:$0xff]  ;;  %v2622_v18 = vld [vmem:[#allocation13 + $0x88] sm:$0xff] }
 0x49d   :  { %v2625_v17 = vld [vmem:[#allocation13 + $0xa0] sm:$0xff]  ;;  %v2626_v19 = vld [vmem:[#allocation13 + $0xa8] sm:$0xff] }
 0x49e   :  { %3126 = vmatprep.subr.bf16.mxu1 %v3119_v22  ;;  %3169 = vmatprep.subr.bf16.mxu0 %v3121_v23  ;;  %v15860_v22 = vcombine.high %v2621_v16, %v2625_v17  ;;  %v15862_v23 = vcombine.high %v2622_v18, %v2626_v19 }
 0x49f   :  { %3127 = vmatpush1.bf16.msra.mxu1 %v3118_v20  ;;  %3170 = vmatpush1.bf16.msra.mxu0 %v3120_v21  ;;  %v15851_v20 = vcombine.low %v2613_v9, %v2617_v10  ;;  %v15853_v21 = vcombine.low %v2614_v0, %v2618_v11  ;;  %v2669_v0 = vld [vmem:[#allocation13 + $0x200] sm:$0xff] }
 0x4a0   :  { %v2673_v11 = vld [vmem:[#allocation13 + $0x220] sm:$0xff] }
 0x4a2   :  { %15839 = vmatmul.mubr.msk.bf16.vlgmr.msra.gmra.mrb[16].mxu1 %vm252_vm1, %v18522_v6  ;;  %15840 = vmatmul.mubr.msk.bf16.vlgmr.msra.gmra.mrb[20].mxu0 %vm252_vm1, %v18522_v6 }
 0x4a3   :  { %3244 = vmatprep.mubr.bf16.mxu1 %v18264_v39  ;;  %3287 = vmatprep.mubr.bf16.mxu0 %v18264_v39 }
 0x514   :  { %v2494_v32 = vpop.f32.mrb[12].mxu1 }
 0x515   :  { %v17560_v33 = vadd.f32 %v2494_v32, %v944_v28  ;;  %v2580_v34 = vpop.f32.mrb[16].mxu0  ;;  %v2496_v35 = vpop.f32.mrb[13].mxu1  ;;  %v15859_v32 = vcombine.low %v2621_v16, %v2625_v17  ;;  %v15908_v16 = vcombine.high %v2669_v0, %v2673_v11 }
 0x516   :  { %v17564_v36 = vadd.f32 %v2580_v34, %v952_v29  ;;  %v17561_v37 = vadd.f32 %v2496_v35, %v948_v30  ;;  %v2582_v38 = vpop.f32.mrb[17].mxu0  ;;  %v2498_v40 = vpop.f32.mrb[14].mxu1 }
 0x517   :  { %v17565_v41 = vadd.f32 %v2582_v38, %v956_v31  ;;  %v17562_v42 = vadd.f32 %v2498_v40, %v944_v28  ;;  %v2584_v46 = vpop.f32.mrb[18].mxu0  ;;  %v2500_v43 = vpop.f32.mrb[15].mxu1  ;;  %v2593_v49 = vmax.f32 %v17560_v33, 0.0  ;;  %v2629_v28 = vld [vmem:[#allocation13 + $0xc0] sm:$0xff]  ;;  %v15861_v33 = vcombine.low %v2622_v18, %v2626_v19  ;;  %v2638_v38 = vld [vmem:[#allocation13 + $0x108] sm:$0xff] }
 0x518   :  { %v17566_v44 = vadd.f32 %v2584_v46, %v952_v29  ;;  %v17563_v63 = vadd.f32 %v2500_v43, %v948_v30  ;;  %v2586_v45 = vpop.f32.mrb[19].mxu0  ;;  %v2595_v56 = vmax.f32 %v17564_v36, 0.0  ;;  %v2594_v57 = vmax.f32 %v17561_v37, 0.0  ;;  %v2633_v29 = vld [vmem:[#allocation13 + $0xe0] sm:$0xff]  ;;  %v2630_v30 = vld [vmem:[#allocation13 + $0xc8] sm:$0xff] }
 0x519   :  { %v2601_v52 = vmax.f32 %v17562_v42, 0.0  ;;  %v17567_v54 = vadd.f32 %v2586_v45, %v956_v31  ;;  %v2596_v2 = vmax.f32 %v17565_v41, 0.0  ;;  %v2634_v31 = vld [vmem:[#allocation13 + $0xe8] sm:$0xff]  ;;  %v15868_v34 = vcombine.high %v2629_v28, %v2633_v29  ;;  %v2637_v36 = vld [vmem:[#allocation13 + $0x100] sm:$0xff] }
 0x51a   :  { %v2603_v58 = vmax.f32 %v17566_v44, 0.0  ;;  %v2602_v60 = vmax.f32 %v17563_v63, 0.0  ;;  %v15870_v35 = vcombine.high %v2630_v30, %v2634_v31  ;;  %v2641_v37 = vld [vmem:[#allocation13 + $0x120] sm:$0xff]  ;;  %v2642_v40 = vld [vmem:[#allocation13 + $0x128] sm:$0xff]  ;;  %v15867_v41 = vcombine.low %v2629_v28, %v2633_v29 }
 0x51b   :  { %v3122_v3 = vpack.c.bf16 %v2601_v52, %v2593_v49  ;;  %v2604_v61 = vmax.f32 %v17567_v54, 0.0  ;;  %v15869_v42 = vcombine.low %v2630_v30, %v2634_v31  ;;  %v15876_v46 = vcombine.high %v2637_v36, %v2641_v37  ;;  %v2645_v44 = vld [vmem:[#allocation13 + $0x140] sm:$0xff]  ;;  %v2646_v45 = vld [vmem:[#allocation13 + $0x148] sm:$0xff] }
 0x51c   :  { %v3124_v59 = vpack.c.bf16 %v2603_v58, %v2595_v56  ;;  %v3123_v4 = vpack.c.bf16 %v2602_v60, %v2594_v57  ;;  %v15878_v43 = vcombine.high %v2638_v38, %v2642_v40  ;;  %v2649_v63 = vld [vmem:[#allocation13 + $0x160] sm:$0xff]  ;;  %v2650_v49 = vld [vmem:[#allocation13 + $0x168] sm:$0xff]  ;;  %v15875_v52 = vcombine.low %v2637_v36, %v2641_v37 }
 0x51d   :  { %v3125_v7 = vpack.c.bf16 %v2604_v61, %v2596_v2  ;;  %v15877_v54 = vcombine.low %v2638_v38, %v2642_v40  ;;  %v15884_v55 = vcombine.high %v2645_v44, %v2649_v63  ;;  %v15886_v53 = vcombine.high %v2646_v45, %v2650_v49  ;;  %v2653_v56 = vld [vmem:[#allocation13 + $0x180] sm:$0xff]  ;;  %v2654_v58 = vld [vmem:[#allocation13 + $0x188] sm:$0xff] }
 0x51e   :  { %3212 = vmatprep.subr.bf16.mxu1 %v3123_v4  ;;  %v2657_v57 = vld [vmem:[#allocation13 + $0x1a0] sm:$0xff]  ;;  %v2658_v60 = vld [vmem:[#allocation13 + $0x1a8] sm:$0xff]  ;;  %v15883_v62 = vcombine.low %v2645_v44, %v2649_v63  ;;  %v15885_v1 = vcombine.low %v2646_v45, %v2650_v49 }
 0x51f   :  { %3255 = vmatprep.subr.bf16.mxu0 %v3125_v7  ;;  %3213 = vmatpush1.bf16.msra.mxu1 %v3122_v3  ;;  %v15892_v2 = vcombine.high %v2653_v56, %v2657_v57  ;;  %v15894_v3 = vcombine.high %v2654_v58, %v2658_v60  ;;  %v2661_v61 = vld [vmem:[#allocation13 + $0x1c0] sm:$0xff]  ;;  %v2662_v4 = vld [vmem:[#allocation13 + $0x1c8] sm:$0xff]  ;;  %v15891_v7 = vcombine.low %v2653_v56, %v2657_v57 }
 0x520   :  { %3256 = vmatpush1.bf16.msra.mxu0 %v3124_v59  ;;  %5907 = vmatprep.subr.bf16.mxu1 %v15844_v5  ;;  %v2665_v59 = vld [vmem:[#allocation13 + $0x1e0] sm:$0xff]  ;;  %v2666_v5 = vld [vmem:[#allocation13 + $0x1e8] sm:$0xff] }
 0x521   :  { %6079 = vmatprep.subr.bf16.mxu0 %v15846_v8  ;;  %v15893_v8 = vcombine.low %v2654_v58, %v2658_v60  ;;  %v15900_v9 = vcombine.high %v2661_v61, %v2665_v59  ;;  %v15902_v10 = vcombine.high %v2662_v4, %v2666_v5  ;;  %v2677_v18 = vld [vmem:[#allocation13 + $0x240] sm:$0xff] }
 0x522   :  { %15841 = vmatmul.mubr.msk.bf16.vlgmr.msra.gmra.mrb[20].mxu1 %vm252_vm1, %v18522_v6  ;;  %v2681_v19 = vld [vmem:[#allocation13 + $0x260] sm:$0xff] }
 0x523   :  { %15842 = vmatmul.mubr.msk.bf16.vlgmr.msra.gmra.mrb[24].mxu0 %vm252_vm1, %v18522_v6  ;;  %5908 = vmatpush1.bf16.msra.mxu1 %v15843_v12  ;;  %v2670_v12 = vld [vmem:[#allocation13 + $0x208] sm:$0xff]  ;;  %v15916_v28 = vcombine.high %v2677_v18, %v2681_v19  ;;  %v2685_v30 = vld [vmem:[#allocation13 + $0x280] sm:$0xff] }
 0x524   :  { %6080 = vmatpush1.bf16.msra.mxu0 %v15845_v13  ;;  %5909 = vmatprep.subr.bf16.mxu1 %v15852_v14  ;;  %v2674_v13 = vld [vmem:[#allocation13 + $0x228] sm:$0xff]  ;;  %v15899_v14 = vcombine.low %v2661_v61, %v2665_v59  ;;  %v2689_v31 = vld [vmem:[#allocation13 + $0x2a0] sm:$0xff] }
 0x525   :  { %6081 = vmatprep.subr.bf16.mxu0 %v15854_v15  ;;  %v15901_v15 = vcombine.low %v2662_v4, %v2666_v5  ;;  %v15910_v17 = vcombine.high %v2670_v12, %v2674_v13  ;;  %v15924_v36 = vcombine.high %v2685_v30, %v2689_v31  ;;  %v2693_v38 = vld [vmem:[#allocation13 + $0x2c0] sm:$0xff] }
 0x526   :  { %v2697_v40 = vld [vmem:[#allocation13 + $0x2e0] sm:$0xff] }
 0x527   :  { %5910 = vmatpush1.bf16.msra.mxu1 %v15851_v20  ;;  %v2678_v20 = vld [vmem:[#allocation13 + $0x248] sm:$0xff]  ;;  %v15932_v44 = vcombine.high %v2693_v38, %v2697_v40  ;;  %v2701_v45 = vld [vmem:[#allocation13 + $0x300] sm:$0xff] }
 0x528   :  { %6082 = vmatpush1.bf16.msra.mxu0 %v15853_v21  ;;  %5911 = vmatprep.subr.bf16.mxu1 %v15860_v22  ;;  %v2682_v21 = vld [vmem:[#allocation13 + $0x268] sm:$0xff]  ;;  %v15907_v22 = vcombine.low %v2669_v0, %v2673_v11  ;;  %v2705_v49 = vld [vmem:[#allocation13 + $0x320] sm:$0xff] }
 0x529   :  { %6083 = vmatprep.subr.bf16.mxu0 %v15862_v23  ;;  %v15909_v23 = vcombine.low %v2670_v12, %v2674_v13  ;;  %v15918_v29 = vcombine.high %v2678_v20, %v2682_v21  ;;  %v15940_v56 = vcombine.high %v2701_v45, %v2705_v49  ;;  %v2709_v58 = vld [vmem:[#allocation13 + $0x340] sm:$0xff] }
 0x52a   :  { %v2713_v60 = vld [vmem:[#allocation13 + $0x360] sm:$0xff] }
 0x52b   :  { %5912 = vmatpush1.bf16.msra.mxu1 %v15859_v32  ;;  %v2686_v32 = vld [vmem:[#allocation13 + $0x288] sm:$0xff]  ;;  %v15948_v61 = vcombine.high %v2709_v58, %v2713_v60  ;;  %v2717_v4 = vld [vmem:[#allocation13 + $0x380] sm:$0xff] }
 0x52c   :  { %6084 = vmatpush1.bf16.msra.mxu0 %v15861_v33  ;;  %5913 = vmatprep.subr.bf16.mxu1 %v15868_v34  ;;  %v2690_v33 = vld [vmem:[#allocation13 + $0x2a8] sm:$0xff]  ;;  %v15915_v34 = vcombine.low %v2677_v18, %v2681_v19  ;;  %v2721_v5 = vld [vmem:[#allocation13 + $0x3a0] sm:$0xff] }
 0x52d   :  { %6085 = vmatprep.subr.bf16.mxu0 %v15870_v35  ;;  %v15917_v35 = vcombine.low %v2678_v20, %v2682_v21  ;;  %v15926_v37 = vcombine.high %v2686_v32, %v2690_v33  ;;  %v15956_v0 = vcombine.high %v2717_v4, %v2721_v5  ;;  %v2725_v12 = vld [vmem:[#allocation13 + $0x3c0] sm:$0xff] }
 0x52e   :  { %v2729_v13 = vld [vmem:[#allocation13 + $0x3e0] sm:$0xff] }
 0x52f   :  { %5914 = vmatpush1.bf16.msra.mxu1 %v15867_v41  ;;  %v2694_v41 = vld [vmem:[#allocation13 + $0x2c8] sm:$0xff]  ;;  %v15964_v18 = vcombine.high %v2725_v12, %v2729_v13  ;;  %v2733_v20 = vld [vmem:[#allocation13 + $0x400] sm:$0xff] }
 0x530   :  { %6086 = vmatpush1.bf16.msra.mxu0 %v15869_v42  ;;  %5915 = vmatprep.subr.bf16.mxu1 %v15876_v46  ;;  %v2698_v42 = vld [vmem:[#allocation13 + $0x2e8] sm:$0xff]  ;;  %v15923_v46 = vcombine.low %v2685_v30, %v2689_v31  ;;  %v2737_v21 = vld [vmem:[#allocation13 + $0x420] sm:$0xff] }
 0x531   :  { %6087 = vmatprep.subr.bf16.mxu0 %v15878_v43  ;;  %v15925_v43 = vcombine.low %v2686_v32, %v2690_v33  ;;  %v15934_v63 = vcombine.high %v2694_v41, %v2698_v42  ;;  %v15972_v30 = vcombine.high %v2733_v20, %v2737_v21 }
 0x533   :  { %5916 = vmatpush1.bf16.msra.mxu1 %v15875_v52  ;;  %v2702_v52 = vld [vmem:[#allocation13 + $0x308] sm:$0xff] }
 0x534   :  { %6088 = vmatpush1.bf16.msra.mxu0 %v15877_v54  ;;  %5917 = vmatprep.subr.bf16.mxu1 %v15884_v55  ;;  %v2706_v54 = vld [vmem:[#allocation13 + $0x328] sm:$0xff]  ;;  %v15931_v55 = vcombine.low %v2693_v38, %v2697_v40  ;;  %v2745_v38 = vld [vmem:[#allocation13 + $0x460] sm:$0xff] }
 0x535   :  { %6089 = vmatprep.subr.bf16.mxu0 %v15886_v53  ;;  %v15933_v53 = vcombine.low %v2694_v41, %v2698_v42  ;;  %v15942_v57 = vcombine.high %v2702_v52, %v2706_v54  ;;  %v2742_v40 = vld [vmem:[#allocation13 + $0x448] sm:$0xff] }
 0x536   :  { %v2746_v41 = vld [vmem:[#allocation13 + $0x468] sm:$0xff] }
 0x537   :  { %5918 = vmatpush1.bf16.msra.mxu1 %v15883_v62  ;;  %v2710_v62 = vld [vmem:[#allocation13 + $0x348] sm:$0xff] }
 0x538   :  { %6090 = vmatpush1.bf16.msra.mxu0 %v15885_v1  ;;  %5919 = vmatprep.subr.bf16.mxu1 %v15892_v2  ;;  %v2714_v1 = vld [vmem:[#allocation13 + $0x368] sm:$0xff]  ;;  %v15939_v2 = vcombine.low %v2701_v45, %v2705_v49  ;;  %v15971_v49 = vcombine.low %v2733_v20, %v2737_v21 }
 0x539   :  { %6091 = vmatprep.subr.bf16.mxu0 %v15894_v3  ;;  %v15941_v3 = vcombine.low %v2702_v52, %v2706_v54  ;;  %v15950_v59 = vcombine.high %v2710_v62, %v2714_v1  ;;  %v2774_v20 = vld [vmem:[#allocation13 + $0x548] sm:$0xff] }
 0x53a   :  { %v2778_v21 = vld [vmem:[#allocation13 + $0x568] sm:$0xff] }
 0x53b   :  { %5920 = vmatpush1.bf16.msra.mxu1 %v15891_v7  ;;  %v2718_v7 = vld [vmem:[#allocation13 + $0x388] sm:$0xff] }
 0x53c   :  { %6092 = vmatpush1.bf16.msra.mxu0 %v15893_v8  ;;  %5921 = vmatprep.subr.bf16.mxu1 %v15900_v9  ;;  %v2722_v8 = vld [vmem:[#allocation13 + $0x3a8] sm:$0xff]  ;;  %v15947_v9 = vcombine.low %v2709_v58, %v2713_v60 }
 0x53d   :  { %6093 = vmatprep.subr.bf16.mxu0 %v15902_v10  ;;  %v15949_v10 = vcombine.low %v2710_v62, %v2714_v1  ;;  %v15958_v11 = vcombine.high %v2718_v7, %v2722_v8  ;;  %v2750_v58 = vld [vmem:[#allocation13 + $0x488] sm:$0xff]  ;;  %v15981_v1 = vcombine.low %v2742_v40, %v2746_v41 }
 0x53e   :  { %v2754_v60 = vld [vmem:[#allocation13 + $0x4a8] sm:$0xff] }
 0x53f   :  { %5922 = vmatpush1.bf16.msra.mxu1 %v15899_v14  ;;  %v2726_v14 = vld [vmem:[#allocation13 + $0x3c8] sm:$0xff] }
 0x540   :  { %6094 = vmatpush1.bf16.msra.mxu0 %v15901_v15  ;;  %5923 = vmatprep.subr.bf16.mxu1 %v15908_v16  ;;  %v2730_v15 = vld [vmem:[#allocation13 + $0x3e8] sm:$0xff]  ;;  %v15955_v16 = vcombine.low %v2717_v4, %v2721_v5 }
 0x541   :  { %6095 = vmatprep.subr.bf16.mxu0 %v15910_v17  ;;  %v15957_v17 = vcombine.low %v2718_v7, %v2722_v8  ;;  %v15966_v19 = vcombine.high %v2726_v14, %v2730_v15  ;;  %v2758_v4 = vld [vmem:[#allocation13 + $0x4c8] sm:$0xff]  ;;  %v15989_v8 = vcombine.low %v2750_v58, %v2754_v60 }
 0x542   :  { %v2762_v5 = vld [vmem:[#allocation13 + $0x4e8] sm:$0xff] }
 0x543   :  { %5924 = vmatpush1.bf16.msra.mxu1 %v15907_v22  ;;  %v2734_v22 = vld [vmem:[#allocation13 + $0x408] sm:$0xff] }
 0x544   :  { %6096 = vmatpush1.bf16.msra.mxu0 %v15909_v23  ;;  %5925 = vmatprep.subr.bf16.mxu1 %v15916_v28  ;;  %v2738_v23 = vld [vmem:[#allocation13 + $0x428] sm:$0xff]  ;;  %v15963_v28 = vcombine.low %v2725_v12, %v2729_v13 }
 0x545   :  { %6097 = vmatprep.subr.bf16.mxu0 %v15918_v29  ;;  %v15965_v29 = vcombine.low %v2726_v14, %v2730_v15  ;;  %v15974_v31 = vcombine.high %v2734_v22, %v2738_v23  ;;  %v15973_v52 = vcombine.low %v2734_v22, %v2738_v23  ;;  %v2766_v12 = vld [vmem:[#allocation13 + $0x508] sm:$0xff]  ;;  %v15997_v15 = vcombine.low %v2758_v4, %v2762_v5 }
 0x546   :  { %v2770_v13 = vld [vmem:[#allocation13 + $0x528] sm:$0xff] }
 0x547   :  { %5926 = vmatpush1.bf16.msra.mxu1 %v15915_v34  ;;  %v16005_v23 = vcombine.low %v2766_v12, %v2770_v13 }
 0x548   :  { %6098 = vmatpush1.bf16.msra.mxu0 %v15917_v35  ;;  %5927 = vmatprep.subr.bf16.mxu1 %v15924_v36  ;;  %v2741_v35 = vld [vmem:[#allocation13 + $0x440] sm:$0xff] }
 0x549   :  { %6099 = vmatprep.subr.bf16.mxu0 %v15926_v37  ;;  %v15979_v62 = vcombine.low %v2741_v35, %v2745_v38 }
 0x54b   :  { %5928 = vmatpush1.bf16.msra.mxu1 %v15923_v46 }
 0x54c   :  { %6100 = vmatpush1.bf16.msra.mxu0 %v15925_v43  ;;  %5929 = vmatprep.subr.bf16.mxu1 %v15932_v44 }
 0x54d   :  { %6101 = vmatprep.subr.bf16.mxu0 %v15934_v63 }
 0x54f   :  { %5930 = vmatpush1.bf16.msra.mxu1 %v15931_v55  ;;  %v15980_v55 = vcombine.high %v2741_v35, %v2745_v38  ;;  %v16013_v35 = vcombine.low %v2774_v20, %v2778_v21  ;;  %v2789_v38 = vld [vmem:[#allocation13 + $0x5c0] sm:$0xff] }
 0x550   :  { %6102 = vmatpush1.bf16.msra.mxu0 %v15933_v53  ;;  %5931 = vmatprep.subr.bf16.mxu1 %v15940_v56  ;;  %v15982_v53 = vcombine.high %v2742_v40, %v2746_v41  ;;  %v2749_v56 = vld [vmem:[#allocation13 + $0x480] sm:$0xff]  ;;  %v2790_v41 = vld [vmem:[#allocation13 + $0x5c8] sm:$0xff] }
 0x551   :  { %6103 = vmatprep.subr.bf16.mxu0 %v15942_v57  ;;  %v2753_v57 = vld [vmem:[#allocation13 + $0x4a0] sm:$0xff] }
 0x552   :  { %v15987_v7 = vcombine.low %v2749_v56, %v2753_v57  ;;  %v2793_v40 = vld [vmem:[#allocation13 + $0x5e0] sm:$0xff] }
 0x553   :  { %5932 = vmatpush1.bf16.msra.mxu1 %v15939_v2  ;;  %v15988_v2 = vcombine.high %v2749_v56, %v2753_v57  ;;  %v2798_v56 = vld [vmem:[#allocation13 + $0x608] sm:$0xff] }
 0x554   :  { %6104 = vmatpush1.bf16.msra.mxu0 %v15941_v3  ;;  %5933 = vmatprep.subr.bf16.mxu1 %v15948_v61  ;;  %v15990_v3 = vcombine.high %v2750_v58, %v2754_v60  ;;  %v2757_v61 = vld [vmem:[#allocation13 + $0x4c0] sm:$0xff]  ;;  %v2802_v57 = vld [vmem:[#allocation13 + $0x628] sm:$0xff]  ;;  %v16027_v58 = vcombine.low %v2789_v38, %v2793_v40 }
 0x555   :  { %6105 = vmatprep.subr.bf16.mxu0 %v15950_v59  ;;  %v2761_v59 = vld [vmem:[#allocation13 + $0x4e0] sm:$0xff] }
 0x556   :  { %v15995_v14 = vcombine.low %v2757_v61, %v2761_v59 }
 0x557   :  { %5934 = vmatpush1.bf16.msra.mxu1 %v15947_v9  ;;  %v15996_v9 = vcombine.high %v2757_v61, %v2761_v59  ;;  %v2806_v61 = vld [vmem:[#allocation13 + $0x648] sm:$0xff] }
 0x558   :  { %6106 = vmatpush1.bf16.msra.mxu0 %v15949_v10  ;;  %5935 = vmatprep.subr.bf16.mxu1 %v15956_v0  ;;  %v15998_v10 = vcombine.high %v2758_v4, %v2762_v5  ;;  %v2765_v0 = vld [vmem:[#allocation13 + $0x500] sm:$0xff]  ;;  %v2810_v59 = vld [vmem:[#allocation13 + $0x668] sm:$0xff]  ;;  %v16037_v5 = vcombine.low %v2798_v56, %v2802_v57 }
 0x559   :  { %6107 = vmatprep.subr.bf16.mxu0 %v15958_v11  ;;  %v2769_v11 = vld [vmem:[#allocation13 + $0x520] sm:$0xff] }
 0x55a   :  { %v16003_v22 = vcombine.low %v2765_v0, %v2769_v11 }
 0x55b   :  { %5936 = vmatpush1.bf16.msra.mxu1 %v15955_v16  ;;  %v16004_v16 = vcombine.high %v2765_v0, %v2769_v11  ;;  %v2814_v0 = vld [vmem:[#allocation13 + $0x688] sm:$0xff] }
 0x55c   :  { %6108 = vmatpush1.bf16.msra.mxu0 %v15957_v17  ;;  %5937 = vmatprep.subr.bf16.mxu1 %v15964_v18  ;;  %v16006_v17 = vcombine.high %v2766_v12, %v2770_v13  ;;  %v2773_v18 = vld [vmem:[#allocation13 + $0x540] sm:$0xff]  ;;  %v2818_v11 = vld [vmem:[#allocation13 + $0x6a8] sm:$0xff]  ;;  %v16045_v13 = vcombine.low %v2806_v61, %v2810_v59 }
 0x55d   :  { %6109 = vmatprep.subr.bf16.mxu0 %v15966_v19  ;;  %v2777_v19 = vld [vmem:[#allocation13 + $0x560] sm:$0xff] }
 0x55f   :  { %5938 = vmatpush1.bf16.msra.mxu1 %v15963_v28  ;;  %v16012_v28 = vcombine.high %v2773_v18, %v2777_v19 }
 0x560   :  { %6110 = vmatpush1.bf16.msra.mxu0 %v15965_v29  ;;  %5950 = vmatprep.subr.bf16.mxu1 %v15972_v30  ;;  %v16014_v29 = vcombine.high %v2774_v20, %v2778_v21  ;;  %v2781_v30 = vld [vmem:[#allocation13 + $0x580] sm:$0xff]  ;;  %v16053_v21 = vcombine.low %v2814_v0, %v2818_v11 }
 0x561   :  { %6122 = vmatprep.subr.bf16.mxu0 %v15974_v31  ;;  %v2785_v31 = vld [vmem:[#allocation13 + $0x5a0] sm:$0xff] }
 0x575   :  { %v3160_v32 = vpop.f32.mrb[16].mxu1  ;;  %v3203_v33 = vpop.f32.mrb[20].mxu0 }
 0x576   :  { %v3162_v34 = vpop.f32.mrb[17].mxu1  ;;  %v3205_v36 = vpop.f32.mrb[21].mxu0 }
 0x577   :  { %v3164_v37 = vpop.f32.mrb[18].mxu1  ;;  %v3207_v42 = vpop.f32.mrb[22].mxu0 }
 0x578   :  { %v18608_v46 = vpack.c.bf16 %v3164_v37, %v3160_v32  ;;  %v3166_v43 = vpop.f32.mrb[19].mxu1  ;;  %v18610_v44 = vpack.c.bf16 %v3207_v42, %v3203_v33  ;;  %v3209_v63 = vpop.f32.mrb[23].mxu0  ;;  %v2782_v32 = vld [vmem:[#allocation13 + $0x588] sm:$0xff] }
 0x579   :  { %v18612_v45 = vpack.c.bf16 %v3166_v43, %v3162_v34  ;;  %v18614_v54 = vpack.c.bf16 %v3209_v63, %v3205_v36  ;;  %v2786_v33 = vld [vmem:[#allocation13 + $0x5a8] sm:$0xff]  ;;  %v16011_v34 = vcombine.low %v2773_v18, %v2777_v19  ;;  %v16020_v36 = vcombine.high %v2781_v30, %v2785_v31 }
 0x57a   :  { %v16022_v37 = vcombine.high %v2782_v32, %v2786_v33  ;;  %v2794_v42 = vld [vmem:[#allocation13 + $0x5e8] sm:$0xff]  ;;  %v16019_v43 = vcombine.low %v2781_v30, %v2785_v31  ;;  %v16021_v63 = vcombine.low %v2782_v32, %v2786_v33 }
 0x57b   :  { %5939 = vmatprep.mubr.bf16.mxu1 %v18612_v45  ;;  %6111 = vmatprep.mubr.bf16.mxu0 %v18612_v45  ;;  %v16029_v60 = vcombine.low %v2790_v41, %v2794_v42  ;;  %v2822_v18 = vld [vmem:[#allocation13 + $0x6c8] sm:$0xff] }
 0x57c   :  { %5940 = vmatmul.mubr.bf16.vlgmr.msra.gmra.mrb[24].mxu1 %v18608_v46  ;;  %6112 = vmatmul.mubr.bf16.vlgmr.msra.gmra.mrb[28].mxu0 %v18608_v46  ;;  %v2826_v19 = vld [vmem:[#allocation13 + $0x6e8] sm:$0xff] }
 0x57d   :  { %5951 = vmatpush1.bf16.msra.mxu1 %v15971_v49  ;;  %6123 = vmatpush1.bf16.msra.mxu0 %v15973_v52  ;;  %v16028_v49 = vcombine.high %v2789_v38, %v2793_v40  ;;  %v16030_v52 = vcombine.high %v2790_v41, %v2794_v42  ;;  %v2830_v30 = vld [vmem:[#allocation13 + $0x708] sm:$0xff]  ;;  %v16061_v33 = vcombine.low %v2822_v18, %v2826_v19 }
 0x57e   :  { %5952 = vmatprep.subr.bf16.mxu1 %v15980_v55  ;;  %6124 = vmatprep.subr.bf16.mxu0 %v15982_v53  ;;  %v2797_v55 = vld [vmem:[#allocation13 + $0x600] sm:$0xff]  ;;  %v2834_v31 = vld [vmem:[#allocation13 + $0x728] sm:$0xff] }
 0x57f   :  { %5982 = vmatprep.mubr.bf16.mxu1 %v18614_v54  ;;  %6154 = vmatprep.mubr.bf16.mxu0 %v18614_v54  ;;  %v2801_v53 = vld [vmem:[#allocation13 + $0x620] sm:$0xff]  ;;  %v2838_v38 = vld [vmem:[#allocation13 + $0x748] sm:$0xff]  ;;  %v16069_v42 = vcombine.low %v2830_v30, %v2834_v31 }
 0x580   :  { %v16035_v4 = vcombine.low %v2797_v55, %v2801_v53  ;;  %v2842_v40 = vld [vmem:[#allocation13 + $0x768] sm:$0xff] }
 0x581   :  { %5953 = vmatpush1.bf16.msra.mxu1 %v15979_v62  ;;  %6125 = vmatpush1.bf16.msra.mxu0 %v15981_v1  ;;  %v16036_v62 = vcombine.high %v2797_v55, %v2801_v53  ;;  %v16038_v1 = vcombine.high %v2798_v56, %v2802_v57  ;;  %v2846_v55 = vld [vmem:[#allocation13 + $0x788] sm:$0xff]  ;;  %v16077_v57 = vcombine.low %v2838_v38, %v2842_v40 }
 0x582   :  { %5954 = vmatprep.subr.bf16.mxu1 %v15988_v2  ;;  %6126 = vmatprep.subr.bf16.mxu0 %v15990_v3  ;;  %v2805_v2 = vld [vmem:[#allocation13 + $0x640] sm:$0xff]  ;;  %v2850_v53 = vld [vmem:[#allocation13 + $0x7a8] sm:$0xff] }
 0x583   :  { %v2809_v3 = vld [vmem:[#allocation13 + $0x660] sm:$0xff] }
 0x584   :  { %v16043_v12 = vcombine.low %v2805_v2, %v2809_v3 }
 0x585   :  { %5955 = vmatpush1.bf16.msra.mxu1 %v15987_v7  ;;  %6127 = vmatpush1.bf16.msra.mxu0 %v15989_v8  ;;  %v16044_v7 = vcombine.high %v2805_v2, %v2809_v3  ;;  %v16046_v8 = vcombine.high %v2806_v61, %v2810_v59  ;;  %v2854_v2 = vld [vmem:[#allocation13 + $0x7c8] sm:$0xff]  ;;  %v16085_v59 = vcombine.low %v2846_v55, %v2850_v53 }
 0x586   :  { %5956 = vmatprep.subr.bf16.mxu1 %v15996_v9  ;;  %6128 = vmatprep.subr.bf16.mxu0 %v15998_v10  ;;  %v2813_v9 = vld [vmem:[#allocation13 + $0x680] sm:$0xff]  ;;  %v2858_v3 = vld [vmem:[#allocation13 + $0x7e8] sm:$0xff] }
 0x587   :  { %v2817_v10 = vld [vmem:[#allocation13 + $0x6a0] sm:$0xff] }
 0x588   :  { %v16051_v20 = vcombine.low %v2813_v9, %v2817_v10 }
 0x589   :  { %5957 = vmatpush1.bf16.msra.mxu1 %v15995_v14  ;;  %6129 = vmatpush1.bf16.msra.mxu0 %v15997_v15  ;;  %v16052_v14 = vcombine.high %v2813_v9, %v2817_v10  ;;  %v16054_v15 = vcombine.high %v2814_v0, %v2818_v11  ;;  %v2862_v9 = vld [vmem:[#allocation13 + $0x808] sm:$0xff]  ;;  %v16093_v11 = vcombine.low %v2854_v2, %v2858_v3 }
 0x58a   :  { %5958 = vmatprep.subr.bf16.mxu1 %v16004_v16  ;;  %6130 = vmatprep.subr.bf16.mxu0 %v16006_v17  ;;  %v2821_v16 = vld [vmem:[#allocation13 + $0x6c0] sm:$0xff]  ;;  %v2866_v10 = vld [vmem:[#allocation13 + $0x828] sm:$0xff] }
 0x58b   :  { %v2825_v17 = vld [vmem:[#allocation13 + $0x6e0] sm:$0xff] }
 0x58c   :  { %v16059_v32 = vcombine.low %v2821_v16, %v2825_v17 }
 0x58d   :  { %5959 = vmatpush1.bf16.msra.mxu1 %v16003_v22  ;;  %6131 = vmatpush1.bf16.msra.mxu0 %v16005_v23  ;;  %v16060_v22 = vcombine.high %v2821_v16, %v2825_v17  ;;  %v16062_v23 = vcombine.high %v2822_v18, %v2826_v19  ;;  %v2870_v16 = vld [vmem:[#allocation13 + $0x848] sm:$0xff]  ;;  %v16101_v19 = vcombine.low %v2862_v9, %v2866_v10 }
 0x58e   :  { %5960 = vmatprep.subr.bf16.mxu1 %v16012_v28  ;;  %6132 = vmatprep.subr.bf16.mxu0 %v16014_v29  ;;  %v2829_v28 = vld [vmem:[#allocation13 + $0x700] sm:$0xff]  ;;  %v2874_v17 = vld [vmem:[#allocation13 + $0x868] sm:$0xff] }
 0x58f   :  { %v2833_v29 = vld [vmem:[#allocation13 + $0x720] sm:$0xff] }
 0x590   :  { %v16067_v41 = vcombine.low %v2829_v28, %v2833_v29 }
 0x591   :  { %5961 = vmatpush1.bf16.msra.mxu1 %v16011_v34  ;;  %6133 = vmatpush1.bf16.msra.mxu0 %v16013_v35  ;;  %v16068_v34 = vcombine.high %v2829_v28, %v2833_v29  ;;  %v16070_v35 = vcombine.high %v2830_v30, %v2834_v31  ;;  %v2878_v28 = vld [vmem:[#allocation13 + $0x888] sm:$0xff]  ;;  %v16109_v31 = vcombine.low %v2870_v16, %v2874_v17 }
 0x592   :  { %5962 = vmatprep.subr.bf16.mxu1 %v16020_v36  ;;  %6134 = vmatprep.subr.bf16.mxu0 %v16022_v37  ;;  %v2837_v36 = vld [vmem:[#allocation13 + $0x740] sm:$0xff]  ;;  %v2882_v29 = vld [vmem:[#allocation13 + $0x8a8] sm:$0xff] }
 0x593   :  { %v2841_v37 = vld [vmem:[#allocation13 + $0x760] sm:$0xff] }
 0x594   :  { %v16075_v56 = vcombine.low %v2837_v36, %v2841_v37 }
 0x595   :  { %5963 = vmatpush1.bf16.msra.mxu1 %v16019_v43  ;;  %6135 = vmatpush1.bf16.msra.mxu0 %v16021_v63  ;;  %v16076_v43 = vcombine.high %v2837_v36, %v2841_v37  ;;  %v16078_v63 = vcombine.high %v2838_v38, %v2842_v40  ;;  %v2886_v36 = vld [vmem:[#allocation13 + $0x8c8] sm:$0xff]  ;;  %v16117_v40 = vcombine.low %v2878_v28, %v2882_v29 }
 0x596   :  { %5964 = vmatprep.subr.bf16.mxu1 %v16028_v49  ;;  %6136 = vmatprep.subr.bf16.mxu0 %v16030_v52  ;;  %v2845_v49 = vld [vmem:[#allocation13 + $0x780] sm:$0xff]  ;;  %v2890_v37 = vld [vmem:[#allocation13 + $0x8e8] sm:$0xff] }
 0x597   :  { %v2849_v52 = vld [vmem:[#allocation13 + $0x7a0] sm:$0xff] }
 0x598   :  { %v16083_v61 = vcombine.low %v2845_v49, %v2849_v52 }
 0x599   :  { %5965 = vmatpush1.bf16.msra.mxu1 %v16027_v58  ;;  %6137 = vmatpush1.bf16.msra.mxu0 %v16029_v60  ;;  %v16084_v58 = vcombine.high %v2845_v49, %v2849_v52  ;;  %v16086_v60 = vcombine.high %v2846_v55, %v2850_v53  ;;  %v2894_v49 = vld [vmem:[#allocation13 + $0x908] sm:$0xff]  ;;  %v16125_v53 = vcombine.low %v2886_v36, %v2890_v37 }
 0x59a   :  { %5966 = vmatprep.subr.bf16.mxu1 %v16036_v62  ;;  %6138 = vmatprep.subr.bf16.mxu0 %v16038_v1  ;;  %v2853_v62 = vld [vmem:[#allocation13 + $0x7c0] sm:$0xff]  ;;  %v2898_v52 = vld [vmem:[#allocation13 + $0x928] sm:$0xff] }
 0x59b   :  { %v2857_v1 = vld [vmem:[#allocation13 + $0x7e0] sm:$0xff] }
 0x59c   :  { %v16091_v0 = vcombine.low %v2853_v62, %v2857_v1 }
 0x59d   :  { %5967 = vmatpush1.bf16.msra.mxu1 %v16035_v4  ;;  %6139 = vmatpush1.bf16.msra.mxu0 %v16037_v5  ;;  %v16092_v4 = vcombine.high %v2853_v62, %v2857_v1  ;;  %v16094_v5 = vcombine.high %v2854_v2, %v2858_v3  ;;  %v2902_v62 = vld [vmem:[#allocation13 + $0x948] sm:$0xff]  ;;  %v16133_v3 = vcombine.low %v2894_v49, %v2898_v52 }
 0x59e   :  { %5968 = vmatprep.subr.bf16.mxu1 %v16044_v7  ;;  %6140 = vmatprep.subr.bf16.mxu0 %v16046_v8  ;;  %v2861_v7 = vld [vmem:[#allocation13 + $0x800] sm:$0xff]  ;;  %v2906_v1 = vld [vmem:[#allocation13 + $0x968] sm:$0xff] }
 0x59f   :  { %v2865_v8 = vld [vmem:[#allocation13 + $0x820] sm:$0xff] }
 0x5a0   :  { %v16099_v18 = vcombine.low %v2861_v7, %v2865_v8 }
 0x5a1   :  { %5969 = vmatpush1.bf16.msra.mxu1 %v16043_v12  ;;  %6141 = vmatpush1.bf16.msra.mxu0 %v16045_v13  ;;  %v16100_v12 = vcombine.high %v2861_v7, %v2865_v8  ;;  %v16102_v13 = vcombine.high %v2862_v9, %v2866_v10  ;;  %v2910_v7 = vld [vmem:[#allocation13 + $0x988] sm:$0xff]  ;;  %v16141_v10 = vcombine.low %v2902_v62, %v2906_v1 }
 0x5a2   :  { %5970 = vmatprep.subr.bf16.mxu1 %v16052_v14  ;;  %6142 = vmatprep.subr.bf16.mxu0 %v16054_v15  ;;  %v2869_v14 = vld [vmem:[#allocation13 + $0x840] sm:$0xff]  ;;  %v2914_v8 = vld [vmem:[#allocation13 + $0x9a8] sm:$0xff] }
 0x5a3   :  { %v2873_v15 = vld [vmem:[#allocation13 + $0x860] sm:$0xff] }
 0x5a4   :  { %v16107_v30 = vcombine.low %v2869_v14, %v2873_v15 }
 0x5a5   :  { %5971 = vmatpush1.bf16.msra.mxu1 %v16051_v20  ;;  %6143 = vmatpush1.bf16.msra.mxu0 %v16053_v21  ;;  %v16108_v20 = vcombine.high %v2869_v14, %v2873_v15  ;;  %v16110_v21 = vcombine.high %v2870_v16, %v2874_v17  ;;  %v2918_v14 = vld [vmem:[#allocation13 + $0x9c8] sm:$0xff]  ;;  %v16149_v17 = vcombine.low %v2910_v7, %v2914_v8 }
 0x5a6   :  { %5972 = vmatprep.subr.bf16.mxu1 %v16060_v22  ;;  %6144 = vmatprep.subr.bf16.mxu0 %v16062_v23  ;;  %v2877_v22 = vld [vmem:[#allocation13 + $0x880] sm:$0xff]  ;;  %v2922_v15 = vld [vmem:[#allocation13 + $0x9e8] sm:$0xff] }
 0x5a7   :  { %v2881_v23 = vld [vmem:[#allocation13 + $0x8a0] sm:$0xff] }
 0x5a8   :  { %v16115_v38 = vcombine.low %v2877_v22, %v2881_v23 }
 0x5a9   :  { %5973 = vmatpush1.bf16.msra.mxu1 %v16059_v32  ;;  %6145 = vmatpush1.bf16.msra.mxu0 %v16061_v33  ;;  %v16116_v32 = vcombine.high %v2877_v22, %v2881_v23  ;;  %v16118_v33 = vcombine.high %v2878_v28, %v2882_v29  ;;  %v2926_v22 = vld [vmem:[#allocation13 + $0xa08] sm:$0xff]  ;;  %v16157_v29 = vcombine.low %v2918_v14, %v2922_v15 }
 0x5aa   :  { %5974 = vmatprep.subr.bf16.mxu1 %v16068_v34  ;;  %6146 = vmatprep.subr.bf16.mxu0 %v16070_v35  ;;  %v2885_v34 = vld [vmem:[#allocation13 + $0x8c0] sm:$0xff]  ;;  %v2930_v23 = vld [vmem:[#allocation13 + $0xa28] sm:$0xff] }
 0x5ab   :  { %v2889_v35 = vld [vmem:[#allocation13 + $0x8e0] sm:$0xff] }
 0x5ac   :  { %v16123_v55 = vcombine.low %v2885_v34, %v2889_v35 }
 0x5ad   :  { %5975 = vmatpush1.bf16.msra.mxu1 %v16067_v41  ;;  %6147 = vmatpush1.bf16.msra.mxu0 %v16069_v42  ;;  %v16124_v41 = vcombine.high %v2885_v34, %v2889_v35  ;;  %v16126_v42 = vcombine.high %v2886_v36, %v2890_v37  ;;  %v2934_v34 = vld [vmem:[#allocation13 + $0xa48] sm:$0xff]  ;;  %v16165_v37 = vcombine.low %v2926_v22, %v2930_v23 }
 0x5ae   :  { %5976 = vmatprep.subr.bf16.mxu1 %v16076_v43  ;;  %6148 = vmatprep.subr.bf16.mxu0 %v16078_v63  ;;  %v2893_v43 = vld [vmem:[#allocation13 + $0x900] sm:$0xff]  ;;  %v2938_v35 = vld [vmem:[#allocation13 + $0xa68] sm:$0xff] }
 0x5af   :  { %v2897_v63 = vld [vmem:[#allocation13 + $0x920] sm:$0xff] }
 0x5b0   :  { %v16131_v2 = vcombine.low %v2893_v43, %v2897_v63 }
 0x5b1   :  { %5977 = vmatpush1.bf16.msra.mxu1 %v16075_v56  ;;  %6149 = vmatpush1.bf16.msra.mxu0 %v16077_v57  ;;  %v16132_v56 = vcombine.high %v2893_v43, %v2897_v63  ;;  %v16134_v57 = vcombine.high %v2894_v49, %v2898_v52  ;;  %v2942_v43 = vld [vmem:[#allocation13 + $0xa88] sm:$0xff]  ;;  %v16173_v52 = vcombine.low %v2934_v34, %v2938_v35 }
 0x5b2   :  { %5978 = vmatprep.subr.bf16.mxu1 %v16084_v58  ;;  %6150 = vmatprep.subr.bf16.mxu0 %v16086_v60  ;;  %v2901_v58 = vld [vmem:[#allocation13 + $0x940] sm:$0xff]  ;;  %v2946_v63 = vld [vmem:[#allocation13 + $0xaa8] sm:$0xff] }
 0x5b3   :  { %v2905_v60 = vld [vmem:[#allocation13 + $0x960] sm:$0xff] }
 0x5b4   :  { %v16139_v9 = vcombine.low %v2901_v58, %v2905_v60 }
 0x5b5   :  { %5979 = vmatpush1.bf16.msra.mxu1 %v16083_v61  ;;  %6151 = vmatpush1.bf16.msra.mxu0 %v16085_v59  ;;  %v16140_v61 = vcombine.high %v2901_v58, %v2905_v60  ;;  %v16142_v59 = vcombine.high %v2902_v62, %v2906_v1  ;;  %v2950_v58 = vld [vmem:[#allocation13 + $0xac8] sm:$0xff]  ;;  %v16181_v1 = vcombine.low %v2942_v43, %v2946_v63 }
 0x5b6   :  { %5980 = vmatprep.subr.bf16.mxu1 %v16092_v4  ;;  %6152 = vmatprep.subr.bf16.mxu0 %v16094_v5  ;;  %v2909_v4 = vld [vmem:[#allocation13 + $0x980] sm:$0xff]  ;;  %v2954_v60 = vld [vmem:[#allocation13 + $0xae8] sm:$0xff] }
 0x5b7   :  { %v2913_v5 = vld [vmem:[#allocation13 + $0x9a0] sm:$0xff] }
 0x5b8   :  { %v16147_v16 = vcombine.low %v2909_v4, %v2913_v5 }
 0x5b9   :  { %5981 = vmatpush1.bf16.msra.mxu1 %v16091_v0  ;;  %6153 = vmatpush1.bf16.msra.mxu0 %v16093_v11  ;;  %v16148_v0 = vcombine.high %v2909_v4, %v2913_v5  ;;  %v16150_v11 = vcombine.high %v2910_v7, %v2914_v8  ;;  %v2958_v4 = vld [vmem:[#allocation13 + $0xb08] sm:$0xff]  ;;  %v16189_v8 = vcombine.low %v2950_v58, %v2954_v60 }
 0x5ba   :  { %5993 = vmatprep.subr.bf16.mxu1 %v16100_v12  ;;  %6165 = vmatprep.subr.bf16.mxu0 %v16102_v13  ;;  %v2917_v12 = vld [vmem:[#allocation13 + $0x9c0] sm:$0xff]  ;;  %v2962_v5 = vld [vmem:[#allocation13 + $0xb28] sm:$0xff] }
 0x5bb   :  { %v2921_v13 = vld [vmem:[#allocation13 + $0x9e0] sm:$0xff] }
 0x5bc   :  { %5983 = vmatmul.mubr.bf16.vlgmr.msra.gmra.mrb[24].mxu1 %v18610_v44  ;;  %6155 = vmatmul.mubr.bf16.vlgmr.msra.gmra.mrb[28].mxu0 %v18610_v44  ;;  %v16155_v28 = vcombine.low %v2917_v12, %v2921_v13 }
 0x5bd   :  { %5994 = vmatpush1.bf16.msra.mxu1 %v16099_v18  ;;  %6166 = vmatpush1.bf16.msra.mxu0 %v16101_v19  ;;  %v16156_v18 = vcombine.high %v2917_v12, %v2921_v13  ;;  %v16158_v19 = vcombine.high %v2918_v14, %v2922_v15  ;;  %v2966_v12 = vld [vmem:[#allocation13 + $0xb48] sm:$0xff]  ;;  %v16197_v15 = vcombine.low %v2958_v4, %v2962_v5 }
 0x5be   :  { %5995 = vmatprep.subr.bf16.mxu1 %v16108_v20  ;;  %6167 = vmatprep.subr.bf16.mxu0 %v16110_v21  ;;  %v2925_v20 = vld [vmem:[#allocation13 + $0xa00] sm:$0xff]  ;;  %v2970_v13 = vld [vmem:[#allocation13 + $0xb68] sm:$0xff] }
 0x5bf   :  { %v2929_v21 = vld [vmem:[#allocation13 + $0xa20] sm:$0xff] }
 0x5c0   :  { %v16163_v36 = vcombine.low %v2925_v20, %v2929_v21 }
 0x5c1   :  { %5996 = vmatpush1.bf16.msra.mxu1 %v16107_v30  ;;  %6168 = vmatpush1.bf16.msra.mxu0 %v16109_v31  ;;  %v16164_v30 = vcombine.high %v2925_v20, %v2929_v21  ;;  %v16166_v31 = vcombine.high %v2926_v22, %v2930_v23  ;;  %v2974_v20 = vld [vmem:[#allocation13 + $0xb88] sm:$0xff]  ;;  %v16205_v23 = vcombine.low %v2966_v12, %v2970_v13 }
 0x5c2   :  { %5997 = vmatprep.subr.bf16.mxu1 %v16116_v32  ;;  %6169 = vmatprep.subr.bf16.mxu0 %v16118_v33  ;;  %v2933_v32 = vld [vmem:[#allocation13 + $0xa40] sm:$0xff]  ;;  %v2978_v21 = vld [vmem:[#allocation13 + $0xba8] sm:$0xff] }
 0x5c3   :  { %v2937_v33 = vld [vmem:[#allocation13 + $0xa60] sm:$0xff] }
 0x5c4   :  { %v16171_v49 = vcombine.low %v2933_v32, %v2937_v33 }
 0x5c5   :  { %5998 = vmatpush1.bf16.msra.mxu1 %v16115_v38  ;;  %6170 = vmatpush1.bf16.msra.mxu0 %v16117_v40  ;;  %v16172_v38 = vcombine.high %v2933_v32, %v2937_v33  ;;  %v16174_v40 = vcombine.high %v2934_v34, %v2938_v35  ;;  %v2982_v32 = vld [vmem:[#allocation13 + $0xbc8] sm:$0xff]  ;;  %v16213_v35 = vcombine.low %v2974_v20, %v2978_v21 }
 0x5c6   :  { %5999 = vmatprep.subr.bf16.mxu1 %v16124_v41  ;;  %6171 = vmatprep.subr.bf16.mxu0 %v16126_v42  ;;  %v2941_v41 = vld [vmem:[#allocation13 + $0xa80] sm:$0xff]  ;;  %v2986_v33 = vld [vmem:[#allocation13 + $0xbe8] sm:$0xff] }
 0x5c7   :  { %v2945_v42 = vld [vmem:[#allocation13 + $0xaa0] sm:$0xff] }
 0x5c8   :  { %v16179_v62 = vcombine.low %v2941_v41, %v2945_v42 }
 0x5c9   :  { %6000 = vmatpush1.bf16.msra.mxu1 %v16123_v55  ;;  %6172 = vmatpush1.bf16.msra.mxu0 %v16125_v53  ;;  %v16180_v55 = vcombine.high %v2941_v41, %v2945_v42  ;;  %v16182_v53 = vcombine.high %v2942_v43, %v2946_v63  ;;  %v2990_v41 = vld [vmem:[#allocation13 + $0xc08] sm:$0xff] }
 0x5ca   :  { %6001 = vmatprep.subr.bf16.mxu1 %v16132_v56  ;;  %6173 = vmatprep.subr.bf16.mxu0 %v16134_v57  ;;  %v2949_v56 = vld [vmem:[#allocation13 + $0xac0] sm:$0xff]  ;;  %v2994_v42 = vld [vmem:[#allocation13 + $0xc28] sm:$0xff] }
 0x5cb   :  { %v2953_v57 = vld [vmem:[#allocation13 + $0xae0] sm:$0xff] }
 0x5cc   :  { %v16187_v7 = vcombine.low %v2949_v56, %v2953_v57 }
 0x5cd   :  { %6002 = vmatpush1.bf16.msra.mxu1 %v16131_v2  ;;  %6174 = vmatpush1.bf16.msra.mxu0 %v16133_v3  ;;  %v16188_v2 = vcombine.high %v2949_v56, %v2953_v57  ;;  %v16190_v3 = vcombine.high %v2950_v58, %v2954_v60  ;;  %v2997_v56 = vld [vmem:[#allocation13 + $0xc40] sm:$0xff] }
 0x5ce   :  { %6003 = vmatprep.subr.bf16.mxu1 %v16140_v61  ;;  %6175 = vmatprep.subr.bf16.mxu0 %v16142_v59  ;;  %v2957_v61 = vld [vmem:[#allocation13 + $0xb00] sm:$0xff] }
 0x5cf   :  { %v2961_v59 = vld [vmem:[#allocation13 + $0xb20] sm:$0xff] }
 0x5d0   :  { %v16195_v14 = vcombine.low %v2957_v61, %v2961_v59  ;;  %v3001_v60 = vld [vmem:[#allocation13 + $0xc60] sm:$0xff] }
 0x5d1   :  { %6004 = vmatpush1.bf16.msra.mxu1 %v16139_v9  ;;  %6176 = vmatpush1.bf16.msra.mxu0 %v16141_v10  ;;  %v16196_v9 = vcombine.high %v2957_v61, %v2961_v59  ;;  %v16198_v10 = vcombine.high %v2958_v4, %v2962_v5 }
 0x5d2   :  { %6005 = vmatprep.subr.bf16.mxu1 %v16148_v0  ;;  %6177 = vmatprep.subr.bf16.mxu0 %v16150_v11  ;;  %v2965_v0 = vld [vmem:[#allocation13 + $0xb40] sm:$0xff] }
 0x5d3   :  { %v2969_v11 = vld [vmem:[#allocation13 + $0xb60] sm:$0xff] }
 0x5d4   :  { %v16203_v22 = vcombine.low %v2965_v0, %v2969_v11 }
 0x5d5   :  { %6006 = vmatpush1.bf16.msra.mxu1 %v16147_v16  ;;  %6178 = vmatpush1.bf16.msra.mxu0 %v16149_v17  ;;  %v16204_v16 = vcombine.high %v2965_v0, %v2969_v11  ;;  %v16206_v17 = vcombine.high %v2966_v12, %v2970_v13  ;;  %v3005_v11 = vld [vmem:[#allocation13 + $0xc80] sm:$0xff] }
 0x5d6   :  { %6007 = vmatprep.subr.bf16.mxu1 %v16156_v18  ;;  %6179 = vmatprep.subr.bf16.mxu0 %v16158_v19  ;;  %v2973_v18 = vld [vmem:[#allocation13 + $0xb80] sm:$0xff] }
 0x5d7   :  { %v2977_v19 = vld [vmem:[#allocation13 + $0xba0] sm:$0xff] }
 0x5d8   :  { %v16211_v34 = vcombine.low %v2973_v18, %v2977_v19  ;;  %v3009_v13 = vld [vmem:[#allocation13 + $0xca0] sm:$0xff] }
 0x5d9   :  { %6008 = vmatpush1.bf16.msra.mxu1 %v16155_v28  ;;  %6180 = vmatpush1.bf16.msra.mxu0 %v16157_v29  ;;  %v16212_v28 = vcombine.high %v2973_v18, %v2977_v19  ;;  %v16214_v29 = vcombine.high %v2974_v20, %v2978_v21  ;;  %v16244_v18 = vcombine.high %v3005_v11, %v3009_v13  ;;  %v3013_v20 = vld [vmem:[#allocation13 + $0xcc0] sm:$0xff] }
 0x5da   :  { %6009 = vmatprep.subr.bf16.mxu1 %v16164_v30  ;;  %6181 = vmatprep.subr.bf16.mxu0 %v16166_v31  ;;  %v2981_v30 = vld [vmem:[#allocation13 + $0xbc0] sm:$0xff] }
 0x5db   :  { %v2985_v31 = vld [vmem:[#allocation13 + $0xbe0] sm:$0xff] }
 0x5dc   :  { %v16219_v63 = vcombine.low %v2981_v30, %v2985_v31  ;;  %v3017_v21 = vld [vmem:[#allocation13 + $0xce0] sm:$0xff] }
 0x5dd   :  { %6010 = vmatpush1.bf16.msra.mxu1 %v16163_v36  ;;  %6182 = vmatpush1.bf16.msra.mxu0 %v16165_v37  ;;  %v16220_v36 = vcombine.high %v2981_v30, %v2985_v31  ;;  %v16222_v37 = vcombine.high %v2982_v32, %v2986_v33  ;;  %v16252_v30 = vcombine.high %v3013_v20, %v3017_v21 }
 0x5de   :  { %6011 = vmatprep.subr.bf16.mxu1 %v16172_v38  ;;  %6183 = vmatprep.subr.bf16.mxu0 %v16174_v40  ;;  %v2989_v38 = vld [vmem:[#allocation13 + $0xc00] sm:$0xff] }
 0x5df   :  { %v2993_v40 = vld [vmem:[#allocation13 + $0xc20] sm:$0xff] }
 0x5e0   :  { %v16227_v59 = vcombine.low %v2989_v38, %v2993_v40 }
 0x5e1   :  { %6012 = vmatpush1.bf16.msra.mxu1 %v16171_v49  ;;  %6184 = vmatpush1.bf16.msra.mxu0 %v16173_v52  ;;  %v16221_v49 = vcombine.low %v2982_v32, %v2986_v33  ;;  %v3021_v32 = vld [vmem:[#allocation13 + $0xd00] sm:$0xff] }
 0x5e2   :  { %6013 = vmatprep.subr.bf16.mxu1 %v16180_v55  ;;  %6185 = vmatprep.subr.bf16.mxu0 %v16182_v53  ;;  %v16228_v55 = vcombine.high %v2989_v38, %v2993_v40  ;;  %v16230_v53 = vcombine.high %v2990_v41, %v2994_v42  ;;  %v3025_v33 = vld [vmem:[#allocation13 + $0xd20] sm:$0xff] }
 0x5e3   :  { %v16260_v38 = vcombine.high %v3021_v32, %v3025_v33 }
 0x5e5   :  { %6014 = vmatpush1.bf16.msra.mxu1 %v16179_v62  ;;  %6186 = vmatpush1.bf16.msra.mxu0 %v16181_v1  ;;  %v2998_v62 = vld [vmem:[#allocation13 + $0xc48] sm:$0xff] }
 0x5e6   :  { %6015 = vmatprep.subr.bf16.mxu1 %v16188_v2  ;;  %6187 = vmatprep.subr.bf16.mxu0 %v16190_v3  ;;  %v3002_v1 = vld [vmem:[#allocation13 + $0xc68] sm:$0xff] }
 0x5e7   :  { %v16238_v0 = vcombine.high %v2998_v62, %v3002_v1 }
 0x5e9   :  { %6016 = vmatpush1.bf16.msra.mxu1 %v16187_v7  ;;  %6188 = vmatpush1.bf16.msra.mxu0 %v16189_v8  ;;  %v16229_v7 = vcombine.low %v2990_v41, %v2994_v42  ;;  %v3029_v41 = vld [vmem:[#allocation13 + $0xd40] sm:$0xff] }
 0x5ea   :  { %6017 = vmatprep.subr.bf16.mxu1 %v16196_v9  ;;  %6189 = vmatprep.subr.bf16.mxu0 %v16198_v10  ;;  %v16236_v10 = vcombine.high %v2997_v56, %v3001_v60  ;;  %v3033_v42 = vld [vmem:[#allocation13 + $0xd60] sm:$0xff] }
 0x5ed   :  { %6018 = vmatpush1.bf16.msra.mxu1 %v16195_v14  ;;  %6190 = vmatpush1.bf16.msra.mxu0 %v16197_v15  ;;  %v3006_v14 = vld [vmem:[#allocation13 + $0xc88] sm:$0xff] }
 0x5ee   :  { %6019 = vmatprep.subr.bf16.mxu1 %v16204_v16  ;;  %6191 = vmatprep.subr.bf16.mxu0 %v16206_v17  ;;  %v3010_v15 = vld [vmem:[#allocation13 + $0xca8] sm:$0xff]  ;;  %v16235_v16 = vcombine.low %v2997_v56, %v3001_v60  ;;  %v16237_v17 = vcombine.low %v2998_v62, %v3002_v1  ;;  %v3037_v56 = vld [vmem:[#allocation13 + $0xd80] sm:$0xff]  ;;  %v16267_v62 = vcombine.low %v3029_v41, %v3033_v42 }
 0x5ef   :  { %v16246_v19 = vcombine.high %v3006_v14, %v3010_v15  ;;  %v3042_v60 = vld [vmem:[#allocation13 + $0xda8] sm:$0xff] }
 0x5f1   :  { %6020 = vmatpush1.bf16.msra.mxu1 %v16203_v22  ;;  %6192 = vmatpush1.bf16.msra.mxu0 %v16205_v23  ;;  %v3014_v22 = vld [vmem:[#allocation13 + $0xcc8] sm:$0xff] }
 0x5f2   :  { %6021 = vmatprep.subr.bf16.mxu1 %v16212_v28  ;;  %6193 = vmatprep.subr.bf16.mxu0 %v16214_v29  ;;  %v3018_v23 = vld [vmem:[#allocation13 + $0xce8] sm:$0xff]  ;;  %v16243_v28 = vcombine.low %v3005_v11, %v3009_v13  ;;  %v16245_v29 = vcombine.low %v3006_v14, %v3010_v15  ;;  %v3053_v14 = vld [vmem:[#allocation13 + $0xe00] sm:$0xff] }
 0x5f3   :  { %v16254_v31 = vcombine.high %v3014_v22, %v3018_v23  ;;  %v3057_v15 = vld [vmem:[#allocation13 + $0xe20] sm:$0xff] }
 0x5f5   :  { %6022 = vmatpush1.bf16.msra.mxu1 %v16211_v34  ;;  %6194 = vmatpush1.bf16.msra.mxu0 %v16213_v35  ;;  %v3246_v43 = vpop.f32.mrb[20].mxu1  ;;  %v3022_v34 = vld [vmem:[#allocation13 + $0xd08] sm:$0xff] }
 0x5f6   :  { %v3248_v52 = vpop.f32.mrb[21].mxu1  ;;  %6023 = vmatprep.subr.bf16.mxu1 %v16220_v36  ;;  %6195 = vmatprep.subr.bf16.mxu0 %v16222_v37  ;;  %v3289_v57 = vpop.f32.mrb[24].mxu0  ;;  %v3026_v35 = vld [vmem:[#allocation13 + $0xd28] sm:$0xff]  ;;  %v16251_v36 = vcombine.low %v3013_v20, %v3017_v21  ;;  %v16253_v37 = vcombine.low %v3014_v22, %v3018_v23  ;;  %v16292_v20 = vcombine.high %v3053_v14, %v3057_v15  ;;  %v3061_v22 = vld [vmem:[#allocation13 + $0xe40] sm:$0xff] }
 0x5f7   :  { %v3250_v58 = vpop.f32.mrb[22].mxu1  ;;  %v3291_v2 = vpop.f32.mrb[25].mxu0  ;;  %v16262_v40 = vcombine.high %v3022_v34, %v3026_v35  ;;  %v3065_v23 = vld [vmem:[#allocation13 + $0xe60] sm:$0xff] }
 0x5f8   :  { %v18624_v3 = vpack.c.bf16 %v3250_v58, %v3246_v43  ;;  %v3252_v61 = vpop.f32.mrb[23].mxu1  ;;  %v3293_v4 = vpop.f32.mrb[26].mxu0  ;;  %v3030_v43 = vld [vmem:[#allocation13 + $0xd48] sm:$0xff] }
 0x5f9   :  { %v18626_v5 = vpack.c.bf16 %v3252_v61, %v3248_v52  ;;  %6024 = vmatpush1.bf16.msra.mxu1 %v16219_v63  ;;  %6196 = vmatpush1.bf16.msra.mxu0 %v16221_v49  ;;  %v18628_v8 = vpack.c.bf16 %v3293_v4, %v3289_v57  ;;  %v3295_v9 = vpop.f32.mrb[27].mxu0  ;;  %v3034_v63 = vld [vmem:[#allocation13 + $0xd68] sm:$0xff]  ;;  %v16259_v49 = vcombine.low %v3021_v32, %v3025_v33  ;;  %v3041_v57 = vld [vmem:[#allocation13 + $0xda0] sm:$0xff] }
 0x5fa   :  { %6036 = vmatprep.subr.bf16.mxu1 %v16228_v55  ;;  %6208 = vmatprep.subr.bf16.mxu0 %v16230_v53  ;;  %v18630_v12 = vpack.c.bf16 %v3295_v9, %v3291_v2  ;;  %v16261_v52 = vcombine.low %v3022_v34, %v3026_v35  ;;  %v16268_v55 = vcombine.high %v3029_v41, %v3033_v42  ;;  %v3038_v58 = vld [vmem:[#allocation13 + $0xd88] sm:$0xff]  ;;  %v3049_v4 = vld [vmem:[#allocation13 + $0xde0] sm:$0xff] }
 0x5fb   :  { %6025 = vmatprep.mubr.bf16.mxu1 %v18626_v5  ;;  %6197 = vmatprep.mubr.bf16.mxu0 %v18626_v5  ;;  %v16270_v53 = vcombine.high %v3030_v43, %v3034_v63  ;;  %v16269_v1 = vcombine.low %v3030_v43, %v3034_v63  ;;  %v16276_v2 = vcombine.high %v3037_v56, %v3041_v57  ;;  %v3050_v9 = vld [vmem:[#allocation13 + $0xde8] sm:$0xff]  ;;  %v3069_v34 = vld [vmem:[#allocation13 + $0xe80] sm:$0xff] }
 0x5fc   :  { %6026 = vmatmul.mubr.bf16.vlgmr.msra.gmra.mrb[24].mxu1 %v18624_v3  ;;  %6198 = vmatmul.mubr.bf16.vlgmr.msra.gmra.mrb[28].mxu0 %v18624_v3  ;;  %v16278_v61 = vcombine.high %v3038_v58, %v3042_v60  ;;  %v16300_v32 = vcombine.high %v3061_v22, %v3065_v23  ;;  %v3073_v35 = vld [vmem:[#allocation13 + $0xea0] sm:$0xff] }
 0x5fd   :  { %6037 = vmatpush1.bf16.msra.mxu1 %v16227_v59  ;;  %6209 = vmatpush1.bf16.msra.mxu0 %v16229_v7  ;;  %v3045_v59 = vld [vmem:[#allocation13 + $0xdc0] sm:$0xff]  ;;  %v3046_v7 = vld [vmem:[#allocation13 + $0xdc8] sm:$0xff]  ;;  %v16308_v41 = vcombine.high %v3069_v34, %v3073_v35 }
 0x5fe   :  { %6038 = vmatprep.subr.bf16.mxu1 %v16236_v10  ;;  %6210 = vmatprep.subr.bf16.mxu0 %v16238_v0  ;;  %v16275_v10 = vcombine.low %v3037_v56, %v3041_v57  ;;  %v16277_v0 = vcombine.low %v3038_v58, %v3042_v60  ;;  %v16284_v11 = vcombine.high %v3045_v59, %v3049_v4  ;;  %v3077_v43 = vld [vmem:[#allocation13 + $0xec0] sm:$0xff] }
 0x5ff   :  { %6068 = vmatprep.mubr.bf16.mxu1 %v18630_v12  ;;  %6240 = vmatprep.mubr.bf16.mxu0 %v18630_v12  ;;  %v16286_v13 = vcombine.high %v3046_v7, %v3050_v9  ;;  %v3081_v63 = vld [vmem:[#allocation13 + $0xee0] sm:$0xff] }
 0x600   :  { %v16316_v56 = vcombine.high %v3077_v43, %v3081_v63  ;;  %v3085_v58 = vld [vmem:[#allocation13 + $0xf00] sm:$0xff] }
 0x601   :  { %6039 = vmatpush1.bf16.msra.mxu1 %v16235_v16  ;;  %6211 = vmatpush1.bf16.msra.mxu0 %v16237_v17  ;;  %v3054_v16 = vld [vmem:[#allocation13 + $0xe08] sm:$0xff]  ;;  %v3089_v60 = vld [vmem:[#allocation13 + $0xf20] sm:$0xff] }
 0x602   :  { %6040 = vmatprep.subr.bf16.mxu1 %v16244_v18  ;;  %6212 = vmatprep.subr.bf16.mxu0 %v16246_v19  ;;  %v3058_v17 = vld [vmem:[#allocation13 + $0xe28] sm:$0xff]  ;;  %v16283_v18 = vcombine.low %v3045_v59, %v3049_v4  ;;  %v16285_v19 = vcombine.low %v3046_v7, %v3050_v9  ;;  %v16324_v59 = vcombine.high %v3085_v58, %v3089_v60  ;;  %v3093_v7 = vld [vmem:[#allocation13 + $0xf40] sm:$0xff] }
 0x603   :  { %v16294_v21 = vcombine.high %v3054_v16, %v3058_v17  ;;  %v3097_v9 = vld [vmem:[#allocation13 + $0xf60] sm:$0xff] }
 0x605   :  { %6041 = vmatpush1.bf16.msra.mxu1 %v16243_v28  ;;  %6213 = vmatpush1.bf16.msra.mxu0 %v16245_v29  ;;  %v3062_v28 = vld [vmem:[#allocation13 + $0xe48] sm:$0xff] }
 0x606   :  { %6042 = vmatprep.subr.bf16.mxu1 %v16252_v30  ;;  %6214 = vmatprep.subr.bf16.mxu0 %v16254_v31  ;;  %v3066_v29 = vld [vmem:[#allocation13 + $0xe68] sm:$0xff]  ;;  %v16291_v30 = vcombine.low %v3053_v14, %v3057_v15  ;;  %v16293_v31 = vcombine.low %v3054_v16, %v3058_v17  ;;  %v16332_v14 = vcombine.high %v3093_v7, %v3097_v9  ;;  %v3101_v16 = vld [vmem:[#allocation13 + $0xf80] sm:$0xff] }
 0x607   :  { %v16302_v33 = vcombine.high %v3062_v28, %v3066_v29  ;;  %v3105_v17 = vld [vmem:[#allocation13 + $0xfa0] sm:$0xff] }
 0x609   :  { %6043 = vmatpush1.bf16.msra.mxu1 %v16251_v36  ;;  %6215 = vmatpush1.bf16.msra.mxu0 %v16253_v37  ;;  %v3070_v36 = vld [vmem:[#allocation13 + $0xe88] sm:$0xff] }
 0x60a   :  { %6044 = vmatprep.subr.bf16.mxu1 %v16260_v38  ;;  %6216 = vmatprep.subr.bf16.mxu0 %v16262_v40  ;;  %v3074_v37 = vld [vmem:[#allocation13 + $0xea8] sm:$0xff]  ;;  %v16299_v38 = vcombine.low %v3061_v22, %v3065_v23  ;;  %v16301_v40 = vcombine.low %v3062_v28, %v3066_v29  ;;  %v16340_v22 = vcombine.high %v3101_v16, %v3105_v17  ;;  %v3109_v28 = vld [vmem:[#allocation13 + $0xfc0] sm:$0xff] }
 0x60b   :  { %v16310_v42 = vcombine.high %v3070_v36, %v3074_v37  ;;  %v3113_v29 = vld [vmem:[#allocation13 + $0xfe0] sm:$0xff] }
 0x60d   :  { %6045 = vmatpush1.bf16.msra.mxu1 %v16259_v49  ;;  %6217 = vmatpush1.bf16.msra.mxu0 %v16261_v52  ;;  %v3078_v49 = vld [vmem:[#allocation13 + $0xec8] sm:$0xff] }
 0x60e   :  { %6046 = vmatprep.subr.bf16.mxu1 %v16268_v55  ;;  %6218 = vmatprep.subr.bf16.mxu0 %v16270_v53  ;;  %v3082_v52 = vld [vmem:[#allocation13 + $0xee8] sm:$0xff]  ;;  %v16307_v55 = vcombine.low %v3069_v34, %v3073_v35  ;;  %v16309_v53 = vcombine.low %v3070_v36, %v3074_v37  ;;  %v16348_v34 = vcombine.high %v3109_v28, %v3113_v29  ;;  %v2607_v36 = vld [vmem:[#allocation13 + $0x10] sm:$0xff] }
 0x60f   :  { %v16318_v57 = vcombine.high %v3078_v49, %v3082_v52  ;;  %v2611_v37 = vld [vmem:[#allocation13 + $0x30] sm:$0xff] }
 0x611   :  { %6047 = vmatpush1.bf16.msra.mxu1 %v16267_v62  ;;  %6219 = vmatpush1.bf16.msra.mxu0 %v16269_v1  ;;  %v3086_v62 = vld [vmem:[#allocation13 + $0xf08] sm:$0xff] }
 0x612   :  { %6048 = vmatprep.subr.bf16.mxu1 %v16276_v2  ;;  %6220 = vmatprep.subr.bf16.mxu0 %v16278_v61  ;;  %v3090_v1 = vld [vmem:[#allocation13 + $0xf28] sm:$0xff]  ;;  %v16315_v2 = vcombine.low %v3077_v43, %v3081_v63  ;;  %v16317_v61 = vcombine.low %v3078_v49, %v3082_v52  ;;  %v15848_v43 = vcombine.high %v2607_v36, %v2611_v37  ;;  %v2615_v49 = vld [vmem:[#allocation13 + $0x50] sm:$0xff] }
 0x613   :  { %v16326_v4 = vcombine.high %v3086_v62, %v3090_v1  ;;  %v2619_v52 = vld [vmem:[#allocation13 + $0x70] sm:$0xff] }
 0x615   :  { %6049 = vmatpush1.bf16.msra.mxu1 %v16275_v10  ;;  %6221 = vmatpush1.bf16.msra.mxu0 %v16277_v0  ;;  %v3094_v10 = vld [vmem:[#allocation13 + $0xf48] sm:$0xff] }
 0x616   :  { %6050 = vmatprep.subr.bf16.mxu1 %v16284_v11  ;;  %6222 = vmatprep.subr.bf16.mxu0 %v16286_v13  ;;  %v3098_v0 = vld [vmem:[#allocation13 + $0xf68] sm:$0xff]  ;;  %v16323_v11 = vcombine.low %v3085_v58, %v3089_v60  ;;  %v16325_v13 = vcombine.low %v3086_v62, %v3090_v1  ;;  %v15856_v58 = vcombine.high %v2615_v49, %v2619_v52  ;;  %v2623_v62 = vld [vmem:[#allocation13 + $0x90] sm:$0xff] }
 0x617   :  { %v16334_v15 = vcombine.high %v3094_v10, %v3098_v0  ;;  %v2627_v1 = vld [vmem:[#allocation13 + $0xb0] sm:$0xff] }
 0x619   :  { %6051 = vmatpush1.bf16.msra.mxu1 %v16283_v18  ;;  %6223 = vmatpush1.bf16.msra.mxu0 %v16285_v19  ;;  %v3102_v18 = vld [vmem:[#allocation13 + $0xf88] sm:$0xff] }
 0x61a   :  { %6052 = vmatprep.subr.bf16.mxu1 %v16292_v20  ;;  %6224 = vmatprep.subr.bf16.mxu0 %v16294_v21  ;;  %v3106_v19 = vld [vmem:[#allocation13 + $0xfa8] sm:$0xff]  ;;  %v16331_v20 = vcombine.low %v3093_v7, %v3097_v9  ;;  %v16333_v21 = vcombine.low %v3094_v10, %v3098_v0  ;;  %v15864_v7 = vcombine.high %v2623_v62, %v2627_v1  ;;  %v2631_v10 = vld [vmem:[#allocation13 + $0xd0] sm:$0xff] }
 0x61b   :  { %v16342_v23 = vcombine.high %v3102_v18, %v3106_v19  ;;  %v2635_v0 = vld [vmem:[#allocation13 + $0xf0] sm:$0xff] }
 0x61d   :  { %6053 = vmatpush1.bf16.msra.mxu1 %v16291_v30  ;;  %6225 = vmatpush1.bf16.msra.mxu0 %v16293_v31  ;;  %v3110_v30 = vld [vmem:[#allocation13 + $0xfc8] sm:$0xff] }
 0x61e   :  { %6054 = vmatprep.subr.bf16.mxu1 %v16300_v32  ;;  %6226 = vmatprep.subr.bf16.mxu0 %v16302_v33  ;;  %v3114_v31 = vld [vmem:[#allocation13 + $0xfe8] sm:$0xff]  ;;  %v16339_v32 = vcombine.low %v3101_v16, %v3105_v17  ;;  %v16341_v33 = vcombine.low %v3102_v18, %v3106_v19  ;;  %v15872_v16 = vcombine.high %v2631_v10, %v2635_v0  ;;  %v2639_v18 = vld [vmem:[#allocation13 + $0x110] sm:$0xff] }
 0x61f   :  { %v16350_v35 = vcombine.high %v3110_v30, %v3114_v31  ;;  %v2643_v19 = vld [vmem:[#allocation13 + $0x130] sm:$0xff] }
 0x621   :  { %6055 = vmatpush1.bf16.msra.mxu1 %v16299_v38  ;;  %6227 = vmatpush1.bf16.msra.mxu0 %v16301_v40  ;;  %v2608_v38 = vld [vmem:[#allocation13 + $0x18] sm:$0xff] }
 0x622   :  { %6056 = vmatprep.subr.bf16.mxu1 %v16308_v41  ;;  %6228 = vmatprep.subr.bf16.mxu0 %v16310_v42  ;;  %v2612_v40 = vld [vmem:[#allocation13 + $0x38] sm:$0xff]  ;;  %v16347_v41 = vcombine.low %v3109_v28, %v3113_v29  ;;  %v16349_v42 = vcombine.low %v3110_v30, %v3114_v31  ;;  %v2647_v29 = vld [vmem:[#allocation13 + $0x150] sm:$0xff] }
 0x623   :  { %v15850_v63 = vcombine.high %v2608_v38, %v2612_v40  ;;  %v2651_v30 = vld [vmem:[#allocation13 + $0x170] sm:$0xff]  ;;  %v2648_v31 = vld [vmem:[#allocation13 + $0x158] sm:$0xff] }
 0x625   :  { %6057 = vmatpush1.bf16.msra.mxu1 %v16307_v55  ;;  %6229 = vmatpush1.bf16.msra.mxu0 %v16309_v53  ;;  %v2616_v55 = vld [vmem:[#allocation13 + $0x58] sm:$0xff] }
 0x626   :  { %6058 = vmatprep.subr.bf16.mxu1 %v16316_v56  ;;  %6230 = vmatprep.subr.bf16.mxu0 %v16318_v57  ;;  %v2620_v53 = vld [vmem:[#allocation13 + $0x78] sm:$0xff]  ;;  %v15847_v56 = vcombine.low %v2607_v36, %v2611_v37  ;;  %v15849_v57 = vcombine.low %v2608_v38, %v2612_v40  ;;  %v2655_v37 = vld [vmem:[#allocation13 + $0x190] sm:$0xff] }
 0x627   :  { %v15858_v60 = vcombine.high %v2616_v55, %v2620_v53  ;;  %v2659_v38 = vld [vmem:[#allocation13 + $0x1b0] sm:$0xff]  ;;  %v2656_v40 = vld [vmem:[#allocation13 + $0x198] sm:$0xff] }
 0x629   :  { %6059 = vmatpush1.bf16.msra.mxu1 %v16315_v2  ;;  %6231 = vmatpush1.bf16.msra.mxu0 %v16317_v61  ;;  %v2624_v2 = vld [vmem:[#allocation13 + $0x98] sm:$0xff] }
 0x62a   :  { %6060 = vmatprep.subr.bf16.mxu1 %v16324_v59  ;;  %6232 = vmatprep.subr.bf16.mxu0 %v16326_v4  ;;  %v2628_v61 = vld [vmem:[#allocation13 + $0xb8] sm:$0xff]  ;;  %v15855_v59 = vcombine.low %v2615_v49, %v2619_v52  ;;  %v15857_v4 = vcombine.low %v2616_v55, %v2620_v53  ;;  %v2663_v52 = vld [vmem:[#allocation13 + $0x1d0] sm:$0xff] }
 0x62b   :  { %v15866_v9 = vcombine.high %v2624_v2, %v2628_v61  ;;  %v2667_v55 = vld [vmem:[#allocation13 + $0x1f0] sm:$0xff]  ;;  %v2664_v53 = vld [vmem:[#allocation13 + $0x1d8] sm:$0xff] }
 0x62d   :  { %6061 = vmatpush1.bf16.msra.mxu1 %v16323_v11  ;;  %6233 = vmatpush1.bf16.msra.mxu0 %v16325_v13  ;;  %v2632_v11 = vld [vmem:[#allocation13 + $0xd8] sm:$0xff] }
 0x62e   :  { %6062 = vmatprep.subr.bf16.mxu1 %v16332_v14  ;;  %6234 = vmatprep.subr.bf16.mxu0 %v16334_v15  ;;  %v2636_v13 = vld [vmem:[#allocation13 + $0xf8] sm:$0xff]  ;;  %v15863_v14 = vcombine.low %v2623_v62, %v2627_v1  ;;  %v15865_v15 = vcombine.low %v2624_v2, %v2628_v61  ;;  %v2671_v1 = vld [vmem:[#allocation13 + $0x210] sm:$0xff] }
 0x62f   :  { %v15874_v17 = vcombine.high %v2632_v11, %v2636_v13  ;;  %v2675_v2 = vld [vmem:[#allocation13 + $0x230] sm:$0xff]  ;;  %v2672_v61 = vld [vmem:[#allocation13 + $0x218] sm:$0xff] }
 0x631   :  { %6063 = vmatpush1.bf16.msra.mxu1 %v16331_v20  ;;  %6235 = vmatpush1.bf16.msra.mxu0 %v16333_v21  ;;  %v2644_v20 = vld [vmem:[#allocation13 + $0x138] sm:$0xff]  ;;  %v15871_v21 = vcombine.low %v2631_v10, %v2635_v0  ;;  %v2679_v0 = vld [vmem:[#allocation13 + $0x250] sm:$0xff] }
 0x632   :  { %6064 = vmatprep.subr.bf16.mxu1 %v16340_v22  ;;  %6236 = vmatprep.subr.bf16.mxu0 %v16342_v23  ;;  %v15873_v22 = vcombine.low %v2632_v11, %v2636_v13  ;;  %v15880_v23 = vcombine.high %v2639_v18, %v2643_v19  ;;  %v2683_v11 = vld [vmem:[#allocation13 + $0x270] sm:$0xff]  ;;  %v2680_v13 = vld [vmem:[#allocation13 + $0x258] sm:$0xff] }
 0x635   :  { %6065 = vmatpush1.bf16.msra.mxu1 %v16339_v32  ;;  %6237 = vmatpush1.bf16.msra.mxu0 %v16341_v33  ;;  %v2652_v32 = vld [vmem:[#allocation13 + $0x178] sm:$0xff]  ;;  %v15879_v33 = vcombine.low %v2639_v18, %v2643_v19  ;;  %v2687_v19 = vld [vmem:[#allocation13 + $0x290] sm:$0xff] }
 0x636   :  { %6066 = vmatprep.subr.bf16.mxu1 %v16348_v34  ;;  %6238 = vmatprep.subr.bf16.mxu0 %v16350_v35  ;;  %v15888_v35 = vcombine.high %v2647_v29, %v2651_v30  ;;  %v15890_v36 = vcombine.high %v2648_v31, %v2652_v32 }
 0x639   :  { %6067 = vmatpush1.bf16.msra.mxu1 %v16347_v41  ;;  %6239 = vmatpush1.bf16.msra.mxu0 %v16349_v42  ;;  %v2660_v41 = vld [vmem:[#allocation13 + $0x1b8] sm:$0xff]  ;;  %v15887_v42 = vcombine.low %v2647_v29, %v2651_v30  ;;  %v2695_v30 = vld [vmem:[#allocation13 + $0x2d0] sm:$0xff] }
 0x63a   :  { %6251 = vmatprep.subr.bf16.mxu1 %v15848_v43  ;;  %6423 = vmatprep.subr.bf16.mxu0 %v15850_v63  ;;  %v15889_v43 = vcombine.low %v2648_v31, %v2652_v32  ;;  %v15896_v63 = vcombine.high %v2655_v37, %v2659_v38  ;;  %v15898_v49 = vcombine.high %v2656_v40, %v2660_v41  ;;  %v2699_v31 = vld [vmem:[#allocation13 + $0x2f0] sm:$0xff]  ;;  %v2696_v32 = vld [vmem:[#allocation13 + $0x2d8] sm:$0xff] }
 0x63c   :  { %6069 = vmatmul.mubr.bf16.vlgmr.msra.gmra.mrb[24].mxu1 %v18628_v8  ;;  %6241 = vmatmul.mubr.bf16.vlgmr.msra.gmra.mrb[28].mxu0 %v18628_v8 }
 0x63d   :  { %6252 = vmatpush1.bf16.msra.mxu1 %v15847_v56  ;;  %6283 = vmatprep.mubr.bf16.mxu1 %v18612_v45  ;;  %v2668_v56 = vld [vmem:[#allocation13 + $0x1f8] sm:$0xff] }
 0x63e   :  { %6424 = vmatpush1.bf16.msra.mxu0 %v15849_v57  ;;  %6455 = vmatprep.mubr.bf16.mxu0 %v18612_v45  ;;  %v2640_v45 = vld [vmem:[#allocation13 + $0x118] sm:$0xff]  ;;  %v15895_v57 = vcombine.low %v2655_v37, %v2659_v38  ;;  %v15906_v62 = vcombine.high %v2664_v53, %v2668_v56  ;;  %v2703_v38 = vld [vmem:[#allocation13 + $0x310] sm:$0xff] }
 0x63f   :  { %6253 = vmatprep.subr.bf16.mxu1 %v15856_v58  ;;  %6425 = vmatprep.subr.bf16.mxu0 %v15858_v60  ;;  %v15882_v28 = vcombine.high %v2640_v45, %v2644_v20  ;;  %v15881_v34 = vcombine.low %v2640_v45, %v2644_v20  ;;  %v15897_v58 = vcombine.low %v2656_v40, %v2660_v41  ;;  %v2691_v45 = vld [vmem:[#allocation13 + $0x2b0] sm:$0xff]  ;;  %v2688_v20 = vld [vmem:[#allocation13 + $0x298] sm:$0xff] }
 0x640   :  { %v15904_v60 = vcombine.high %v2663_v52, %v2667_v55  ;;  %v2707_v40 = vld [vmem:[#allocation13 + $0x330] sm:$0xff]  ;;  %v2704_v41 = vld [vmem:[#allocation13 + $0x318] sm:$0xff] }
 0x641   :  { %6254 = vmatpush1.bf16.msra.mxu1 %v15855_v59  ;;  %v2676_v59 = vld [vmem:[#allocation13 + $0x238] sm:$0xff] }
 0x642   :  { %6426 = vmatpush1.bf16.msra.mxu0 %v15857_v4  ;;  %6255 = vmatprep.subr.bf16.mxu1 %v15864_v7  ;;  %v15903_v4 = vcombine.low %v2663_v52, %v2667_v55  ;;  %v15905_v7 = vcombine.low %v2664_v53, %v2668_v56  ;;  %v15914_v10 = vcombine.high %v2672_v61, %v2676_v59  ;;  %v2711_v55 = vld [vmem:[#allocation13 + $0x350] sm:$0xff]  ;;  %v2712_v56 = vld [vmem:[#allocation13 + $0x358] sm:$0xff] }
 0x643   :  { %6427 = vmatprep.subr.bf16.mxu0 %v15866_v9  ;;  %v15912_v9 = vcombine.high %v2671_v1, %v2675_v2  ;;  %v2715_v53 = vld [vmem:[#allocation13 + $0x370] sm:$0xff] }
 0x645   :  { %6256 = vmatpush1.bf16.msra.mxu1 %v15863_v14  ;;  %v2684_v14 = vld [vmem:[#allocation13 + $0x278] sm:$0xff] }
 0x646   :  { %6428 = vmatpush1.bf16.msra.mxu0 %v15865_v15  ;;  %6257 = vmatprep.subr.bf16.mxu1 %v15872_v16  ;;  %v15911_v15 = vcombine.low %v2671_v1, %v2675_v2  ;;  %v15913_v16 = vcombine.low %v2672_v61, %v2676_v59  ;;  %v15922_v18 = vcombine.high %v2680_v13, %v2684_v14  ;;  %v2719_v2 = vld [vmem:[#allocation13 + $0x390] sm:$0xff]  ;;  %v2720_v59 = vld [vmem:[#allocation13 + $0x398] sm:$0xff] }
 0x647   :  { %6429 = vmatprep.subr.bf16.mxu0 %v15874_v17  ;;  %v15920_v17 = vcombine.high %v2679_v0, %v2683_v11  ;;  %v2723_v61 = vld [vmem:[#allocation13 + $0x3b0] sm:$0xff] }
 0x649   :  { %6258 = vmatpush1.bf16.msra.mxu1 %v15871_v21  ;;  %v2692_v21 = vld [vmem:[#allocation13 + $0x2b8] sm:$0xff] }
 0x64a   :  { %6430 = vmatpush1.bf16.msra.mxu0 %v15873_v22  ;;  %6259 = vmatprep.subr.bf16.mxu1 %v15880_v23  ;;  %v15919_v22 = vcombine.low %v2679_v0, %v2683_v11  ;;  %v15921_v23 = vcombine.low %v2680_v13, %v2684_v14  ;;  %v15930_v29 = vcombine.high %v2688_v20, %v2692_v21  ;;  %v2727_v11 = vld [vmem:[#allocation13 + $0x3d0] sm:$0xff]  ;;  %v2728_v14 = vld [vmem:[#allocation13 + $0x3d8] sm:$0xff] }
 0x64b   :  { %6431 = vmatprep.subr.bf16.mxu0 %v15882_v28  ;;  %v15928_v28 = vcombine.high %v2687_v19, %v2691_v45  ;;  %v2731_v13 = vld [vmem:[#allocation13 + $0x3f0] sm:$0xff] }
 0x64d   :  { %6260 = vmatpush1.bf16.msra.mxu1 %v15879_v33  ;;  %v2700_v33 = vld [vmem:[#allocation13 + $0x2f8] sm:$0xff] }
 0x64e   :  { %6432 = vmatpush1.bf16.msra.mxu0 %v15881_v34  ;;  %6261 = vmatprep.subr.bf16.mxu1 %v15888_v35  ;;  %v15927_v34 = vcombine.low %v2687_v19, %v2691_v45  ;;  %v15929_v35 = vcombine.low %v2688_v20, %v2692_v21  ;;  %v15938_v37 = vcombine.high %v2696_v32, %v2700_v33  ;;  %v2735_v45 = vld [vmem:[#allocation13 + $0x410] sm:$0xff]  ;;  %v2736_v21 = vld [vmem:[#allocation13 + $0x418] sm:$0xff] }
 0x64f   :  { %6433 = vmatprep.subr.bf16.mxu0 %v15890_v36  ;;  %v15936_v36 = vcombine.high %v2695_v30, %v2699_v31  ;;  %v2739_v20 = vld [vmem:[#allocation13 + $0x430] sm:$0xff] }
 0x651   :  { %6262 = vmatpush1.bf16.msra.mxu1 %v15887_v42  ;;  %v2708_v42 = vld [vmem:[#allocation13 + $0x338] sm:$0xff] }
 0x652   :  { %6434 = vmatpush1.bf16.msra.mxu0 %v15889_v43  ;;  %6263 = vmatprep.subr.bf16.mxu1 %v15896_v63  ;;  %v15935_v43 = vcombine.low %v2695_v30, %v2699_v31  ;;  %v15937_v63 = vcombine.low %v2696_v32, %v2700_v33  ;;  %v15946_v52 = vcombine.high %v2704_v41, %v2708_v42  ;;  %v2743_v31 = vld [vmem:[#allocation13 + $0x450] sm:$0xff] }
 0x653   :  { %6435 = vmatprep.subr.bf16.mxu0 %v15898_v49  ;;  %v15944_v49 = vcombine.high %v2703_v38, %v2707_v40  ;;  %v2747_v32 = vld [vmem:[#allocation13 + $0x470] sm:$0xff]  ;;  %v15975_v33 = vcombine.low %v2735_v45, %v2739_v20 }
 0x655   :  { %6264 = vmatpush1.bf16.msra.mxu1 %v15895_v57  ;;  %v2716_v57 = vld [vmem:[#allocation13 + $0x378] sm:$0xff] }
 0x656   :  { %6436 = vmatpush1.bf16.msra.mxu0 %v15897_v58  ;;  %6265 = vmatprep.subr.bf16.mxu1 %v15904_v60  ;;  %v15943_v58 = vcombine.low %v2703_v38, %v2707_v40  ;;  %v15945_v60 = vcombine.low %v2704_v41, %v2708_v42  ;;  %v15954_v1 = vcombine.high %v2712_v56, %v2716_v57  ;;  %v2751_v38 = vld [vmem:[#allocation13 + $0x490] sm:$0xff]  ;;  %v2752_v42 = vld [vmem:[#allocation13 + $0x498] sm:$0xff] }
 0x657   :  { %6437 = vmatprep.subr.bf16.mxu0 %v15906_v62  ;;  %v15952_v62 = vcombine.high %v2711_v55, %v2715_v53  ;;  %v2755_v40 = vld [vmem:[#allocation13 + $0x4b0] sm:$0xff] }
 0x659   :  { %6266 = vmatpush1.bf16.msra.mxu1 %v15903_v4  ;;  %v2724_v4 = vld [vmem:[#allocation13 + $0x3b8] sm:$0xff] }
 0x65a   :  { %6438 = vmatpush1.bf16.msra.mxu0 %v15905_v7  ;;  %6267 = vmatprep.subr.bf16.mxu1 %v15912_v9  ;;  %v15951_v7 = vcombine.low %v2711_v55, %v2715_v53  ;;  %v15953_v9 = vcombine.low %v2712_v56, %v2716_v57  ;;  %v15962_v0 = vcombine.high %v2720_v59, %v2724_v4  ;;  %v2759_v53 = vld [vmem:[#allocation13 + $0x4d0] sm:$0xff]  ;;  %v2760_v57 = vld [vmem:[#allocation13 + $0x4d8] sm:$0xff] }
 0x65b   :  { %6439 = vmatprep.subr.bf16.mxu0 %v15914_v10  ;;  %v15960_v10 = vcombine.high %v2719_v2, %v2723_v61  ;;  %v2763_v56 = vld [vmem:[#allocation13 + $0x4f0] sm:$0xff] }
 0x65d   :  { %6268 = vmatpush1.bf16.msra.mxu1 %v15911_v15  ;;  %v2732_v15 = vld [vmem:[#allocation13 + $0x3f8] sm:$0xff] }
 0x65e   :  { %6440 = vmatpush1.bf16.msra.mxu0 %v15913_v16  ;;  %6269 = vmatprep.subr.bf16.mxu1 %v15920_v17  ;;  %v15959_v16 = vcombine.low %v2719_v2, %v2723_v61  ;;  %v15961_v17 = vcombine.low %v2720_v59, %v2724_v4  ;;  %v15970_v19 = vcombine.high %v2728_v14, %v2732_v15  ;;  %v2767_v2 = vld [vmem:[#allocation13 + $0x510] sm:$0xff]  ;;  %v2768_v59 = vld [vmem:[#allocation13 + $0x518] sm:$0xff] }
 0x65f   :  { %6441 = vmatprep.subr.bf16.mxu0 %v15922_v18  ;;  %v15968_v18 = vcombine.high %v2727_v11, %v2731_v13  ;;  %v2771_v61 = vld [vmem:[#allocation13 + $0x530] sm:$0xff]  ;;  %v2772_v4 = vld [vmem:[#allocation13 + $0x538] sm:$0xff] }
 0x661   :  { %6270 = vmatpush1.bf16.msra.mxu1 %v15919_v22  ;;  %v2740_v22 = vld [vmem:[#allocation13 + $0x438] sm:$0xff] }
 0x662   :  { %6442 = vmatpush1.bf16.msra.mxu0 %v15921_v23  ;;  %6271 = vmatprep.subr.bf16.mxu1 %v15928_v28  ;;  %v15967_v23 = vcombine.low %v2727_v11, %v2731_v13  ;;  %v15969_v28 = vcombine.low %v2728_v14, %v2732_v15  ;;  %v15978_v30 = vcombine.high %v2736_v21, %v2740_v22  ;;  %v2779_v11 = vld [vmem:[#allocation13 + $0x570] sm:$0xff]  ;;  %v2776_v13 = vld [vmem:[#allocation13 + $0x558] sm:$0xff] }
 0x663   :  { %6443 = vmatprep.subr.bf16.mxu0 %v15930_v29  ;;  %v15976_v29 = vcombine.high %v2735_v45, %v2739_v20  ;;  %v2780_v14 = vld [vmem:[#allocation13 + $0x578] sm:$0xff]  ;;  %v16007_v15 = vcombine.low %v2767_v2, %v2771_v61  ;;  %v2787_v45 = vld [vmem:[#allocation13 + $0x5b0] sm:$0xff] }
 0x664   :  { %v2784_v20 = vld [vmem:[#allocation13 + $0x598] sm:$0xff] }
 0x665   :  { %6272 = vmatpush1.bf16.msra.mxu1 %v15927_v34  ;;  %v2744_v34 = vld [vmem:[#allocation13 + $0x458] sm:$0xff] }
 0x666   :  { %6444 = vmatpush1.bf16.msra.mxu0 %v15929_v35  ;;  %6273 = vmatprep.subr.bf16.mxu1 %v15936_v36  ;;  %v2748_v35 = vld [vmem:[#allocation13 + $0x478] sm:$0xff]  ;;  %v15977_v36 = vcombine.low %v2736_v21, %v2740_v22 }
 0x667   :  { %6445 = vmatprep.subr.bf16.mxu0 %v15938_v37  ;;  %v15984_v37 = vcombine.high %v2743_v31, %v2747_v32  ;;  %v15986_v41 = vcombine.high %v2744_v34, %v2748_v35  ;;  %v2788_v21 = vld [vmem:[#allocation13 + $0x5b8] sm:$0xff] }
 0x669   :  { %6274 = vmatpush1.bf16.msra.mxu1 %v15935_v43  ;;  %v2756_v43 = vld [vmem:[#allocation13 + $0x4b8] sm:$0xff] }
 0x66a   :  { %6446 = vmatpush1.bf16.msra.mxu0 %v15937_v63  ;;  %6275 = vmatprep.subr.bf16.mxu1 %v15944_v49  ;;  %v15983_v63 = vcombine.low %v2743_v31, %v2747_v32  ;;  %v15985_v49 = vcombine.low %v2744_v34, %v2748_v35  ;;  %v15994_v55 = vcombine.high %v2752_v42, %v2756_v43  ;;  %v2795_v31 = vld [vmem:[#allocation13 + $0x5f0] sm:$0xff]  ;;  %v2792_v32 = vld [vmem:[#allocation13 + $0x5d8] sm:$0xff] }
 0x66b   :  { %6447 = vmatprep.subr.bf16.mxu0 %v15946_v52  ;;  %v15992_v52 = vcombine.high %v2751_v38, %v2755_v40  ;;  %v16025_v35 = vcombine.low %v2784_v20, %v2788_v21 }
 0x66d   :  { %6276 = vmatpush1.bf16.msra.mxu1 %v15943_v58  ;;  %v2764_v58 = vld [vmem:[#allocation13 + $0x4f8] sm:$0xff] }
 0x66e   :  { %6448 = vmatpush1.bf16.msra.mxu0 %v15945_v60  ;;  %6277 = vmatprep.subr.bf16.mxu1 %v15952_v62  ;;  %v15991_v60 = vcombine.low %v2751_v38, %v2755_v40  ;;  %v16000_v62 = vcombine.high %v2759_v53, %v2763_v56  ;;  %v2799_v38 = vld [vmem:[#allocation13 + $0x610] sm:$0xff] }
 0x66f   :  { %6449 = vmatprep.subr.bf16.mxu0 %v15954_v1  ;;  %v16002_v1 = vcombine.high %v2760_v57, %v2764_v58  ;;  %v2803_v40 = vld [vmem:[#allocation13 + $0x630] sm:$0xff] }
 0x671   :  { %6278 = vmatpush1.bf16.msra.mxu1 %v15951_v7  ;;  %v16001_v7 = vcombine.low %v2760_v57, %v2764_v58  ;;  %v2812_v57 = vld [vmem:[#allocation13 + $0x678] sm:$0xff]  ;;  %v16039_v58 = vcombine.low %v2799_v38, %v2803_v40 }
 0x672   :  { %6450 = vmatpush1.bf16.msra.mxu0 %v15953_v9  ;;  %6279 = vmatprep.subr.bf16.mxu1 %v15960_v10  ;;  %v16008_v9 = vcombine.high %v2767_v2, %v2771_v61  ;;  %v16010_v10 = vcombine.high %v2768_v59, %v2772_v4  ;;  %v2819_v2 = vld [vmem:[#allocation13 + $0x6b0] sm:$0xff]  ;;  %v2816_v61 = vld [vmem:[#allocation13 + $0x698] sm:$0xff] }
 0x673   :  { %6451 = vmatprep.subr.bf16.mxu0 %v15962_v0  ;;  %v2775_v0 = vld [vmem:[#allocation13 + $0x550] sm:$0xff] }
 0x674   :  { %v16015_v22 = vcombine.low %v2775_v0, %v2779_v11 }
 0x675   :  { %6280 = vmatpush1.bf16.msra.mxu1 %v15959_v16  ;;  %v16009_v16 = vcombine.low %v2768_v59, %v2772_v4  ;;  %v2820_v59 = vld [vmem:[#allocation13 + $0x6b8] sm:$0xff] }
 0x676   :  { %6452 = vmatpush1.bf16.msra.mxu0 %v15961_v17  ;;  %6281 = vmatprep.subr.bf16.mxu1 %v15968_v18  ;;  %v16016_v17 = vcombine.high %v2775_v0, %v2779_v11  ;;  %v16018_v18 = vcombine.high %v2776_v13, %v2780_v14  ;;  %v2827_v0 = vld [vmem:[#allocation13 + $0x6f0] sm:$0xff]  ;;  %v2824_v11 = vld [vmem:[#allocation13 + $0x6d8] sm:$0xff] }
 0x677   :  { %6453 = vmatprep.subr.bf16.mxu0 %v15970_v19  ;;  %v2783_v19 = vld [vmem:[#allocation13 + $0x590] sm:$0xff] }
 0x678   :  { %v16023_v34 = vcombine.low %v2783_v19, %v2787_v45 }
 0x679   :  { %6282 = vmatpush1.bf16.msra.mxu1 %v15967_v23  ;;  %v16017_v23 = vcombine.low %v2776_v13, %v2780_v14  ;;  %v2828_v13 = vld [vmem:[#allocation13 + $0x6f8] sm:$0xff] }
 0x67a   :  { %6454 = vmatpush1.bf16.msra.mxu0 %v15969_v28  ;;  %6294 = vmatprep.subr.bf16.mxu1 %v15976_v29  ;;  %v16024_v28 = vcombine.high %v2783_v19, %v2787_v45  ;;  %v16026_v29 = vcombine.high %v2784_v20, %v2788_v21  ;;  %v2835_v19 = vld [vmem:[#allocation13 + $0x730] sm:$0xff]  ;;  %v2832_v45 = vld [vmem:[#allocation13 + $0x718] sm:$0xff] }
 0x67b   :  { %6466 = vmatprep.subr.bf16.mxu0 %v15978_v30  ;;  %v2791_v30 = vld [vmem:[#allocation13 + $0x5d0] sm:$0xff]  ;;  %v2836_v20 = vld [vmem:[#allocation13 + $0x738] sm:$0xff] }
 0x67c   :  { %6284 = vmatmul.mubr.bf16.vlgmr.msra.gmra.mrb[28].mxu1 %v18608_v46 }
 0x67d   :  { %6456 = vmatmul.mubr.bf16.vlgmr.msra.gmra.mrb[32].mxu0 %v18608_v46  ;;  %6295 = vmatpush1.bf16.msra.mxu1 %v15975_v33  ;;  %v15993_v46 = vcombine.low %v2752_v42, %v2756_v43  ;;  %v2796_v33 = vld [vmem:[#allocation13 + $0x5f8] sm:$0xff]  ;;  %v16031_v43 = vcombine.low %v2791_v30, %v2795_v31 }
 0x67e   :  { %6326 = vmatprep.mubr.bf16.mxu1 %v18614_v54  ;;  %6467 = vmatpush1.bf16.msra.mxu0 %v15977_v36  ;;  %v16032_v36 = vcombine.high %v2791_v30, %v2795_v31  ;;  %v2804_v42 = vld [vmem:[#allocation13 + $0x638] sm:$0xff]  ;;  %v2843_v30 = vld [vmem:[#allocation13 + $0x770] sm:$0xff] }
 0x67f   :  { %6498 = vmatprep.mubr.bf16.mxu0 %v18614_v54  ;;  %6296 = vmatprep.subr.bf16.mxu1 %v15984_v37  ;;  %v15999_v54 = vcombine.low %v2759_v53, %v2763_v56  ;;  %v16034_v37 = vcombine.high %v2792_v32, %v2796_v33  ;;  %v2811_v53 = vld [vmem:[#allocation13 + $0x670] sm:$0xff]  ;;  %v2808_v56 = vld [vmem:[#allocation13 + $0x658] sm:$0xff] }
 0x680   :  { %6468 = vmatprep.subr.bf16.mxu0 %v15986_v41  ;;  %v2800_v41 = vld [vmem:[#allocation13 + $0x618] sm:$0xff] }
 0x681   :  { %6297 = vmatpush1.bf16.msra.mxu1 %v15983_v63  ;;  %v16033_v63 = vcombine.low %v2792_v32, %v2796_v33  ;;  %v2840_v31 = vld [vmem:[#allocation13 + $0x758] sm:$0xff] }
 0x682   :  { %6469 = vmatpush1.bf16.msra.mxu0 %v15985_v49  ;;  %6298 = vmatprep.subr.bf16.mxu1 %v15992_v52  ;;  %v16040_v49 = vcombine.high %v2799_v38, %v2803_v40  ;;  %v16042_v52 = vcombine.high %v2800_v41, %v2804_v42  ;;  %v2844_v32 = vld [vmem:[#allocation13 + $0x778] sm:$0xff]  ;;  %v2851_v38 = vld [vmem:[#allocation13 + $0x7b0] sm:$0xff] }
 0x683   :  { %6470 = vmatprep.subr.bf16.mxu0 %v15994_v55  ;;  %v2807_v55 = vld [vmem:[#allocation13 + $0x650] sm:$0xff]  ;;  %v2848_v40 = vld [vmem:[#allocation13 + $0x798] sm:$0xff] }
 0x684   :  { %v16047_v4 = vcombine.low %v2807_v55, %v2811_v53 }
 0x685   :  { %6299 = vmatpush1.bf16.msra.mxu1 %v15991_v60  ;;  %v16041_v60 = vcombine.low %v2800_v41, %v2804_v42  ;;  %v2852_v41 = vld [vmem:[#allocation13 + $0x7b8] sm:$0xff] }
 0x686   :  { %6471 = vmatpush1.bf16.msra.mxu0 %v15993_v46  ;;  %6300 = vmatprep.subr.bf16.mxu1 %v16000_v62  ;;  %v16048_v46 = vcombine.high %v2807_v55, %v2811_v53  ;;  %v16050_v62 = vcombine.high %v2808_v56, %v2812_v57  ;;  %v2859_v55 = vld [vmem:[#allocation13 + $0x7f0] sm:$0xff]  ;;  %v2856_v53 = vld [vmem:[#allocation13 + $0x7d8] sm:$0xff] }
 0x687   :  { %6472 = vmatprep.subr.bf16.mxu0 %v16002_v1  ;;  %v2815_v1 = vld [vmem:[#allocation13 + $0x690] sm:$0xff] }
 0x688   :  { %v16055_v14 = vcombine.low %v2815_v1, %v2819_v2 }
 0x689   :  { %6301 = vmatpush1.bf16.msra.mxu1 %v15999_v54  ;;  %v16049_v54 = vcombine.low %v2808_v56, %v2812_v57  ;;  %v2860_v56 = vld [vmem:[#allocation13 + $0x7f8] sm:$0xff] }
 0x68a   :  { %6473 = vmatpush1.bf16.msra.mxu0 %v16001_v7  ;;  %6302 = vmatprep.subr.bf16.mxu1 %v16008_v9  ;;  %v16056_v7 = vcombine.high %v2815_v1, %v2819_v2  ;;  %v16058_v9 = vcombine.high %v2816_v61, %v2820_v59  ;;  %v2867_v1 = vld [vmem:[#allocation13 + $0x830] sm:$0xff]  ;;  %v2864_v2 = vld [vmem:[#allocation13 + $0x818] sm:$0xff] }
 0x68b   :  { %6474 = vmatprep.subr.bf16.mxu0 %v16010_v10  ;;  %v2823_v10 = vld [vmem:[#allocation13 + $0x6d0] sm:$0xff] }
 0x68c   :  { %v16063_v21 = vcombine.low %v2823_v10, %v2827_v0 }
 0x68d   :  { %6303 = vmatpush1.bf16.msra.mxu1 %v16007_v15  ;;  %v16057_v15 = vcombine.low %v2816_v61, %v2820_v59  ;;  %v2868_v61 = vld [vmem:[#allocation13 + $0x838] sm:$0xff] }
 0x68e   :  { %6475 = vmatpush1.bf16.msra.mxu0 %v16009_v16  ;;  %6304 = vmatprep.subr.bf16.mxu1 %v16016_v17  ;;  %v16064_v16 = vcombine.high %v2823_v10, %v2827_v0  ;;  %v16066_v17 = vcombine.high %v2824_v11, %v2828_v13  ;;  %v2875_v10 = vld [vmem:[#allocation13 + $0x870] sm:$0xff] }
 0x68f   :  { %6476 = vmatprep.subr.bf16.mxu0 %v16018_v18  ;;  %v2831_v18 = vld [vmem:[#allocation13 + $0x710] sm:$0xff] }
 0x690   :  { %v16071_v33 = vcombine.low %v2831_v18, %v2835_v19 }
 0x691   :  { %6305 = vmatpush1.bf16.msra.mxu1 %v16015_v22  ;;  %v16065_v22 = vcombine.low %v2824_v11, %v2828_v13  ;;  %v2872_v11 = vld [vmem:[#allocation13 + $0x858] sm:$0xff] }
 0x692   :  { %6477 = vmatpush1.bf16.msra.mxu0 %v16017_v23  ;;  %6306 = vmatprep.subr.bf16.mxu1 %v16024_v28  ;;  %v16072_v23 = vcombine.high %v2831_v18, %v2835_v19  ;;  %v16074_v28 = vcombine.high %v2832_v45, %v2836_v20  ;;  %v2876_v13 = vld [vmem:[#allocation13 + $0x878] sm:$0xff] }
 0x693   :  { %6478 = vmatprep.subr.bf16.mxu0 %v16026_v29  ;;  %v2839_v29 = vld [vmem:[#allocation13 + $0x750] sm:$0xff]  ;;  %v16114_v18 = vcombine.high %v2872_v11, %v2876_v13  ;;  %v2880_v19 = vld [vmem:[#allocation13 + $0x898] sm:$0xff] }
 0x694   :  { %v16079_v42 = vcombine.low %v2839_v29, %v2843_v30 }
 0x695   :  { %6307 = vmatpush1.bf16.msra.mxu1 %v16023_v34  ;;  %v16073_v34 = vcombine.low %v2832_v45, %v2836_v20  ;;  %v2884_v45 = vld [vmem:[#allocation13 + $0x8b8] sm:$0xff] }
 0x696   :  { %6479 = vmatpush1.bf16.msra.mxu0 %v16025_v35  ;;  %6308 = vmatprep.subr.bf16.mxu1 %v16032_v36  ;;  %v16080_v35 = vcombine.high %v2839_v29, %v2843_v30  ;;  %v16082_v36 = vcombine.high %v2840_v31, %v2844_v32  ;;  %v2891_v29 = vld [vmem:[#allocation13 + $0x8f0] sm:$0xff]  ;;  %v2888_v30 = vld [vmem:[#allocation13 + $0x8d8] sm:$0xff] }
 0x697   :  { %6480 = vmatprep.subr.bf16.mxu0 %v16034_v37  ;;  %v2847_v37 = vld [vmem:[#allocation13 + $0x790] sm:$0xff] }
 0x698   :  { %v16087_v57 = vcombine.low %v2847_v37, %v2851_v38 }
 0x699   :  { %6309 = vmatpush1.bf16.msra.mxu1 %v16031_v43  ;;  %v16081_v43 = vcombine.low %v2840_v31, %v2844_v32  ;;  %v2892_v31 = vld [vmem:[#allocation13 + $0x8f8] sm:$0xff] }
 0x69a   :  { %6481 = vmatpush1.bf16.msra.mxu0 %v16033_v63  ;;  %6310 = vmatprep.subr.bf16.mxu1 %v16040_v49  ;;  %v16088_v63 = vcombine.high %v2847_v37, %v2851_v38  ;;  %v16090_v49 = vcombine.high %v2848_v40, %v2852_v41  ;;  %v2896_v37 = vld [vmem:[#allocation13 + $0x918] sm:$0xff] }
 0x69b   :  { %6482 = vmatprep.subr.bf16.mxu0 %v16042_v52  ;;  %v2855_v52 = vld [vmem:[#allocation13 + $0x7d0] sm:$0xff]  ;;  %v2900_v38 = vld [vmem:[#allocation13 + $0x938] sm:$0xff] }
 0x69c   :  { %v16095_v59 = vcombine.low %v2855_v52, %v2859_v55 }
 0x69d   :  { %6311 = vmatpush1.bf16.msra.mxu1 %v16039_v58  ;;  %v16089_v58 = vcombine.low %v2848_v40, %v2852_v41  ;;  %v16129_v40 = vcombine.low %v2888_v30, %v2892_v31 }
 0x69e   :  { %6483 = vmatpush1.bf16.msra.mxu0 %v16041_v60  ;;  %6312 = vmatprep.subr.bf16.mxu1 %v16048_v46  ;;  %v16096_v60 = vcombine.high %v2855_v52, %v2859_v55  ;;  %v16098_v46 = vcombine.high %v2856_v53, %v2860_v56  ;;  %v2908_v52 = vld [vmem:[#allocation13 + $0x978] sm:$0xff] }
 0x69f   :  { %6484 = vmatprep.subr.bf16.mxu0 %v16050_v62  ;;  %v2863_v62 = vld [vmem:[#allocation13 + $0x810] sm:$0xff] }
 0x6a0   :  { %v16103_v0 = vcombine.low %v2863_v62, %v2867_v1 }
 0x6a1   :  { %6313 = vmatpush1.bf16.msra.mxu1 %v16047_v4  ;;  %v16097_v4 = vcombine.low %v2856_v53, %v2860_v56  ;;  %v16137_v53 = vcombine.low %v2896_v37, %v2900_v38 }
 0x6a2   :  { %6485 = vmatpush1.bf16.msra.mxu0 %v16049_v54  ;;  %6314 = vmatprep.subr.bf16.mxu1 %v16056_v7  ;;  %v16104_v54 = vcombine.high %v2863_v62, %v2867_v1  ;;  %v16106_v7 = vcombine.high %v2864_v2, %v2868_v61  ;;  %v2916_v62 = vld [vmem:[#allocation13 + $0x9b8] sm:$0xff] }
 0x6a3   :  { %6486 = vmatprep.subr.bf16.mxu0 %v16058_v9  ;;  %v2871_v9 = vld [vmem:[#allocation13 + $0x850] sm:$0xff] }
 0x6a4   :  { %v16111_v20 = vcombine.low %v2871_v9, %v2875_v10 }
 0x6a5   :  { %6315 = vmatpush1.bf16.msra.mxu1 %v16055_v14  ;;  %v16105_v14 = vcombine.low %v2864_v2, %v2868_v61 }
 0x6a6   :  { %6487 = vmatpush1.bf16.msra.mxu0 %v16057_v15  ;;  %6316 = vmatprep.subr.bf16.mxu1 %v16064_v16  ;;  %v16112_v15 = vcombine.high %v2871_v9, %v2875_v10  ;;  %v2879_v16 = vld [vmem:[#allocation13 + $0x890] sm:$0xff]  ;;  %v2924_v9 = vld [vmem:[#allocation13 + $0x9f8] sm:$0xff] }
 0x6a7   :  { %6488 = vmatprep.subr.bf16.mxu0 %v16066_v17  ;;  %v2883_v17 = vld [vmem:[#allocation13 + $0x8b0] sm:$0xff] }
 0x6a8   :  { %v16119_v32 = vcombine.low %v2879_v16, %v2883_v17 }
 0x6a9   :  { %6317 = vmatpush1.bf16.msra.mxu1 %v16063_v21  ;;  %v16113_v21 = vcombine.low %v2872_v11, %v2876_v13 }
 0x6aa   :  { %6489 = vmatpush1.bf16.msra.mxu0 %v16065_v22  ;;  %6318 = vmatprep.subr.bf16.mxu1 %v16072_v23  ;;  %v16120_v22 = vcombine.high %v2879_v16, %v2883_v17  ;;  %v16122_v23 = vcombine.high %v2880_v19, %v2884_v45  ;;  %v2928_v16 = vld [vmem:[#allocation13 + $0xa18] sm:$0xff] }
 0x6ab   :  { %6490 = vmatprep.subr.bf16.mxu0 %v16074_v28  ;;  %v2887_v28 = vld [vmem:[#allocation13 + $0x8d0] sm:$0xff]  ;;  %v2932_v17 = vld [vmem:[#allocation13 + $0xa38] sm:$0xff] }
 0x6ad   :  { %6319 = vmatpush1.bf16.msra.mxu1 %v16071_v33  ;;  %v16128_v33 = vcombine.high %v2887_v28, %v2891_v29 }
 0x6ae   :  { %6491 = vmatpush1.bf16.msra.mxu0 %v16073_v34  ;;  %6320 = vmatprep.subr.bf16.mxu1 %v16080_v35  ;;  %v16130_v34 = vcombine.high %v2888_v30, %v2892_v31  ;;  %v2895_v35 = vld [vmem:[#allocation13 + $0x910] sm:$0xff]  ;;  %v16169_v30 = vcombine.low %v2928_v16, %v2932_v17 }
 0x6af   :  { %6492 = vmatprep.subr.bf16.mxu0 %v16082_v36  ;;  %v2899_v36 = vld [vmem:[#allocation13 + $0x930] sm:$0xff] }
 0x6b0   :  { %v16136_v41 = vcombine.high %v2895_v35, %v2899_v36  ;;  %v16135_v55 = vcombine.low %v2895_v35, %v2899_v36  ;;  %v2948_v35 = vld [vmem:[#allocation13 + $0xab8] sm:$0xff] }
 0x6b1   :  { %6321 = vmatpush1.bf16.msra.mxu1 %v16079_v42  ;;  %v16138_v42 = vcombine.high %v2896_v37, %v2900_v38 }
 0x6b2   :  { %6493 = vmatpush1.bf16.msra.mxu0 %v16081_v43  ;;  %6322 = vmatprep.subr.bf16.mxu1 %v16088_v63  ;;  %v2903_v43 = vld [vmem:[#allocation13 + $0x950] sm:$0xff] }
 0x6b3   :  { %6494 = vmatprep.subr.bf16.mxu0 %v16090_v49  ;;  %v2907_v63 = vld [vmem:[#allocation13 + $0x970] sm:$0xff]  ;;  %v2904_v49 = vld [vmem:[#allocation13 + $0x958] sm:$0xff] }
 0x6b4   :  { %v16144_v56 = vcombine.high %v2903_v43, %v2907_v63  ;;  %v16143_v1 = vcombine.low %v2903_v43, %v2907_v63  ;;  %v16145_v2 = vcombine.low %v2904_v49, %v2908_v52  ;;  %v2956_v43 = vld [vmem:[#allocation13 + $0xaf8] sm:$0xff] }
 0x6b5   :  { %6323 = vmatpush1.bf16.msra.mxu1 %v16087_v57  ;;  %v16146_v57 = vcombine.high %v2904_v49, %v2908_v52 }
 0x6b6   :  { %6495 = vmatpush1.bf16.msra.mxu0 %v16089_v58  ;;  %6324 = vmatprep.subr.bf16.mxu1 %v16096_v60  ;;  %v2911_v58 = vld [vmem:[#allocation13 + $0x990] sm:$0xff] }
 0x6b7   :  { %6496 = vmatprep.subr.bf16.mxu0 %v16098_v46  ;;  %v2915_v60 = vld [vmem:[#allocation13 + $0x9b0] sm:$0xff]  ;;  %v2912_v46 = vld [vmem:[#allocation13 + $0x998] sm:$0xff] }
 0x6b8   :  { %v16152_v61 = vcombine.high %v2911_v58, %v2915_v60  ;;  %v16151_v10 = vcombine.low %v2911_v58, %v2915_v60  ;;  %v2964_v58 = vld [vmem:[#allocation13 + $0xb38] sm:$0xff] }
 0x6b9   :  { %6325 = vmatpush1.bf16.msra.mxu1 %v16095_v59  ;;  %v16154_v59 = vcombine.high %v2912_v46, %v2916_v62 }
 0x6ba   :  { %6497 = vmatpush1.bf16.msra.mxu0 %v16097_v4  ;;  %6337 = vmatprep.subr.bf16.mxu1 %v16104_v54  ;;  %v2919_v4 = vld [vmem:[#allocation13 + $0x9d0] sm:$0xff] }
 0x6bb   :  { %6509 = vmatprep.subr.bf16.mxu0 %v16106_v7  ;;  %v2923_v54 = vld [vmem:[#allocation13 + $0x9f0] sm:$0xff]  ;;  %v2920_v7 = vld [vmem:[#allocation13 + $0x9d8] sm:$0xff] }
 0x6bc   :  { %6327 = vmatmul.mubr.bf16.vlgmr.msra.gmra.mrb[28].mxu1 %v18610_v44  ;;  %v16160_v11 = vcombine.high %v2919_v4, %v2923_v54  ;;  %v16162_v13 = vcombine.high %v2920_v7, %v2924_v9 }
 0x6bd   :  { %6499 = vmatmul.mubr.bf16.vlgmr.msra.gmra.mrb[32].mxu0 %v18610_v44  ;;  %6338 = vmatpush1.bf16.msra.mxu1 %v16103_v0  ;;  %v16121_v44 = vcombine.low %v2880_v19, %v2884_v45  ;;  %v16153_v0 = vcombine.low %v2912_v46, %v2916_v62  ;;  %v16161_v19 = vcombine.low %v2920_v7, %v2924_v9 }
 0x6be   :  { %6369 = vmatprep.mubr.bf16.mxu1 %v18626_v5  ;;  %6510 = vmatpush1.bf16.msra.mxu0 %v16105_v14  ;;  %v2927_v14 = vld [vmem:[#allocation13 + $0xa10] sm:$0xff] }
 0x6bf   :  { %6541 = vmatprep.mubr.bf16.mxu0 %v18626_v5  ;;  %6339 = vmatprep.subr.bf16.mxu1 %v16112_v15  ;;  %v16127_v5 = vcombine.low %v2887_v28, %v2891_v29  ;;  %v2931_v15 = vld [vmem:[#allocation13 + $0xa30] sm:$0xff]  ;;  %v2940_v28 = vld [vmem:[#allocation13 + $0xa78] sm:$0xff] }
 0x6c0   :  { %6511 = vmatprep.subr.bf16.mxu0 %v16114_v18  ;;  %v16159_v18 = vcombine.low %v2919_v4, %v2923_v54  ;;  %v16168_v45 = vcombine.high %v2927_v14, %v2931_v15  ;;  %v16167_v29 = vcombine.low %v2927_v14, %v2931_v15  ;;  %v2972_v4 = vld [vmem:[#allocation13 + $0xb78] sm:$0xff] }
 0x6c1   :  { %6340 = vmatpush1.bf16.msra.mxu1 %v16111_v20  ;;  %v16170_v20 = vcombine.high %v2928_v16, %v2932_v17  ;;  %v2980_v14 = vld [vmem:[#allocation13 + $0xbb8] sm:$0xff] }
 0x6c2   :  { %6512 = vmatpush1.bf16.msra.mxu0 %v16113_v21  ;;  %6341 = vmatprep.subr.bf16.mxu1 %v16120_v22  ;;  %v2935_v21 = vld [vmem:[#allocation13 + $0xa50] sm:$0xff] }
 0x6c3   :  { %6513 = vmatprep.subr.bf16.mxu0 %v16122_v23  ;;  %v2939_v22 = vld [vmem:[#allocation13 + $0xa70] sm:$0xff]  ;;  %v2936_v23 = vld [vmem:[#allocation13 + $0xa58] sm:$0xff] }
 0x6c4   :  { %v16176_v31 = vcombine.high %v2935_v21, %v2939_v22  ;;  %v16175_v36 = vcombine.low %v2935_v21, %v2939_v22  ;;  %v16177_v37 = vcombine.low %v2936_v23, %v2940_v28  ;;  %v2988_v21 = vld [vmem:[#allocation13 + $0xbf8] sm:$0xff] }
 0x6c5   :  { %6342 = vmatpush1.bf16.msra.mxu1 %v16119_v32  ;;  %v16178_v32 = vcombine.high %v2936_v23, %v2940_v28 }
 0x6c6   :  { %6514 = vmatpush1.bf16.msra.mxu0 %v16121_v44  ;;  %6343 = vmatprep.subr.bf16.mxu1 %v16128_v33  ;;  %v2943_v44 = vld [vmem:[#allocation13 + $0xa90] sm:$0xff] }
 0x6c7   :  { %6515 = vmatprep.subr.bf16.mxu0 %v16130_v34  ;;  %v2947_v33 = vld [vmem:[#allocation13 + $0xab0] sm:$0xff]  ;;  %v2944_v34 = vld [vmem:[#allocation13 + $0xa98] sm:$0xff] }
 0x6c8   :  { %v16184_v38 = vcombine.high %v2943_v44, %v2947_v33  ;;  %v16183_v63 = vcombine.low %v2943_v44, %v2947_v33  ;;  %v16185_v49 = vcombine.low %v2944_v34, %v2948_v35  ;;  %v2996_v44 = vld [vmem:[#allocation13 + $0xc38] sm:$0xff] }
 0x6c9   :  { %6344 = vmatpush1.bf16.msra.mxu1 %v16127_v5  ;;  %v16186_v5 = vcombine.high %v2944_v34, %v2948_v35 }
 0x6ca   :  { %6516 = vmatpush1.bf16.msra.mxu0 %v16129_v40  ;;  %6345 = vmatprep.subr.bf16.mxu1 %v16136_v41  ;;  %v2951_v40 = vld [vmem:[#allocation13 + $0xad0] sm:$0xff] }
 0x6cb   :  { %6517 = vmatprep.subr.bf16.mxu0 %v16138_v42  ;;  %v2955_v41 = vld [vmem:[#allocation13 + $0xaf0] sm:$0xff]  ;;  %v2952_v42 = vld [vmem:[#allocation13 + $0xad8] sm:$0xff] }
 0x6cc   :  { %v16192_v52 = vcombine.high %v2951_v40, %v2955_v41  ;;  %v16191_v60 = vcombine.low %v2951_v40, %v2955_v41  ;;  %v16193_v46 = vcombine.low %v2952_v42, %v2956_v43  ;;  %v3000_v40 = vld [vmem:[#allocation13 + $0xc58] sm:$0xff] }
 0x6cd   :  { %6346 = vmatpush1.bf16.msra.mxu1 %v16135_v55  ;;  %v16194_v55 = vcombine.high %v2952_v42, %v2956_v43  ;;  %v3004_v41 = vld [vmem:[#allocation13 + $0xc78] sm:$0xff] }
 0x6ce   :  { %6518 = vmatpush1.bf16.msra.mxu0 %v16137_v53  ;;  %6347 = vmatprep.subr.bf16.mxu1 %v16144_v56  ;;  %v2959_v53 = vld [vmem:[#allocation13 + $0xb10] sm:$0xff] }
 0x6cf   :  { %6519 = vmatprep.subr.bf16.mxu0 %v16146_v57  ;;  %v2963_v56 = vld [vmem:[#allocation13 + $0xb30] sm:$0xff]  ;;  %v2960_v57 = vld [vmem:[#allocation13 + $0xb18] sm:$0xff] }
 0x6d0   :  { %v16200_v62 = vcombine.high %v2959_v53, %v2963_v56  ;;  %v16199_v54 = vcombine.low %v2959_v53, %v2963_v56  ;;  %v16201_v7 = vcombine.low %v2960_v57, %v2964_v58  ;;  %v3012_v53 = vld [vmem:[#allocation13 + $0xcb8] sm:$0xff] }
 0x6d1   :  { %6348 = vmatpush1.bf16.msra.mxu1 %v16143_v1  ;;  %v16202_v1 = vcombine.high %v2960_v57, %v2964_v58  ;;  %v16241_v57 = vcombine.low %v3000_v40, %v3004_v41 }
 0x6d2   :  { %6520 = vmatpush1.bf16.msra.mxu0 %v16145_v2  ;;  %6349 = vmatprep.subr.bf16.mxu1 %v16152_v61  ;;  %v2967_v2 = vld [vmem:[#allocation13 + $0xb50] sm:$0xff] }
 0x6d3   :  { %6521 = vmatprep.subr.bf16.mxu0 %v16154_v59  ;;  %v2971_v61 = vld [vmem:[#allocation13 + $0xb70] sm:$0xff]  ;;  %v2968_v59 = vld [vmem:[#allocation13 + $0xb58] sm:$0xff] }
 0x6d4   :  { %v16208_v9 = vcombine.high %v2967_v2, %v2971_v61  ;;  %v16207_v15 = vcombine.low %v2967_v2, %v2971_v61  ;;  %v16209_v16 = vcombine.low %v2968_v59, %v2972_v4  ;;  %v3020_v2 = vld [vmem:[#allocation13 + $0xcf8] sm:$0xff] }
 0x6d5   :  { %6350 = vmatpush1.bf16.msra.mxu1 %v16151_v10  ;;  %v16210_v10 = vcombine.high %v2968_v59, %v2972_v4 }
 0x6d6   :  { %6522 = vmatpush1.bf16.msra.mxu0 %v16153_v0  ;;  %6351 = vmatprep.subr.bf16.mxu1 %v16160_v11  ;;  %v2975_v0 = vld [vmem:[#allocation13 + $0xb90] sm:$0xff] }
 0x6d7   :  { %6523 = vmatprep.subr.bf16.mxu0 %v16162_v13  ;;  %v2979_v11 = vld [vmem:[#allocation13 + $0xbb0] sm:$0xff]  ;;  %v2976_v13 = vld [vmem:[#allocation13 + $0xb98] sm:$0xff] }
 0x6d8   :  { %v16216_v17 = vcombine.high %v2975_v0, %v2979_v11  ;;  %v16215_v22 = vcombine.low %v2975_v0, %v2979_v11  ;;  %v16217_v23 = vcombine.low %v2976_v13, %v2980_v14 }
 0x6d9   :  { %6352 = vmatpush1.bf16.msra.mxu1 %v16159_v18  ;;  %v16218_v18 = vcombine.high %v2976_v13, %v2980_v14  ;;  %v3031_v14 = vld [vmem:[#allocation13 + $0xd50] sm:$0xff] }
 0x6da   :  { %6524 = vmatpush1.bf16.msra.mxu0 %v16161_v19  ;;  %6353 = vmatprep.subr.bf16.mxu1 %v16168_v45  ;;  %v2983_v19 = vld [vmem:[#allocation13 + $0xbd0] sm:$0xff] }
 0x6db   :  { %6525 = vmatprep.subr.bf16.mxu0 %v16170_v20  ;;  %v2987_v45 = vld [vmem:[#allocation13 + $0xbf0] sm:$0xff]  ;;  %v2984_v20 = vld [vmem:[#allocation13 + $0xbd8] sm:$0xff] }
 0x6dc   :  { %v16224_v28 = vcombine.high %v2983_v19, %v2987_v45  ;;  %v16223_v33 = vcombine.low %v2983_v19, %v2987_v45  ;;  %v16225_v34 = vcombine.low %v2984_v20, %v2988_v21  ;;  %v18654_v19 = vld [vmem:[#allocation14] sm:$0xff] }
 0x6dd   :  { %6354 = vmatpush1.bf16.msra.mxu1 %v16167_v29  ;;  %v16226_v29 = vcombine.high %v2984_v20, %v2988_v21 }
 0x6de   :  { %6526 = vmatpush1.bf16.msra.mxu0 %v16169_v30  ;;  %6355 = vmatprep.subr.bf16.mxu1 %v16176_v31  ;;  %v2991_v30 = vld [vmem:[#allocation13 + $0xc10] sm:$0xff] }
 0x6df   :  { %6527 = vmatprep.subr.bf16.mxu0 %v16178_v32  ;;  %v2995_v31 = vld [vmem:[#allocation13 + $0xc30] sm:$0xff]  ;;  %v2992_v32 = vld [vmem:[#allocation13 + $0xc18] sm:$0xff] }
 0x6e0   :  { %v16232_v35 = vcombine.high %v2991_v30, %v2995_v31  ;;  %v16233_v42 = vcombine.low %v2992_v32, %v2996_v44 }
 0x6e1   :  { %6356 = vmatpush1.bf16.msra.mxu1 %v16175_v36  ;;  %v16234_v36 = vcombine.high %v2992_v32, %v2996_v44  ;;  %v3314_v32 = vrot.slane %v18654_v19, %v18539_v50  ;;  %v3322_v44 = vrot.slane %v18654_v19, %v18542_v51 }
 0x6e2   :  { %6528 = vmatpush1.bf16.msra.mxu0 %v16177_v37  ;;  %6357 = vmatprep.subr.bf16.mxu1 %v16184_v38  ;;  %v2999_v37 = vld [vmem:[#allocation13 + $0xc50] sm:$0xff] }
 0x6e3   :  { %6529 = vmatprep.subr.bf16.mxu0 %v16186_v5  ;;  %v3003_v38 = vld [vmem:[#allocation13 + $0xc70] sm:$0xff]  ;;  %v16231_v5 = vcombine.low %v2991_v30, %v2995_v31  ;;  %v3040_v30 = vld [vmem:[#allocation13 + $0xd98] sm:$0xff] }
 0x6e4   :  { %v16240_v43 = vcombine.high %v2999_v37, %v3003_v38  ;;  %v16239_v56 = vcombine.low %v2999_v37, %v3003_v38  ;;  %v3044_v31 = vld [vmem:[#allocation13 + $0xdb8] sm:$0xff]  ;;  %v3051_v37 = vld [vmem:[#allocation13 + $0xdf0] sm:$0xff] }
 0x6e5   :  { %6358 = vmatpush1.bf16.msra.mxu1 %v16183_v63  ;;  %v3007_v63 = vld [vmem:[#allocation13 + $0xc90] sm:$0xff] }
 0x6e6   :  { %6530 = vmatpush1.bf16.msra.mxu0 %v16185_v49  ;;  %6359 = vmatprep.subr.bf16.mxu1 %v16192_v52  ;;  %v3011_v49 = vld [vmem:[#allocation13 + $0xcb0] sm:$0xff]  ;;  %v16242_v52 = vcombine.high %v3000_v40, %v3004_v41  ;;  %v16282_v40 = vcombine.high %v3040_v30, %v3044_v31 }
 0x6e7   :  { %6531 = vmatprep.subr.bf16.mxu0 %v16194_v55  ;;  %v3008_v55 = vld [vmem:[#allocation13 + $0xc98] sm:$0xff]  ;;  %v16248_v58 = vcombine.high %v3007_v63, %v3011_v49  ;;  %v16247_v61 = vcombine.low %v3007_v63, %v3011_v49 }
 0x6e9   :  { %6360 = vmatpush1.bf16.msra.mxu1 %v16191_v60  ;;  %v16250_v60 = vcombine.high %v3008_v55, %v3012_v53 }
 0x6ea   :  { %6532 = vmatpush1.bf16.msra.mxu0 %v16193_v46  ;;  %6361 = vmatprep.subr.bf16.mxu1 %v16200_v62  ;;  %v3015_v46 = vld [vmem:[#allocation13 + $0xcd0] sm:$0xff] }
 0x6eb   :  { %6533 = vmatprep.subr.bf16.mxu0 %v16202_v1  ;;  %v3019_v62 = vld [vmem:[#allocation13 + $0xcf0] sm:$0xff]  ;;  %v3016_v1 = vld [vmem:[#allocation13 + $0xcd8] sm:$0xff] }
 0x6ec   :  { %v16256_v59 = vcombine.high %v3015_v46, %v3019_v62  ;;  %v16258_v4 = vcombine.high %v3016_v1, %v3020_v2  ;;  %v16257_v0 = vcombine.low %v3016_v1, %v3020_v2 }
 0x6ed   :  { %6362 = vmatpush1.bf16.msra.mxu1 %v16199_v54  ;;  %v3023_v54 = vld [vmem:[#allocation13 + $0xd10] sm:$0xff] }
 0x6ee   :  { %6534 = vmatpush1.bf16.msra.mxu0 %v16201_v7  ;;  %6363 = vmatprep.subr.bf16.mxu1 %v16208_v9  ;;  %v3027_v7 = vld [vmem:[#allocation13 + $0xd30] sm:$0xff]  ;;  %v3024_v9 = vld [vmem:[#allocation13 + $0xd18] sm:$0xff] }
 0x6ef   :  { %6535 = vmatprep.subr.bf16.mxu0 %v16210_v10  ;;  %v3028_v10 = vld [vmem:[#allocation13 + $0xd38] sm:$0xff]  ;;  %v16264_v11 = vcombine.high %v3023_v54, %v3027_v7 }
 0x6f0   :  { %v16266_v13 = vcombine.high %v3024_v9, %v3028_v10  ;;  %v16265_v45 = vcombine.low %v3024_v9, %v3028_v10  ;;  %v3055_v9 = vld [vmem:[#allocation13 + $0xe10] sm:$0xff] }
 0x6f1   :  { %6364 = vmatpush1.bf16.msra.mxu1 %v16207_v15  ;;  %v3035_v15 = vld [vmem:[#allocation13 + $0xd70] sm:$0xff] }
 0x6f2   :  { %6536 = vmatpush1.bf16.msra.mxu0 %v16209_v16  ;;  %6365 = vmatprep.subr.bf16.mxu1 %v16216_v17  ;;  %v3032_v16 = vld [vmem:[#allocation13 + $0xd58] sm:$0xff]  ;;  %v16272_v20 = vcombine.high %v3031_v14, %v3035_v15  ;;  %v3059_v10 = vld [vmem:[#allocation13 + $0xe30] sm:$0xff] }
 0x6f3   :  { %6537 = vmatprep.subr.bf16.mxu0 %v16218_v18  ;;  %v3036_v17 = vld [vmem:[#allocation13 + $0xd78] sm:$0xff]  ;;  %v16263_v18 = vcombine.low %v3023_v54, %v3027_v7 }
 0x6f4   :  { %v16274_v21 = vcombine.high %v3032_v16, %v3036_v17 }
 0x6f5   :  { %6366 = vmatpush1.bf16.msra.mxu1 %v16215_v22  ;;  %v3039_v22 = vld [vmem:[#allocation13 + $0xd90] sm:$0xff] }
 0x6f6   :  { %6538 = vmatpush1.bf16.msra.mxu0 %v16217_v23  ;;  %6367 = vmatprep.subr.bf16.mxu1 %v16224_v28  ;;  %v3043_v23 = vld [vmem:[#allocation13 + $0xdb0] sm:$0xff]  ;;  %v3310_v28 = vrot.slane %v18654_v19, %v18533_v47 }
 0x6f7   :  { %6539 = vmatprep.subr.bf16.mxu0 %v16226_v29  ;;  %v3318_v29 = vrot.slane %v18654_v19, %v18536_v48  ;;  %v16279_v49 = vcombine.low %v3039_v22, %v3043_v23 }
 0x6f9   :  { %6368 = vmatpush1.bf16.msra.mxu1 %v16223_v33  ;;  %v16271_v33 = vcombine.low %v3031_v14, %v3035_v15  ;;  %v3056_v14 = vld [vmem:[#allocation13 + $0xe18] sm:$0xff] }
 0x6fa   :  { %6540 = vmatpush1.bf16.msra.mxu0 %v16225_v34  ;;  %6380 = vmatprep.subr.bf16.mxu1 %v16232_v35  ;;  %v16273_v34 = vcombine.low %v3032_v16, %v3036_v17  ;;  %v16280_v35 = vcombine.high %v3039_v22, %v3043_v23  ;;  %v3060_v15 = vld [vmem:[#allocation13 + $0xe38] sm:$0xff]  ;;  %v16296_v22 = vcombine.high %v3055_v9, %v3059_v10 }
 0x6fb   :  { %6552 = vmatprep.subr.bf16.mxu0 %v16234_v36  ;;  %v3047_v36 = vld [vmem:[#allocation13 + $0xdd0] sm:$0xff] }
 0x6fc   :  { %6370 = vmatmul.mubr.bf16.vlgmr.msra.gmra.mrb[28].mxu1 %v18624_v3 }
 0x6fd   :  { %6542 = vmatmul.mubr.bf16.vlgmr.msra.gmra.mrb[32].mxu0 %v18624_v3  ;;  %6381 = vmatpush1.bf16.msra.mxu1 %v16231_v5  ;;  %v16249_v3 = vcombine.low %v3008_v55, %v3012_v53  ;;  %v3052_v55 = vld [vmem:[#allocation13 + $0xdf8] sm:$0xff] }
 0x6fe   :  { %6412 = vmatprep.mubr.bf16.mxu1 %v18630_v12  ;;  %6553 = vmatpush1.bf16.msra.mxu0 %v16233_v42 }
 0x6ff   :  { %6584 = vmatprep.mubr.bf16.mxu0 %v18630_v12  ;;  %6382 = vmatprep.subr.bf16.mxu1 %v16240_v43  ;;  %v16255_v12 = vcombine.low %v3015_v46, %v3019_v62  ;;  %v16287_v46 = vcombine.low %v3047_v36, %v3051_v37 }
 0x700   :  { %6554 = vmatprep.subr.bf16.mxu0 %v16242_v52  ;;  %v3048_v52 = vld [vmem:[#allocation13 + $0xdd8] sm:$0xff] }
 0x701   :  { %6383 = vmatpush1.bf16.msra.mxu1 %v16239_v56  ;;  %v16289_v54 = vcombine.low %v3048_v52, %v3052_v55  ;;  %v16290_v7 = vcombine.high %v3048_v52, %v3052_v55  ;;  %v3083_v52 = vld [vmem:[#allocation13 + $0xef0] sm:$0xff]  ;;  %v3080_v55 = vld [vmem:[#allocation13 + $0xed8] sm:$0xff] }
 0x702   :  { %6555 = vmatpush1.bf16.msra.mxu0 %v16241_v57  ;;  %6384 = vmatprep.subr.bf16.mxu1 %v16248_v58 }
 0x703   :  { %6556 = vmatprep.subr.bf16.mxu0 %v16250_v60  ;;  %v16281_v60 = vcombine.low %v3040_v30, %v3044_v31  ;;  %v3063_v30 = vld [vmem:[#allocation13 + $0xe50] sm:$0xff] }
 0x704   :  { %v3067_v31 = vld [vmem:[#allocation13 + $0xe70] sm:$0xff] }
 0x705   :  { %6385 = vmatpush1.bf16.msra.mxu1 %v16247_v61 }
 0x706   :  { %6557 = vmatpush1.bf16.msra.mxu0 %v16249_v3  ;;  %6386 = vmatprep.subr.bf16.mxu1 %v16256_v59  ;;  %v16288_v3 = vcombine.high %v3047_v36, %v3051_v37  ;;  %v3071_v37 = vld [vmem:[#allocation13 + $0xe90] sm:$0xff] }
 0x707   :  { %6558 = vmatprep.subr.bf16.mxu0 %v16258_v4 }
 0x709   :  { %6387 = vmatpush1.bf16.msra.mxu1 %v16255_v12 }
 0x70a   :  { %6559 = vmatpush1.bf16.msra.mxu0 %v16257_v0  ;;  %6388 = vmatprep.subr.bf16.mxu1 %v16264_v11 }
 0x70b   :  { %6560 = vmatprep.subr.bf16.mxu0 %v16266_v13 }
 0x70d   :  { %6389 = vmatpush1.bf16.msra.mxu1 %v16263_v18 }
 0x70e   :  { %6561 = vmatpush1.bf16.msra.mxu0 %v16265_v45  ;;  %6390 = vmatprep.subr.bf16.mxu1 %v16272_v20 }
 0x70f   :  { %v6070_v38 = vpop.f32.mrb[24].mxu1  ;;  %v6242_v5 = vpop.f32.mrb[28].mxu0  ;;  %6562 = vmatprep.subr.bf16.mxu0 %v16274_v21 }
 0x710   :  { %v17568_v41 = vadd.f32 %v6070_v38, %v3310_v28  ;;  %v17572_v42 = vadd.f32 %v6242_v5, %v3318_v29  ;;  %v6072_v43 = vpop.f32.mrb[25].mxu1  ;;  %v6244_v63 = vpop.f32.mrb[29].mxu0  ;;  %v3075_v38 = vld [vmem:[#allocation13 + $0xeb0] sm:$0xff]  ;;  %v3072_v5 = vld [vmem:[#allocation13 + $0xe98] sm:$0xff] }
 0x711   :  { %v17569_v53 = vadd.f32 %v6072_v43, %v3314_v32  ;;  %v17573_v56 = vadd.f32 %v6244_v63, %v3322_v44  ;;  %v6074_v57 = vpop.f32.mrb[26].mxu1  ;;  %v6246_v58 = vpop.f32.mrb[30].mxu0  ;;  %6391 = vmatpush1.bf16.msra.mxu1 %v16271_v33  ;;  %v16295_v33 = vcombine.low %v3055_v9, %v3059_v10  ;;  %v16312_v43 = vcombine.high %v3071_v37, %v3075_v38  ;;  %v3096_v9 = vld [vmem:[#allocation13 + $0xf58] sm:$0xff] }
 0x712   :  { %v17570_v62 = vadd.f32 %v6074_v57, %v3310_v28  ;;  %v17574_v1 = vadd.f32 %v6246_v58, %v3318_v29  ;;  %6563 = vmatpush1.bf16.msra.mxu0 %v16273_v34  ;;  %v6076_v2 = vpop.f32.mrb[27].mxu1  ;;  %v6248_v61 = vpop.f32.mrb[31].mxu0  ;;  %6392 = vmatprep.subr.bf16.mxu1 %v16280_v35  ;;  %v6595_v12 = vmax.f32 %v17568_v41, 0.0  ;;  %v6597_v0 = vmax.f32 %v17572_v42, 0.0  ;;  %v3100_v10 = vld [vmem:[#allocation13 + $0xf78] sm:$0xff] }
 0x713   :  { %v17571_v59 = vadd.f32 %v6076_v2, %v3314_v32  ;;  %v17575_v4 = vadd.f32 %v6248_v61, %v3322_v44  ;;  %6564 = vmatprep.subr.bf16.mxu0 %v16282_v40  ;;  %v6596_v16 = vmax.f32 %v17569_v53, 0.0  ;;  %v6598_v17 = vmax.f32 %v17573_v56, 0.0  ;;  %v3064_v32 = vld [vmem:[#allocation13 + $0xe58] sm:$0xff] }
 0x714   :  { %v6603_v11 = vmax.f32 %v17570_v62, 0.0  ;;  %v6605_v13 = vmax.f32 %v17574_v1, 0.0  ;;  %v16298_v29 = vcombine.high %v3056_v14, %v3060_v15  ;;  %v3068_v44 = vld [vmem:[#allocation13 + $0xe78] sm:$0xff]  ;;  %v16297_v34 = vcombine.low %v3056_v14, %v3060_v15  ;;  %v3091_v62 = vld [vmem:[#allocation13 + $0xf30] sm:$0xff] }
 0x715   :  { %v6604_v18 = vmax.f32 %v17571_v59, 0.0  ;;  %v6606_v45 = vmax.f32 %v17575_v4, 0.0  ;;  %6393 = vmatpush1.bf16.msra.mxu1 %v16279_v49  ;;  %v16304_v35 = vcombine.high %v3063_v30, %v3067_v31  ;;  %v16306_v36 = vcombine.high %v3064_v32, %v3068_v44  ;;  %v3076_v40 = vld [vmem:[#allocation13 + $0xeb8] sm:$0xff]  ;;  %v3079_v49 = vld [vmem:[#allocation13 + $0xed0] sm:$0xff] }
 0x716   :  { %v18664_v20 = vpack.c.bf16 %v6603_v11, %v6595_v12  ;;  %v18666_v21 = vpack.c.bf16 %v6605_v13, %v6597_v0  ;;  %6565 = vmatpush1.bf16.msra.mxu0 %v16281_v60  ;;  %6394 = vmatprep.subr.bf16.mxu1 %v16288_v3  ;;  %v16303_v41 = vcombine.low %v3063_v30, %v3067_v31  ;;  %v3084_v53 = vld [vmem:[#allocation13 + $0xef8] sm:$0xff]  ;;  %v3103_v14 = vld [vmem:[#allocation13 + $0xf90] sm:$0xff] }
 0x717   :  { %v18668_v23 = vpack.c.bf16 %v6604_v18, %v6596_v16  ;;  %v18670_v28 = vpack.c.bf16 %v6606_v45, %v6598_v17  ;;  %6566 = vmatprep.subr.bf16.mxu0 %v16290_v7  ;;  %v16305_v42 = vcombine.low %v3064_v32, %v3068_v44  ;;  %v16314_v63 = vcombine.high %v3072_v5, %v3076_v40  ;;  %v3088_v1 = vld [vmem:[#allocation13 + $0xf18] sm:$0xff]  ;;  %v3099_v7 = vld [vmem:[#allocation13 + $0xf70] sm:$0xff] }
 0x718   :  { %v16311_v56 = vcombine.low %v3071_v37, %v3075_v38  ;;  %v16313_v57 = vcombine.low %v3072_v5, %v3076_v40  ;;  %v16320_v58 = vcombine.high %v3079_v49, %v3083_v52  ;;  %v16322_v60 = vcombine.high %v3080_v55, %v3084_v53  ;;  %v3092_v2 = vld [vmem:[#allocation13 + $0xf38] sm:$0xff]  ;;  %v3107_v15 = vld [vmem:[#allocation13 + $0xfb0] sm:$0xff] }
 0x719   :  { %6395 = vmatpush1.bf16.msra.mxu1 %v16287_v46  ;;  %v3087_v46 = vld [vmem:[#allocation13 + $0xf10] sm:$0xff]  ;;  %v16319_v61 = vcombine.low %v3079_v49, %v3083_v52  ;;  %v16321_v3 = vcombine.low %v3080_v55, %v3084_v53  ;;  %v16330_v4 = vcombine.high %v3088_v1, %v3092_v2  ;;  %v16329_v0 = vcombine.low %v3088_v1, %v3092_v2  ;;  %v3104_v16 = vld [vmem:[#allocation13 + $0xf98] sm:$0xff]  ;;  %v6611_v2 = vld [vmem:[#allocation16] sm:$0xff] }
 0x71a   :  { %6567 = vmatpush1.bf16.msra.mxu0 %v16289_v54  ;;  %6396 = vmatprep.subr.bf16.mxu1 %v16296_v22  ;;  %v16328_v59 = vcombine.high %v3087_v46, %v3091_v62  ;;  %v3095_v54 = vld [vmem:[#allocation13 + $0xf50] sm:$0xff]  ;;  %v16327_v12 = vcombine.low %v3087_v46, %v3091_v62  ;;  %v16338_v13 = vcombine.high %v3096_v9, %v3100_v10  ;;  %v3108_v17 = vld [vmem:[#allocation13 + $0xfb8] sm:$0xff] }
 0x71b   :  { %6568 = vmatprep.subr.bf16.mxu0 %v16298_v29  ;;  %v16336_v11 = vcombine.high %v3095_v54, %v3099_v7  ;;  %v16335_v18 = vcombine.low %v3095_v54, %v3099_v7  ;;  %v16337_v45 = vcombine.low %v3096_v9, %v3100_v10  ;;  %v16344_v22 = vcombine.high %v3103_v14, %v3107_v15  ;;  %v3111_v30 = vld [vmem:[#allocation13 + $0xfd0] sm:$0xff]  ;;  %v3112_v32 = vld [vmem:[#allocation13 + $0xfd8] sm:$0xff] }
 0x71c   :  { %v16346_v29 = vcombine.high %v3104_v16, %v3108_v17  ;;  %v3115_v31 = vld [vmem:[#allocation13 + $0xff0] sm:$0xff]  ;;  %v3116_v44 = vld [vmem:[#allocation13 + $0xff8] sm:$0xff] }
 0x71d   :  { %6397 = vmatpush1.bf16.msra.mxu1 %v16295_v33  ;;  %v16343_v33 = vcombine.low %v3103_v14, %v3107_v15  ;;  %v16351_v37 = vcombine.low %v3111_v30, %v3115_v31  ;;  %v16353_v38 = vcombine.low %v3112_v32, %v3116_v44  ;;  %v6612_v54 = vld [vmem:[#allocation16 + $0x8] sm:$0xff] }
 0x71e   :  { %6569 = vmatpush1.bf16.msra.mxu0 %v16297_v34  ;;  %6398 = vmatprep.subr.bf16.mxu1 %v16304_v35  ;;  %v16345_v34 = vcombine.low %v3104_v16, %v3108_v17  ;;  %v16352_v35 = vcombine.high %v3111_v30, %v3115_v31  ;;  %v6616_v7 = vld [vmem:[#allocation16 + $0x28] sm:$0xff]  ;;  %v6619_v17 = vld [vmem:[#allocation16 + $0x40] sm:$0xff] }
 0x71f   :  { %6570 = vmatprep.subr.bf16.mxu0 %v16306_v36  ;;  %v16354_v36 = vcombine.high %v3112_v32, %v3116_v44  ;;  %v16362_v16 = vcombine.high %v6612_v54, %v6616_v7  ;;  %v6624_v30 = vld [vmem:[#allocation16 + $0x68] sm:$0xff] }
 0x721   :  { %6399 = vmatpush1.bf16.msra.mxu1 %v16303_v41 }
 0x722   :  { %6571 = vmatpush1.bf16.msra.mxu0 %v16305_v42  ;;  %6400 = vmatprep.subr.bf16.mxu1 %v16312_v43 }
 0x723   :  { %6572 = vmatprep.subr.bf16.mxu0 %v16314_v63 }
 0x725   :  { %6401 = vmatpush1.bf16.msra.mxu1 %v16311_v56 }
 0x726   :  { %6573 = vmatpush1.bf16.msra.mxu0 %v16313_v57  ;;  %6402 = vmatprep.subr.bf16.mxu1 %v16320_v58 }
 0x727   :  { %6574 = vmatprep.subr.bf16.mxu0 %v16322_v60 }
 0x729   :  { %6403 = vmatpush1.bf16.msra.mxu1 %v16319_v61 }
 0x72a   :  { %6575 = vmatpush1.bf16.msra.mxu0 %v16321_v3  ;;  %6404 = vmatprep.subr.bf16.mxu1 %v16328_v59 }
 0x72b   :  { %6576 = vmatprep.subr.bf16.mxu0 %v16330_v4 }
 0x72d   :  { %6405 = vmatpush1.bf16.msra.mxu1 %v16327_v12 }
 0x72e   :  { %6577 = vmatpush1.bf16.msra.mxu0 %v16329_v0  ;;  %6406 = vmatprep.subr.bf16.mxu1 %v16336_v11 }
 0x72f   :  { %6578 = vmatprep.subr.bf16.mxu0 %v16338_v13 }
 0x731   :  { %6407 = vmatpush1.bf16.msra.mxu1 %v16335_v18  ;;  %v6623_v18 = vld [vmem:[#allocation16 + $0x60] sm:$0xff] }
 0x732   :  { %6579 = vmatpush1.bf16.msra.mxu0 %v16337_v45  ;;  %6408 = vmatprep.subr.bf16.mxu1 %v16344_v22 }
 0x733   :  { %6580 = vmatprep.subr.bf16.mxu0 %v16346_v29  ;;  %v6620_v29 = vld [vmem:[#allocation16 + $0x48] sm:$0xff] }
 0x735   :  { %6409 = vmatpush1.bf16.msra.mxu1 %v16343_v33  ;;  %v16361_v33 = vcombine.low %v6612_v54, %v6616_v7  ;;  %v6651_v54 = vld [vmem:[#allocation16 + $0x140] sm:$0xff] }
 0x736   :  { %6581 = vmatpush1.bf16.msra.mxu0 %v16345_v34  ;;  %6410 = vmatprep.subr.bf16.mxu1 %v16352_v35  ;;  %v6655_v7 = vld [vmem:[#allocation16 + $0x160] sm:$0xff] }
 0x737   :  { %6582 = vmatprep.subr.bf16.mxu0 %v16354_v36 }
 0x739   :  { %6411 = vmatpush1.bf16.msra.mxu1 %v16351_v37  ;;  %v16368_v37 = vcombine.high %v6619_v17, %v6623_v18 }
 0x73a   :  { %6583 = vmatpush1.bf16.msra.mxu0 %v16353_v38  ;;  %7132 = vmatprep.subr.bf16.mxu1 %v18668_v23  ;;  %v3338_v23 = vrot.slane %v18654_v19, %v18598_v27 }
 0x73b   :  { %7175 = vmatprep.subr.bf16.mxu0 %v18670_v28 }
 0x73c   :  { %6413 = vmatmul.mubr.bf16.vlgmr.msra.gmra.mrb[28].mxu1 %v18628_v8 }
 0x73d   :  { %6585 = vmatmul.mubr.bf16.vlgmr.msra.gmra.mrb[32].mxu0 %v18628_v8  ;;  %7133 = vmatpush1.bf16.msra.mxu1 %v18664_v20  ;;  %v3326_v8 = vrot.slane %v18654_v19, %v18589_v24  ;;  %v3334_v20 = vrot.slane %v18654_v19, %v18592_v25 }
 0x73e   :  { %7176 = vmatpush1.bf16.msra.mxu0 %v18666_v21  ;;  %7164 = vmatprep.mubr.bf16.mxu1 %v18264_v39  ;;  %v3330_v21 = vrot.slane %v18654_v19, %v18595_v26  ;;  %v6615_v19 = vld [vmem:[#allocation16 + $0x20] sm:$0xff] }
 0x73f   :  { %7207 = vmatprep.mubr.bf16.mxu0 %v18264_v39  ;;  %v16360_v13 = vcombine.high %v6611_v2, %v6615_v19  ;;  %v16359_v44 = vcombine.low %v6611_v2, %v6615_v19  ;;  %v6644_v2 = vld [vmem:[#allocation16 + $0x108] sm:$0xff] }
 0x740   :  { %v6648_v19 = vld [vmem:[#allocation16 + $0x128] sm:$0xff] }
 0x744   :  { %16355 = vmatmul.mubr.msk.bf16.vlgmr.msra.gmra.mrb[32].mxu1 %vm252_vm1, %v18522_v6 }
 0x745   :  { %16356 = vmatmul.mubr.msk.bf16.vlgmr.msra.gmra.mrb[36].mxu0 %vm252_vm1, %v18522_v6  ;;  %7250 = vmatprep.mubr.bf16.mxu1 %v18264_v39 }
 0x746   :  { %7293 = vmatprep.mubr.bf16.mxu0 %v18264_v39 }
 0x80f   :  { %v6414_v28 = vpop.f32.mrb[28].mxu1 }
 0x810   :  { %v17576_v5 = vadd.f32 %v6414_v28, %v3326_v8  ;;  %v6586_v40 = vpop.f32.mrb[32].mxu0  ;;  %v6416_v41 = vpop.f32.mrb[29].mxu1  ;;  %v6631_v28 = vld [vmem:[#allocation16 + $0xa0] sm:$0xff] }
 0x811   :  { %v17580_v42 = vadd.f32 %v6586_v40, %v3334_v20  ;;  %v17577_v43 = vadd.f32 %v6416_v41, %v3330_v21  ;;  %v6588_v63 = vpop.f32.mrb[33].mxu0  ;;  %v6418_v49 = vpop.f32.mrb[30].mxu1  ;;  %v6628_v40 = vld [vmem:[#allocation16 + $0x88] sm:$0xff] }
 0x812   :  { %v17581_v52 = vadd.f32 %v6588_v63, %v3338_v23  ;;  %v17578_v55 = vadd.f32 %v6418_v49, %v3326_v8  ;;  %v6590_v53 = vpop.f32.mrb[34].mxu0  ;;  %v6420_v56 = vpop.f32.mrb[31].mxu1  ;;  %v6599_v46 = vmax.f32 %v17576_v5, 0.0  ;;  %v6632_v41 = vld [vmem:[#allocation16 + $0xa8] sm:$0xff] }
 0x813   :  { %v17582_v57 = vadd.f32 %v6590_v53, %v3334_v20  ;;  %v17579_v58 = vadd.f32 %v6420_v56, %v3330_v21  ;;  %v6592_v60 = vpop.f32.mrb[35].mxu0  ;;  %v6601_v61 = vmax.f32 %v17580_v42, 0.0  ;;  %v6600_v3 = vmax.f32 %v17577_v43, 0.0  ;;  %v6636_v53 = vld [vmem:[#allocation16 + $0xc8] sm:$0xff] }
 0x814   :  { %v6607_v62 = vmax.f32 %v17578_v55, 0.0  ;;  %v17583_v1 = vadd.f32 %v6592_v60, %v3338_v23  ;;  %v6602_v9 = vmax.f32 %v17581_v52, 0.0  ;;  %v16370_v21 = vcombine.high %v6620_v29, %v6624_v30  ;;  %v6627_v23 = vld [vmem:[#allocation16 + $0x80] sm:$0xff]  ;;  %v6640_v56 = vld [vmem:[#allocation16 + $0xe8] sm:$0xff] }
 0x815   :  { %v6609_v59 = vmax.f32 %v17582_v57, 0.0  ;;  %v6608_v4 = vmax.f32 %v17579_v58, 0.0  ;;  %v16367_v42 = vcombine.low %v6619_v17, %v6623_v18  ;;  %v16369_v43 = vcombine.low %v6620_v29, %v6624_v30  ;;  %v6635_v52 = vld [vmem:[#allocation16 + $0xc0] sm:$0xff]  ;;  %v6664_v17 = vld [vmem:[#allocation16 + $0x1a8] sm:$0xff] }
 0x816   :  { %v7128_v10 = vpack.c.bf16 %v6607_v62, %v6599_v46  ;;  %v6610_v12 = vmax.f32 %v17583_v1, 0.0  ;;  %v16376_v63 = vcombine.high %v6627_v23, %v6631_v28  ;;  %v16378_v49 = vcombine.high %v6628_v40, %v6632_v41  ;;  %v6639_v55 = vld [vmem:[#allocation16 + $0xe0] sm:$0xff] }
 0x817   :  { %v7130_v0 = vpack.c.bf16 %v6609_v59, %v6601_v61  ;;  %v7129_v11 = vpack.c.bf16 %v6608_v4, %v6600_v3  ;;  %v7166_v14 = vpop.f32.mrb[32].mxu1  ;;  %v16375_v57 = vcombine.low %v6627_v23, %v6631_v28  ;;  %v16377_v58 = vcombine.low %v6628_v40, %v6632_v41  ;;  %v6643_v62 = vld [vmem:[#allocation16 + $0x100] sm:$0xff]  ;;  %v6676_v23 = vld [vmem:[#allocation16 + $0x208] sm:$0xff] }
 0x818   :  { %v7131_v15 = vpack.c.bf16 %v6610_v12, %v6602_v9  ;;  %v7168_v45 = vpop.f32.mrb[33].mxu1  ;;  %v7209_v22 = vpop.f32.mrb[36].mxu0  ;;  %v16384_v60 = vcombine.high %v6635_v52, %v6639_v55  ;;  %v16386_v46 = vcombine.high %v6636_v53, %v6640_v56  ;;  %v6647_v1 = vld [vmem:[#allocation16 + $0x120] sm:$0xff]  ;;  %v16383_v61 = vcombine.low %v6635_v52, %v6639_v55  ;;  %v6652_v9 = vld [vmem:[#allocation16 + $0x148] sm:$0xff] }
 0x819   :  { %7218 = vmatprep.subr.bf16.mxu1 %v7129_v11  ;;  %v7170_v31 = vpop.f32.mrb[34].mxu1  ;;  %v7211_v32 = vpop.f32.mrb[37].mxu0  ;;  %v16385_v3 = vcombine.low %v6636_v53, %v6640_v56  ;;  %v16392_v59 = vcombine.high %v6643_v62, %v6647_v1  ;;  %v16394_v4 = vcombine.high %v6644_v2, %v6648_v19  ;;  %v16391_v12 = vcombine.low %v6643_v62, %v6647_v1  ;;  %v6667_v30 = vld [vmem:[#allocation16 + $0x1c0] sm:$0xff]  ;;  %v6680_v28 = vld [vmem:[#allocation16 + $0x228] sm:$0xff] }
 0x81a   :  { %7261 = vmatprep.subr.bf16.mxu0 %v7131_v15  ;;  %7219 = vmatpush1.bf16.msra.mxu1 %v7128_v10  ;;  %v18694_v34 = vpack.c.bf16 %v7170_v31, %v7166_v14  ;;  %v7172_v35 = vpop.f32.mrb[35].mxu1  ;;  %v7213_v36 = vpop.f32.mrb[38].mxu0  ;;  %v6656_v10 = vld [vmem:[#allocation16 + $0x168] sm:$0xff]  ;;  %v16400_v11 = vcombine.high %v6651_v54, %v6655_v7  ;;  %v6659_v14 = vld [vmem:[#allocation16 + $0x180] sm:$0xff]  ;;  %v16399_v18 = vcombine.low %v6651_v54, %v6655_v7 }
 0x81b   :  { %7262 = vmatpush1.bf16.msra.mxu0 %v7130_v0  ;;  %9913 = vmatprep.subr.bf16.mxu1 %v16360_v13  ;;  %v18696_v38 = vpack.c.bf16 %v7172_v35, %v7168_v45  ;;  %v18698_v8 = vpack.c.bf16 %v7213_v36, %v7209_v22  ;;  %v7215_v20 = vpop.f32.mrb[39].mxu0  ;;  %v16393_v0 = vcombine.low %v6644_v2, %v6648_v19  ;;  %v6663_v15 = vld [vmem:[#allocation16 + $0x1a0] sm:$0xff]  ;;  %v6684_v52 = vld [vmem:[#allocation16 + $0x248] sm:$0xff] }
 0x81c   :  { %10085 = vmatprep.subr.bf16.mxu0 %v16362_v16  ;;  %v18700_v5 = vpack.c.bf16 %v7215_v20, %v7211_v32  ;;  %v16402_v13 = vcombine.high %v6652_v9, %v6656_v10  ;;  %v6660_v16 = vld [vmem:[#allocation16 + $0x188] sm:$0xff]  ;;  %v16401_v45 = vcombine.low %v6652_v9, %v6656_v10  ;;  %v16408_v22 = vcombine.high %v6659_v14, %v6663_v15  ;;  %v6671_v31 = vld [vmem:[#allocation16 + $0x1e0] sm:$0xff] }
 0x81d   :  { %16357 = vmatmul.mubr.msk.bf16.vlgmr.msra.gmra.mrb[36].mxu1 %vm252_vm1, %v18522_v6  ;;  %v16410_v29 = vcombine.high %v6660_v16, %v6664_v17  ;;  %v6668_v32 = vld [vmem:[#allocation16 + $0x1c8] sm:$0xff]  ;;  %v16409_v35 = vcombine.low %v6660_v16, %v6664_v17  ;;  %v16416_v36 = vcombine.high %v6667_v30, %v6671_v31  ;;  %v6675_v20 = vld [vmem:[#allocation16 + $0x200] sm:$0xff]  ;;  %v16415_v40 = vcombine.low %v6667_v30, %v6671_v31 }
 0x81e   :  { %16358 = vmatmul.mubr.msk.bf16.vlgmr.msra.gmra.mrb[40].mxu0 %vm252_vm1, %v18522_v6  ;;  %9914 = vmatpush1.bf16.msra.mxu1 %v16359_v44  ;;  %v6672_v44 = vld [vmem:[#allocation16 + $0x1e8] sm:$0xff]  ;;  %v16425_v56 = vcombine.low %v6676_v23, %v6680_v28 }
 0x81f   :  { %10086 = vmatpush1.bf16.msra.mxu0 %v16361_v33  ;;  %9915 = vmatprep.subr.bf16.mxu1 %v16368_v37  ;;  %v16407_v33 = vcombine.low %v6659_v14, %v6663_v15  ;;  %v16418_v37 = vcombine.high %v6668_v32, %v6672_v44  ;;  %v16417_v41 = vcombine.low %v6668_v32, %v6672_v44  ;;  %v6688_v55 = vld [vmem:[#allocation16 + $0x268] sm:$0xff] }
 0x820   :  { %10087 = vmatprep.subr.bf16.mxu0 %v16370_v21  ;;  %9945 = vmatprep.mubr.bf16.mxu1 %v18696_v38  ;;  %v6679_v21 = vld [vmem:[#allocation16 + $0x220] sm:$0xff]  ;;  %v6692_v62 = vld [vmem:[#allocation16 + $0x288] sm:$0xff]  ;;  %v16433_v19 = vcombine.low %v6684_v52, %v6688_v55 }
 0x821   :  { %10117 = vmatprep.mubr.bf16.mxu0 %v18696_v38  ;;  %v16423_v53 = vcombine.low %v6675_v20, %v6679_v21  ;;  %v6696_v1 = vld [vmem:[#allocation16 + $0x2a8] sm:$0xff] }
 0x822   :  { %9916 = vmatpush1.bf16.msra.mxu1 %v16367_v42  ;;  %v16424_v42 = vcombine.high %v6675_v20, %v6679_v21  ;;  %v6700_v54 = vld [vmem:[#allocation16 + $0x2c8] sm:$0xff]  ;;  %v16441_v10 = vcombine.low %v6692_v62, %v6696_v1 }
 0x823   :  { %10088 = vmatpush1.bf16.msra.mxu0 %v16369_v43  ;;  %9917 = vmatprep.subr.bf16.mxu1 %v16376_v63  ;;  %v16426_v43 = vcombine.high %v6676_v23, %v6680_v28  ;;  %v6683_v63 = vld [vmem:[#allocation16 + $0x240] sm:$0xff]  ;;  %v6704_v7 = vld [vmem:[#allocation16 + $0x2e8] sm:$0xff] }
 0x824   :  { %10089 = vmatprep.subr.bf16.mxu0 %v16378_v49  ;;  %v6687_v49 = vld [vmem:[#allocation16 + $0x260] sm:$0xff]  ;;  %v6708_v14 = vld [vmem:[#allocation16 + $0x308] sm:$0xff]  ;;  %v16449_v17 = vcombine.low %v6700_v54, %v6704_v7 }
 0x825   :  { %v16431_v2 = vcombine.low %v6683_v63, %v6687_v49  ;;  %v6712_v15 = vld [vmem:[#allocation16 + $0x328] sm:$0xff] }
 0x826   :  { %9918 = vmatpush1.bf16.msra.mxu1 %v16375_v57  ;;  %v16432_v57 = vcombine.high %v6683_v63, %v6687_v49  ;;  %v6716_v30 = vld [vmem:[#allocation16 + $0x348] sm:$0xff]  ;;  %v16457_v44 = vcombine.low %v6708_v14, %v6712_v15 }
 0x827   :  { %10090 = vmatpush1.bf16.msra.mxu0 %v16377_v58  ;;  %9919 = vmatprep.subr.bf16.mxu1 %v16384_v60  ;;  %v16434_v58 = vcombine.high %v6684_v52, %v6688_v55  ;;  %v6691_v60 = vld [vmem:[#allocation16 + $0x280] sm:$0xff]  ;;  %v6720_v31 = vld [vmem:[#allocation16 + $0x368] sm:$0xff] }
 0x828   :  { %10091 = vmatprep.subr.bf16.mxu0 %v16386_v46  ;;  %v6695_v46 = vld [vmem:[#allocation16 + $0x2a0] sm:$0xff]  ;;  %v6724_v20 = vld [vmem:[#allocation16 + $0x388] sm:$0xff]  ;;  %v16465_v28 = vcombine.low %v6716_v30, %v6720_v31 }
 0x829   :  { %v16439_v9 = vcombine.low %v6691_v60, %v6695_v46  ;;  %v6728_v21 = vld [vmem:[#allocation16 + $0x3a8] sm:$0xff] }
 0x82a   :  { %9920 = vmatpush1.bf16.msra.mxu1 %v16383_v61  ;;  %v16440_v61 = vcombine.high %v6691_v60, %v6695_v46  ;;  %v6732_v63 = vld [vmem:[#allocation16 + $0x3c8] sm:$0xff]  ;;  %v16473_v55 = vcombine.low %v6724_v20, %v6728_v21 }
 0x82b   :  { %10092 = vmatpush1.bf16.msra.mxu0 %v16385_v3  ;;  %9921 = vmatprep.subr.bf16.mxu1 %v16392_v59  ;;  %v16442_v3 = vcombine.high %v6692_v62, %v6696_v1  ;;  %v6699_v59 = vld [vmem:[#allocation16 + $0x2c0] sm:$0xff]  ;;  %v6736_v49 = vld [vmem:[#allocation16 + $0x3e8] sm:$0xff] }
 0x82c   :  { %10093 = vmatprep.subr.bf16.mxu0 %v16394_v4  ;;  %v6703_v4 = vld [vmem:[#allocation16 + $0x2e0] sm:$0xff]  ;;  %v6740_v60 = vld [vmem:[#allocation16 + $0x408] sm:$0xff]  ;;  %v16481_v1 = vcombine.low %v6732_v63, %v6736_v49 }
 0x82d   :  { %v16447_v16 = vcombine.low %v6699_v59, %v6703_v4  ;;  %v6744_v46 = vld [vmem:[#allocation16 + $0x428] sm:$0xff] }
 0x82e   :  { %9922 = vmatpush1.bf16.msra.mxu1 %v16391_v12  ;;  %v16448_v12 = vcombine.high %v6699_v59, %v6703_v4  ;;  %v6748_v59 = vld [vmem:[#allocation16 + $0x448] sm:$0xff] }
 0x82f   :  { %10094 = vmatpush1.bf16.msra.mxu0 %v16393_v0  ;;  %9923 = vmatprep.subr.bf16.mxu1 %v16400_v11  ;;  %v16450_v0 = vcombine.high %v6700_v54, %v6704_v7  ;;  %v6707_v11 = vld [vmem:[#allocation16 + $0x300] sm:$0xff]  ;;  %v6752_v4 = vld [vmem:[#allocation16 + $0x468] sm:$0xff]  ;;  %v16489_v7 = vcombine.low %v6740_v60, %v6744_v46 }
 0x830   :  { %10095 = vmatprep.subr.bf16.mxu0 %v16402_v13  ;;  %v6711_v13 = vld [vmem:[#allocation16 + $0x320] sm:$0xff] }
 0x831   :  { %v16455_v32 = vcombine.low %v6707_v11, %v6711_v13 }
 0x832   :  { %9924 = vmatpush1.bf16.msra.mxu1 %v16399_v18  ;;  %v16456_v18 = vcombine.high %v6707_v11, %v6711_v13  ;;  %v6756_v11 = vld [vmem:[#allocation16 + $0x488] sm:$0xff] }
 0x833   :  { %10096 = vmatpush1.bf16.msra.mxu0 %v16401_v45  ;;  %9925 = vmatprep.subr.bf16.mxu1 %v16408_v22  ;;  %v16458_v45 = vcombine.high %v6708_v14, %v6712_v15  ;;  %v6715_v22 = vld [vmem:[#allocation16 + $0x340] sm:$0xff]  ;;  %v6760_v13 = vld [vmem:[#allocation16 + $0x4a8] sm:$0xff]  ;;  %v16497_v15 = vcombine.low %v6748_v59, %v6752_v4 }
 0x834   :  { %10097 = vmatprep.subr.bf16.mxu0 %v16410_v29  ;;  %v6719_v29 = vld [vmem:[#allocation16 + $0x360] sm:$0xff] }
 0x835   :  { %v16463_v23 = vcombine.low %v6715_v22, %v6719_v29 }
 0x836   :  { %9926 = vmatpush1.bf16.msra.mxu1 %v16407_v33  ;;  %v16464_v33 = vcombine.high %v6715_v22, %v6719_v29  ;;  %v6764_v22 = vld [vmem:[#allocation16 + $0x4c8] sm:$0xff] }
 0x837   :  { %10098 = vmatpush1.bf16.msra.mxu0 %v16409_v35  ;;  %9927 = vmatprep.subr.bf16.mxu1 %v16416_v36  ;;  %v16466_v35 = vcombine.high %v6716_v30, %v6720_v31  ;;  %v6723_v36 = vld [vmem:[#allocation16 + $0x380] sm:$0xff]  ;;  %v6768_v29 = vld [vmem:[#allocation16 + $0x4e8] sm:$0xff]  ;;  %v16505_v31 = vcombine.low %v6756_v11, %v6760_v13 }
 0x838   :  { %10099 = vmatprep.subr.bf16.mxu0 %v16418_v37  ;;  %v6727_v37 = vld [vmem:[#allocation16 + $0x3a0] sm:$0xff] }
 0x839   :  { %v16471_v52 = vcombine.low %v6723_v36, %v6727_v37 }
 0x83a   :  { %9928 = vmatpush1.bf16.msra.mxu1 %v16415_v40  ;;  %v16472_v40 = vcombine.high %v6723_v36, %v6727_v37  ;;  %v6772_v36 = vld [vmem:[#allocation16 + $0x508] sm:$0xff] }
 0x83b   :  { %10100 = vmatpush1.bf16.msra.mxu0 %v16417_v41  ;;  %9929 = vmatprep.subr.bf16.mxu1 %v16424_v42  ;;  %v16474_v41 = vcombine.high %v6724_v20, %v6728_v21  ;;  %v6731_v42 = vld [vmem:[#allocation16 + $0x3c0] sm:$0xff]  ;;  %v6776_v37 = vld [vmem:[#allocation16 + $0x528] sm:$0xff]  ;;  %v16513_v21 = vcombine.low %v6764_v22, %v6768_v29 }
 0x83c   :  { %10101 = vmatprep.subr.bf16.mxu0 %v16426_v43  ;;  %v6735_v43 = vld [vmem:[#allocation16 + $0x3e0] sm:$0xff] }
 0x83d   :  { %v16479_v62 = vcombine.low %v6731_v42, %v6735_v43 }
 0x83e   :  { %9930 = vmatpush1.bf16.msra.mxu1 %v16423_v53  ;;  %v16480_v53 = vcombine.high %v6731_v42, %v6735_v43  ;;  %v6780_v42 = vld [vmem:[#allocation16 + $0x548] sm:$0xff] }
 0x83f   :  { %10102 = vmatpush1.bf16.msra.mxu0 %v16425_v56  ;;  %9931 = vmatprep.subr.bf16.mxu1 %v16432_v57  ;;  %v16482_v56 = vcombine.high %v6732_v63, %v6736_v49  ;;  %v6739_v57 = vld [vmem:[#allocation16 + $0x400] sm:$0xff]  ;;  %v6784_v43 = vld [vmem:[#allocation16 + $0x568] sm:$0xff]  ;;  %v16521_v49 = vcombine.low %v6772_v36, %v6776_v37 }
 0x840   :  { %10103 = vmatprep.subr.bf16.mxu0 %v16434_v58  ;;  %v6743_v58 = vld [vmem:[#allocation16 + $0x420] sm:$0xff] }
 0x841   :  { %v16487_v54 = vcombine.low %v6739_v57, %v6743_v58 }
 0x842   :  { %9932 = vmatpush1.bf16.msra.mxu1 %v16431_v2  ;;  %v16488_v2 = vcombine.high %v6739_v57, %v6743_v58  ;;  %v6788_v57 = vld [vmem:[#allocation16 + $0x588] sm:$0xff] }
 0x843   :  { %10104 = vmatpush1.bf16.msra.mxu0 %v16433_v19  ;;  %9933 = vmatprep.subr.bf16.mxu1 %v16440_v61  ;;  %v16490_v19 = vcombine.high %v6740_v60, %v6744_v46  ;;  %v6747_v61 = vld [vmem:[#allocation16 + $0x440] sm:$0xff]  ;;  %v6792_v58 = vld [vmem:[#allocation16 + $0x5a8] sm:$0xff]  ;;  %v16529_v46 = vcombine.low %v6780_v42, %v6784_v43 }
 0x844   :  { %10105 = vmatprep.subr.bf16.mxu0 %v16442_v3  ;;  %v6751_v3 = vld [vmem:[#allocation16 + $0x460] sm:$0xff] }
 0x845   :  { %v16495_v14 = vcombine.low %v6747_v61, %v6751_v3 }
 0x846   :  { %9934 = vmatpush1.bf16.msra.mxu1 %v16439_v9  ;;  %v16496_v9 = vcombine.high %v6747_v61, %v6751_v3  ;;  %v6796_v61 = vld [vmem:[#allocation16 + $0x5c8] sm:$0xff] }
 0x847   :  { %10106 = vmatpush1.bf16.msra.mxu0 %v16441_v10  ;;  %9935 = vmatprep.subr.bf16.mxu1 %v16448_v12  ;;  %v16498_v10 = vcombine.high %v6748_v59, %v6752_v4  ;;  %v6755_v12 = vld [vmem:[#allocation16 + $0x480] sm:$0xff]  ;;  %v6800_v3 = vld [vmem:[#allocation16 + $0x5e8] sm:$0xff]  ;;  %v16537_v4 = vcombine.low %v6788_v57, %v6792_v58 }
 0x848   :  { %10107 = vmatprep.subr.bf16.mxu0 %v16450_v0  ;;  %v6759_v0 = vld [vmem:[#allocation16 + $0x4a0] sm:$0xff] }
 0x849   :  { %v16503_v30 = vcombine.low %v6755_v12, %v6759_v0 }
 0x84a   :  { %9936 = vmatpush1.bf16.msra.mxu1 %v16447_v16  ;;  %v16504_v16 = vcombine.high %v6755_v12, %v6759_v0  ;;  %v6804_v12 = vld [vmem:[#allocation16 + $0x608] sm:$0xff] }
 0x84b   :  { %10108 = vmatpush1.bf16.msra.mxu0 %v16449_v17  ;;  %9937 = vmatprep.subr.bf16.mxu1 %v16456_v18  ;;  %v16506_v17 = vcombine.high %v6756_v11, %v6760_v13  ;;  %v6763_v18 = vld [vmem:[#allocation16 + $0x4c0] sm:$0xff]  ;;  %v6808_v0 = vld [vmem:[#allocation16 + $0x628] sm:$0xff]  ;;  %v16545_v13 = vcombine.low %v6796_v61, %v6800_v3 }
 0x84c   :  { %10109 = vmatprep.subr.bf16.mxu0 %v16458_v45  ;;  %v6767_v45 = vld [vmem:[#allocation16 + $0x4e0] sm:$0xff] }
 0x84d   :  { %v16511_v20 = vcombine.low %v6763_v18, %v6767_v45 }
 0x84e   :  { %9938 = vmatpush1.bf16.msra.mxu1 %v16455_v32  ;;  %v16512_v32 = vcombine.high %v6763_v18, %v6767_v45  ;;  %v6812_v18 = vld [vmem:[#allocation16 + $0x648] sm:$0xff] }
 0x84f   :  { %10110 = vmatpush1.bf16.msra.mxu0 %v16457_v44  ;;  %9939 = vmatprep.subr.bf16.mxu1 %v16464_v33  ;;  %v16514_v44 = vcombine.high %v6764_v22, %v6768_v29  ;;  %v6771_v33 = vld [vmem:[#allocation16 + $0x500] sm:$0xff]  ;;  %v6816_v45 = vld [vmem:[#allocation16 + $0x668] sm:$0xff]  ;;  %v16553_v29 = vcombine.low %v6804_v12, %v6808_v0 }
 0x850   :  { %10111 = vmatprep.subr.bf16.mxu0 %v16466_v35  ;;  %v6775_v35 = vld [vmem:[#allocation16 + $0x520] sm:$0xff] }
 0x851   :  { %v16519_v63 = vcombine.low %v6771_v33, %v6775_v35 }
 0x852   :  { %9940 = vmatpush1.bf16.msra.mxu1 %v16463_v23  ;;  %v16520_v23 = vcombine.high %v6771_v33, %v6775_v35  ;;  %v6820_v33 = vld [vmem:[#allocation16 + $0x688] sm:$0xff] }
 0x853   :  { %10112 = vmatpush1.bf16.msra.mxu0 %v16465_v28  ;;  %9941 = vmatprep.subr.bf16.mxu1 %v16472_v40  ;;  %v16522_v28 = vcombine.high %v6772_v36, %v6776_v37  ;;  %v6779_v40 = vld [vmem:[#allocation16 + $0x540] sm:$0xff]  ;;  %v6824_v35 = vld [vmem:[#allocation16 + $0x6a8] sm:$0xff]  ;;  %v16561_v37 = vcombine.low %v6812_v18, %v6816_v45 }
 0x854   :  { %10113 = vmatprep.subr.bf16.mxu0 %v16474_v41  ;;  %v6783_v41 = vld [vmem:[#allocation16 + $0x560] sm:$0xff] }
 0x855   :  { %v16527_v60 = vcombine.low %v6779_v40, %v6783_v41 }
 0x856   :  { %9942 = vmatpush1.bf16.msra.mxu1 %v16471_v52  ;;  %v16528_v52 = vcombine.high %v6779_v40, %v6783_v41  ;;  %v6828_v40 = vld [vmem:[#allocation16 + $0x6c8] sm:$0xff] }
 0x857   :  { %10114 = vmatpush1.bf16.msra.mxu0 %v16473_v55  ;;  %9943 = vmatprep.subr.bf16.mxu1 %v16480_v53  ;;  %v16530_v55 = vcombine.high %v6780_v42, %v6784_v43  ;;  %v6787_v53 = vld [vmem:[#allocation16 + $0x580] sm:$0xff]  ;;  %v6832_v41 = vld [vmem:[#allocation16 + $0x6e8] sm:$0xff]  ;;  %v16569_v43 = vcombine.low %v6820_v33, %v6824_v35 }
 0x858   :  { %10115 = vmatprep.subr.bf16.mxu0 %v16482_v56  ;;  %v6791_v56 = vld [vmem:[#allocation16 + $0x5a0] sm:$0xff] }
 0x859   :  { %v16535_v59 = vcombine.low %v6787_v53, %v6791_v56 }
 0x85a   :  { %9944 = vmatpush1.bf16.msra.mxu1 %v16479_v62  ;;  %v16536_v62 = vcombine.high %v6787_v53, %v6791_v56  ;;  %v6836_v53 = vld [vmem:[#allocation16 + $0x708] sm:$0xff] }
 0x85b   :  { %10116 = vmatpush1.bf16.msra.mxu0 %v16481_v1  ;;  %9956 = vmatprep.subr.bf16.mxu1 %v16488_v2  ;;  %v16538_v1 = vcombine.high %v6788_v57, %v6792_v58  ;;  %v6795_v2 = vld [vmem:[#allocation16 + $0x5c0] sm:$0xff]  ;;  %v6840_v56 = vld [vmem:[#allocation16 + $0x728] sm:$0xff]  ;;  %v16577_v58 = vcombine.low %v6828_v40, %v6832_v41 }
 0x85c   :  { %10128 = vmatprep.subr.bf16.mxu0 %v16490_v19  ;;  %v6799_v19 = vld [vmem:[#allocation16 + $0x5e0] sm:$0xff] }
 0x85d   :  { %9946 = vmatmul.mubr.bf16.vlgmr.msra.gmra.mrb[40].mxu1 %v18694_v34  ;;  %v16543_v11 = vcombine.low %v6795_v2, %v6799_v19 }
 0x85e   :  { %10118 = vmatmul.mubr.bf16.vlgmr.msra.gmra.mrb[44].mxu0 %v18694_v34  ;;  %9957 = vmatpush1.bf16.msra.mxu1 %v16487_v54  ;;  %v16544_v54 = vcombine.high %v6795_v2, %v6799_v19  ;;  %v6844_v2 = vld [vmem:[#allocation16 + $0x748] sm:$0xff] }
 0x85f   :  { %10129 = vmatpush1.bf16.msra.mxu0 %v16489_v7  ;;  %9958 = vmatprep.subr.bf16.mxu1 %v16496_v9  ;;  %v16546_v7 = vcombine.high %v6796_v61, %v6800_v3  ;;  %v6803_v9 = vld [vmem:[#allocation16 + $0x600] sm:$0xff]  ;;  %v6848_v19 = vld [vmem:[#allocation16 + $0x768] sm:$0xff]  ;;  %v16585_v3 = vcombine.low %v6836_v53, %v6840_v56 }
 0x860   :  { %10130 = vmatprep.subr.bf16.mxu0 %v16498_v10  ;;  %9988 = vmatprep.mubr.bf16.mxu1 %v18700_v5  ;;  %v6807_v10 = vld [vmem:[#allocation16 + $0x620] sm:$0xff] }
 0x861   :  { %10160 = vmatprep.mubr.bf16.mxu0 %v18700_v5  ;;  %v16551_v22 = vcombine.low %v6803_v9, %v6807_v10 }
 0x862   :  { %9959 = vmatpush1.bf16.msra.mxu1 %v16495_v14  ;;  %v16552_v14 = vcombine.high %v6803_v9, %v6807_v10  ;;  %v6852_v9 = vld [vmem:[#allocation16 + $0x788] sm:$0xff] }
 0x863   :  { %10131 = vmatpush1.bf16.msra.mxu0 %v16497_v15  ;;  %9960 = vmatprep.subr.bf16.mxu1 %v16504_v16  ;;  %v16554_v15 = vcombine.high %v6804_v12, %v6808_v0  ;;  %v6811_v16 = vld [vmem:[#allocation16 + $0x640] sm:$0xff]  ;;  %v6856_v10 = vld [vmem:[#allocation16 + $0x7a8] sm:$0xff]  ;;  %v16593_v0 = vcombine.low %v6844_v2, %v6848_v19 }
 0x864   :  { %10132 = vmatprep.subr.bf16.mxu0 %v16506_v17  ;;  %v6815_v17 = vld [vmem:[#allocation16 + $0x660] sm:$0xff] }
 0x865   :  { %v16559_v36 = vcombine.low %v6811_v16, %v6815_v17 }
 0x866   :  { %9961 = vmatpush1.bf16.msra.mxu1 %v16503_v30  ;;  %v16560_v30 = vcombine.high %v6811_v16, %v6815_v17  ;;  %v6860_v16 = vld [vmem:[#allocation16 + $0x7c8] sm:$0xff] }
 0x867   :  { %10133 = vmatpush1.bf16.msra.mxu0 %v16505_v31  ;;  %9962 = vmatprep.subr.bf16.mxu1 %v16512_v32  ;;  %v16562_v31 = vcombine.high %v6812_v18, %v6816_v45  ;;  %v6819_v32 = vld [vmem:[#allocation16 + $0x680] sm:$0xff]  ;;  %v6864_v17 = vld [vmem:[#allocation16 + $0x7e8] sm:$0xff]  ;;  %v16601_v45 = vcombine.low %v6852_v9, %v6856_v10 }
 0x868   :  { %10134 = vmatprep.subr.bf16.mxu0 %v16514_v44  ;;  %v6823_v44 = vld [vmem:[#allocation16 + $0x6a0] sm:$0xff] }
 0x869   :  { %v16567_v42 = vcombine.low %v6819_v32, %v6823_v44 }
 0x86a   :  { %9963 = vmatpush1.bf16.msra.mxu1 %v16511_v20  ;;  %v16568_v20 = vcombine.high %v6819_v32, %v6823_v44  ;;  %v6868_v32 = vld [vmem:[#allocation16 + $0x808] sm:$0xff] }
 0x86b   :  { %10135 = vmatpush1.bf16.msra.mxu0 %v16513_v21  ;;  %9964 = vmatprep.subr.bf16.mxu1 %v16520_v23  ;;  %v16570_v21 = vcombine.high %v6820_v33, %v6824_v35  ;;  %v6827_v23 = vld [vmem:[#allocation16 + $0x6c0] sm:$0xff]  ;;  %v6872_v44 = vld [vmem:[#allocation16 + $0x828] sm:$0xff]  ;;  %v16609_v35 = vcombine.low %v6860_v16, %v6864_v17 }
 0x86c   :  { %10136 = vmatprep.subr.bf16.mxu0 %v16522_v28  ;;  %v6831_v28 = vld [vmem:[#allocation16 + $0x6e0] sm:$0xff] }
 0x86d   :  { %v16575_v57 = vcombine.low %v6827_v23, %v6831_v28 }
 0x86e   :  { %9965 = vmatpush1.bf16.msra.mxu1 %v16519_v63  ;;  %v16576_v63 = vcombine.high %v6827_v23, %v6831_v28  ;;  %v6876_v23 = vld [vmem:[#allocation16 + $0x848] sm:$0xff] }
 0x86f   :  { %10137 = vmatpush1.bf16.msra.mxu0 %v16521_v49  ;;  %9966 = vmatprep.subr.bf16.mxu1 %v16528_v52  ;;  %v16578_v49 = vcombine.high %v6828_v40, %v6832_v41  ;;  %v6835_v52 = vld [vmem:[#allocation16 + $0x700] sm:$0xff]  ;;  %v6880_v28 = vld [vmem:[#allocation16 + $0x868] sm:$0xff]  ;;  %v16617_v41 = vcombine.low %v6868_v32, %v6872_v44 }
 0x870   :  { %10138 = vmatprep.subr.bf16.mxu0 %v16530_v55  ;;  %v6839_v55 = vld [vmem:[#allocation16 + $0x720] sm:$0xff] }
 0x871   :  { %v16583_v61 = vcombine.low %v6835_v52, %v6839_v55 }
 0x872   :  { %9967 = vmatpush1.bf16.msra.mxu1 %v16527_v60  ;;  %v16584_v60 = vcombine.high %v6835_v52, %v6839_v55  ;;  %v6884_v52 = vld [vmem:[#allocation16 + $0x888] sm:$0xff] }
 0x873   :  { %10139 = vmatpush1.bf16.msra.mxu0 %v16529_v46  ;;  %9968 = vmatprep.subr.bf16.mxu1 %v16536_v62  ;;  %v16586_v46 = vcombine.high %v6836_v53, %v6840_v56  ;;  %v6843_v62 = vld [vmem:[#allocation16 + $0x740] sm:$0xff]  ;;  %v6888_v55 = vld [vmem:[#allocation16 + $0x8a8] sm:$0xff]  ;;  %v16625_v56 = vcombine.low %v6876_v23, %v6880_v28 }
 0x874   :  { %10140 = vmatprep.subr.bf16.mxu0 %v16538_v1  ;;  %v6847_v1 = vld [vmem:[#allocation16 + $0x760] sm:$0xff] }
 0x875   :  { %v16591_v12 = vcombine.low %v6843_v62, %v6847_v1 }
 0x876   :  { %9969 = vmatpush1.bf16.msra.mxu1 %v16535_v59  ;;  %v16592_v59 = vcombine.high %v6843_v62, %v6847_v1  ;;  %v6892_v62 = vld [vmem:[#allocation16 + $0x8c8] sm:$0xff] }
 0x877   :  { %10141 = vmatpush1.bf16.msra.mxu0 %v16537_v4  ;;  %9970 = vmatprep.subr.bf16.mxu1 %v16544_v54  ;;  %v16594_v4 = vcombine.high %v6844_v2, %v6848_v19  ;;  %v6851_v54 = vld [vmem:[#allocation16 + $0x780] sm:$0xff]  ;;  %v6896_v1 = vld [vmem:[#allocation16 + $0x8e8] sm:$0xff]  ;;  %v16633_v19 = vcombine.low %v6884_v52, %v6888_v55 }
 0x878   :  { %10142 = vmatprep.subr.bf16.mxu0 %v16546_v7  ;;  %v6855_v7 = vld [vmem:[#allocation16 + $0x7a0] sm:$0xff] }
 0x879   :  { %v16599_v18 = vcombine.low %v6851_v54, %v6855_v7 }
 0x87a   :  { %9971 = vmatpush1.bf16.msra.mxu1 %v16543_v11  ;;  %v16600_v11 = vcombine.high %v6851_v54, %v6855_v7  ;;  %v6900_v54 = vld [vmem:[#allocation16 + $0x908] sm:$0xff] }
 0x87b   :  { %10143 = vmatpush1.bf16.msra.mxu0 %v16545_v13  ;;  %9972 = vmatprep.subr.bf16.mxu1 %v16552_v14  ;;  %v16602_v13 = vcombine.high %v6852_v9, %v6856_v10  ;;  %v6859_v14 = vld [vmem:[#allocation16 + $0x7c0] sm:$0xff]  ;;  %v6904_v7 = vld [vmem:[#allocation16 + $0x928] sm:$0xff]  ;;  %v16641_v10 = vcombine.low %v6892_v62, %v6896_v1 }
 0x87c   :  { %10144 = vmatprep.subr.bf16.mxu0 %v16554_v15  ;;  %v6863_v15 = vld [vmem:[#allocation16 + $0x7e0] sm:$0xff] }
 0x87d   :  { %v16607_v33 = vcombine.low %v6859_v14, %v6863_v15 }
 0x87e   :  { %9973 = vmatpush1.bf16.msra.mxu1 %v16551_v22  ;;  %v16608_v22 = vcombine.high %v6859_v14, %v6863_v15  ;;  %v6908_v14 = vld [vmem:[#allocation16 + $0x948] sm:$0xff] }
 0x87f   :  { %10145 = vmatpush1.bf16.msra.mxu0 %v16553_v29  ;;  %9974 = vmatprep.subr.bf16.mxu1 %v16560_v30  ;;  %v16610_v29 = vcombine.high %v6860_v16, %v6864_v17  ;;  %v6867_v30 = vld [vmem:[#allocation16 + $0x800] sm:$0xff]  ;;  %v6912_v15 = vld [vmem:[#allocation16 + $0x968] sm:$0xff]  ;;  %v16649_v17 = vcombine.low %v6900_v54, %v6904_v7 }
 0x880   :  { %10146 = vmatprep.subr.bf16.mxu0 %v16562_v31  ;;  %v6871_v31 = vld [vmem:[#allocation16 + $0x820] sm:$0xff] }
 0x881   :  { %v16615_v40 = vcombine.low %v6867_v30, %v6871_v31 }
 0x882   :  { %9975 = vmatpush1.bf16.msra.mxu1 %v16559_v36  ;;  %v16616_v36 = vcombine.high %v6867_v30, %v6871_v31  ;;  %v6916_v30 = vld [vmem:[#allocation16 + $0x988] sm:$0xff] }
 0x883   :  { %10147 = vmatpush1.bf16.msra.mxu0 %v16561_v37  ;;  %9976 = vmatprep.subr.bf16.mxu1 %v16568_v20  ;;  %v16618_v37 = vcombine.high %v6868_v32, %v6872_v44  ;;  %v6875_v20 = vld [vmem:[#allocation16 + $0x840] sm:$0xff]  ;;  %v6920_v31 = vld [vmem:[#allocation16 + $0x9a8] sm:$0xff]  ;;  %v16657_v44 = vcombine.low %v6908_v14, %v6912_v15 }
 0x884   :  { %10148 = vmatprep.subr.bf16.mxu0 %v16570_v21  ;;  %v6879_v21 = vld [vmem:[#allocation16 + $0x860] sm:$0xff] }
 0x885   :  { %v16623_v53 = vcombine.low %v6875_v20, %v6879_v21 }
 0x886   :  { %9977 = vmatpush1.bf16.msra.mxu1 %v16567_v42  ;;  %v16624_v42 = vcombine.high %v6875_v20, %v6879_v21  ;;  %v6924_v20 = vld [vmem:[#allocation16 + $0x9c8] sm:$0xff] }
 0x887   :  { %10149 = vmatpush1.bf16.msra.mxu0 %v16569_v43  ;;  %9978 = vmatprep.subr.bf16.mxu1 %v16576_v63  ;;  %v16626_v43 = vcombine.high %v6876_v23, %v6880_v28  ;;  %v6883_v63 = vld [vmem:[#allocation16 + $0x880] sm:$0xff]  ;;  %v6928_v21 = vld [vmem:[#allocation16 + $0x9e8] sm:$0xff]  ;;  %v16665_v28 = vcombine.low %v6916_v30, %v6920_v31 }
 0x888   :  { %10150 = vmatprep.subr.bf16.mxu0 %v16578_v49  ;;  %v6887_v49 = vld [vmem:[#allocation16 + $0x8a0] sm:$0xff] }
 0x889   :  { %v16631_v2 = vcombine.low %v6883_v63, %v6887_v49 }
 0x88a   :  { %9979 = vmatpush1.bf16.msra.mxu1 %v16575_v57  ;;  %v16632_v57 = vcombine.high %v6883_v63, %v6887_v49  ;;  %v6932_v63 = vld [vmem:[#allocation16 + $0xa08] sm:$0xff] }
 0x88b   :  { %10151 = vmatpush1.bf16.msra.mxu0 %v16577_v58  ;;  %9980 = vmatprep.subr.bf16.mxu1 %v16584_v60  ;;  %v16634_v58 = vcombine.high %v6884_v52, %v6888_v55  ;;  %v6891_v60 = vld [vmem:[#allocation16 + $0x8c0] sm:$0xff]  ;;  %v6936_v49 = vld [vmem:[#allocation16 + $0xa28] sm:$0xff]  ;;  %v16673_v55 = vcombine.low %v6924_v20, %v6928_v21 }
 0x88c   :  { %10152 = vmatprep.subr.bf16.mxu0 %v16586_v46  ;;  %v6895_v46 = vld [vmem:[#allocation16 + $0x8e0] sm:$0xff] }
 0x88d   :  { %v16639_v9 = vcombine.low %v6891_v60, %v6895_v46 }
 0x88e   :  { %9981 = vmatpush1.bf16.msra.mxu1 %v16583_v61  ;;  %v16640_v61 = vcombine.high %v6891_v60, %v6895_v46  ;;  %v6940_v60 = vld [vmem:[#allocation16 + $0xa48] sm:$0xff] }
 0x88f   :  { %10153 = vmatpush1.bf16.msra.mxu0 %v16585_v3  ;;  %9982 = vmatprep.subr.bf16.mxu1 %v16592_v59  ;;  %v16642_v3 = vcombine.high %v6892_v62, %v6896_v1  ;;  %v6899_v59 = vld [vmem:[#allocation16 + $0x900] sm:$0xff]  ;;  %v6944_v46 = vld [vmem:[#allocation16 + $0xa68] sm:$0xff]  ;;  %v16681_v1 = vcombine.low %v6932_v63, %v6936_v49 }
 0x890   :  { %10154 = vmatprep.subr.bf16.mxu0 %v16594_v4  ;;  %v6903_v4 = vld [vmem:[#allocation16 + $0x920] sm:$0xff] }
 0x891   :  { %v16647_v16 = vcombine.low %v6899_v59, %v6903_v4 }
 0x892   :  { %9983 = vmatpush1.bf16.msra.mxu1 %v16591_v12  ;;  %v16648_v12 = vcombine.high %v6899_v59, %v6903_v4  ;;  %v6948_v59 = vld [vmem:[#allocation16 + $0xa88] sm:$0xff] }
 0x893   :  { %10155 = vmatpush1.bf16.msra.mxu0 %v16593_v0  ;;  %9984 = vmatprep.subr.bf16.mxu1 %v16600_v11  ;;  %v16650_v0 = vcombine.high %v6900_v54, %v6904_v7  ;;  %v6907_v11 = vld [vmem:[#allocation16 + $0x940] sm:$0xff]  ;;  %v6952_v4 = vld [vmem:[#allocation16 + $0xaa8] sm:$0xff]  ;;  %v16689_v7 = vcombine.low %v6940_v60, %v6944_v46 }
 0x894   :  { %10156 = vmatprep.subr.bf16.mxu0 %v16602_v13  ;;  %v6911_v13 = vld [vmem:[#allocation16 + $0x960] sm:$0xff] }
 0x895   :  { %v16655_v32 = vcombine.low %v6907_v11, %v6911_v13 }
 0x896   :  { %9985 = vmatpush1.bf16.msra.mxu1 %v16599_v18  ;;  %v16656_v18 = vcombine.high %v6907_v11, %v6911_v13  ;;  %v6956_v11 = vld [vmem:[#allocation16 + $0xac8] sm:$0xff] }
 0x897   :  { %10157 = vmatpush1.bf16.msra.mxu0 %v16601_v45  ;;  %9986 = vmatprep.subr.bf16.mxu1 %v16608_v22  ;;  %v16658_v45 = vcombine.high %v6908_v14, %v6912_v15  ;;  %v6915_v22 = vld [vmem:[#allocation16 + $0x980] sm:$0xff]  ;;  %v6960_v13 = vld [vmem:[#allocation16 + $0xae8] sm:$0xff]  ;;  %v16697_v15 = vcombine.low %v6948_v59, %v6952_v4 }
 0x898   :  { %10158 = vmatprep.subr.bf16.mxu0 %v16610_v29  ;;  %v6919_v29 = vld [vmem:[#allocation16 + $0x9a0] sm:$0xff] }
 0x899   :  { %v16663_v23 = vcombine.low %v6915_v22, %v6919_v29 }
 0x89a   :  { %9987 = vmatpush1.bf16.msra.mxu1 %v16607_v33  ;;  %v16664_v33 = vcombine.high %v6915_v22, %v6919_v29  ;;  %v6964_v22 = vld [vmem:[#allocation16 + $0xb08] sm:$0xff] }
 0x89b   :  { %10159 = vmatpush1.bf16.msra.mxu0 %v16609_v35  ;;  %9999 = vmatprep.subr.bf16.mxu1 %v16616_v36  ;;  %v16666_v35 = vcombine.high %v6916_v30, %v6920_v31  ;;  %v6923_v36 = vld [vmem:[#allocation16 + $0x9c0] sm:$0xff]  ;;  %v6968_v29 = vld [vmem:[#allocation16 + $0xb28] sm:$0xff]  ;;  %v16705_v31 = vcombine.low %v6956_v11, %v6960_v13 }
 0x89c   :  { %10171 = vmatprep.subr.bf16.mxu0 %v16618_v37  ;;  %v6927_v37 = vld [vmem:[#allocation16 + $0x9e0] sm:$0xff] }
 0x89d   :  { %9989 = vmatmul.mubr.bf16.vlgmr.msra.gmra.mrb[40].mxu1 %v18698_v8  ;;  %v16671_v52 = vcombine.low %v6923_v36, %v6927_v37 }
 0x89e   :  { %10161 = vmatmul.mubr.bf16.vlgmr.msra.gmra.mrb[44].mxu0 %v18698_v8  ;;  %10000 = vmatpush1.bf16.msra.mxu1 %v16615_v40  ;;  %v16672_v40 = vcombine.high %v6923_v36, %v6927_v37  ;;  %v6972_v36 = vld [vmem:[#allocation16 + $0xb48] sm:$0xff] }
 0x89f   :  { %10172 = vmatpush1.bf16.msra.mxu0 %v16617_v41  ;;  %10001 = vmatprep.subr.bf16.mxu1 %v16624_v42  ;;  %v16674_v41 = vcombine.high %v6924_v20, %v6928_v21  ;;  %v6931_v42 = vld [vmem:[#allocation16 + $0xa00] sm:$0xff]  ;;  %v6976_v37 = vld [vmem:[#allocation16 + $0xb68] sm:$0xff]  ;;  %v16713_v21 = vcombine.low %v6964_v22, %v6968_v29 }
 0x8a0   :  { %10173 = vmatprep.subr.bf16.mxu0 %v16626_v43  ;;  %v6935_v43 = vld [vmem:[#allocation16 + $0xa20] sm:$0xff] }
 0x8a1   :  { %v16679_v62 = vcombine.low %v6931_v42, %v6935_v43 }
 0x8a2   :  { %10002 = vmatpush1.bf16.msra.mxu1 %v16623_v53  ;;  %v16680_v53 = vcombine.high %v6931_v42, %v6935_v43  ;;  %v6980_v42 = vld [vmem:[#allocation16 + $0xb88] sm:$0xff] }
 0x8a3   :  { %10174 = vmatpush1.bf16.msra.mxu0 %v16625_v56  ;;  %10003 = vmatprep.subr.bf16.mxu1 %v16632_v57  ;;  %v16682_v56 = vcombine.high %v6932_v63, %v6936_v49  ;;  %v6939_v57 = vld [vmem:[#allocation16 + $0xa40] sm:$0xff]  ;;  %v6984_v43 = vld [vmem:[#allocation16 + $0xba8] sm:$0xff]  ;;  %v16721_v49 = vcombine.low %v6972_v36, %v6976_v37 }
 0x8a4   :  { %10175 = vmatprep.subr.bf16.mxu0 %v16634_v58  ;;  %v6943_v58 = vld [vmem:[#allocation16 + $0xa60] sm:$0xff] }
 0x8a5   :  { %v16687_v54 = vcombine.low %v6939_v57, %v6943_v58 }
 0x8a6   :  { %10004 = vmatpush1.bf16.msra.mxu1 %v16631_v2  ;;  %v16688_v2 = vcombine.high %v6939_v57, %v6943_v58  ;;  %v6988_v57 = vld [vmem:[#allocation16 + $0xbc8] sm:$0xff] }
 0x8a7   :  { %10176 = vmatpush1.bf16.msra.mxu0 %v16633_v19  ;;  %10005 = vmatprep.subr.bf16.mxu1 %v16640_v61  ;;  %v16690_v19 = vcombine.high %v6940_v60, %v6944_v46  ;;  %v6947_v61 = vld [vmem:[#allocation16 + $0xa80] sm:$0xff]  ;;  %v6992_v58 = vld [vmem:[#allocation16 + $0xbe8] sm:$0xff]  ;;  %v16729_v46 = vcombine.low %v6980_v42, %v6984_v43 }
 0x8a8   :  { %10177 = vmatprep.subr.bf16.mxu0 %v16642_v3  ;;  %v6951_v3 = vld [vmem:[#allocation16 + $0xaa0] sm:$0xff] }
 0x8a9   :  { %v16695_v14 = vcombine.low %v6947_v61, %v6951_v3 }
 0x8aa   :  { %10006 = vmatpush1.bf16.msra.mxu1 %v16639_v9  ;;  %v16696_v9 = vcombine.high %v6947_v61, %v6951_v3  ;;  %v6996_v61 = vld [vmem:[#allocation16 + $0xc08] sm:$0xff] }
 0x8ab   :  { %10178 = vmatpush1.bf16.msra.mxu0 %v16641_v10  ;;  %10007 = vmatprep.subr.bf16.mxu1 %v16648_v12  ;;  %v16698_v10 = vcombine.high %v6948_v59, %v6952_v4  ;;  %v6955_v12 = vld [vmem:[#allocation16 + $0xac0] sm:$0xff]  ;;  %v7000_v3 = vld [vmem:[#allocation16 + $0xc28] sm:$0xff]  ;;  %v16737_v4 = vcombine.low %v6988_v57, %v6992_v58 }
 0x8ac   :  { %10179 = vmatprep.subr.bf16.mxu0 %v16650_v0  ;;  %v6959_v0 = vld [vmem:[#allocation16 + $0xae0] sm:$0xff] }
 0x8ad   :  { %v16703_v30 = vcombine.low %v6955_v12, %v6959_v0 }
 0x8ae   :  { %10008 = vmatpush1.bf16.msra.mxu1 %v16647_v16  ;;  %v16704_v16 = vcombine.high %v6955_v12, %v6959_v0  ;;  %v7003_v12 = vld [vmem:[#allocation16 + $0xc40] sm:$0xff] }
 0x8af   :  { %10180 = vmatpush1.bf16.msra.mxu0 %v16649_v17  ;;  %10009 = vmatprep.subr.bf16.mxu1 %v16656_v18  ;;  %v16706_v17 = vcombine.high %v6956_v11, %v6960_v13  ;;  %v6963_v18 = vld [vmem:[#allocation16 + $0xb00] sm:$0xff] }
 0x8b0   :  { %10181 = vmatprep.subr.bf16.mxu0 %v16658_v45  ;;  %v6967_v45 = vld [vmem:[#allocation16 + $0xb20] sm:$0xff] }
 0x8b1   :  { %v16711_v20 = vcombine.low %v6963_v18, %v6967_v45  ;;  %v7007_v13 = vld [vmem:[#allocation16 + $0xc60] sm:$0xff] }
 0x8b2   :  { %10010 = vmatpush1.bf16.msra.mxu1 %v16655_v32  ;;  %v16712_v32 = vcombine.high %v6963_v18, %v6967_v45 }
 0x8b3   :  { %10182 = vmatpush1.bf16.msra.mxu0 %v16657_v44  ;;  %10011 = vmatprep.subr.bf16.mxu1 %v16664_v33  ;;  %v16714_v44 = vcombine.high %v6964_v22, %v6968_v29  ;;  %v6971_v33 = vld [vmem:[#allocation16 + $0xb40] sm:$0xff] }
 0x8b4   :  { %10183 = vmatprep.subr.bf16.mxu0 %v16666_v35  ;;  %v6975_v35 = vld [vmem:[#allocation16 + $0xb60] sm:$0xff] }
 0x8b5   :  { %v16719_v63 = vcombine.low %v6971_v33, %v6975_v35 }
 0x8b6   :  { %10012 = vmatpush1.bf16.msra.mxu1 %v16663_v23  ;;  %v16720_v23 = vcombine.high %v6971_v33, %v6975_v35  ;;  %v7011_v35 = vld [vmem:[#allocation16 + $0xc80] sm:$0xff] }
 0x8b7   :  { %10184 = vmatpush1.bf16.msra.mxu0 %v16665_v28  ;;  %10013 = vmatprep.subr.bf16.mxu1 %v16672_v40  ;;  %v16722_v28 = vcombine.high %v6972_v36, %v6976_v37  ;;  %v6979_v40 = vld [vmem:[#allocation16 + $0xb80] sm:$0xff] }
 0x8b8   :  { %10185 = vmatprep.subr.bf16.mxu0 %v16674_v41  ;;  %v6983_v41 = vld [vmem:[#allocation16 + $0xba0] sm:$0xff] }
 0x8b9   :  { %v16727_v60 = vcombine.low %v6979_v40, %v6983_v41  ;;  %v7015_v37 = vld [vmem:[#allocation16 + $0xca0] sm:$0xff] }
 0x8ba   :  { %10014 = vmatpush1.bf16.msra.mxu1 %v16671_v52  ;;  %v16728_v52 = vcombine.high %v6979_v40, %v6983_v41  ;;  %v16760_v40 = vcombine.high %v7011_v35, %v7015_v37 }
 0x8bb   :  { %10186 = vmatpush1.bf16.msra.mxu0 %v16673_v55  ;;  %10015 = vmatprep.subr.bf16.mxu1 %v16680_v53  ;;  %v16730_v55 = vcombine.high %v6980_v42, %v6984_v43  ;;  %v6987_v53 = vld [vmem:[#allocation16 + $0xbc0] sm:$0xff] }
 0x8bc   :  { %10187 = vmatprep.subr.bf16.mxu0 %v16682_v56  ;;  %v6991_v56 = vld [vmem:[#allocation16 + $0xbe0] sm:$0xff] }
 0x8bd   :  { %v16735_v59 = vcombine.low %v6987_v53, %v6991_v56  ;;  %v7019_v42 = vld [vmem:[#allocation16 + $0xcc0] sm:$0xff] }
 0x8be   :  { %10016 = vmatpush1.bf16.msra.mxu1 %v16679_v62  ;;  %v16736_v62 = vcombine.high %v6987_v53, %v6991_v56  ;;  %v7023_v43 = vld [vmem:[#allocation16 + $0xce0] sm:$0xff] }
 0x8bf   :  { %10188 = vmatpush1.bf16.msra.mxu0 %v16681_v1  ;;  %10017 = vmatprep.subr.bf16.mxu1 %v16688_v2  ;;  %v16738_v1 = vcombine.high %v6988_v57, %v6992_v58  ;;  %v6995_v2 = vld [vmem:[#allocation16 + $0xc00] sm:$0xff]  ;;  %v16768_v53 = vcombine.high %v7019_v42, %v7023_v43 }
 0x8c0   :  { %10189 = vmatprep.subr.bf16.mxu0 %v16690_v19  ;;  %v6999_v19 = vld [vmem:[#allocation16 + $0xc20] sm:$0xff] }
 0x8c1   :  { %v16743_v29 = vcombine.low %v6995_v2, %v6999_v19  ;;  %v7027_v57 = vld [vmem:[#allocation16 + $0xd00] sm:$0xff] }
 0x8c2   :  { %10018 = vmatpush1.bf16.msra.mxu1 %v16687_v54  ;;  %v16744_v54 = vcombine.high %v6995_v2, %v6999_v19  ;;  %v7031_v58 = vld [vmem:[#allocation16 + $0xd20] sm:$0xff] }
 0x8c3   :  { %10190 = vmatpush1.bf16.msra.mxu0 %v16689_v7  ;;  %10019 = vmatprep.subr.bf16.mxu1 %v16696_v9  ;;  %v16746_v7 = vcombine.high %v6996_v61, %v7000_v3  ;;  %v16776_v2 = vcombine.high %v7027_v57, %v7031_v58 }
 0x8c4   :  { %10191 = vmatprep.subr.bf16.mxu0 %v16698_v10 }
 0x8c6   :  { %10020 = vmatpush1.bf16.msra.mxu1 %v16695_v14  ;;  %v7004_v14 = vld [vmem:[#allocation16 + $0xc48] sm:$0xff] }
 0x8c7   :  { %10192 = vmatpush1.bf16.msra.mxu0 %v16697_v15  ;;  %10021 = vmatprep.subr.bf16.mxu1 %v16704_v16  ;;  %v7008_v15 = vld [vmem:[#allocation16 + $0xc68] sm:$0xff] }
 0x8c8   :  { %10193 = vmatprep.subr.bf16.mxu0 %v16706_v17  ;;  %v16754_v33 = vcombine.high %v7004_v14, %v7008_v15 }
 0x8ca   :  { %10022 = vmatpush1.bf16.msra.mxu1 %v16703_v30  ;;  %v16745_v30 = vcombine.low %v6996_v61, %v7000_v3  ;;  %v7035_v61 = vld [vmem:[#allocation16 + $0xd40] sm:$0xff] }
 0x8cb   :  { %10194 = vmatpush1.bf16.msra.mxu0 %v16705_v31  ;;  %10023 = vmatprep.subr.bf16.mxu1 %v16712_v32  ;;  %v7039_v3 = vld [vmem:[#allocation16 + $0xd60] sm:$0xff] }
 0x8cc   :  { %10195 = vmatprep.subr.bf16.mxu0 %v16714_v44  ;;  %v16752_v44 = vcombine.high %v7003_v12, %v7007_v13 }
 0x8ce   :  { %10024 = vmatpush1.bf16.msra.mxu1 %v16711_v20  ;;  %v7012_v20 = vld [vmem:[#allocation16 + $0xc88] sm:$0xff] }
 0x8cf   :  { %10196 = vmatpush1.bf16.msra.mxu0 %v16713_v21  ;;  %10025 = vmatprep.subr.bf16.mxu1 %v16720_v23  ;;  %v7016_v21 = vld [vmem:[#allocation16 + $0xca8] sm:$0xff]  ;;  %v16751_v23 = vcombine.low %v7003_v12, %v7007_v13  ;;  %v7043_v12 = vld [vmem:[#allocation16 + $0xd80] sm:$0xff] }
 0x8d0   :  { %10197 = vmatprep.subr.bf16.mxu0 %v16722_v28  ;;  %v16753_v28 = vcombine.low %v7004_v14, %v7008_v15  ;;  %v16762_v41 = vcombine.high %v7012_v20, %v7016_v21  ;;  %v7048_v13 = vld [vmem:[#allocation16 + $0xda8] sm:$0xff]  ;;  %v16783_v14 = vcombine.low %v7035_v61, %v7039_v3 }
 0x8d2   :  { %10026 = vmatpush1.bf16.msra.mxu1 %v16719_v63  ;;  %v7020_v63 = vld [vmem:[#allocation16 + $0xcc8] sm:$0xff] }
 0x8d3   :  { %10198 = vmatpush1.bf16.msra.mxu0 %v16721_v49  ;;  %10027 = vmatprep.subr.bf16.mxu1 %v16728_v52  ;;  %v7024_v49 = vld [vmem:[#allocation16 + $0xce8] sm:$0xff]  ;;  %v16759_v52 = vcombine.low %v7011_v35, %v7015_v37 }
 0x8d4   :  { %10199 = vmatprep.subr.bf16.mxu0 %v16730_v55  ;;  %v16761_v55 = vcombine.low %v7012_v20, %v7016_v21  ;;  %v16770_v56 = vcombine.high %v7020_v63, %v7024_v49  ;;  %v7059_v20 = vld [vmem:[#allocation16 + $0xe00] sm:$0xff] }
 0x8d5   :  { %v7063_v21 = vld [vmem:[#allocation16 + $0xe20] sm:$0xff] }
 0x8d6   :  { %10028 = vmatpush1.bf16.msra.mxu1 %v16727_v60  ;;  %v7028_v60 = vld [vmem:[#allocation16 + $0xd08] sm:$0xff] }
 0x8d7   :  { %10200 = vmatpush1.bf16.msra.mxu0 %v16729_v46  ;;  %10029 = vmatprep.subr.bf16.mxu1 %v16736_v62  ;;  %v7032_v46 = vld [vmem:[#allocation16 + $0xd28] sm:$0xff]  ;;  %v16767_v62 = vcombine.low %v7019_v42, %v7023_v43  ;;  %v16808_v42 = vcombine.high %v7059_v20, %v7063_v21 }
 0x8d8   :  { %10201 = vmatprep.subr.bf16.mxu0 %v16738_v1  ;;  %v16769_v1 = vcombine.low %v7020_v63, %v7024_v49  ;;  %v16778_v19 = vcombine.high %v7028_v60, %v7032_v46  ;;  %v7067_v63 = vld [vmem:[#allocation16 + $0xe40] sm:$0xff] }
 0x8d9   :  { %v7071_v49 = vld [vmem:[#allocation16 + $0xe60] sm:$0xff] }
 0x8da   :  { %10030 = vmatpush1.bf16.msra.mxu1 %v16735_v59  ;;  %v7036_v59 = vld [vmem:[#allocation16 + $0xd48] sm:$0xff] }
 0x8db   :  { %10202 = vmatpush1.bf16.msra.mxu0 %v16737_v4  ;;  %10042 = vmatprep.subr.bf16.mxu1 %v16744_v54  ;;  %v7040_v4 = vld [vmem:[#allocation16 + $0xd68] sm:$0xff]  ;;  %v16775_v54 = vcombine.low %v7027_v57, %v7031_v58  ;;  %v16816_v57 = vcombine.high %v7067_v63, %v7071_v49 }
 0x8dc   :  { %10214 = vmatprep.subr.bf16.mxu0 %v16746_v7  ;;  %v16777_v7 = vcombine.low %v7028_v60, %v7032_v46  ;;  %v16785_v15 = vcombine.low %v7036_v59, %v7040_v4  ;;  %v7075_v60 = vld [vmem:[#allocation16 + $0xe80] sm:$0xff] }
 0x8dd   :  { %v7079_v46 = vld [vmem:[#allocation16 + $0xea0] sm:$0xff] }
 0x8f0   :  { %v7252_v9 = vpop.f32.mrb[36].mxu1 }
 0x8f1   :  { %v7254_v10 = vpop.f32.mrb[37].mxu1  ;;  %v7295_v0 = vpop.f32.mrb[40].mxu0 }
 0x8f2   :  { %v7256_v11 = vpop.f32.mrb[38].mxu1  ;;  %v7297_v16 = vpop.f32.mrb[41].mxu0 }
 0x8f3   :  { %v18714_v17 = vpack.c.bf16 %v7256_v11, %v7252_v9  ;;  %v7258_v18 = vpop.f32.mrb[39].mxu1  ;;  %v7299_v45 = vpop.f32.mrb[42].mxu0  ;;  %v16784_v9 = vcombine.high %v7035_v61, %v7039_v3  ;;  %v7044_v11 = vld [vmem:[#allocation16 + $0xd88] sm:$0xff]  ;;  %v16824_v61 = vcombine.high %v7075_v60, %v7079_v46 }
 0x8f4   :  { %v18716_v22 = vpack.c.bf16 %v7258_v18, %v7254_v10  ;;  %v18718_v31 = vpack.c.bf16 %v7299_v45, %v7295_v0  ;;  %v7301_v32 = vpop.f32.mrb[43].mxu0  ;;  %v16786_v10 = vcombine.high %v7036_v59, %v7040_v4  ;;  %v7047_v0 = vld [vmem:[#allocation16 + $0xda0] sm:$0xff]  ;;  %v16794_v18 = vcombine.high %v7044_v11, %v7048_v13 }
 0x8f5   :  { %v18720_v36 = vpack.c.bf16 %v7301_v32, %v7297_v16  ;;  %v16792_v16 = vcombine.high %v7043_v12, %v7047_v0  ;;  %v7051_v45 = vld [vmem:[#allocation16 + $0xdc0] sm:$0xff]  ;;  %v7056_v32 = vld [vmem:[#allocation16 + $0xde8] sm:$0xff] }
 0x8f6   :  { %10031 = vmatprep.mubr.bf16.mxu1 %v18716_v22  ;;  %10203 = vmatprep.mubr.bf16.mxu0 %v18716_v22  ;;  %v7083_v59 = vld [vmem:[#allocation16 + $0xec0] sm:$0xff] }
 0x8f7   :  { %10032 = vmatmul.mubr.bf16.vlgmr.msra.gmra.mrb[40].mxu1 %v18714_v17  ;;  %10204 = vmatmul.mubr.bf16.vlgmr.msra.gmra.mrb[44].mxu0 %v18714_v17  ;;  %v7087_v4 = vld [vmem:[#allocation16 + $0xee0] sm:$0xff] }
 0x8f8   :  { %10043 = vmatpush1.bf16.msra.mxu1 %v16743_v29  ;;  %10215 = vmatpush1.bf16.msra.mxu0 %v16745_v30  ;;  %v7055_v29 = vld [vmem:[#allocation16 + $0xde0] sm:$0xff]  ;;  %v7052_v30 = vld [vmem:[#allocation16 + $0xdc8] sm:$0xff] }
 0x8f9   :  { %10044 = vmatprep.subr.bf16.mxu1 %v16752_v44  ;;  %10216 = vmatprep.subr.bf16.mxu0 %v16754_v33  ;;  %v16791_v44 = vcombine.low %v7043_v12, %v7047_v0  ;;  %v16793_v33 = vcombine.low %v7044_v11, %v7048_v13  ;;  %v16800_v35 = vcombine.high %v7051_v45, %v7055_v29  ;;  %v7091_v11 = vld [vmem:[#allocation16 + $0xf00] sm:$0xff] }
 0x8fa   :  { %10074 = vmatprep.mubr.bf16.mxu1 %v18720_v36  ;;  %10246 = vmatprep.mubr.bf16.mxu0 %v18720_v36  ;;  %v16802_v37 = vcombine.high %v7052_v30, %v7056_v32  ;;  %v16832_v12 = vcombine.high %v7083_v59, %v7087_v4  ;;  %v7095_v13 = vld [vmem:[#allocation16 + $0xf20] sm:$0xff] }
 0x8fc   :  { %10045 = vmatpush1.bf16.msra.mxu1 %v16751_v23  ;;  %10217 = vmatpush1.bf16.msra.mxu0 %v16753_v28  ;;  %v7060_v23 = vld [vmem:[#allocation16 + $0xe08] sm:$0xff] }
 0x8fd   :  { %10046 = vmatprep.subr.bf16.mxu1 %v16760_v40  ;;  %10218 = vmatprep.subr.bf16.mxu0 %v16762_v41  ;;  %v7064_v28 = vld [vmem:[#allocation16 + $0xe28] sm:$0xff]  ;;  %v16799_v40 = vcombine.low %v7051_v45, %v7055_v29  ;;  %v16801_v41 = vcombine.low %v7052_v30, %v7056_v32  ;;  %v16840_v45 = vcombine.high %v7091_v11, %v7095_v13  ;;  %v7099_v30 = vld [vmem:[#allocation16 + $0xf40] sm:$0xff] }
 0x8fe   :  { %v16810_v43 = vcombine.high %v7060_v23, %v7064_v28  ;;  %v7103_v32 = vld [vmem:[#allocation16 + $0xf60] sm:$0xff] }
 0x900   :  { %10047 = vmatpush1.bf16.msra.mxu1 %v16759_v52  ;;  %10219 = vmatpush1.bf16.msra.mxu0 %v16761_v55  ;;  %v7068_v52 = vld [vmem:[#allocation16 + $0xe48] sm:$0xff] }
 0x901   :  { %10048 = vmatprep.subr.bf16.mxu1 %v16768_v53  ;;  %10220 = vmatprep.subr.bf16.mxu0 %v16770_v56  ;;  %v7072_v55 = vld [vmem:[#allocation16 + $0xe68] sm:$0xff]  ;;  %v16807_v53 = vcombine.low %v7059_v20, %v7063_v21  ;;  %v16809_v56 = vcombine.low %v7060_v23, %v7064_v28  ;;  %v16848_v20 = vcombine.high %v7099_v30, %v7103_v32  ;;  %v7107_v23 = vld [vmem:[#allocation16 + $0xf80] sm:$0xff] }
 0x902   :  { %v16818_v58 = vcombine.high %v7068_v52, %v7072_v55  ;;  %v7111_v28 = vld [vmem:[#allocation16 + $0xfa0] sm:$0xff] }
 0x904   :  { %10049 = vmatpush1.bf16.msra.mxu1 %v16767_v62  ;;  %10221 = vmatpush1.bf16.msra.mxu0 %v16769_v1  ;;  %v7076_v62 = vld [vmem:[#allocation16 + $0xe88] sm:$0xff] }
 0x905   :  { %10050 = vmatprep.subr.bf16.mxu1 %v16776_v2  ;;  %10222 = vmatprep.subr.bf16.mxu0 %v16778_v19  ;;  %v7080_v1 = vld [vmem:[#allocation16 + $0xea8] sm:$0xff]  ;;  %v16815_v2 = vcombine.low %v7067_v63, %v7071_v49  ;;  %v16817_v19 = vcombine.low %v7068_v52, %v7072_v55  ;;  %v16856_v63 = vcombine.high %v7107_v23, %v7111_v28  ;;  %v7115_v52 = vld [vmem:[#allocation16 + $0xfc0] sm:$0xff] }
 0x906   :  { %v16826_v3 = vcombine.high %v7076_v62, %v7080_v1  ;;  %v7119_v55 = vld [vmem:[#allocation16 + $0xfe0] sm:$0xff] }
 0x908   :  { %10051 = vmatpush1.bf16.msra.mxu1 %v16775_v54  ;;  %10223 = vmatpush1.bf16.msra.mxu0 %v16777_v7  ;;  %v7084_v54 = vld [vmem:[#allocation16 + $0xec8] sm:$0xff] }
 0x909   :  { %10052 = vmatprep.subr.bf16.mxu1 %v16784_v9  ;;  %10224 = vmatprep.subr.bf16.mxu0 %v16786_v10  ;;  %v7088_v7 = vld [vmem:[#allocation16 + $0xee8] sm:$0xff]  ;;  %v16823_v9 = vcombine.low %v7075_v60, %v7079_v46  ;;  %v16825_v10 = vcombine.low %v7076_v62, %v7080_v1  ;;  %v16864_v60 = vcombine.high %v7115_v52, %v7119_v55  ;;  %v6613_v62 = vld [vmem:[#allocation16 + $0x10] sm:$0xff] }
 0x90a   :  { %v16834_v0 = vcombine.high %v7084_v54, %v7088_v7  ;;  %v6617_v1 = vld [vmem:[#allocation16 + $0x30] sm:$0xff] }
 0x90c   :  { %10053 = vmatpush1.bf16.msra.mxu1 %v16783_v14  ;;  %10225 = vmatpush1.bf16.msra.mxu0 %v16785_v15  ;;  %v7092_v14 = vld [vmem:[#allocation16 + $0xf08] sm:$0xff] }
 0x90d   :  { %10054 = vmatprep.subr.bf16.mxu1 %v16792_v16  ;;  %10226 = vmatprep.subr.bf16.mxu0 %v16794_v18  ;;  %v7096_v15 = vld [vmem:[#allocation16 + $0xf28] sm:$0xff]  ;;  %v16831_v16 = vcombine.low %v7083_v59, %v7087_v4  ;;  %v16833_v18 = vcombine.low %v7084_v54, %v7088_v7  ;;  %v16364_v59 = vcombine.high %v6613_v62, %v6617_v1  ;;  %v6621_v54 = vld [vmem:[#allocation16 + $0x50] sm:$0xff] }
 0x90e   :  { %v16842_v29 = vcombine.high %v7092_v14, %v7096_v15  ;;  %v6625_v7 = vld [vmem:[#allocation16 + $0x70] sm:$0xff] }
 0x910   :  { %10055 = vmatpush1.bf16.msra.mxu1 %v16791_v44  ;;  %10227 = vmatpush1.bf16.msra.mxu0 %v16793_v33  ;;  %v7100_v44 = vld [vmem:[#allocation16 + $0xf48] sm:$0xff] }
 0x911   :  { %10056 = vmatprep.subr.bf16.mxu1 %v16800_v35  ;;  %10228 = vmatprep.subr.bf16.mxu0 %v16802_v37  ;;  %v7104_v33 = vld [vmem:[#allocation16 + $0xf68] sm:$0xff]  ;;  %v16839_v35 = vcombine.low %v7091_v11, %v7095_v13  ;;  %v16841_v37 = vcombine.low %v7092_v14, %v7096_v15  ;;  %v16372_v11 = vcombine.high %v6621_v54, %v6625_v7  ;;  %v6629_v14 = vld [vmem:[#allocation16 + $0x90] sm:$0xff] }
 0x912   :  { %v16850_v21 = vcombine.high %v7100_v44, %v7104_v33  ;;  %v6633_v15 = vld [vmem:[#allocation16 + $0xb0] sm:$0xff] }
 0x914   :  { %10057 = vmatpush1.bf16.msra.mxu1 %v16799_v40  ;;  %10229 = vmatpush1.bf16.msra.mxu0 %v16801_v41  ;;  %v7108_v40 = vld [vmem:[#allocation16 + $0xf88] sm:$0xff] }
 0x915   :  { %10058 = vmatprep.subr.bf16.mxu1 %v16808_v42  ;;  %10230 = vmatprep.subr.bf16.mxu0 %v16810_v43  ;;  %v7112_v41 = vld [vmem:[#allocation16 + $0xfa8] sm:$0xff]  ;;  %v16847_v42 = vcombine.low %v7099_v30, %v7103_v32  ;;  %v16849_v43 = vcombine.low %v7100_v44, %v7104_v33  ;;  %v16380_v30 = vcombine.high %v6629_v14, %v6633_v15  ;;  %v6637_v44 = vld [vmem:[#allocation16 + $0xd0] sm:$0xff] }
 0x916   :  { %v16858_v49 = vcombine.high %v7108_v40, %v7112_v41  ;;  %v6641_v33 = vld [vmem:[#allocation16 + $0xf0] sm:$0xff] }
 0x918   :  { %10059 = vmatpush1.bf16.msra.mxu1 %v16807_v53  ;;  %10231 = vmatpush1.bf16.msra.mxu0 %v16809_v56  ;;  %v7116_v53 = vld [vmem:[#allocation16 + $0xfc8] sm:$0xff] }
 0x919   :  { %10060 = vmatprep.subr.bf16.mxu1 %v16816_v57  ;;  %10232 = vmatprep.subr.bf16.mxu0 %v16818_v58  ;;  %v7120_v56 = vld [vmem:[#allocation16 + $0xfe8] sm:$0xff]  ;;  %v16855_v57 = vcombine.low %v7107_v23, %v7111_v28  ;;  %v16857_v58 = vcombine.low %v7108_v40, %v7112_v41  ;;  %v16388_v23 = vcombine.high %v6637_v44, %v6641_v33  ;;  %v6645_v40 = vld [vmem:[#allocation16 + $0x110] sm:$0xff] }
 0x91a   :  { %v16866_v46 = vcombine.high %v7116_v53, %v7120_v56  ;;  %v6649_v41 = vld [vmem:[#allocation16 + $0x130] sm:$0xff] }
 0x91c   :  { %10061 = vmatpush1.bf16.msra.mxu1 %v16815_v2  ;;  %10233 = vmatpush1.bf16.msra.mxu0 %v16817_v19  ;;  %v6614_v2 = vld [vmem:[#allocation16 + $0x18] sm:$0xff] }
 0x91d   :  { %10062 = vmatprep.subr.bf16.mxu1 %v16824_v61  ;;  %10234 = vmatprep.subr.bf16.mxu0 %v16826_v3  ;;  %v6618_v19 = vld [vmem:[#allocation16 + $0x38] sm:$0xff]  ;;  %v16863_v61 = vcombine.low %v7115_v52, %v7119_v55  ;;  %v16865_v3 = vcombine.low %v7116_v53, %v7120_v56  ;;  %v6653_v55 = vld [vmem:[#allocation16 + $0x150] sm:$0xff] }
 0x91e   :  { %v16366_v4 = vcombine.high %v6614_v2, %v6618_v19  ;;  %v6657_v53 = vld [vmem:[#allocation16 + $0x170] sm:$0xff]  ;;  %v6654_v56 = vld [vmem:[#allocation16 + $0x158] sm:$0xff] }
 0x920   :  { %10063 = vmatpush1.bf16.msra.mxu1 %v16823_v9  ;;  %10235 = vmatpush1.bf16.msra.mxu0 %v16825_v10  ;;  %v6622_v9 = vld [vmem:[#allocation16 + $0x58] sm:$0xff] }
 0x921   :  { %10064 = vmatprep.subr.bf16.mxu1 %v16832_v12  ;;  %10236 = vmatprep.subr.bf16.mxu0 %v16834_v0  ;;  %v6626_v10 = vld [vmem:[#allocation16 + $0x78] sm:$0xff]  ;;  %v16363_v12 = vcombine.low %v6613_v62, %v6617_v1  ;;  %v16365_v0 = vcombine.low %v6614_v2, %v6618_v19  ;;  %v6661_v1 = vld [vmem:[#allocation16 + $0x190] sm:$0xff] }
 0x922   :  { %v16374_v13 = vcombine.high %v6622_v9, %v6626_v10  ;;  %v6665_v2 = vld [vmem:[#allocation16 + $0x1b0] sm:$0xff]  ;;  %v6662_v19 = vld [vmem:[#allocation16 + $0x198] sm:$0xff] }
 0x924   :  { %10065 = vmatpush1.bf16.msra.mxu1 %v16831_v16  ;;  %10237 = vmatpush1.bf16.msra.mxu0 %v16833_v18  ;;  %v6630_v16 = vld [vmem:[#allocation16 + $0x98] sm:$0xff] }
 0x925   :  { %10066 = vmatprep.subr.bf16.mxu1 %v16840_v45  ;;  %10238 = vmatprep.subr.bf16.mxu0 %v16842_v29  ;;  %v6634_v18 = vld [vmem:[#allocation16 + $0xb8] sm:$0xff]  ;;  %v16371_v45 = vcombine.low %v6621_v54, %v6625_v7  ;;  %v16373_v29 = vcombine.low %v6622_v9, %v6626_v10  ;;  %v6669_v7 = vld [vmem:[#allocation16 + $0x1d0] sm:$0xff] }
 0x926   :  { %v16382_v32 = vcombine.high %v6630_v16, %v6634_v18  ;;  %v6673_v9 = vld [vmem:[#allocation16 + $0x1f0] sm:$0xff]  ;;  %v6670_v10 = vld [vmem:[#allocation16 + $0x1d8] sm:$0xff] }
 0x928   :  { %10067 = vmatpush1.bf16.msra.mxu1 %v16839_v35  ;;  %10239 = vmatpush1.bf16.msra.mxu0 %v16841_v37  ;;  %v6638_v35 = vld [vmem:[#allocation16 + $0xd8] sm:$0xff] }
 0x929   :  { %10068 = vmatprep.subr.bf16.mxu1 %v16848_v20  ;;  %10240 = vmatprep.subr.bf16.mxu0 %v16850_v21  ;;  %v6642_v37 = vld [vmem:[#allocation16 + $0xf8] sm:$0xff]  ;;  %v16379_v20 = vcombine.low %v6629_v14, %v6633_v15  ;;  %v16381_v21 = vcombine.low %v6630_v16, %v6634_v18  ;;  %v6677_v15 = vld [vmem:[#allocation16 + $0x210] sm:$0xff] }
 0x92a   :  { %v16390_v28 = vcombine.high %v6638_v35, %v6642_v37  ;;  %v6681_v16 = vld [vmem:[#allocation16 + $0x230] sm:$0xff]  ;;  %v6678_v18 = vld [vmem:[#allocation16 + $0x218] sm:$0xff] }
 0x92c   :  { %10069 = vmatpush1.bf16.msra.mxu1 %v16847_v42  ;;  %10241 = vmatpush1.bf16.msra.mxu0 %v16849_v43  ;;  %v6650_v42 = vld [vmem:[#allocation16 + $0x138] sm:$0xff]  ;;  %v16387_v43 = vcombine.low %v6637_v44, %v6641_v33  ;;  %v6685_v33 = vld [vmem:[#allocation16 + $0x250] sm:$0xff] }
 0x92d   :  { %10070 = vmatprep.subr.bf16.mxu1 %v16856_v63  ;;  %10242 = vmatprep.subr.bf16.mxu0 %v16858_v49  ;;  %v16389_v63 = vcombine.low %v6638_v35, %v6642_v37  ;;  %v16396_v49 = vcombine.high %v6645_v40, %v6649_v41  ;;  %v6689_v35 = vld [vmem:[#allocation16 + $0x270] sm:$0xff]  ;;  %v6686_v37 = vld [vmem:[#allocation16 + $0x258] sm:$0xff] }
 0x930   :  { %10071 = vmatpush1.bf16.msra.mxu1 %v16855_v57  ;;  %10243 = vmatpush1.bf16.msra.mxu0 %v16857_v58  ;;  %v6658_v57 = vld [vmem:[#allocation16 + $0x178] sm:$0xff]  ;;  %v16395_v58 = vcombine.low %v6645_v40, %v6649_v41  ;;  %v6693_v41 = vld [vmem:[#allocation16 + $0x290] sm:$0xff] }
 0x931   :  { %10072 = vmatprep.subr.bf16.mxu1 %v16864_v60  ;;  %10244 = vmatprep.subr.bf16.mxu0 %v16866_v46  ;;  %v16404_v46 = vcombine.high %v6653_v55, %v6657_v53  ;;  %v16406_v62 = vcombine.high %v6654_v56, %v6658_v57 }
 0x934   :  { %10073 = vmatpush1.bf16.msra.mxu1 %v16863_v61  ;;  %10245 = vmatpush1.bf16.msra.mxu0 %v16865_v3  ;;  %v6666_v61 = vld [vmem:[#allocation16 + $0x1b8] sm:$0xff]  ;;  %v16403_v3 = vcombine.low %v6653_v55, %v6657_v53  ;;  %v6701_v53 = vld [vmem:[#allocation16 + $0x2d0] sm:$0xff] }
 0x935   :  { %10257 = vmatprep.subr.bf16.mxu1 %v16364_v59  ;;  %10429 = vmatprep.subr.bf16.mxu0 %v16366_v4  ;;  %v16405_v59 = vcombine.low %v6654_v56, %v6658_v57  ;;  %v16412_v4 = vcombine.high %v6661_v1, %v6665_v2  ;;  %v16414_v54 = vcombine.high %v6662_v19, %v6666_v61  ;;  %v6705_v56 = vld [vmem:[#allocation16 + $0x2f0] sm:$0xff]  ;;  %v6702_v57 = vld [vmem:[#allocation16 + $0x2d8] sm:$0xff] }
 0x937   :  { %10075 = vmatmul.mubr.bf16.vlgmr.msra.gmra.mrb[40].mxu1 %v18718_v31  ;;  %10247 = vmatmul.mubr.bf16.vlgmr.msra.gmra.mrb[44].mxu0 %v18718_v31 }
 0x938   :  { %10258 = vmatpush1.bf16.msra.mxu1 %v16363_v12  ;;  %10289 = vmatprep.mubr.bf16.mxu1 %v18696_v38  ;;  %v6674_v12 = vld [vmem:[#allocation16 + $0x1f8] sm:$0xff] }
 0x939   :  { %10430 = vmatpush1.bf16.msra.mxu0 %v16365_v0  ;;  %10461 = vmatprep.mubr.bf16.mxu0 %v18696_v38  ;;  %v6646_v38 = vld [vmem:[#allocation16 + $0x118] sm:$0xff]  ;;  %v16411_v0 = vcombine.low %v6661_v1, %v6665_v2  ;;  %v16422_v14 = vcombine.high %v6670_v10, %v6674_v12  ;;  %v6709_v2 = vld [vmem:[#allocation16 + $0x310] sm:$0xff] }
 0x93a   :  { %10259 = vmatprep.subr.bf16.mxu1 %v16372_v11  ;;  %10431 = vmatprep.subr.bf16.mxu0 %v16374_v13  ;;  %v16398_v52 = vcombine.high %v6646_v38, %v6650_v42  ;;  %v16397_v60 = vcombine.low %v6646_v38, %v6650_v42  ;;  %v16413_v11 = vcombine.low %v6662_v19, %v6666_v61  ;;  %v6697_v38 = vld [vmem:[#allocation16 + $0x2b0] sm:$0xff]  ;;  %v6694_v42 = vld [vmem:[#allocation16 + $0x298] sm:$0xff] }
 0x93b   :  { %v16420_v13 = vcombine.high %v6669_v7, %v6673_v9  ;;  %v6713_v19 = vld [vmem:[#allocation16 + $0x330] sm:$0xff]  ;;  %v6710_v61 = vld [vmem:[#allocation16 + $0x318] sm:$0xff] }
 0x93c   :  { %10260 = vmatpush1.bf16.msra.mxu1 %v16371_v45  ;;  %v6682_v45 = vld [vmem:[#allocation16 + $0x238] sm:$0xff] }
 0x93d   :  { %10432 = vmatpush1.bf16.msra.mxu0 %v16373_v29  ;;  %10261 = vmatprep.subr.bf16.mxu1 %v16380_v30  ;;  %v16419_v29 = vcombine.low %v6669_v7, %v6673_v9  ;;  %v16421_v30 = vcombine.low %v6670_v10, %v6674_v12  ;;  %v16430_v44 = vcombine.high %v6678_v18, %v6682_v45  ;;  %v6717_v9 = vld [vmem:[#allocation16 + $0x350] sm:$0xff]  ;;  %v6718_v12 = vld [vmem:[#allocation16 + $0x358] sm:$0xff] }
 0x93e   :  { %10433 = vmatprep.subr.bf16.mxu0 %v16382_v32  ;;  %v16428_v32 = vcombine.high %v6677_v15, %v6681_v16  ;;  %v6721_v10 = vld [vmem:[#allocation16 + $0x370] sm:$0xff] }
 0x940   :  { %10262 = vmatpush1.bf16.msra.mxu1 %v16379_v20  ;;  %v6690_v20 = vld [vmem:[#allocation16 + $0x278] sm:$0xff] }
 0x941   :  { %10434 = vmatpush1.bf16.msra.mxu0 %v16381_v21  ;;  %10263 = vmatprep.subr.bf16.mxu1 %v16388_v23  ;;  %v16427_v21 = vcombine.low %v6677_v15, %v6681_v16  ;;  %v16429_v23 = vcombine.low %v6678_v18, %v6682_v45  ;;  %v16438_v40 = vcombine.high %v6686_v37, %v6690_v20  ;;  %v6725_v16 = vld [vmem:[#allocation16 + $0x390] sm:$0xff]  ;;  %v6726_v45 = vld [vmem:[#allocation16 + $0x398] sm:$0xff] }
 0x942   :  { %10435 = vmatprep.subr.bf16.mxu0 %v16390_v28  ;;  %v16436_v28 = vcombine.high %v6685_v33, %v6689_v35  ;;  %v6729_v18 = vld [vmem:[#allocation16 + $0x3b0] sm:$0xff] }
 0x944   :  { %10264 = vmatpush1.bf16.msra.mxu1 %v16387_v43  ;;  %v6698_v43 = vld [vmem:[#allocation16 + $0x2b8] sm:$0xff] }
 0x945   :  { %10436 = vmatpush1.bf16.msra.mxu0 %v16389_v63  ;;  %10265 = vmatprep.subr.bf16.mxu1 %v16396_v49  ;;  %v16435_v63 = vcombine.low %v6685_v33, %v6689_v35  ;;  %v16437_v49 = vcombine.low %v6686_v37, %v6690_v20  ;;  %v16446_v55 = vcombine.high %v6694_v42, %v6698_v43  ;;  %v6733_v35 = vld [vmem:[#allocation16 + $0x3d0] sm:$0xff]  ;;  %v6734_v20 = vld [vmem:[#allocation16 + $0x3d8] sm:$0xff] }
 0x946   :  { %10437 = vmatprep.subr.bf16.mxu0 %v16398_v52  ;;  %v16444_v52 = vcombine.high %v6693_v41, %v6697_v38  ;;  %v6737_v37 = vld [vmem:[#allocation16 + $0x3f0] sm:$0xff] }
 0x948   :  { %10266 = vmatpush1.bf16.msra.mxu1 %v16395_v58  ;;  %v6706_v58 = vld [vmem:[#allocation16 + $0x2f8] sm:$0xff] }
 0x949   :  { %10438 = vmatpush1.bf16.msra.mxu0 %v16397_v60  ;;  %10267 = vmatprep.subr.bf16.mxu1 %v16404_v46  ;;  %v16443_v60 = vcombine.low %v6693_v41, %v6697_v38  ;;  %v16445_v46 = vcombine.low %v6694_v42, %v6698_v43  ;;  %v16454_v1 = vcombine.high %v6702_v57, %v6706_v58  ;;  %v6741_v38 = vld [vmem:[#allocation16 + $0x410] sm:$0xff]  ;;  %v6742_v43 = vld [vmem:[#allocation16 + $0x418] sm:$0xff] }
 0x94a   :  { %10439 = vmatprep.subr.bf16.mxu0 %v16406_v62  ;;  %v16452_v62 = vcombine.high %v6701_v53, %v6705_v56  ;;  %v6745_v42 = vld [vmem:[#allocation16 + $0x430] sm:$0xff] }
 0x94c   :  { %10268 = vmatpush1.bf16.msra.mxu1 %v16403_v3  ;;  %v6714_v3 = vld [vmem:[#allocation16 + $0x338] sm:$0xff] }
 0x94d   :  { %10440 = vmatpush1.bf16.msra.mxu0 %v16405_v59  ;;  %10269 = vmatprep.subr.bf16.mxu1 %v16412_v4  ;;  %v16451_v59 = vcombine.low %v6701_v53, %v6705_v56  ;;  %v16453_v4 = vcombine.low %v6702_v57, %v6706_v58  ;;  %v16462_v7 = vcombine.high %v6710_v61, %v6714_v3  ;;  %v6749_v56 = vld [vmem:[#allocation16 + $0x450] sm:$0xff] }
 0x94e   :  { %10441 = vmatprep.subr.bf16.mxu0 %v16414_v54  ;;  %v16460_v54 = vcombine.high %v6709_v2, %v6713_v19  ;;  %v6753_v57 = vld [vmem:[#allocation16 + $0x470] sm:$0xff]  ;;  %v16491_v58 = vcombine.low %v6741_v38, %v6745_v42 }
 0x950   :  { %10270 = vmatpush1.bf16.msra.mxu1 %v16411_v0  ;;  %v6722_v0 = vld [vmem:[#allocation16 + $0x378] sm:$0xff] }
 0x951   :  { %10442 = vmatpush1.bf16.msra.mxu0 %v16413_v11  ;;  %10271 = vmatprep.subr.bf16.mxu1 %v16420_v13  ;;  %v16459_v11 = vcombine.low %v6709_v2, %v6713_v19  ;;  %v16461_v13 = vcombine.low %v6710_v61, %v6714_v3  ;;  %v16470_v15 = vcombine.high %v6718_v12, %v6722_v0  ;;  %v6757_v2 = vld [vmem:[#allocation16 + $0x490] sm:$0xff]  ;;  %v6758_v3 = vld [vmem:[#allocation16 + $0x498] sm:$0xff] }
 0x952   :  { %10443 = vmatprep.subr.bf16.mxu0 %v16422_v14  ;;  %v16468_v14 = vcombine.high %v6717_v9, %v6721_v10  ;;  %v6761_v19 = vld [vmem:[#allocation16 + $0x4b0] sm:$0xff] }
 0x954   :  { %10272 = vmatpush1.bf16.msra.mxu1 %v16419_v29  ;;  %v6730_v29 = vld [vmem:[#allocation16 + $0x3b8] sm:$0xff] }
 0x955   :  { %10444 = vmatpush1.bf16.msra.mxu0 %v16421_v30  ;;  %10273 = vmatprep.subr.bf16.mxu1 %v16428_v32  ;;  %v16467_v30 = vcombine.low %v6717_v9, %v6721_v10  ;;  %v16469_v32 = vcombine.low %v6718_v12, %v6722_v0  ;;  %v16478_v33 = vcombine.high %v6726_v45, %v6730_v29  ;;  %v6765_v10 = vld [vmem:[#allocation16 + $0x4d0] sm:$0xff]  ;;  %v6766_v0 = vld [vmem:[#allocation16 + $0x4d8] sm:$0xff] }
 0x956   :  { %10445 = vmatprep.subr.bf16.mxu0 %v16430_v44  ;;  %v16476_v44 = vcombine.high %v6725_v16, %v6729_v18  ;;  %v6769_v12 = vld [vmem:[#allocation16 + $0x4f0] sm:$0xff] }
 0x958   :  { %10274 = vmatpush1.bf16.msra.mxu1 %v16427_v21  ;;  %v6738_v21 = vld [vmem:[#allocation16 + $0x3f8] sm:$0xff] }
 0x959   :  { %10446 = vmatpush1.bf16.msra.mxu0 %v16429_v23  ;;  %10275 = vmatprep.subr.bf16.mxu1 %v16436_v28  ;;  %v16475_v23 = vcombine.low %v6725_v16, %v6729_v18  ;;  %v16477_v28 = vcombine.low %v6726_v45, %v6730_v29  ;;  %v16486_v41 = vcombine.high %v6734_v20, %v6738_v21  ;;  %v6773_v16 = vld [vmem:[#allocation16 + $0x510] sm:$0xff]  ;;  %v6774_v45 = vld [vmem:[#allocation16 + $0x518] sm:$0xff] }
 0x95a   :  { %10447 = vmatprep.subr.bf16.mxu0 %v16438_v40  ;;  %v16484_v40 = vcombine.high %v6733_v35, %v6737_v37  ;;  %v6777_v18 = vld [vmem:[#allocation16 + $0x530] sm:$0xff]  ;;  %v6778_v29 = vld [vmem:[#allocation16 + $0x538] sm:$0xff] }
 0x95c   :  { %10276 = vmatpush1.bf16.msra.mxu1 %v16435_v63  ;;  %v6746_v63 = vld [vmem:[#allocation16 + $0x438] sm:$0xff] }
 0x95d   :  { %10448 = vmatpush1.bf16.msra.mxu0 %v16437_v49  ;;  %10277 = vmatprep.subr.bf16.mxu1 %v16444_v52  ;;  %v16483_v49 = vcombine.low %v6733_v35, %v6737_v37  ;;  %v16485_v52 = vcombine.low %v6734_v20, %v6738_v21  ;;  %v16494_v53 = vcombine.high %v6742_v43, %v6746_v63  ;;  %v6785_v35 = vld [vmem:[#allocation16 + $0x570] sm:$0xff]  ;;  %v6782_v37 = vld [vmem:[#allocation16 + $0x558] sm:$0xff] }
 0x95e   :  { %10449 = vmatprep.subr.bf16.mxu0 %v16446_v55  ;;  %v16492_v55 = vcombine.high %v6741_v38, %v6745_v42  ;;  %v6786_v20 = vld [vmem:[#allocation16 + $0x578] sm:$0xff]  ;;  %v16523_v21 = vcombine.low %v6773_v16, %v6777_v18  ;;  %v6793_v38 = vld [vmem:[#allocation16 + $0x5b0] sm:$0xff] }
 0x95f   :  { %v6790_v42 = vld [vmem:[#allocation16 + $0x598] sm:$0xff] }
 0x960   :  { %10278 = vmatpush1.bf16.msra.mxu1 %v16443_v60  ;;  %v6750_v60 = vld [vmem:[#allocation16 + $0x458] sm:$0xff] }
 0x961   :  { %10450 = vmatpush1.bf16.msra.mxu0 %v16445_v46  ;;  %10279 = vmatprep.subr.bf16.mxu1 %v16452_v62  ;;  %v6754_v46 = vld [vmem:[#allocation16 + $0x478] sm:$0xff]  ;;  %v16493_v62 = vcombine.low %v6742_v43, %v6746_v63 }
 0x962   :  { %10451 = vmatprep.subr.bf16.mxu0 %v16454_v1  ;;  %v16500_v1 = vcombine.high %v6749_v56, %v6753_v57  ;;  %v16502_v61 = vcombine.high %v6750_v60, %v6754_v46  ;;  %v6794_v43 = vld [vmem:[#allocation16 + $0x5b8] sm:$0xff] }
 0x964   :  { %10280 = vmatpush1.bf16.msra.mxu1 %v16451_v59  ;;  %v6762_v59 = vld [vmem:[#allocation16 + $0x4b8] sm:$0xff] }
 0x965   :  { %10452 = vmatpush1.bf16.msra.mxu0 %v16453_v4  ;;  %10281 = vmatprep.subr.bf16.mxu1 %v16460_v54  ;;  %v16499_v4 = vcombine.low %v6749_v56, %v6753_v57  ;;  %v16501_v54 = vcombine.low %v6750_v60, %v6754_v46  ;;  %v16510_v9 = vcombine.high %v6758_v3, %v6762_v59  ;;  %v6801_v56 = vld [vmem:[#allocation16 + $0x5f0] sm:$0xff]  ;;  %v6798_v57 = vld [vmem:[#allocation16 + $0x5d8] sm:$0xff] }
 0x966   :  { %10453 = vmatprep.subr.bf16.mxu0 %v16462_v7  ;;  %v16508_v7 = vcombine.high %v6757_v2, %v6761_v19  ;;  %v16541_v46 = vcombine.low %v6790_v42, %v6794_v43 }
 0x968   :  { %10282 = vmatpush1.bf16.msra.mxu1 %v16459_v11  ;;  %v6770_v11 = vld [vmem:[#allocation16 + $0x4f8] sm:$0xff] }
 0x969   :  { %10454 = vmatpush1.bf16.msra.mxu0 %v16461_v13  ;;  %10283 = vmatprep.subr.bf16.mxu1 %v16468_v14  ;;  %v16507_v13 = vcombine.low %v6757_v2, %v6761_v19  ;;  %v16516_v14 = vcombine.high %v6765_v10, %v6769_v12  ;;  %v6805_v2 = vld [vmem:[#allocation16 + $0x610] sm:$0xff] }
 0x96a   :  { %10455 = vmatprep.subr.bf16.mxu0 %v16470_v15  ;;  %v16518_v15 = vcombine.high %v6766_v0, %v6770_v11  ;;  %v6809_v19 = vld [vmem:[#allocation16 + $0x630] sm:$0xff] }
 0x96c   :  { %10284 = vmatpush1.bf16.msra.mxu1 %v16467_v30  ;;  %v16517_v30 = vcombine.low %v6766_v0, %v6770_v11  ;;  %v6818_v0 = vld [vmem:[#allocation16 + $0x678] sm:$0xff]  ;;  %v16555_v11 = vcombine.low %v6805_v2, %v6809_v19 }
 0x96d   :  { %10456 = vmatpush1.bf16.msra.mxu0 %v16469_v32  ;;  %10285 = vmatprep.subr.bf16.mxu1 %v16476_v44  ;;  %v16524_v32 = vcombine.high %v6773_v16, %v6777_v18  ;;  %v16526_v44 = vcombine.high %v6774_v45, %v6778_v29  ;;  %v6825_v16 = vld [vmem:[#allocation16 + $0x6b0] sm:$0xff]  ;;  %v6822_v18 = vld [vmem:[#allocation16 + $0x698] sm:$0xff] }
 0x96e   :  { %10457 = vmatprep.subr.bf16.mxu0 %v16478_v33  ;;  %v6781_v33 = vld [vmem:[#allocation16 + $0x550] sm:$0xff] }
 0x96f   :  { %v16531_v63 = vcombine.low %v6781_v33, %v6785_v35 }
 0x970   :  { %10286 = vmatpush1.bf16.msra.mxu1 %v16475_v23  ;;  %v16525_v23 = vcombine.low %v6774_v45, %v6778_v29  ;;  %v6826_v45 = vld [vmem:[#allocation16 + $0x6b8] sm:$0xff] }
 0x971   :  { %10458 = vmatpush1.bf16.msra.mxu0 %v16477_v28  ;;  %10287 = vmatprep.subr.bf16.mxu1 %v16484_v40  ;;  %v16532_v28 = vcombine.high %v6781_v33, %v6785_v35  ;;  %v16534_v40 = vcombine.high %v6782_v37, %v6786_v20  ;;  %v6833_v33 = vld [vmem:[#allocation16 + $0x6f0] sm:$0xff]  ;;  %v6830_v35 = vld [vmem:[#allocation16 + $0x6d8] sm:$0xff] }
 0x972   :  { %10459 = vmatprep.subr.bf16.mxu0 %v16486_v41  ;;  %v6789_v41 = vld [vmem:[#allocation16 + $0x590] sm:$0xff] }
 0x973   :  { %v16539_v60 = vcombine.low %v6789_v41, %v6793_v38 }
 0x974   :  { %10288 = vmatpush1.bf16.msra.mxu1 %v16483_v49  ;;  %v16533_v49 = vcombine.low %v6782_v37, %v6786_v20  ;;  %v6834_v37 = vld [vmem:[#allocation16 + $0x6f8] sm:$0xff] }
 0x975   :  { %10460 = vmatpush1.bf16.msra.mxu0 %v16485_v52  ;;  %10300 = vmatprep.subr.bf16.mxu1 %v16492_v55  ;;  %v16540_v52 = vcombine.high %v6789_v41, %v6793_v38  ;;  %v16542_v55 = vcombine.high %v6790_v42, %v6794_v43  ;;  %v6841_v41 = vld [vmem:[#allocation16 + $0x730] sm:$0xff]  ;;  %v6838_v38 = vld [vmem:[#allocation16 + $0x718] sm:$0xff] }
 0x976   :  { %10472 = vmatprep.subr.bf16.mxu0 %v16494_v53  ;;  %v6797_v53 = vld [vmem:[#allocation16 + $0x5d0] sm:$0xff]  ;;  %v6842_v42 = vld [vmem:[#allocation16 + $0x738] sm:$0xff] }
 0x977   :  { %10290 = vmatmul.mubr.bf16.vlgmr.msra.gmra.mrb[44].mxu1 %v18694_v34 }
 0x978   :  { %10462 = vmatmul.mubr.bf16.vlgmr.msra.gmra.mrb[48].mxu0 %v18694_v34  ;;  %10301 = vmatpush1.bf16.msra.mxu1 %v16491_v58  ;;  %v16509_v34 = vcombine.low %v6758_v3, %v6762_v59  ;;  %v6802_v58 = vld [vmem:[#allocation16 + $0x5f8] sm:$0xff]  ;;  %v16547_v59 = vcombine.low %v6797_v53, %v6801_v56 }
 0x979   :  { %10332 = vmatprep.mubr.bf16.mxu1 %v18700_v5  ;;  %10473 = vmatpush1.bf16.msra.mxu0 %v16493_v62  ;;  %v16548_v62 = vcombine.high %v6797_v53, %v6801_v56  ;;  %v6810_v3 = vld [vmem:[#allocation16 + $0x638] sm:$0xff]  ;;  %v6849_v53 = vld [vmem:[#allocation16 + $0x770] sm:$0xff] }
 0x97a   :  { %10504 = vmatprep.mubr.bf16.mxu0 %v18700_v5  ;;  %10302 = vmatprep.subr.bf16.mxu1 %v16500_v1  ;;  %v16515_v5 = vcombine.low %v6765_v10, %v6769_v12  ;;  %v16550_v1 = vcombine.high %v6798_v57, %v6802_v58  ;;  %v6817_v10 = vld [vmem:[#allocation16 + $0x670] sm:$0xff]  ;;  %v6814_v12 = vld [vmem:[#allocation16 + $0x658] sm:$0xff] }
 0x97b   :  { %10474 = vmatprep.subr.bf16.mxu0 %v16502_v61  ;;  %v6806_v61 = vld [vmem:[#allocation16 + $0x618] sm:$0xff] }
 0x97c   :  { %10303 = vmatpush1.bf16.msra.mxu1 %v16499_v4  ;;  %v16549_v4 = vcombine.low %v6798_v57, %v6802_v58  ;;  %v6846_v56 = vld [vmem:[#allocation16 + $0x758] sm:$0xff] }
 0x97d   :  { %10475 = vmatpush1.bf16.msra.mxu0 %v16501_v54  ;;  %10304 = vmatprep.subr.bf16.mxu1 %v16508_v7  ;;  %v16556_v54 = vcombine.high %v6805_v2, %v6809_v19  ;;  %v16558_v7 = vcombine.high %v6806_v61, %v6810_v3  ;;  %v6850_v57 = vld [vmem:[#allocation16 + $0x778] sm:$0xff]  ;;  %v6857_v2 = vld [vmem:[#allocation16 + $0x7b0] sm:$0xff] }
 0x97e   :  { %10476 = vmatprep.subr.bf16.mxu0 %v16510_v9  ;;  %v6813_v9 = vld [vmem:[#allocation16 + $0x650] sm:$0xff]  ;;  %v6854_v19 = vld [vmem:[#allocation16 + $0x798] sm:$0xff] }
 0x97f   :  { %v16563_v29 = vcombine.low %v6813_v9, %v6817_v10 }
 0x980   :  { %10305 = vmatpush1.bf16.msra.mxu1 %v16507_v13  ;;  %v16557_v13 = vcombine.low %v6806_v61, %v6810_v3  ;;  %v6858_v61 = vld [vmem:[#allocation16 + $0x7b8] sm:$0xff] }
 0x981   :  { %10477 = vmatpush1.bf16.msra.mxu0 %v16509_v34  ;;  %10306 = vmatprep.subr.bf16.mxu1 %v16516_v14  ;;  %v16564_v34 = vcombine.high %v6813_v9, %v6817_v10  ;;  %v16566_v14 = vcombine.high %v6814_v12, %v6818_v0  ;;  %v6865_v9 = vld [vmem:[#allocation16 + $0x7f0] sm:$0xff]  ;;  %v6862_v10 = vld [vmem:[#allocation16 + $0x7d8] sm:$0xff] }
 0x982   :  { %10478 = vmatprep.subr.bf16.mxu0 %v16518_v15  ;;  %v6821_v15 = vld [vmem:[#allocation16 + $0x690] sm:$0xff] }
 0x983   :  { %v16571_v20 = vcombine.low %v6821_v15, %v6825_v16 }
 0x984   :  { %10307 = vmatpush1.bf16.msra.mxu1 %v16515_v5  ;;  %v16565_v5 = vcombine.low %v6814_v12, %v6818_v0  ;;  %v6866_v12 = vld [vmem:[#allocation16 + $0x7f8] sm:$0xff] }
 0x985   :  { %10479 = vmatpush1.bf16.msra.mxu0 %v16517_v30  ;;  %10308 = vmatprep.subr.bf16.mxu1 %v16524_v32  ;;  %v16572_v30 = vcombine.high %v6821_v15, %v6825_v16  ;;  %v16574_v32 = vcombine.high %v6822_v18, %v6826_v45  ;;  %v6873_v15 = vld [vmem:[#allocation16 + $0x830] sm:$0xff]  ;;  %v6870_v16 = vld [vmem:[#allocation16 + $0x818] sm:$0xff] }
 0x986   :  { %10480 = vmatprep.subr.bf16.mxu0 %v16526_v44  ;;  %v6829_v44 = vld [vmem:[#allocation16 + $0x6d0] sm:$0xff] }
 0x987   :  { %v16579_v43 = vcombine.low %v6829_v44, %v6833_v33 }
 0x988   :  { %10309 = vmatpush1.bf16.msra.mxu1 %v16523_v21  ;;  %v16573_v21 = vcombine.low %v6822_v18, %v6826_v45  ;;  %v6874_v18 = vld [vmem:[#allocation16 + $0x838] sm:$0xff] }
 0x989   :  { %10481 = vmatpush1.bf16.msra.mxu0 %v16525_v23  ;;  %10310 = vmatprep.subr.bf16.mxu1 %v16532_v28  ;;  %v16580_v23 = vcombine.high %v6829_v44, %v6833_v33  ;;  %v16582_v28 = vcombine.high %v6830_v35, %v6834_v37  ;;  %v6881_v44 = vld [vmem:[#allocation16 + $0x870] sm:$0xff] }
 0x98a   :  { %10482 = vmatprep.subr.bf16.mxu0 %v16534_v40  ;;  %v6837_v40 = vld [vmem:[#allocation16 + $0x710] sm:$0xff] }
 0x98b   :  { %v16587_v58 = vcombine.low %v6837_v40, %v6841_v41 }
 0x98c   :  { %10311 = vmatpush1.bf16.msra.mxu1 %v16531_v63  ;;  %v16581_v63 = vcombine.low %v6830_v35, %v6834_v37  ;;  %v6878_v35 = vld [vmem:[#allocation16 + $0x858] sm:$0xff] }
 0x98d   :  { %10483 = vmatpush1.bf16.msra.mxu0 %v16533_v49  ;;  %10312 = vmatprep.subr.bf16.mxu1 %v16540_v52  ;;  %v16588_v49 = vcombine.high %v6837_v40, %v6841_v41  ;;  %v16590_v52 = vcombine.high %v6838_v38, %v6842_v42  ;;  %v6882_v37 = vld [vmem:[#allocation16 + $0x878] sm:$0xff] }
 0x98e   :  { %10484 = vmatprep.subr.bf16.mxu0 %v16542_v55  ;;  %v6845_v55 = vld [vmem:[#allocation16 + $0x750] sm:$0xff]  ;;  %v16630_v40 = vcombine.high %v6878_v35, %v6882_v37  ;;  %v6886_v41 = vld [vmem:[#allocation16 + $0x898] sm:$0xff] }
 0x98f   :  { %v16595_v3 = vcombine.low %v6845_v55, %v6849_v53 }
 0x990   :  { %10313 = vmatpush1.bf16.msra.mxu1 %v16539_v60  ;;  %v16589_v60 = vcombine.low %v6838_v38, %v6842_v42  ;;  %v6890_v38 = vld [vmem:[#allocation16 + $0x8b8] sm:$0xff] }
 0x991   :  { %10485 = vmatpush1.bf16.msra.mxu0 %v16541_v46  ;;  %10314 = vmatprep.subr.bf16.mxu1 %v16548_v62  ;;  %v16596_v46 = vcombine.high %v6845_v55, %v6849_v53  ;;  %v16598_v62 = vcombine.high %v6846_v56, %v6850_v57  ;;  %v6897_v55 = vld [vmem:[#allocation16 + $0x8f0] sm:$0xff]  ;;  %v6894_v53 = vld [vmem:[#allocation16 + $0x8d8] sm:$0xff] }
 0x992   :  { %10486 = vmatprep.subr.bf16.mxu0 %v16550_v1  ;;  %v6853_v1 = vld [vmem:[#allocation16 + $0x790] sm:$0xff] }
 0x993   :  { %v16603_v0 = vcombine.low %v6853_v1, %v6857_v2 }
 0x994   :  { %10315 = vmatpush1.bf16.msra.mxu1 %v16547_v59  ;;  %v16597_v59 = vcombine.low %v6846_v56, %v6850_v57  ;;  %v6898_v56 = vld [vmem:[#allocation16 + $0x8f8] sm:$0xff] }
 0x995   :  { %10487 = vmatpush1.bf16.msra.mxu0 %v16549_v4  ;;  %10316 = vmatprep.subr.bf16.mxu1 %v16556_v54  ;;  %v16604_v4 = vcombine.high %v6853_v1, %v6857_v2  ;;  %v16606_v54 = vcombine.high %v6854_v19, %v6858_v61  ;;  %v6902_v1 = vld [vmem:[#allocation16 + $0x918] sm:$0xff] }
 0x996   :  { %10488 = vmatprep.subr.bf16.mxu0 %v16558_v7  ;;  %v6861_v7 = vld [vmem:[#allocation16 + $0x7d0] sm:$0xff]  ;;  %v6906_v2 = vld [vmem:[#allocation16 + $0x938] sm:$0xff] }
 0x997   :  { %v16611_v45 = vcombine.low %v6861_v7, %v6865_v9 }
 0x998   :  { %10317 = vmatpush1.bf16.msra.mxu1 %v16555_v11  ;;  %v16605_v11 = vcombine.low %v6854_v19, %v6858_v61  ;;  %v16645_v19 = vcombine.low %v6894_v53, %v6898_v56 }
 0x999   :  { %10489 = vmatpush1.bf16.msra.mxu0 %v16557_v13  ;;  %10318 = vmatprep.subr.bf16.mxu1 %v16564_v34  ;;  %v16612_v13 = vcombine.high %v6861_v7, %v6865_v9  ;;  %v16614_v34 = vcombine.high %v6862_v10, %v6866_v12  ;;  %v6914_v7 = vld [vmem:[#allocation16 + $0x978] sm:$0xff] }
 0x99a   :  { %10490 = vmatprep.subr.bf16.mxu0 %v16566_v14  ;;  %v6869_v14 = vld [vmem:[#allocation16 + $0x810] sm:$0xff] }
 0x99b   :  { %v16619_v33 = vcombine.low %v6869_v14, %v6873_v15 }
 0x99c   :  { %10319 = vmatpush1.bf16.msra.mxu1 %v16563_v29  ;;  %v16613_v29 = vcombine.low %v6862_v10, %v6866_v12  ;;  %v16653_v10 = vcombine.low %v6902_v1, %v6906_v2 }
 0x99d   :  { %10491 = vmatpush1.bf16.msra.mxu0 %v16565_v5  ;;  %10320 = vmatprep.subr.bf16.mxu1 %v16572_v30  ;;  %v16620_v5 = vcombine.high %v6869_v14, %v6873_v15  ;;  %v16622_v30 = vcombine.high %v6870_v16, %v6874_v18  ;;  %v6922_v14 = vld [vmem:[#allocation16 + $0x9b8] sm:$0xff] }
 0x99e   :  { %10492 = vmatprep.subr.bf16.mxu0 %v16574_v32  ;;  %v6877_v32 = vld [vmem:[#allocation16 + $0x850] sm:$0xff] }
 0x99f   :  { %v16627_v42 = vcombine.low %v6877_v32, %v6881_v44 }
 0x9a0   :  { %10321 = vmatpush1.bf16.msra.mxu1 %v16571_v20  ;;  %v16621_v20 = vcombine.low %v6870_v16, %v6874_v18 }
 0x9a1   :  { %10493 = vmatpush1.bf16.msra.mxu0 %v16573_v21  ;;  %10322 = vmatprep.subr.bf16.mxu1 %v16580_v23  ;;  %v16628_v21 = vcombine.high %v6877_v32, %v6881_v44  ;;  %v6885_v23 = vld [vmem:[#allocation16 + $0x890] sm:$0xff]  ;;  %v6930_v32 = vld [vmem:[#allocation16 + $0x9f8] sm:$0xff] }
 0x9a2   :  { %10494 = vmatprep.subr.bf16.mxu0 %v16582_v28  ;;  %v6889_v28 = vld [vmem:[#allocation16 + $0x8b0] sm:$0xff] }
 0x9a3   :  { %v16635_v57 = vcombine.low %v6885_v23, %v6889_v28 }
 0x9a4   :  { %10323 = vmatpush1.bf16.msra.mxu1 %v16579_v43  ;;  %v16629_v43 = vcombine.low %v6878_v35, %v6882_v37 }
 0x9a5   :  { %10495 = vmatpush1.bf16.msra.mxu0 %v16581_v63  ;;  %10324 = vmatprep.subr.bf16.mxu1 %v16588_v49  ;;  %v16636_v63 = vcombine.high %v6885_v23, %v6889_v28  ;;  %v16638_v49 = vcombine.high %v6886_v41, %v6890_v38  ;;  %v6934_v23 = vld [vmem:[#allocation16 + $0xa18] sm:$0xff] }
 0x9a6   :  { %10496 = vmatprep.subr.bf16.mxu0 %v16590_v52  ;;  %v6893_v52 = vld [vmem:[#allocation16 + $0x8d0] sm:$0xff]  ;;  %v6938_v28 = vld [vmem:[#allocation16 + $0xa38] sm:$0xff] }
 0x9a8   :  { %10325 = vmatpush1.bf16.msra.mxu1 %v16587_v58  ;;  %v16644_v58 = vcombine.high %v6893_v52, %v6897_v55 }
 0x9a9   :  { %10497 = vmatpush1.bf16.msra.mxu0 %v16589_v60  ;;  %10326 = vmatprep.subr.bf16.mxu1 %v16596_v46  ;;  %v16646_v60 = vcombine.high %v6894_v53, %v6898_v56  ;;  %v6901_v46 = vld [vmem:[#allocation16 + $0x910] sm:$0xff]  ;;  %v16685_v53 = vcombine.low %v6934_v23, %v6938_v28 }
 0x9aa   :  { %10498 = vmatprep.subr.bf16.mxu0 %v16598_v62  ;;  %v6905_v62 = vld [vmem:[#allocation16 + $0x930] sm:$0xff] }
 0x9ab   :  { %v16652_v61 = vcombine.high %v6901_v46, %v6905_v62  ;;  %v16651_v9 = vcombine.low %v6901_v46, %v6905_v62  ;;  %v6954_v46 = vld [vmem:[#allocation16 + $0xab8] sm:$0xff] }
 0x9ac   :  { %10327 = vmatpush1.bf16.msra.mxu1 %v16595_v3  ;;  %v16654_v3 = vcombine.high %v6902_v1, %v6906_v2 }
 0x9ad   :  { %10499 = vmatpush1.bf16.msra.mxu0 %v16597_v59  ;;  %10328 = vmatprep.subr.bf16.mxu1 %v16604_v4  ;;  %v6909_v59 = vld [vmem:[#allocation16 + $0x950] sm:$0xff] }
 0x9ae   :  { %10500 = vmatprep.subr.bf16.mxu0 %v16606_v54  ;;  %v6913_v4 = vld [vmem:[#allocation16 + $0x970] sm:$0xff]  ;;  %v6910_v54 = vld [vmem:[#allocation16 + $0x958] sm:$0xff] }
 0x9af   :  { %v16660_v12 = vcombine.high %v6909_v59, %v6913_v4  ;;  %v16659_v15 = vcombine.low %v6909_v59, %v6913_v4  ;;  %v16661_v16 = vcombine.low %v6910_v54, %v6914_v7  ;;  %v6962_v59 = vld [vmem:[#allocation16 + $0xaf8] sm:$0xff] }
 0x9b0   :  { %10329 = vmatpush1.bf16.msra.mxu1 %v16603_v0  ;;  %v16662_v0 = vcombine.high %v6910_v54, %v6914_v7 }
 0x9b1   :  { %10501 = vmatpush1.bf16.msra.mxu0 %v16605_v11  ;;  %10330 = vmatprep.subr.bf16.mxu1 %v16612_v13  ;;  %v6917_v11 = vld [vmem:[#allocation16 + $0x990] sm:$0xff] }
 0x9b2   :  { %10502 = vmatprep.subr.bf16.mxu0 %v16614_v34  ;;  %v6921_v13 = vld [vmem:[#allocation16 + $0x9b0] sm:$0xff]  ;;  %v6918_v34 = vld [vmem:[#allocation16 + $0x998] sm:$0xff] }
 0x9b3   :  { %v16668_v18 = vcombine.high %v6917_v11, %v6921_v13  ;;  %v16667_v44 = vcombine.low %v6917_v11, %v6921_v13  ;;  %v6970_v11 = vld [vmem:[#allocation16 + $0xb38] sm:$0xff] }
 0x9b4   :  { %10331 = vmatpush1.bf16.msra.mxu1 %v16611_v45  ;;  %v16670_v45 = vcombine.high %v6918_v34, %v6922_v14 }
 0x9b5   :  { %10503 = vmatpush1.bf16.msra.mxu0 %v16613_v29  ;;  %10343 = vmatprep.subr.bf16.mxu1 %v16620_v5  ;;  %v6925_v29 = vld [vmem:[#allocation16 + $0x9d0] sm:$0xff] }
 0x9b6   :  { %10515 = vmatprep.subr.bf16.mxu0 %v16622_v30  ;;  %v6929_v5 = vld [vmem:[#allocation16 + $0x9f0] sm:$0xff]  ;;  %v6926_v30 = vld [vmem:[#allocation16 + $0x9d8] sm:$0xff] }
 0x9b7   :  { %10333 = vmatmul.mubr.bf16.vlgmr.msra.gmra.mrb[44].mxu1 %v18698_v8  ;;  %v16676_v35 = vcombine.high %v6925_v29, %v6929_v5  ;;  %v16678_v37 = vcombine.high %v6926_v30, %v6930_v32 }
 0x9b8   :  { %10505 = vmatmul.mubr.bf16.vlgmr.msra.gmra.mrb[48].mxu0 %v18698_v8  ;;  %10344 = vmatpush1.bf16.msra.mxu1 %v16619_v33  ;;  %v16637_v8 = vcombine.low %v6886_v41, %v6890_v38  ;;  %v16669_v33 = vcombine.low %v6918_v34, %v6922_v14  ;;  %v16677_v41 = vcombine.low %v6926_v30, %v6930_v32 }
 0x9b9   :  { %10375 = vmatprep.mubr.bf16.mxu1 %v18716_v22  ;;  %10516 = vmatpush1.bf16.msra.mxu0 %v16621_v20  ;;  %v6933_v20 = vld [vmem:[#allocation16 + $0xa10] sm:$0xff] }
 0x9ba   :  { %10547 = vmatprep.mubr.bf16.mxu0 %v18716_v22  ;;  %10345 = vmatprep.subr.bf16.mxu1 %v16628_v21  ;;  %v16643_v22 = vcombine.low %v6893_v52, %v6897_v55  ;;  %v6937_v21 = vld [vmem:[#allocation16 + $0xa30] sm:$0xff]  ;;  %v6946_v52 = vld [vmem:[#allocation16 + $0xa78] sm:$0xff] }
 0x9bb   :  { %10517 = vmatprep.subr.bf16.mxu0 %v16630_v40  ;;  %v16675_v40 = vcombine.low %v6925_v29, %v6929_v5  ;;  %v16684_v38 = vcombine.high %v6933_v20, %v6937_v21  ;;  %v16683_v55 = vcombine.low %v6933_v20, %v6937_v21  ;;  %v6978_v29 = vld [vmem:[#allocation16 + $0xb78] sm:$0xff] }
 0x9bc   :  { %10346 = vmatpush1.bf16.msra.mxu1 %v16627_v42  ;;  %v16686_v42 = vcombine.high %v6934_v23, %v6938_v28  ;;  %v6986_v20 = vld [vmem:[#allocation16 + $0xbb8] sm:$0xff] }
 0x9bd   :  { %10518 = vmatpush1.bf16.msra.mxu0 %v16629_v43  ;;  %10347 = vmatprep.subr.bf16.mxu1 %v16636_v63  ;;  %v6941_v43 = vld [vmem:[#allocation16 + $0xa50] sm:$0xff] }
 0x9be   :  { %10519 = vmatprep.subr.bf16.mxu0 %v16638_v49  ;;  %v6945_v63 = vld [vmem:[#allocation16 + $0xa70] sm:$0xff]  ;;  %v6942_v49 = vld [vmem:[#allocation16 + $0xa58] sm:$0xff] }
 0x9bf   :  { %v16692_v56 = vcombine.high %v6941_v43, %v6945_v63  ;;  %v16691_v62 = vcombine.low %v6941_v43, %v6945_v63  ;;  %v16693_v1 = vcombine.low %v6942_v49, %v6946_v52  ;;  %v6994_v43 = vld [vmem:[#allocation16 + $0xbf8] sm:$0xff] }
 0x9c0   :  { %10348 = vmatpush1.bf16.msra.mxu1 %v16635_v57  ;;  %v16694_v57 = vcombine.high %v6942_v49, %v6946_v52 }
 0x9c1   :  { %10520 = vmatpush1.bf16.msra.mxu0 %v16637_v8  ;;  %10349 = vmatprep.subr.bf16.mxu1 %v16644_v58  ;;  %v6949_v8 = vld [vmem:[#allocation16 + $0xa90] sm:$0xff] }
 0x9c2   :  { %10521 = vmatprep.subr.bf16.mxu0 %v16646_v60  ;;  %v6953_v58 = vld [vmem:[#allocation16 + $0xab0] sm:$0xff]  ;;  %v6950_v60 = vld [vmem:[#allocation16 + $0xa98] sm:$0xff] }
 0x9c3   :  { %v16700_v2 = vcombine.high %v6949_v8, %v6953_v58  ;;  %v16699_v4 = vcombine.low %v6949_v8, %v6953_v58  ;;  %v16701_v54 = vcombine.low %v6950_v60, %v6954_v46  ;;  %v7002_v8 = vld [vmem:[#allocation16 + $0xc38] sm:$0xff] }
 0x9c4   :  { %10350 = vmatpush1.bf16.msra.mxu1 %v16643_v22  ;;  %v16702_v22 = vcombine.high %v6950_v60, %v6954_v46 }
 0x9c5   :  { %10522 = vmatpush1.bf16.msra.mxu0 %v16645_v19  ;;  %10351 = vmatprep.subr.bf16.mxu1 %v16652_v61  ;;  %v6957_v19 = vld [vmem:[#allocation16 + $0xad0] sm:$0xff] }
 0x9c6   :  { %10523 = vmatprep.subr.bf16.mxu0 %v16654_v3  ;;  %v6961_v61 = vld [vmem:[#allocation16 + $0xaf0] sm:$0xff]  ;;  %v6958_v3 = vld [vmem:[#allocation16 + $0xad8] sm:$0xff] }
 0x9c7   :  { %v16708_v7 = vcombine.high %v6957_v19, %v6961_v61  ;;  %v16707_v13 = vcombine.low %v6957_v19, %v6961_v61  ;;  %v16709_v34 = vcombine.low %v6958_v3, %v6962_v59  ;;  %v7006_v19 = vld [vmem:[#allocation16 + $0xc58] sm:$0xff] }
 0x9c8   :  { %10352 = vmatpush1.bf16.msra.mxu1 %v16651_v9  ;;  %v16710_v9 = vcombine.high %v6958_v3, %v6962_v59  ;;  %v7010_v61 = vld [vmem:[#allocation16 + $0xc78] sm:$0xff] }
 0x9c9   :  { %10524 = vmatpush1.bf16.msra.mxu0 %v16653_v10  ;;  %10353 = vmatprep.subr.bf16.mxu1 %v16660_v12  ;;  %v6965_v10 = vld [vmem:[#allocation16 + $0xb10] sm:$0xff] }
 0x9ca   :  { %10525 = vmatprep.subr.bf16.mxu0 %v16662_v0  ;;  %v6969_v12 = vld [vmem:[#allocation16 + $0xb30] sm:$0xff]  ;;  %v6966_v0 = vld [vmem:[#allocation16 + $0xb18] sm:$0xff] }
 0x9cb   :  { %v16716_v14 = vcombine.high %v6965_v10, %v6969_v12  ;;  %v16715_v5 = vcombine.low %v6965_v10, %v6969_v12  ;;  %v16717_v30 = vcombine.low %v6966_v0, %v6970_v11  ;;  %v7018_v10 = vld [vmem:[#allocation16 + $0xcb8] sm:$0xff] }
 0x9cc   :  { %10354 = vmatpush1.bf16.msra.mxu1 %v16659_v15  ;;  %v16718_v15 = vcombine.high %v6966_v0, %v6970_v11  ;;  %v16757_v0 = vcombine.low %v7006_v19, %v7010_v61 }
 0x9cd   :  { %10526 = vmatpush1.bf16.msra.mxu0 %v16661_v16  ;;  %10355 = vmatprep.subr.bf16.mxu1 %v16668_v18  ;;  %v6973_v16 = vld [vmem:[#allocation16 + $0xb50] sm:$0xff] }
 0x9ce   :  { %10527 = vmatprep.subr.bf16.mxu0 %v16670_v45  ;;  %v6977_v18 = vld [vmem:[#allocation16 + $0xb70] sm:$0xff]  ;;  %v6974_v45 = vld [vmem:[#allocation16 + $0xb58] sm:$0xff] }
 0x9cf   :  { %v16724_v32 = vcombine.high %v6973_v16, %v6977_v18  ;;  %v16723_v21 = vcombine.low %v6973_v16, %v6977_v18  ;;  %v16725_v23 = vcombine.low %v6974_v45, %v6978_v29  ;;  %v7026_v16 = vld [vmem:[#allocation16 + $0xcf8] sm:$0xff] }
 0x9d0   :  { %10356 = vmatpush1.bf16.msra.mxu1 %v16667_v44  ;;  %v16726_v44 = vcombine.high %v6974_v45, %v6978_v29 }
 0x9d1   :  { %10528 = vmatpush1.bf16.msra.mxu0 %v16669_v33  ;;  %10357 = vmatprep.subr.bf16.mxu1 %v16676_v35  ;;  %v6981_v33 = vld [vmem:[#allocation16 + $0xb90] sm:$0xff] }
 0x9d2   :  { %10529 = vmatprep.subr.bf16.mxu0 %v16678_v37  ;;  %v6985_v35 = vld [vmem:[#allocation16 + $0xbb0] sm:$0xff]  ;;  %v6982_v37 = vld [vmem:[#allocation16 + $0xb98] sm:$0xff] }
 0x9d3   :  { %v16732_v28 = vcombine.high %v6981_v33, %v6985_v35  ;;  %v16731_v63 = vcombine.low %v6981_v33, %v6985_v35  ;;  %v16733_v49 = vcombine.low %v6982_v37, %v6986_v20 }
 0x9d4   :  { %10358 = vmatpush1.bf16.msra.mxu1 %v16675_v40  ;;  %v16734_v40 = vcombine.high %v6982_v37, %v6986_v20  ;;  %v7037_v20 = vld [vmem:[#allocation16 + $0xd50] sm:$0xff] }
 0x9d5   :  { %10530 = vmatpush1.bf16.msra.mxu0 %v16677_v41  ;;  %10359 = vmatprep.subr.bf16.mxu1 %v16684_v38  ;;  %v6989_v41 = vld [vmem:[#allocation16 + $0xbd0] sm:$0xff] }
 0x9d6   :  { %10531 = vmatprep.subr.bf16.mxu0 %v16686_v42  ;;  %v6993_v38 = vld [vmem:[#allocation16 + $0xbf0] sm:$0xff]  ;;  %v6990_v42 = vld [vmem:[#allocation16 + $0xbd8] sm:$0xff] }
 0x9d7   :  { %v16740_v52 = vcombine.high %v6989_v41, %v6993_v38  ;;  %v16739_v58 = vcombine.low %v6989_v41, %v6993_v38  ;;  %v16741_v60 = vcombine.low %v6990_v42, %v6994_v43  ;;  %v18744_v41 = vld [vmem:[#allocation17] sm:$0xff] }
 0x9d8   :  { %10360 = vmatpush1.bf16.msra.mxu1 %v16683_v55  ;;  %v16742_v55 = vcombine.high %v6990_v42, %v6994_v43 }
 0x9d9   :  { %10532 = vmatpush1.bf16.msra.mxu0 %v16685_v53  ;;  %10361 = vmatprep.subr.bf16.mxu1 %v16692_v56  ;;  %v6997_v53 = vld [vmem:[#allocation16 + $0xc10] sm:$0xff] }
 0x9da   :  { %10533 = vmatprep.subr.bf16.mxu0 %v16694_v57  ;;  %v7001_v56 = vld [vmem:[#allocation16 + $0xc30] sm:$0xff]  ;;  %v6998_v57 = vld [vmem:[#allocation16 + $0xc18] sm:$0xff] }
 0x9db   :  { %v16748_v46 = vcombine.high %v6997_v53, %v7001_v56  ;;  %v16749_v3 = vcombine.low %v6998_v57, %v7002_v8 }
 0x9dc   :  { %10362 = vmatpush1.bf16.msra.mxu1 %v16691_v62  ;;  %v16750_v62 = vcombine.high %v6998_v57, %v7002_v8  ;;  %v7320_v57 = vrot.slane %v18744_v41, %v18539_v50  ;;  %v7328_v8 = vrot.slane %v18744_v41, %v18542_v51 }
 0x9dd   :  { %10534 = vmatpush1.bf16.msra.mxu0 %v16693_v1  ;;  %10363 = vmatprep.subr.bf16.mxu1 %v16700_v2  ;;  %v7005_v1 = vld [vmem:[#allocation16 + $0xc50] sm:$0xff] }
 0x9de   :  { %10535 = vmatprep.subr.bf16.mxu0 %v16702_v22  ;;  %v7009_v2 = vld [vmem:[#allocation16 + $0xc70] sm:$0xff]  ;;  %v16747_v22 = vcombine.low %v6997_v53, %v7001_v56  ;;  %v7046_v53 = vld [vmem:[#allocation16 + $0xd98] sm:$0xff] }
 0x9df   :  { %v16756_v59 = vcombine.high %v7005_v1, %v7009_v2  ;;  %v16755_v12 = vcombine.low %v7005_v1, %v7009_v2  ;;  %v7050_v56 = vld [vmem:[#allocation16 + $0xdb8] sm:$0xff]  ;;  %v7057_v1 = vld [vmem:[#allocation16 + $0xdf0] sm:$0xff] }
 0x9e0   :  { %10364 = vmatpush1.bf16.msra.mxu1 %v16699_v4  ;;  %v7013_v4 = vld [vmem:[#allocation16 + $0xc90] sm:$0xff] }
 0x9e1   :  { %10536 = vmatpush1.bf16.msra.mxu0 %v16701_v54  ;;  %10365 = vmatprep.subr.bf16.mxu1 %v16708_v7  ;;  %v7017_v54 = vld [vmem:[#allocation16 + $0xcb0] sm:$0xff]  ;;  %v16758_v7 = vcombine.high %v7006_v19, %v7010_v61  ;;  %v16798_v19 = vcombine.high %v7046_v53, %v7050_v56 }
 0x9e2   :  { %10537 = vmatprep.subr.bf16.mxu0 %v16710_v9  ;;  %v7014_v9 = vld [vmem:[#allocation16 + $0xc98] sm:$0xff]  ;;  %v16764_v11 = vcombine.high %v7013_v4, %v7017_v54  ;;  %v16763_v18 = vcombine.low %v7013_v4, %v7017_v54 }
 0x9e4   :  { %10366 = vmatpush1.bf16.msra.mxu1 %v16707_v13  ;;  %v16766_v13 = vcombine.high %v7014_v9, %v7018_v10 }
 0x9e5   :  { %10538 = vmatpush1.bf16.msra.mxu0 %v16709_v34  ;;  %10367 = vmatprep.subr.bf16.mxu1 %v16716_v14  ;;  %v7021_v34 = vld [vmem:[#allocation16 + $0xcd0] sm:$0xff] }
 0x9e6   :  { %10539 = vmatprep.subr.bf16.mxu0 %v16718_v15  ;;  %v7025_v14 = vld [vmem:[#allocation16 + $0xcf0] sm:$0xff]  ;;  %v7022_v15 = vld [vmem:[#allocation16 + $0xcd8] sm:$0xff] }
 0x9e7   :  { %v16772_v45 = vcombine.high %v7021_v34, %v7025_v14  ;;  %v16774_v29 = vcombine.high %v7022_v15, %v7026_v16  ;;  %v16773_v33 = vcombine.low %v7022_v15, %v7026_v16 }
 0x9e8   :  { %10368 = vmatpush1.bf16.msra.mxu1 %v16715_v5  ;;  %v7029_v5 = vld [vmem:[#allocation16 + $0xd10] sm:$0xff] }
 0x9e9   :  { %10540 = vmatpush1.bf16.msra.mxu0 %v16717_v30  ;;  %10369 = vmatprep.subr.bf16.mxu1 %v16724_v32  ;;  %v7033_v30 = vld [vmem:[#allocation16 + $0xd30] sm:$0xff]  ;;  %v7030_v32 = vld [vmem:[#allocation16 + $0xd18] sm:$0xff] }
 0x9ea   :  { %10541 = vmatprep.subr.bf16.mxu0 %v16726_v44  ;;  %v7034_v44 = vld [vmem:[#allocation16 + $0xd38] sm:$0xff]  ;;  %v16780_v35 = vcombine.high %v7029_v5, %v7033_v30 }
 0x9eb   :  { %v16782_v37 = vcombine.high %v7030_v32, %v7034_v44  ;;  %v16781_v38 = vcombine.low %v7030_v32, %v7034_v44  ;;  %v7061_v32 = vld [vmem:[#allocation16 + $0xe10] sm:$0xff] }
 0x9ec   :  { %10370 = vmatpush1.bf16.msra.mxu1 %v16723_v21  ;;  %v7041_v21 = vld [vmem:[#allocation16 + $0xd70] sm:$0xff] }
 0x9ed   :  { %10542 = vmatpush1.bf16.msra.mxu0 %v16725_v23  ;;  %10371 = vmatprep.subr.bf16.mxu1 %v16732_v28  ;;  %v7038_v23 = vld [vmem:[#allocation16 + $0xd58] sm:$0xff]  ;;  %v16788_v42 = vcombine.high %v7037_v20, %v7041_v21  ;;  %v7065_v44 = vld [vmem:[#allocation16 + $0xe30] sm:$0xff] }
 0x9ee   :  { %10543 = vmatprep.subr.bf16.mxu0 %v16734_v40  ;;  %v7042_v28 = vld [vmem:[#allocation16 + $0xd78] sm:$0xff]  ;;  %v16779_v40 = vcombine.low %v7029_v5, %v7033_v30 }
 0x9ef   :  { %v16790_v43 = vcombine.high %v7038_v23, %v7042_v28 }
 0x9f0   :  { %10372 = vmatpush1.bf16.msra.mxu1 %v16731_v63  ;;  %v7045_v63 = vld [vmem:[#allocation16 + $0xd90] sm:$0xff] }
 0x9f1   :  { %10544 = vmatpush1.bf16.msra.mxu0 %v16733_v49  ;;  %10373 = vmatprep.subr.bf16.mxu1 %v16740_v52  ;;  %v7049_v49 = vld [vmem:[#allocation16 + $0xdb0] sm:$0xff]  ;;  %v7316_v52 = vrot.slane %v18744_v41, %v18533_v47 }
 0x9f2   :  { %10545 = vmatprep.subr.bf16.mxu0 %v16742_v55  ;;  %v7324_v55 = vrot.slane %v18744_v41, %v18536_v48  ;;  %v16795_v54 = vcombine.low %v7045_v63, %v7049_v49 }
 0x9f4   :  { %10374 = vmatpush1.bf16.msra.mxu1 %v16739_v58  ;;  %v16787_v58 = vcombine.low %v7037_v20, %v7041_v21  ;;  %v7062_v20 = vld [vmem:[#allocation16 + $0xe18] sm:$0xff] }
 0x9f5   :  { %10546 = vmatpush1.bf16.msra.mxu0 %v16741_v60  ;;  %10386 = vmatprep.subr.bf16.mxu1 %v16748_v46  ;;  %v16789_v60 = vcombine.low %v7038_v23, %v7042_v28  ;;  %v16796_v46 = vcombine.high %v7045_v63, %v7049_v49  ;;  %v7066_v21 = vld [vmem:[#allocation16 + $0xe38] sm:$0xff]  ;;  %v16812_v63 = vcombine.high %v7061_v32, %v7065_v44 }
 0x9f6   :  { %10558 = vmatprep.subr.bf16.mxu0 %v16750_v62  ;;  %v7053_v62 = vld [vmem:[#allocation16 + $0xdd0] sm:$0xff] }
 0x9f7   :  { %10376 = vmatmul.mubr.bf16.vlgmr.msra.gmra.mrb[44].mxu1 %v18714_v17 }
 0x9f8   :  { %10548 = vmatmul.mubr.bf16.vlgmr.msra.gmra.mrb[48].mxu0 %v18714_v17  ;;  %10387 = vmatpush1.bf16.msra.mxu1 %v16747_v22  ;;  %v16765_v17 = vcombine.low %v7014_v9, %v7018_v10  ;;  %v7058_v9 = vld [vmem:[#allocation16 + $0xdf8] sm:$0xff] }
 0x9f9   :  { %10418 = vmatprep.mubr.bf16.mxu1 %v18720_v36  ;;  %10559 = vmatpush1.bf16.msra.mxu0 %v16749_v3 }
 0x9fa   :  { %10590 = vmatprep.mubr.bf16.mxu0 %v18720_v36  ;;  %10388 = vmatprep.subr.bf16.mxu1 %v16756_v59  ;;  %v16771_v36 = vcombine.low %v7021_v34, %v7025_v14  ;;  %v16803_v34 = vcombine.low %v7053_v62, %v7057_v1 }
 0x9fb   :  { %10560 = vmatprep.subr.bf16.mxu0 %v16758_v7  ;;  %v7054_v7 = vld [vmem:[#allocation16 + $0xdd8] sm:$0xff] }
 0x9fc   :  { %10389 = vmatpush1.bf16.msra.mxu1 %v16755_v12  ;;  %v16805_v5 = vcombine.low %v7054_v7, %v7058_v9  ;;  %v16806_v30 = vcombine.high %v7054_v7, %v7058_v9  ;;  %v7089_v7 = vld [vmem:[#allocation16 + $0xef0] sm:$0xff]  ;;  %v7086_v9 = vld [vmem:[#allocation16 + $0xed8] sm:$0xff] }
 0x9fd   :  { %10561 = vmatpush1.bf16.msra.mxu0 %v16757_v0  ;;  %10390 = vmatprep.subr.bf16.mxu1 %v16764_v11 }
 0x9fe   :  { %10562 = vmatprep.subr.bf16.mxu0 %v16766_v13  ;;  %v16797_v13 = vcombine.low %v7046_v53, %v7050_v56  ;;  %v7069_v53 = vld [vmem:[#allocation16 + $0xe50] sm:$0xff] }
 0x9ff   :  { %v7073_v56 = vld [vmem:[#allocation16 + $0xe70] sm:$0xff] }
 0xa00   :  { %10391 = vmatpush1.bf16.msra.mxu1 %v16763_v18 }
 0xa01   :  { %10563 = vmatpush1.bf16.msra.mxu0 %v16765_v17  ;;  %10392 = vmatprep.subr.bf16.mxu1 %v16772_v45  ;;  %v16804_v17 = vcombine.high %v7053_v62, %v7057_v1  ;;  %v7077_v1 = vld [vmem:[#allocation16 + $0xe90] sm:$0xff] }
 0xa02   :  { %10564 = vmatprep.subr.bf16.mxu0 %v16774_v29 }
 0xa04   :  { %10393 = vmatpush1.bf16.msra.mxu1 %v16771_v36 }
 0xa05   :  { %10565 = vmatpush1.bf16.msra.mxu0 %v16773_v33  ;;  %10394 = vmatprep.subr.bf16.mxu1 %v16780_v35 }
 0xa06   :  { %10566 = vmatprep.subr.bf16.mxu0 %v16782_v37 }
 0xa08   :  { %10395 = vmatpush1.bf16.msra.mxu1 %v16779_v40 }
 0xa09   :  { %10567 = vmatpush1.bf16.msra.mxu0 %v16781_v38  ;;  %10396 = vmatprep.subr.bf16.mxu1 %v16788_v42 }
 0xa0a   :  { %v10076_v2 = vpop.f32.mrb[40].mxu1  ;;  %v10248_v22 = vpop.f32.mrb[44].mxu0  ;;  %10568 = vmatprep.subr.bf16.mxu0 %v16790_v43 }
 0xa0b   :  { %v17584_v61 = vadd.f32 %v10076_v2, %v7316_v52  ;;  %v17588_v3 = vadd.f32 %v10248_v22, %v7324_v55  ;;  %v10078_v59 = vpop.f32.mrb[41].mxu1  ;;  %v10250_v4 = vpop.f32.mrb[45].mxu0  ;;  %v7081_v2 = vld [vmem:[#allocation16 + $0xeb0] sm:$0xff]  ;;  %v7078_v22 = vld [vmem:[#allocation16 + $0xe98] sm:$0xff] }
 0xa0c   :  { %v17585_v10 = vadd.f32 %v10078_v59, %v7320_v57  ;;  %v17589_v12 = vadd.f32 %v10250_v4, %v7328_v8  ;;  %v10080_v0 = vpop.f32.mrb[42].mxu1  ;;  %v10252_v11 = vpop.f32.mrb[46].mxu0  ;;  %10397 = vmatpush1.bf16.msra.mxu1 %v16787_v58  ;;  %v16811_v58 = vcombine.low %v7061_v32, %v7065_v44  ;;  %v16828_v59 = vcombine.high %v7077_v1, %v7081_v2  ;;  %v7102_v32 = vld [vmem:[#allocation16 + $0xf58] sm:$0xff] }
 0xa0d   :  { %v17586_v14 = vadd.f32 %v10080_v0, %v7316_v52  ;;  %v17590_v15 = vadd.f32 %v10252_v11, %v7324_v55  ;;  %10569 = vmatpush1.bf16.msra.mxu0 %v16789_v60  ;;  %v10082_v16 = vpop.f32.mrb[43].mxu1  ;;  %v10254_v18 = vpop.f32.mrb[47].mxu0  ;;  %10398 = vmatprep.subr.bf16.mxu1 %v16796_v46  ;;  %v10601_v36 = vmax.f32 %v17584_v61, 0.0  ;;  %v10603_v33 = vmax.f32 %v17588_v3, 0.0  ;;  %v7106_v44 = vld [vmem:[#allocation16 + $0xf78] sm:$0xff] }
 0xa0e   :  { %v17587_v45 = vadd.f32 %v10082_v16, %v7320_v57  ;;  %v17591_v29 = vadd.f32 %v10254_v18, %v7328_v8  ;;  %10570 = vmatprep.subr.bf16.mxu0 %v16798_v19  ;;  %v10602_v23 = vmax.f32 %v17585_v10, 0.0  ;;  %v10604_v28 = vmax.f32 %v17589_v12, 0.0  ;;  %v7070_v57 = vld [vmem:[#allocation16 + $0xe58] sm:$0xff] }
 0xa0f   :  { %v10609_v35 = vmax.f32 %v17586_v14, 0.0  ;;  %v10611_v37 = vmax.f32 %v17590_v15, 0.0  ;;  %v16814_v55 = vcombine.high %v7062_v20, %v7066_v21  ;;  %v7074_v8 = vld [vmem:[#allocation16 + $0xe78] sm:$0xff]  ;;  %v16813_v60 = vcombine.low %v7062_v20, %v7066_v21  ;;  %v7097_v14 = vld [vmem:[#allocation16 + $0xf30] sm:$0xff] }
 0xa10   :  { %v10610_v40 = vmax.f32 %v17587_v45, 0.0  ;;  %v10612_v38 = vmax.f32 %v17591_v29, 0.0  ;;  %10399 = vmatpush1.bf16.msra.mxu1 %v16795_v54  ;;  %v16820_v46 = vcombine.high %v7069_v53, %v7073_v56  ;;  %v16822_v62 = vcombine.high %v7070_v57, %v7074_v8  ;;  %v7082_v19 = vld [vmem:[#allocation16 + $0xeb8] sm:$0xff]  ;;  %v7085_v54 = vld [vmem:[#allocation16 + $0xed0] sm:$0xff] }
 0xa11   :  { %v18754_v42 = vpack.c.bf16 %v10609_v35, %v10601_v36  ;;  %v18756_v43 = vpack.c.bf16 %v10611_v37, %v10603_v33  ;;  %10571 = vmatpush1.bf16.msra.mxu0 %v16797_v13  ;;  %10400 = vmatprep.subr.bf16.mxu1 %v16804_v17  ;;  %v16819_v61 = vcombine.low %v7069_v53, %v7073_v56  ;;  %v7090_v10 = vld [vmem:[#allocation16 + $0xef8] sm:$0xff]  ;;  %v7109_v20 = vld [vmem:[#allocation16 + $0xf90] sm:$0xff] }
 0xa12   :  { %v18758_v49 = vpack.c.bf16 %v10610_v40, %v10602_v23  ;;  %v18760_v52 = vpack.c.bf16 %v10612_v38, %v10604_v28  ;;  %10572 = vmatprep.subr.bf16.mxu0 %v16806_v30  ;;  %v16821_v3 = vcombine.low %v7070_v57, %v7074_v8  ;;  %v16830_v4 = vcombine.high %v7078_v22, %v7082_v19  ;;  %v7094_v15 = vld [vmem:[#allocation16 + $0xf18] sm:$0xff]  ;;  %v7105_v30 = vld [vmem:[#allocation16 + $0xf70] sm:$0xff] }
 0xa13   :  { %v16827_v12 = vcombine.low %v7077_v1, %v7081_v2  ;;  %v16829_v0 = vcombine.low %v7078_v22, %v7082_v19  ;;  %v16836_v11 = vcombine.high %v7085_v54, %v7089_v7  ;;  %v16838_v13 = vcombine.high %v7086_v9, %v7090_v10  ;;  %v7098_v16 = vld [vmem:[#allocation16 + $0xf38] sm:$0xff]  ;;  %v7113_v21 = vld [vmem:[#allocation16 + $0xfb0] sm:$0xff] }
 0xa14   :  { %10401 = vmatpush1.bf16.msra.mxu1 %v16803_v34  ;;  %v7093_v34 = vld [vmem:[#allocation16 + $0xf10] sm:$0xff]  ;;  %v16835_v18 = vcombine.low %v7085_v54, %v7089_v7  ;;  %v16837_v17 = vcombine.low %v7086_v9, %v7090_v10  ;;  %v16846_v29 = vcombine.high %v7094_v15, %v7098_v16  ;;  %v16845_v33 = vcombine.low %v7094_v15, %v7098_v16  ;;  %v7110_v23 = vld [vmem:[#allocation16 + $0xf98] sm:$0xff]  ;;  %v10617_v16 = vld [vmem:[#allocation19] sm:$0xff] }
 0xa15   :  { %10573 = vmatpush1.bf16.msra.mxu0 %v16805_v5  ;;  %10402 = vmatprep.subr.bf16.mxu1 %v16812_v63  ;;  %v16844_v45 = vcombine.high %v7093_v34, %v7097_v14  ;;  %v7101_v5 = vld [vmem:[#allocation16 + $0xf50] sm:$0xff]  ;;  %v16843_v36 = vcombine.low %v7093_v34, %v7097_v14  ;;  %v16854_v37 = vcombine.high %v7102_v32, %v7106_v44  ;;  %v7114_v28 = vld [vmem:[#allocation16 + $0xfb8] sm:$0xff] }
 0xa16   :  { %10574 = vmatprep.subr.bf16.mxu0 %v16814_v55  ;;  %v16852_v35 = vcombine.high %v7101_v5, %v7105_v30  ;;  %v16851_v40 = vcombine.low %v7101_v5, %v7105_v30  ;;  %v16853_v38 = vcombine.low %v7102_v32, %v7106_v44  ;;  %v16860_v63 = vcombine.high %v7109_v20, %v7113_v21  ;;  %v7117_v53 = vld [vmem:[#allocation16 + $0xfd0] sm:$0xff]  ;;  %v7118_v57 = vld [vmem:[#allocation16 + $0xfd8] sm:$0xff] }
 0xa17   :  { %v16862_v55 = vcombine.high %v7110_v23, %v7114_v28  ;;  %v7121_v56 = vld [vmem:[#allocation16 + $0xff0] sm:$0xff]  ;;  %v7122_v8 = vld [vmem:[#allocation16 + $0xff8] sm:$0xff] }
 0xa18   :  { %10403 = vmatpush1.bf16.msra.mxu1 %v16811_v58  ;;  %v16859_v58 = vcombine.low %v7109_v20, %v7113_v21  ;;  %v16867_v1 = vcombine.low %v7117_v53, %v7121_v56  ;;  %v16869_v2 = vcombine.low %v7118_v57, %v7122_v8  ;;  %v10618_v5 = vld [vmem:[#allocation19 + $0x8] sm:$0xff] }
 0xa19   :  { %10575 = vmatpush1.bf16.msra.mxu0 %v16813_v60  ;;  %10404 = vmatprep.subr.bf16.mxu1 %v16820_v46  ;;  %v16861_v60 = vcombine.low %v7110_v23, %v7114_v28  ;;  %v16868_v46 = vcombine.high %v7117_v53, %v7121_v56  ;;  %v10622_v30 = vld [vmem:[#allocation19 + $0x28] sm:$0xff]  ;;  %v10625_v28 = vld [vmem:[#allocation19 + $0x40] sm:$0xff] }
 0xa1a   :  { %10576 = vmatprep.subr.bf16.mxu0 %v16822_v62  ;;  %v16870_v62 = vcombine.high %v7118_v57, %v7122_v8  ;;  %v16878_v23 = vcombine.high %v10618_v5, %v10622_v30  ;;  %v10630_v53 = vld [vmem:[#allocation19 + $0x68] sm:$0xff] }
 0xa1c   :  { %10405 = vmatpush1.bf16.msra.mxu1 %v16819_v61 }
 0xa1d   :  { %10577 = vmatpush1.bf16.msra.mxu0 %v16821_v3  ;;  %10406 = vmatprep.subr.bf16.mxu1 %v16828_v59 }
 0xa1e   :  { %10578 = vmatprep.subr.bf16.mxu0 %v16830_v4 }
 0xa20   :  { %10407 = vmatpush1.bf16.msra.mxu1 %v16827_v12 }
 0xa21   :  { %10579 = vmatpush1.bf16.msra.mxu0 %v16829_v0  ;;  %10408 = vmatprep.subr.bf16.mxu1 %v16836_v11 }
 0xa22   :  { %10580 = vmatprep.subr.bf16.mxu0 %v16838_v13 }
 0xa24   :  { %10409 = vmatpush1.bf16.msra.mxu1 %v16835_v18 }
 0xa25   :  { %10581 = vmatpush1.bf16.msra.mxu0 %v16837_v17  ;;  %10410 = vmatprep.subr.bf16.mxu1 %v16844_v45 }
 0xa26   :  { %10582 = vmatprep.subr.bf16.mxu0 %v16846_v29 }
 0xa28   :  { %10411 = vmatpush1.bf16.msra.mxu1 %v16843_v36 }
 0xa29   :  { %10583 = vmatpush1.bf16.msra.mxu0 %v16845_v33  ;;  %10412 = vmatprep.subr.bf16.mxu1 %v16852_v35 }
 0xa2a   :  { %10584 = vmatprep.subr.bf16.mxu0 %v16854_v37 }
 0xa2c   :  { %10413 = vmatpush1.bf16.msra.mxu1 %v16851_v40  ;;  %v10629_v40 = vld [vmem:[#allocation19 + $0x60] sm:$0xff] }
 0xa2d   :  { %10585 = vmatpush1.bf16.msra.mxu0 %v16853_v38  ;;  %10414 = vmatprep.subr.bf16.mxu1 %v16860_v63 }
 0xa2e   :  { %10586 = vmatprep.subr.bf16.mxu0 %v16862_v55  ;;  %v10626_v55 = vld [vmem:[#allocation19 + $0x48] sm:$0xff] }
 0xa30   :  { %10415 = vmatpush1.bf16.msra.mxu1 %v16859_v58  ;;  %v16877_v58 = vcombine.low %v10618_v5, %v10622_v30  ;;  %v10657_v5 = vld [vmem:[#allocation19 + $0x140] sm:$0xff] }
 0xa31   :  { %10587 = vmatpush1.bf16.msra.mxu0 %v16861_v60  ;;  %10416 = vmatprep.subr.bf16.mxu1 %v16868_v46  ;;  %v10661_v30 = vld [vmem:[#allocation19 + $0x160] sm:$0xff] }
 0xa32   :  { %10588 = vmatprep.subr.bf16.mxu0 %v16870_v62 }
 0xa34   :  { %10417 = vmatpush1.bf16.msra.mxu1 %v16867_v1  ;;  %v16884_v1 = vcombine.high %v10625_v28, %v10629_v40 }
 0xa35   :  { %10589 = vmatpush1.bf16.msra.mxu0 %v16869_v2  ;;  %11138 = vmatprep.subr.bf16.mxu1 %v18758_v49  ;;  %v7344_v49 = vrot.slane %v18744_v41, %v18598_v27 }
 0xa36   :  { %11181 = vmatprep.subr.bf16.mxu0 %v18760_v52 }
 0xa37   :  { %10419 = vmatmul.mubr.bf16.vlgmr.msra.gmra.mrb[44].mxu1 %v18718_v31 }
 0xa38   :  { %10591 = vmatmul.mubr.bf16.vlgmr.msra.gmra.mrb[48].mxu0 %v18718_v31  ;;  %11139 = vmatpush1.bf16.msra.mxu1 %v18754_v42  ;;  %v7332_v31 = vrot.slane %v18744_v41, %v18589_v24  ;;  %v7340_v42 = vrot.slane %v18744_v41, %v18592_v25 }
 0xa39   :  { %11182 = vmatpush1.bf16.msra.mxu0 %v18756_v43  ;;  %11170 = vmatprep.mubr.bf16.mxu1 %v18264_v39  ;;  %v7336_v43 = vrot.slane %v18744_v41, %v18595_v26  ;;  %v10621_v41 = vld [vmem:[#allocation19 + $0x20] sm:$0xff] }
 0xa3a   :  { %11213 = vmatprep.mubr.bf16.mxu0 %v18264_v39  ;;  %v16876_v37 = vcombine.high %v10617_v16, %v10621_v41  ;;  %v16875_v8 = vcombine.low %v10617_v16, %v10621_v41  ;;  %v10650_v16 = vld [vmem:[#allocation19 + $0x108] sm:$0xff] }
 0xa3b   :  { %v10654_v41 = vld [vmem:[#allocation19 + $0x128] sm:$0xff] }
 0xa3f   :  { %16871 = vmatmul.mubr.msk.bf16.vlgmr.msra.gmra.mrb[48].mxu1 %vm252_vm1, %v18522_v6 }
 0xa40   :  { %16872 = vmatmul.mubr.msk.bf16.vlgmr.msra.gmra.mrb[52].mxu0 %vm252_vm1, %v18522_v6  ;;  %11256 = vmatprep.mubr.bf16.mxu1 %v18264_v39 }
 0xa41   :  { %11299 = vmatprep.mubr.bf16.mxu0 %v18264_v39 }
 0xb0a   :  { %v10420_v52 = vpop.f32.mrb[44].mxu1 }
 0xb0b   :  { %v17592_v22 = vadd.f32 %v10420_v52, %v7332_v31  ;;  %v10592_v19 = vpop.f32.mrb[48].mxu0  ;;  %v10422_v61 = vpop.f32.mrb[45].mxu1  ;;  %v10637_v52 = vld [vmem:[#allocation19 + $0xa0] sm:$0xff] }
 0xb0c   :  { %v17596_v3 = vadd.f32 %v10592_v19, %v7340_v42  ;;  %v17593_v59 = vadd.f32 %v10422_v61, %v7336_v43  ;;  %v10594_v4 = vpop.f32.mrb[49].mxu0  ;;  %v10424_v54 = vpop.f32.mrb[46].mxu1  ;;  %v10634_v19 = vld [vmem:[#allocation19 + $0x88] sm:$0xff] }
 0xb0d   :  { %v17597_v7 = vadd.f32 %v10594_v4, %v7344_v49  ;;  %v17594_v9 = vadd.f32 %v10424_v54, %v7332_v31  ;;  %v10596_v10 = vpop.f32.mrb[50].mxu0  ;;  %v10426_v12 = vpop.f32.mrb[47].mxu1  ;;  %v10605_v34 = vmax.f32 %v17592_v22, 0.0  ;;  %v10638_v61 = vld [vmem:[#allocation19 + $0xa8] sm:$0xff] }
 0xb0e   :  { %v17598_v0 = vadd.f32 %v10596_v10, %v7340_v42  ;;  %v17595_v11 = vadd.f32 %v10426_v12, %v7336_v43  ;;  %v10598_v13 = vpop.f32.mrb[51].mxu0  ;;  %v10607_v18 = vmax.f32 %v17596_v3, 0.0  ;;  %v10606_v17 = vmax.f32 %v17593_v59, 0.0  ;;  %v10642_v10 = vld [vmem:[#allocation19 + $0xc8] sm:$0xff] }
 0xb0f   :  { %v10613_v14 = vmax.f32 %v17594_v9, 0.0  ;;  %v17599_v15 = vadd.f32 %v10598_v13, %v7344_v49  ;;  %v10608_v32 = vmax.f32 %v17597_v7, 0.0  ;;  %v16886_v43 = vcombine.high %v10626_v55, %v10630_v53  ;;  %v10633_v49 = vld [vmem:[#allocation19 + $0x80] sm:$0xff]  ;;  %v10646_v12 = vld [vmem:[#allocation19 + $0xe8] sm:$0xff] }
 0xb10   :  { %v10615_v45 = vmax.f32 %v17598_v0, 0.0  ;;  %v10614_v29 = vmax.f32 %v17595_v11, 0.0  ;;  %v16883_v3 = vcombine.low %v10625_v28, %v10629_v40  ;;  %v16885_v59 = vcombine.low %v10626_v55, %v10630_v53  ;;  %v10641_v7 = vld [vmem:[#allocation19 + $0xc0] sm:$0xff]  ;;  %v10670_v28 = vld [vmem:[#allocation19 + $0x1a8] sm:$0xff] }
 0xb11   :  { %v11134_v44 = vpack.c.bf16 %v10613_v14, %v10605_v34  ;;  %v10616_v36 = vmax.f32 %v17599_v15, 0.0  ;;  %v16892_v4 = vcombine.high %v10633_v49, %v10637_v52  ;;  %v16894_v54 = vcombine.high %v10634_v19, %v10638_v61  ;;  %v10645_v9 = vld [vmem:[#allocation19 + $0xe0] sm:$0xff] }
 0xb12   :  { %v11136_v33 = vpack.c.bf16 %v10615_v45, %v10607_v18  ;;  %v11135_v35 = vpack.c.bf16 %v10614_v29, %v10606_v17  ;;  %v11172_v20 = vpop.f32.mrb[48].mxu1  ;;  %v16891_v0 = vcombine.low %v10633_v49, %v10637_v52  ;;  %v16893_v11 = vcombine.low %v10634_v19, %v10638_v61  ;;  %v10649_v14 = vld [vmem:[#allocation19 + $0x100] sm:$0xff]  ;;  %v10682_v49 = vld [vmem:[#allocation19 + $0x208] sm:$0xff] }
 0xb13   :  { %v11137_v21 = vpack.c.bf16 %v10616_v36, %v10608_v32  ;;  %v11174_v38 = vpop.f32.mrb[49].mxu1  ;;  %v11215_v63 = vpop.f32.mrb[52].mxu0  ;;  %v16900_v13 = vcombine.high %v10641_v7, %v10645_v9  ;;  %v16902_v34 = vcombine.high %v10642_v10, %v10646_v12  ;;  %v10653_v15 = vld [vmem:[#allocation19 + $0x120] sm:$0xff]  ;;  %v16899_v18 = vcombine.low %v10641_v7, %v10645_v9  ;;  %v10658_v32 = vld [vmem:[#allocation19 + $0x148] sm:$0xff] }
 0xb14   :  { %11224 = vmatprep.subr.bf16.mxu1 %v11135_v35  ;;  %v11176_v56 = vpop.f32.mrb[50].mxu1  ;;  %v11217_v57 = vpop.f32.mrb[53].mxu0  ;;  %v16901_v17 = vcombine.low %v10642_v10, %v10646_v12  ;;  %v16908_v45 = vcombine.high %v10649_v14, %v10653_v15  ;;  %v16910_v29 = vcombine.high %v10650_v16, %v10654_v41  ;;  %v16907_v36 = vcombine.low %v10649_v14, %v10653_v15  ;;  %v10673_v53 = vld [vmem:[#allocation19 + $0x1c0] sm:$0xff]  ;;  %v10686_v52 = vld [vmem:[#allocation19 + $0x228] sm:$0xff] }
 0xb15   :  { %11267 = vmatprep.subr.bf16.mxu0 %v11137_v21  ;;  %11225 = vmatpush1.bf16.msra.mxu1 %v11134_v44  ;;  %v18784_v60 = vpack.c.bf16 %v11176_v56, %v11172_v20  ;;  %v11178_v46 = vpop.f32.mrb[51].mxu1  ;;  %v11219_v62 = vpop.f32.mrb[54].mxu0  ;;  %v10662_v44 = vld [vmem:[#allocation19 + $0x168] sm:$0xff]  ;;  %v16916_v35 = vcombine.high %v10657_v5, %v10661_v30  ;;  %v10665_v20 = vld [vmem:[#allocation19 + $0x180] sm:$0xff]  ;;  %v16915_v40 = vcombine.low %v10657_v5, %v10661_v30 }
 0xb16   :  { %11268 = vmatpush1.bf16.msra.mxu0 %v11136_v33  ;;  %13919 = vmatprep.subr.bf16.mxu1 %v16876_v37  ;;  %v18786_v2 = vpack.c.bf16 %v11178_v46, %v11174_v38  ;;  %v18788_v31 = vpack.c.bf16 %v11219_v62, %v11215_v63  ;;  %v11221_v42 = vpop.f32.mrb[55].mxu0  ;;  %v16909_v33 = vcombine.low %v10650_v16, %v10654_v41  ;;  %v10669_v21 = vld [vmem:[#allocation19 + $0x1a0] sm:$0xff]  ;;  %v10690_v7 = vld [vmem:[#allocation19 + $0x248] sm:$0xff] }
 0xb17   :  { %14091 = vmatprep.subr.bf16.mxu0 %v16878_v23  ;;  %v18790_v22 = vpack.c.bf16 %v11221_v42, %v11217_v57  ;;  %v16918_v37 = vcombine.high %v10658_v32, %v10662_v44  ;;  %v10666_v23 = vld [vmem:[#allocation19 + $0x188] sm:$0xff]  ;;  %v16917_v38 = vcombine.low %v10658_v32, %v10662_v44  ;;  %v16924_v63 = vcombine.high %v10665_v20, %v10669_v21  ;;  %v10677_v56 = vld [vmem:[#allocation19 + $0x1e0] sm:$0xff] }
 0xb18   :  { %16873 = vmatmul.mubr.msk.bf16.vlgmr.msra.gmra.mrb[52].mxu1 %vm252_vm1, %v18522_v6  ;;  %v16926_v55 = vcombine.high %v10666_v23, %v10670_v28  ;;  %v10674_v57 = vld [vmem:[#allocation19 + $0x1c8] sm:$0xff]  ;;  %v16925_v46 = vcombine.low %v10666_v23, %v10670_v28  ;;  %v16932_v62 = vcombine.high %v10673_v53, %v10677_v56  ;;  %v10681_v42 = vld [vmem:[#allocation19 + $0x200] sm:$0xff]  ;;  %v16931_v19 = vcombine.low %v10673_v53, %v10677_v56 }
 0xb19   :  { %16874 = vmatmul.mubr.msk.bf16.vlgmr.msra.gmra.mrb[56].mxu0 %vm252_vm1, %v18522_v6  ;;  %13920 = vmatpush1.bf16.msra.mxu1 %v16875_v8  ;;  %v10678_v8 = vld [vmem:[#allocation19 + $0x1e8] sm:$0xff]  ;;  %v16941_v12 = vcombine.low %v10682_v49, %v10686_v52 }
 0xb1a   :  { %14092 = vmatpush1.bf16.msra.mxu0 %v16877_v58  ;;  %13921 = vmatprep.subr.bf16.mxu1 %v16884_v1  ;;  %v16923_v58 = vcombine.low %v10665_v20, %v10669_v21  ;;  %v16934_v1 = vcombine.high %v10674_v57, %v10678_v8  ;;  %v16933_v61 = vcombine.low %v10674_v57, %v10678_v8  ;;  %v10694_v9 = vld [vmem:[#allocation19 + $0x268] sm:$0xff] }
 0xb1b   :  { %14093 = vmatprep.subr.bf16.mxu0 %v16886_v43  ;;  %13951 = vmatprep.mubr.bf16.mxu1 %v18786_v2  ;;  %v10685_v43 = vld [vmem:[#allocation19 + $0x220] sm:$0xff]  ;;  %v10698_v14 = vld [vmem:[#allocation19 + $0x288] sm:$0xff]  ;;  %v16949_v41 = vcombine.low %v10690_v7, %v10694_v9 }
 0xb1c   :  { %14123 = vmatprep.mubr.bf16.mxu0 %v18786_v2  ;;  %v16939_v10 = vcombine.low %v10681_v42, %v10685_v43  ;;  %v10702_v15 = vld [vmem:[#allocation19 + $0x2a8] sm:$0xff] }
 0xb1d   :  { %13922 = vmatpush1.bf16.msra.mxu1 %v16883_v3  ;;  %v16940_v3 = vcombine.high %v10681_v42, %v10685_v43  ;;  %v10706_v5 = vld [vmem:[#allocation19 + $0x2c8] sm:$0xff]  ;;  %v16957_v44 = vcombine.low %v10698_v14, %v10702_v15 }
 0xb1e   :  { %14094 = vmatpush1.bf16.msra.mxu0 %v16885_v59  ;;  %13923 = vmatprep.subr.bf16.mxu1 %v16892_v4  ;;  %v16942_v59 = vcombine.high %v10682_v49, %v10686_v52  ;;  %v10689_v4 = vld [vmem:[#allocation19 + $0x240] sm:$0xff]  ;;  %v10710_v30 = vld [vmem:[#allocation19 + $0x2e8] sm:$0xff] }
 0xb1f   :  { %14095 = vmatprep.subr.bf16.mxu0 %v16894_v54  ;;  %v10693_v54 = vld [vmem:[#allocation19 + $0x260] sm:$0xff]  ;;  %v10714_v20 = vld [vmem:[#allocation19 + $0x308] sm:$0xff]  ;;  %v16965_v28 = vcombine.low %v10706_v5, %v10710_v30 }
 0xb20   :  { %v16947_v16 = vcombine.low %v10689_v4, %v10693_v54  ;;  %v10718_v21 = vld [vmem:[#allocation19 + $0x328] sm:$0xff] }
 0xb21   :  { %13924 = vmatpush1.bf16.msra.mxu1 %v16891_v0  ;;  %v16948_v0 = vcombine.high %v10689_v4, %v10693_v54  ;;  %v10722_v53 = vld [vmem:[#allocation19 + $0x348] sm:$0xff]  ;;  %v16973_v8 = vcombine.low %v10714_v20, %v10718_v21 }
 0xb22   :  { %14096 = vmatpush1.bf16.msra.mxu0 %v16893_v11  ;;  %13925 = vmatprep.subr.bf16.mxu1 %v16900_v13  ;;  %v16950_v11 = vcombine.high %v10690_v7, %v10694_v9  ;;  %v10697_v13 = vld [vmem:[#allocation19 + $0x280] sm:$0xff]  ;;  %v10726_v56 = vld [vmem:[#allocation19 + $0x368] sm:$0xff] }
 0xb23   :  { %14097 = vmatprep.subr.bf16.mxu0 %v16902_v34  ;;  %v10701_v34 = vld [vmem:[#allocation19 + $0x2a0] sm:$0xff]  ;;  %v10730_v42 = vld [vmem:[#allocation19 + $0x388] sm:$0xff]  ;;  %v16981_v52 = vcombine.low %v10722_v53, %v10726_v56 }
 0xb24   :  { %v16955_v32 = vcombine.low %v10697_v13, %v10701_v34  ;;  %v10734_v43 = vld [vmem:[#allocation19 + $0x3a8] sm:$0xff] }
 0xb25   :  { %13926 = vmatpush1.bf16.msra.mxu1 %v16899_v18  ;;  %v16956_v18 = vcombine.high %v10697_v13, %v10701_v34  ;;  %v10738_v4 = vld [vmem:[#allocation19 + $0x3c8] sm:$0xff]  ;;  %v16989_v9 = vcombine.low %v10730_v42, %v10734_v43 }
 0xb26   :  { %14098 = vmatpush1.bf16.msra.mxu0 %v16901_v17  ;;  %13927 = vmatprep.subr.bf16.mxu1 %v16908_v45  ;;  %v16958_v17 = vcombine.high %v10698_v14, %v10702_v15  ;;  %v10705_v45 = vld [vmem:[#allocation19 + $0x2c0] sm:$0xff]  ;;  %v10742_v54 = vld [vmem:[#allocation19 + $0x3e8] sm:$0xff] }
 0xb27   :  { %14099 = vmatprep.subr.bf16.mxu0 %v16910_v29  ;;  %v10709_v29 = vld [vmem:[#allocation19 + $0x2e0] sm:$0xff]  ;;  %v10746_v13 = vld [vmem:[#allocation19 + $0x408] sm:$0xff]  ;;  %v16997_v15 = vcombine.low %v10738_v4, %v10742_v54 }
 0xb28   :  { %v16963_v23 = vcombine.low %v10705_v45, %v10709_v29  ;;  %v10750_v34 = vld [vmem:[#allocation19 + $0x428] sm:$0xff] }
 0xb29   :  { %13928 = vmatpush1.bf16.msra.mxu1 %v16907_v36  ;;  %v16964_v36 = vcombine.high %v10705_v45, %v10709_v29  ;;  %v10754_v45 = vld [vmem:[#allocation19 + $0x448] sm:$0xff] }
 0xb2a   :  { %14100 = vmatpush1.bf16.msra.mxu0 %v16909_v33  ;;  %13929 = vmatprep.subr.bf16.mxu1 %v16916_v35  ;;  %v16966_v33 = vcombine.high %v10706_v5, %v10710_v30  ;;  %v10713_v35 = vld [vmem:[#allocation19 + $0x300] sm:$0xff]  ;;  %v10758_v29 = vld [vmem:[#allocation19 + $0x468] sm:$0xff]  ;;  %v17005_v30 = vcombine.low %v10746_v13, %v10750_v34 }
 0xb2b   :  { %14101 = vmatprep.subr.bf16.mxu0 %v16918_v37  ;;  %v10717_v37 = vld [vmem:[#allocation19 + $0x320] sm:$0xff] }
 0xb2c   :  { %v16971_v57 = vcombine.low %v10713_v35, %v10717_v37 }
 0xb2d   :  { %13930 = vmatpush1.bf16.msra.mxu1 %v16915_v40  ;;  %v16972_v40 = vcombine.high %v10713_v35, %v10717_v37  ;;  %v10762_v35 = vld [vmem:[#allocation19 + $0x488] sm:$0xff] }
 0xb2e   :  { %14102 = vmatpush1.bf16.msra.mxu0 %v16917_v38  ;;  %13931 = vmatprep.subr.bf16.mxu1 %v16924_v63  ;;  %v16974_v38 = vcombine.high %v10714_v20, %v10718_v21  ;;  %v10721_v63 = vld [vmem:[#allocation19 + $0x340] sm:$0xff]  ;;  %v10766_v37 = vld [vmem:[#allocation19 + $0x4a8] sm:$0xff]  ;;  %v17013_v21 = vcombine.low %v10754_v45, %v10758_v29 }
 0xb2f   :  { %14103 = vmatprep.subr.bf16.mxu0 %v16926_v55  ;;  %v10725_v55 = vld [vmem:[#allocation19 + $0x360] sm:$0xff] }
 0xb30   :  { %v16979_v49 = vcombine.low %v10721_v63, %v10725_v55 }
 0xb31   :  { %13932 = vmatpush1.bf16.msra.mxu1 %v16923_v58  ;;  %v16980_v58 = vcombine.high %v10721_v63, %v10725_v55  ;;  %v10770_v63 = vld [vmem:[#allocation19 + $0x4c8] sm:$0xff] }
 0xb32   :  { %14104 = vmatpush1.bf16.msra.mxu0 %v16925_v46  ;;  %13933 = vmatprep.subr.bf16.mxu1 %v16932_v62  ;;  %v16982_v46 = vcombine.high %v10722_v53, %v10726_v56  ;;  %v10729_v62 = vld [vmem:[#allocation19 + $0x380] sm:$0xff]  ;;  %v10774_v55 = vld [vmem:[#allocation19 + $0x4e8] sm:$0xff]  ;;  %v17021_v56 = vcombine.low %v10762_v35, %v10766_v37 }
 0xb33   :  { %14105 = vmatprep.subr.bf16.mxu0 %v16934_v1  ;;  %v10733_v1 = vld [vmem:[#allocation19 + $0x3a0] sm:$0xff] }
 0xb34   :  { %v16987_v7 = vcombine.low %v10729_v62, %v10733_v1 }
 0xb35   :  { %13934 = vmatpush1.bf16.msra.mxu1 %v16931_v19  ;;  %v16988_v19 = vcombine.high %v10729_v62, %v10733_v1  ;;  %v10778_v62 = vld [vmem:[#allocation19 + $0x508] sm:$0xff] }
 0xb36   :  { %14106 = vmatpush1.bf16.msra.mxu0 %v16933_v61  ;;  %13935 = vmatprep.subr.bf16.mxu1 %v16940_v3  ;;  %v16990_v61 = vcombine.high %v10730_v42, %v10734_v43  ;;  %v10737_v3 = vld [vmem:[#allocation19 + $0x3c0] sm:$0xff]  ;;  %v10782_v1 = vld [vmem:[#allocation19 + $0x528] sm:$0xff]  ;;  %v17029_v43 = vcombine.low %v10770_v63, %v10774_v55 }
 0xb37   :  { %14107 = vmatprep.subr.bf16.mxu0 %v16942_v59  ;;  %v10741_v59 = vld [vmem:[#allocation19 + $0x3e0] sm:$0xff] }
 0xb38   :  { %v16995_v14 = vcombine.low %v10737_v3, %v10741_v59 }
 0xb39   :  { %13936 = vmatpush1.bf16.msra.mxu1 %v16939_v10  ;;  %v16996_v10 = vcombine.high %v10737_v3, %v10741_v59  ;;  %v10786_v3 = vld [vmem:[#allocation19 + $0x548] sm:$0xff] }
 0xb3a   :  { %14108 = vmatpush1.bf16.msra.mxu0 %v16941_v12  ;;  %13937 = vmatprep.subr.bf16.mxu1 %v16948_v0  ;;  %v16998_v12 = vcombine.high %v10738_v4, %v10742_v54  ;;  %v10745_v0 = vld [vmem:[#allocation19 + $0x400] sm:$0xff]  ;;  %v10790_v59 = vld [vmem:[#allocation19 + $0x568] sm:$0xff]  ;;  %v17037_v54 = vcombine.low %v10778_v62, %v10782_v1 }
 0xb3b   :  { %14109 = vmatprep.subr.bf16.mxu0 %v16950_v11  ;;  %v10749_v11 = vld [vmem:[#allocation19 + $0x420] sm:$0xff] }
 0xb3c   :  { %v17003_v5 = vcombine.low %v10745_v0, %v10749_v11 }
 0xb3d   :  { %13938 = vmatpush1.bf16.msra.mxu1 %v16947_v16  ;;  %v17004_v16 = vcombine.high %v10745_v0, %v10749_v11  ;;  %v10794_v0 = vld [vmem:[#allocation19 + $0x588] sm:$0xff] }
 0xb3e   :  { %14110 = vmatpush1.bf16.msra.mxu0 %v16949_v41  ;;  %13939 = vmatprep.subr.bf16.mxu1 %v16956_v18  ;;  %v17006_v41 = vcombine.high %v10746_v13, %v10750_v34  ;;  %v10753_v18 = vld [vmem:[#allocation19 + $0x440] sm:$0xff]  ;;  %v10798_v11 = vld [vmem:[#allocation19 + $0x5a8] sm:$0xff]  ;;  %v17045_v34 = vcombine.low %v10786_v3, %v10790_v59 }
 0xb3f   :  { %14111 = vmatprep.subr.bf16.mxu0 %v16958_v17  ;;  %v10757_v17 = vld [vmem:[#allocation19 + $0x460] sm:$0xff] }
 0xb40   :  { %v17011_v20 = vcombine.low %v10753_v18, %v10757_v17 }
 0xb41   :  { %13940 = vmatpush1.bf16.msra.mxu1 %v16955_v32  ;;  %v17012_v32 = vcombine.high %v10753_v18, %v10757_v17  ;;  %v10802_v18 = vld [vmem:[#allocation19 + $0x5c8] sm:$0xff] }
 0xb42   :  { %14112 = vmatpush1.bf16.msra.mxu0 %v16957_v44  ;;  %13941 = vmatprep.subr.bf16.mxu1 %v16964_v36  ;;  %v17014_v44 = vcombine.high %v10754_v45, %v10758_v29  ;;  %v10761_v36 = vld [vmem:[#allocation19 + $0x480] sm:$0xff]  ;;  %v10806_v17 = vld [vmem:[#allocation19 + $0x5e8] sm:$0xff]  ;;  %v17053_v29 = vcombine.low %v10794_v0, %v10798_v11 }
 0xb43   :  { %14113 = vmatprep.subr.bf16.mxu0 %v16966_v33  ;;  %v10765_v33 = vld [vmem:[#allocation19 + $0x4a0] sm:$0xff] }
 0xb44   :  { %v17019_v53 = vcombine.low %v10761_v36, %v10765_v33 }
 0xb45   :  { %13942 = vmatpush1.bf16.msra.mxu1 %v16963_v23  ;;  %v17020_v23 = vcombine.high %v10761_v36, %v10765_v33  ;;  %v10810_v36 = vld [vmem:[#allocation19 + $0x608] sm:$0xff] }
 0xb46   :  { %14114 = vmatpush1.bf16.msra.mxu0 %v16965_v28  ;;  %13943 = vmatprep.subr.bf16.mxu1 %v16972_v40  ;;  %v17022_v28 = vcombine.high %v10762_v35, %v10766_v37  ;;  %v10769_v40 = vld [vmem:[#allocation19 + $0x4c0] sm:$0xff]  ;;  %v10814_v33 = vld [vmem:[#allocation19 + $0x628] sm:$0xff]  ;;  %v17061_v37 = vcombine.low %v10802_v18, %v10806_v17 }
 0xb47   :  { %14115 = vmatprep.subr.bf16.mxu0 %v16974_v38  ;;  %v10773_v38 = vld [vmem:[#allocation19 + $0x4e0] sm:$0xff] }
 0xb48   :  { %v17027_v42 = vcombine.low %v10769_v40, %v10773_v38 }
 0xb49   :  { %13944 = vmatpush1.bf16.msra.mxu1 %v16971_v57  ;;  %v17028_v57 = vcombine.high %v10769_v40, %v10773_v38  ;;  %v10818_v40 = vld [vmem:[#allocation19 + $0x648] sm:$0xff] }
 0xb4a   :  { %14116 = vmatpush1.bf16.msra.mxu0 %v16973_v8  ;;  %13945 = vmatprep.subr.bf16.mxu1 %v16980_v58  ;;  %v17030_v8 = vcombine.high %v10770_v63, %v10774_v55  ;;  %v10777_v58 = vld [vmem:[#allocation19 + $0x500] sm:$0xff]  ;;  %v10822_v38 = vld [vmem:[#allocation19 + $0x668] sm:$0xff]  ;;  %v17069_v55 = vcombine.low %v10810_v36, %v10814_v33 }
 0xb4b   :  { %14117 = vmatprep.subr.bf16.mxu0 %v16982_v46  ;;  %v10781_v46 = vld [vmem:[#allocation19 + $0x520] sm:$0xff] }
 0xb4c   :  { %v17035_v4 = vcombine.low %v10777_v58, %v10781_v46 }
 0xb4d   :  { %13946 = vmatpush1.bf16.msra.mxu1 %v16979_v49  ;;  %v17036_v49 = vcombine.high %v10777_v58, %v10781_v46  ;;  %v10826_v58 = vld [vmem:[#allocation19 + $0x688] sm:$0xff] }
 0xb4e   :  { %14118 = vmatpush1.bf16.msra.mxu0 %v16981_v52  ;;  %13947 = vmatprep.subr.bf16.mxu1 %v16988_v19  ;;  %v17038_v52 = vcombine.high %v10778_v62, %v10782_v1  ;;  %v10785_v19 = vld [vmem:[#allocation19 + $0x540] sm:$0xff]  ;;  %v10830_v46 = vld [vmem:[#allocation19 + $0x6a8] sm:$0xff]  ;;  %v17077_v1 = vcombine.low %v10818_v40, %v10822_v38 }
 0xb4f   :  { %14119 = vmatprep.subr.bf16.mxu0 %v16990_v61  ;;  %v10789_v61 = vld [vmem:[#allocation19 + $0x560] sm:$0xff] }
 0xb50   :  { %v17043_v13 = vcombine.low %v10785_v19, %v10789_v61 }
 0xb51   :  { %13948 = vmatpush1.bf16.msra.mxu1 %v16987_v7  ;;  %v17044_v7 = vcombine.high %v10785_v19, %v10789_v61  ;;  %v10834_v19 = vld [vmem:[#allocation19 + $0x6c8] sm:$0xff] }
 0xb52   :  { %14120 = vmatpush1.bf16.msra.mxu0 %v16989_v9  ;;  %13949 = vmatprep.subr.bf16.mxu1 %v16996_v10  ;;  %v17046_v9 = vcombine.high %v10786_v3, %v10790_v59  ;;  %v10793_v10 = vld [vmem:[#allocation19 + $0x580] sm:$0xff]  ;;  %v10838_v61 = vld [vmem:[#allocation19 + $0x6e8] sm:$0xff]  ;;  %v17085_v59 = vcombine.low %v10826_v58, %v10830_v46 }
 0xb53   :  { %14121 = vmatprep.subr.bf16.mxu0 %v16998_v12  ;;  %v10797_v12 = vld [vmem:[#allocation19 + $0x5a0] sm:$0xff] }
 0xb54   :  { %v17051_v45 = vcombine.low %v10793_v10, %v10797_v12 }
 0xb55   :  { %13950 = vmatpush1.bf16.msra.mxu1 %v16995_v14  ;;  %v17052_v14 = vcombine.high %v10793_v10, %v10797_v12  ;;  %v10842_v10 = vld [vmem:[#allocation19 + $0x708] sm:$0xff] }
 0xb56   :  { %14122 = vmatpush1.bf16.msra.mxu0 %v16997_v15  ;;  %13962 = vmatprep.subr.bf16.mxu1 %v17004_v16  ;;  %v17054_v15 = vcombine.high %v10794_v0, %v10798_v11  ;;  %v10801_v16 = vld [vmem:[#allocation19 + $0x5c0] sm:$0xff]  ;;  %v10846_v12 = vld [vmem:[#allocation19 + $0x728] sm:$0xff]  ;;  %v17093_v11 = vcombine.low %v10834_v19, %v10838_v61 }
 0xb57   :  { %14134 = vmatprep.subr.bf16.mxu0 %v17006_v41  ;;  %v10805_v41 = vld [vmem:[#allocation19 + $0x5e0] sm:$0xff] }
 0xb58   :  { %13952 = vmatmul.mubr.bf16.vlgmr.msra.gmra.mrb[56].mxu1 %v18784_v60  ;;  %v17059_v35 = vcombine.low %v10801_v16, %v10805_v41 }
 0xb59   :  { %14124 = vmatmul.mubr.bf16.vlgmr.msra.gmra.mrb[60].mxu0 %v18784_v60  ;;  %13963 = vmatpush1.bf16.msra.mxu1 %v17003_v5  ;;  %v17060_v5 = vcombine.high %v10801_v16, %v10805_v41  ;;  %v10850_v16 = vld [vmem:[#allocation19 + $0x748] sm:$0xff] }
 0xb5a   :  { %14135 = vmatpush1.bf16.msra.mxu0 %v17005_v30  ;;  %13964 = vmatprep.subr.bf16.mxu1 %v17012_v32  ;;  %v17062_v30 = vcombine.high %v10802_v18, %v10806_v17  ;;  %v10809_v32 = vld [vmem:[#allocation19 + $0x600] sm:$0xff]  ;;  %v10854_v41 = vld [vmem:[#allocation19 + $0x768] sm:$0xff]  ;;  %v17101_v17 = vcombine.low %v10842_v10, %v10846_v12 }
 0xb5b   :  { %14136 = vmatprep.subr.bf16.mxu0 %v17014_v44  ;;  %13994 = vmatprep.mubr.bf16.mxu1 %v18790_v22  ;;  %v10813_v44 = vld [vmem:[#allocation19 + $0x620] sm:$0xff] }
 0xb5c   :  { %14166 = vmatprep.mubr.bf16.mxu0 %v18790_v22  ;;  %v17067_v63 = vcombine.low %v10809_v32, %v10813_v44 }
 0xb5d   :  { %13965 = vmatpush1.bf16.msra.mxu1 %v17011_v20  ;;  %v17068_v20 = vcombine.high %v10809_v32, %v10813_v44  ;;  %v10858_v32 = vld [vmem:[#allocation19 + $0x788] sm:$0xff] }
 0xb5e   :  { %14137 = vmatpush1.bf16.msra.mxu0 %v17013_v21  ;;  %13966 = vmatprep.subr.bf16.mxu1 %v17020_v23  ;;  %v17070_v21 = vcombine.high %v10810_v36, %v10814_v33  ;;  %v10817_v23 = vld [vmem:[#allocation19 + $0x640] sm:$0xff]  ;;  %v10862_v44 = vld [vmem:[#allocation19 + $0x7a8] sm:$0xff]  ;;  %v17109_v33 = vcombine.low %v10850_v16, %v10854_v41 }
 0xb5f   :  { %14138 = vmatprep.subr.bf16.mxu0 %v17022_v28  ;;  %v10821_v28 = vld [vmem:[#allocation19 + $0x660] sm:$0xff] }
 0xb60   :  { %v17075_v62 = vcombine.low %v10817_v23, %v10821_v28 }
 0xb61   :  { %13967 = vmatpush1.bf16.msra.mxu1 %v17019_v53  ;;  %v17076_v53 = vcombine.high %v10817_v23, %v10821_v28  ;;  %v10866_v23 = vld [vmem:[#allocation19 + $0x7c8] sm:$0xff] }
 0xb62   :  { %14139 = vmatpush1.bf16.msra.mxu0 %v17021_v56  ;;  %13968 = vmatprep.subr.bf16.mxu1 %v17028_v57  ;;  %v17078_v56 = vcombine.high %v10818_v40, %v10822_v38  ;;  %v10825_v57 = vld [vmem:[#allocation19 + $0x680] sm:$0xff]  ;;  %v10870_v28 = vld [vmem:[#allocation19 + $0x7e8] sm:$0xff]  ;;  %v17117_v38 = vcombine.low %v10858_v32, %v10862_v44 }
 0xb63   :  { %14140 = vmatprep.subr.bf16.mxu0 %v17030_v8  ;;  %v10829_v8 = vld [vmem:[#allocation19 + $0x6a0] sm:$0xff] }
 0xb64   :  { %v17083_v3 = vcombine.low %v10825_v57, %v10829_v8 }
 0xb65   :  { %13969 = vmatpush1.bf16.msra.mxu1 %v17027_v42  ;;  %v17084_v42 = vcombine.high %v10825_v57, %v10829_v8  ;;  %v10874_v57 = vld [vmem:[#allocation19 + $0x808] sm:$0xff] }
 0xb66   :  { %14141 = vmatpush1.bf16.msra.mxu0 %v17029_v43  ;;  %13970 = vmatprep.subr.bf16.mxu1 %v17036_v49  ;;  %v17086_v43 = vcombine.high %v10826_v58, %v10830_v46  ;;  %v10833_v49 = vld [vmem:[#allocation19 + $0x6c0] sm:$0xff]  ;;  %v10878_v8 = vld [vmem:[#allocation19 + $0x828] sm:$0xff]  ;;  %v17125_v46 = vcombine.low %v10866_v23, %v10870_v28 }
 0xb67   :  { %14142 = vmatprep.subr.bf16.mxu0 %v17038_v52  ;;  %v10837_v52 = vld [vmem:[#allocation19 + $0x6e0] sm:$0xff] }
 0xb68   :  { %v17091_v0 = vcombine.low %v10833_v49, %v10837_v52 }
 0xb69   :  { %13971 = vmatpush1.bf16.msra.mxu1 %v17035_v4  ;;  %v17092_v4 = vcombine.high %v10833_v49, %v10837_v52  ;;  %v10882_v49 = vld [vmem:[#allocation19 + $0x848] sm:$0xff] }
 0xb6a   :  { %14143 = vmatpush1.bf16.msra.mxu0 %v17037_v54  ;;  %13972 = vmatprep.subr.bf16.mxu1 %v17044_v7  ;;  %v17094_v54 = vcombine.high %v10834_v19, %v10838_v61  ;;  %v10841_v7 = vld [vmem:[#allocation19 + $0x700] sm:$0xff]  ;;  %v10886_v52 = vld [vmem:[#allocation19 + $0x868] sm:$0xff]  ;;  %v17133_v61 = vcombine.low %v10874_v57, %v10878_v8 }
 0xb6b   :  { %14144 = vmatprep.subr.bf16.mxu0 %v17046_v9  ;;  %v10845_v9 = vld [vmem:[#allocation19 + $0x720] sm:$0xff] }
 0xb6c   :  { %v17099_v18 = vcombine.low %v10841_v7, %v10845_v9 }
 0xb6d   :  { %13973 = vmatpush1.bf16.msra.mxu1 %v17043_v13  ;;  %v17100_v13 = vcombine.high %v10841_v7, %v10845_v9  ;;  %v10890_v7 = vld [vmem:[#allocation19 + $0x888] sm:$0xff] }
 0xb6e   :  { %14145 = vmatpush1.bf16.msra.mxu0 %v17045_v34  ;;  %13974 = vmatprep.subr.bf16.mxu1 %v17052_v14  ;;  %v17102_v34 = vcombine.high %v10842_v10, %v10846_v12  ;;  %v10849_v14 = vld [vmem:[#allocation19 + $0x740] sm:$0xff]  ;;  %v10894_v9 = vld [vmem:[#allocation19 + $0x8a8] sm:$0xff]  ;;  %v17141_v12 = vcombine.low %v10882_v49, %v10886_v52 }
 0xb6f   :  { %14146 = vmatprep.subr.bf16.mxu0 %v17054_v15  ;;  %v10853_v15 = vld [vmem:[#allocation19 + $0x760] sm:$0xff] }
 0xb70   :  { %v17107_v36 = vcombine.low %v10849_v14, %v10853_v15 }
 0xb71   :  { %13975 = vmatpush1.bf16.msra.mxu1 %v17051_v45  ;;  %v17108_v45 = vcombine.high %v10849_v14, %v10853_v15  ;;  %v10898_v14 = vld [vmem:[#allocation19 + $0x8c8] sm:$0xff] }
 0xb72   :  { %14147 = vmatpush1.bf16.msra.mxu0 %v17053_v29  ;;  %13976 = vmatprep.subr.bf16.mxu1 %v17060_v5  ;;  %v17110_v29 = vcombine.high %v10850_v16, %v10854_v41  ;;  %v10857_v5 = vld [vmem:[#allocation19 + $0x780] sm:$0xff]  ;;  %v10902_v15 = vld [vmem:[#allocation19 + $0x8e8] sm:$0xff]  ;;  %v17149_v41 = vcombine.low %v10890_v7, %v10894_v9 }
 0xb73   :  { %14148 = vmatprep.subr.bf16.mxu0 %v17062_v30  ;;  %v10861_v30 = vld [vmem:[#allocation19 + $0x7a0] sm:$0xff] }
 0xb74   :  { %v17115_v40 = vcombine.low %v10857_v5, %v10861_v30 }
 0xb75   :  { %13977 = vmatpush1.bf16.msra.mxu1 %v17059_v35  ;;  %v17116_v35 = vcombine.high %v10857_v5, %v10861_v30  ;;  %v10906_v5 = vld [vmem:[#allocation19 + $0x908] sm:$0xff] }
 0xb76   :  { %14149 = vmatpush1.bf16.msra.mxu0 %v17061_v37  ;;  %13978 = vmatprep.subr.bf16.mxu1 %v17068_v20  ;;  %v17118_v37 = vcombine.high %v10858_v32, %v10862_v44  ;;  %v10865_v20 = vld [vmem:[#allocation19 + $0x7c0] sm:$0xff]  ;;  %v10910_v30 = vld [vmem:[#allocation19 + $0x928] sm:$0xff]  ;;  %v17157_v44 = vcombine.low %v10898_v14, %v10902_v15 }
 0xb77   :  { %14150 = vmatprep.subr.bf16.mxu0 %v17070_v21  ;;  %v10869_v21 = vld [vmem:[#allocation19 + $0x7e0] sm:$0xff] }
 0xb78   :  { %v17123_v58 = vcombine.low %v10865_v20, %v10869_v21 }
 0xb79   :  { %13979 = vmatpush1.bf16.msra.mxu1 %v17067_v63  ;;  %v17124_v63 = vcombine.high %v10865_v20, %v10869_v21  ;;  %v10914_v20 = vld [vmem:[#allocation19 + $0x948] sm:$0xff] }
 0xb7a   :  { %14151 = vmatpush1.bf16.msra.mxu0 %v17069_v55  ;;  %13980 = vmatprep.subr.bf16.mxu1 %v17076_v53  ;;  %v17126_v55 = vcombine.high %v10866_v23, %v10870_v28  ;;  %v10873_v53 = vld [vmem:[#allocation19 + $0x800] sm:$0xff]  ;;  %v10918_v21 = vld [vmem:[#allocation19 + $0x968] sm:$0xff]  ;;  %v17165_v28 = vcombine.low %v10906_v5, %v10910_v30 }
 0xb7b   :  { %14152 = vmatprep.subr.bf16.mxu0 %v17078_v56  ;;  %v10877_v56 = vld [vmem:[#allocation19 + $0x820] sm:$0xff] }
 0xb7c   :  { %v17131_v19 = vcombine.low %v10873_v53, %v10877_v56 }
 0xb7d   :  { %13981 = vmatpush1.bf16.msra.mxu1 %v17075_v62  ;;  %v17132_v62 = vcombine.high %v10873_v53, %v10877_v56  ;;  %v10922_v53 = vld [vmem:[#allocation19 + $0x988] sm:$0xff] }
 0xb7e   :  { %14153 = vmatpush1.bf16.msra.mxu0 %v17077_v1  ;;  %13982 = vmatprep.subr.bf16.mxu1 %v17084_v42  ;;  %v17134_v1 = vcombine.high %v10874_v57, %v10878_v8  ;;  %v10881_v42 = vld [vmem:[#allocation19 + $0x840] sm:$0xff]  ;;  %v10926_v56 = vld [vmem:[#allocation19 + $0x9a8] sm:$0xff]  ;;  %v17173_v8 = vcombine.low %v10914_v20, %v10918_v21 }
 0xb7f   :  { %14154 = vmatprep.subr.bf16.mxu0 %v17086_v43  ;;  %v10885_v43 = vld [vmem:[#allocation19 + $0x860] sm:$0xff] }
 0xb80   :  { %v17139_v10 = vcombine.low %v10881_v42, %v10885_v43 }
 0xb81   :  { %13983 = vmatpush1.bf16.msra.mxu1 %v17083_v3  ;;  %v17140_v3 = vcombine.high %v10881_v42, %v10885_v43  ;;  %v10930_v42 = vld [vmem:[#allocation19 + $0x9c8] sm:$0xff] }
 0xb82   :  { %14155 = vmatpush1.bf16.msra.mxu0 %v17085_v59  ;;  %13984 = vmatprep.subr.bf16.mxu1 %v17092_v4  ;;  %v17142_v59 = vcombine.high %v10882_v49, %v10886_v52  ;;  %v10889_v4 = vld [vmem:[#allocation19 + $0x880] sm:$0xff]  ;;  %v10934_v43 = vld [vmem:[#allocation19 + $0x9e8] sm:$0xff]  ;;  %v17181_v52 = vcombine.low %v10922_v53, %v10926_v56 }
 0xb83   :  { %14156 = vmatprep.subr.bf16.mxu0 %v17094_v54  ;;  %v10893_v54 = vld [vmem:[#allocation19 + $0x8a0] sm:$0xff] }
 0xb84   :  { %v17147_v16 = vcombine.low %v10889_v4, %v10893_v54 }
 0xb85   :  { %13985 = vmatpush1.bf16.msra.mxu1 %v17091_v0  ;;  %v17148_v0 = vcombine.high %v10889_v4, %v10893_v54  ;;  %v10938_v4 = vld [vmem:[#allocation19 + $0xa08] sm:$0xff] }
 0xb86   :  { %14157 = vmatpush1.bf16.msra.mxu0 %v17093_v11  ;;  %13986 = vmatprep.subr.bf16.mxu1 %v17100_v13  ;;  %v17150_v11 = vcombine.high %v10890_v7, %v10894_v9  ;;  %v10897_v13 = vld [vmem:[#allocation19 + $0x8c0] sm:$0xff]  ;;  %v10942_v54 = vld [vmem:[#allocation19 + $0xa28] sm:$0xff]  ;;  %v17189_v9 = vcombine.low %v10930_v42, %v10934_v43 }
 0xb87   :  { %14158 = vmatprep.subr.bf16.mxu0 %v17102_v34  ;;  %v10901_v34 = vld [vmem:[#allocation19 + $0x8e0] sm:$0xff] }
 0xb88   :  { %v17155_v32 = vcombine.low %v10897_v13, %v10901_v34 }
 0xb89   :  { %13987 = vmatpush1.bf16.msra.mxu1 %v17099_v18  ;;  %v17156_v18 = vcombine.high %v10897_v13, %v10901_v34  ;;  %v10946_v13 = vld [vmem:[#allocation19 + $0xa48] sm:$0xff] }
 0xb8a   :  { %14159 = vmatpush1.bf16.msra.mxu0 %v17101_v17  ;;  %13988 = vmatprep.subr.bf16.mxu1 %v17108_v45  ;;  %v17158_v17 = vcombine.high %v10898_v14, %v10902_v15  ;;  %v10905_v45 = vld [vmem:[#allocation19 + $0x900] sm:$0xff]  ;;  %v10950_v34 = vld [vmem:[#allocation19 + $0xa68] sm:$0xff]  ;;  %v17197_v15 = vcombine.low %v10938_v4, %v10942_v54 }
 0xb8b   :  { %14160 = vmatprep.subr.bf16.mxu0 %v17110_v29  ;;  %v10909_v29 = vld [vmem:[#allocation19 + $0x920] sm:$0xff] }
 0xb8c   :  { %v17163_v23 = vcombine.low %v10905_v45, %v10909_v29 }
 0xb8d   :  { %13989 = vmatpush1.bf16.msra.mxu1 %v17107_v36  ;;  %v17164_v36 = vcombine.high %v10905_v45, %v10909_v29  ;;  %v10954_v45 = vld [vmem:[#allocation19 + $0xa88] sm:$0xff] }
 0xb8e   :  { %14161 = vmatpush1.bf16.msra.mxu0 %v17109_v33  ;;  %13990 = vmatprep.subr.bf16.mxu1 %v17116_v35  ;;  %v17166_v33 = vcombine.high %v10906_v5, %v10910_v30  ;;  %v10913_v35 = vld [vmem:[#allocation19 + $0x940] sm:$0xff]  ;;  %v10958_v29 = vld [vmem:[#allocation19 + $0xaa8] sm:$0xff]  ;;  %v17205_v30 = vcombine.low %v10946_v13, %v10950_v34 }
 0xb8f   :  { %14162 = vmatprep.subr.bf16.mxu0 %v17118_v37  ;;  %v10917_v37 = vld [vmem:[#allocation19 + $0x960] sm:$0xff] }
 0xb90   :  { %v17171_v57 = vcombine.low %v10913_v35, %v10917_v37 }
 0xb91   :  { %13991 = vmatpush1.bf16.msra.mxu1 %v17115_v40  ;;  %v17172_v40 = vcombine.high %v10913_v35, %v10917_v37  ;;  %v10962_v35 = vld [vmem:[#allocation19 + $0xac8] sm:$0xff] }
 0xb92   :  { %14163 = vmatpush1.bf16.msra.mxu0 %v17117_v38  ;;  %13992 = vmatprep.subr.bf16.mxu1 %v17124_v63  ;;  %v17174_v38 = vcombine.high %v10914_v20, %v10918_v21  ;;  %v10921_v63 = vld [vmem:[#allocation19 + $0x980] sm:$0xff]  ;;  %v10966_v37 = vld [vmem:[#allocation19 + $0xae8] sm:$0xff]  ;;  %v17213_v21 = vcombine.low %v10954_v45, %v10958_v29 }
 0xb93   :  { %14164 = vmatprep.subr.bf16.mxu0 %v17126_v55  ;;  %v10925_v55 = vld [vmem:[#allocation19 + $0x9a0] sm:$0xff] }
 0xb94   :  { %v17179_v49 = vcombine.low %v10921_v63, %v10925_v55 }
 0xb95   :  { %13993 = vmatpush1.bf16.msra.mxu1 %v17123_v58  ;;  %v17180_v58 = vcombine.high %v10921_v63, %v10925_v55  ;;  %v10970_v63 = vld [vmem:[#allocation19 + $0xb08] sm:$0xff] }
 0xb96   :  { %14165 = vmatpush1.bf16.msra.mxu0 %v17125_v46  ;;  %14005 = vmatprep.subr.bf16.mxu1 %v17132_v62  ;;  %v17182_v46 = vcombine.high %v10922_v53, %v10926_v56  ;;  %v10929_v62 = vld [vmem:[#allocation19 + $0x9c0] sm:$0xff]  ;;  %v10974_v55 = vld [vmem:[#allocation19 + $0xb28] sm:$0xff]  ;;  %v17221_v56 = vcombine.low %v10962_v35, %v10966_v37 }
 0xb97   :  { %14177 = vmatprep.subr.bf16.mxu0 %v17134_v1  ;;  %v10933_v1 = vld [vmem:[#allocation19 + $0x9e0] sm:$0xff] }
 0xb98   :  { %13995 = vmatmul.mubr.bf16.vlgmr.msra.gmra.mrb[56].mxu1 %v18788_v31  ;;  %v17187_v7 = vcombine.low %v10929_v62, %v10933_v1 }
 0xb99   :  { %14167 = vmatmul.mubr.bf16.vlgmr.msra.gmra.mrb[60].mxu0 %v18788_v31  ;;  %14006 = vmatpush1.bf16.msra.mxu1 %v17131_v19  ;;  %v17188_v19 = vcombine.high %v10929_v62, %v10933_v1  ;;  %v10978_v62 = vld [vmem:[#allocation19 + $0xb48] sm:$0xff] }
 0xb9a   :  { %14178 = vmatpush1.bf16.msra.mxu0 %v17133_v61  ;;  %14007 = vmatprep.subr.bf16.mxu1 %v17140_v3  ;;  %v17190_v61 = vcombine.high %v10930_v42, %v10934_v43  ;;  %v10937_v3 = vld [vmem:[#allocation19 + $0xa00] sm:$0xff]  ;;  %v10982_v1 = vld [vmem:[#allocation19 + $0xb68] sm:$0xff]  ;;  %v17229_v43 = vcombine.low %v10970_v63, %v10974_v55 }
 0xb9b   :  { %14179 = vmatprep.subr.bf16.mxu0 %v17142_v59  ;;  %v10941_v59 = vld [vmem:[#allocation19 + $0xa20] sm:$0xff] }
 0xb9c   :  { %v17195_v14 = vcombine.low %v10937_v3, %v10941_v59 }
 0xb9d   :  { %14008 = vmatpush1.bf16.msra.mxu1 %v17139_v10  ;;  %v17196_v10 = vcombine.high %v10937_v3, %v10941_v59  ;;  %v10986_v3 = vld [vmem:[#allocation19 + $0xb88] sm:$0xff] }
 0xb9e   :  { %14180 = vmatpush1.bf16.msra.mxu0 %v17141_v12  ;;  %14009 = vmatprep.subr.bf16.mxu1 %v17148_v0  ;;  %v17198_v12 = vcombine.high %v10938_v4, %v10942_v54  ;;  %v10945_v0 = vld [vmem:[#allocation19 + $0xa40] sm:$0xff]  ;;  %v10990_v59 = vld [vmem:[#allocation19 + $0xba8] sm:$0xff]  ;;  %v17237_v54 = vcombine.low %v10978_v62, %v10982_v1 }
 0xb9f   :  { %14181 = vmatprep.subr.bf16.mxu0 %v17150_v11  ;;  %v10949_v11 = vld [vmem:[#allocation19 + $0xa60] sm:$0xff] }
 0xba0   :  { %v17203_v5 = vcombine.low %v10945_v0, %v10949_v11 }
 0xba1   :  { %14010 = vmatpush1.bf16.msra.mxu1 %v17147_v16  ;;  %v17204_v16 = vcombine.high %v10945_v0, %v10949_v11  ;;  %v10994_v0 = vld [vmem:[#allocation19 + $0xbc8] sm:$0xff] }
 0xba2   :  { %14182 = vmatpush1.bf16.msra.mxu0 %v17149_v41  ;;  %14011 = vmatprep.subr.bf16.mxu1 %v17156_v18  ;;  %v17206_v41 = vcombine.high %v10946_v13, %v10950_v34  ;;  %v10953_v18 = vld [vmem:[#allocation19 + $0xa80] sm:$0xff]  ;;  %v10998_v11 = vld [vmem:[#allocation19 + $0xbe8] sm:$0xff]  ;;  %v17245_v34 = vcombine.low %v10986_v3, %v10990_v59 }
 0xba3   :  { %14183 = vmatprep.subr.bf16.mxu0 %v17158_v17  ;;  %v10957_v17 = vld [vmem:[#allocation19 + $0xaa0] sm:$0xff] }
 0xba4   :  { %v17211_v20 = vcombine.low %v10953_v18, %v10957_v17 }
 0xba5   :  { %14012 = vmatpush1.bf16.msra.mxu1 %v17155_v32  ;;  %v17212_v32 = vcombine.high %v10953_v18, %v10957_v17  ;;  %v11002_v18 = vld [vmem:[#allocation19 + $0xc08] sm:$0xff] }
 0xba6   :  { %14184 = vmatpush1.bf16.msra.mxu0 %v17157_v44  ;;  %14013 = vmatprep.subr.bf16.mxu1 %v17164_v36  ;;  %v17214_v44 = vcombine.high %v10954_v45, %v10958_v29  ;;  %v10961_v36 = vld [vmem:[#allocation19 + $0xac0] sm:$0xff]  ;;  %v11006_v17 = vld [vmem:[#allocation19 + $0xc28] sm:$0xff]  ;;  %v17253_v29 = vcombine.low %v10994_v0, %v10998_v11 }
 0xba7   :  { %14185 = vmatprep.subr.bf16.mxu0 %v17166_v33  ;;  %v10965_v33 = vld [vmem:[#allocation19 + $0xae0] sm:$0xff] }
 0xba8   :  { %v17219_v53 = vcombine.low %v10961_v36, %v10965_v33 }
 0xba9   :  { %14014 = vmatpush1.bf16.msra.mxu1 %v17163_v23  ;;  %v17220_v23 = vcombine.high %v10961_v36, %v10965_v33  ;;  %v11009_v36 = vld [vmem:[#allocation19 + $0xc40] sm:$0xff] }
 0xbaa   :  { %14186 = vmatpush1.bf16.msra.mxu0 %v17165_v28  ;;  %14015 = vmatprep.subr.bf16.mxu1 %v17172_v40  ;;  %v17222_v28 = vcombine.high %v10962_v35, %v10966_v37  ;;  %v10969_v40 = vld [vmem:[#allocation19 + $0xb00] sm:$0xff] }
 0xbab   :  { %14187 = vmatprep.subr.bf16.mxu0 %v17174_v38  ;;  %v10973_v38 = vld [vmem:[#allocation19 + $0xb20] sm:$0xff] }
 0xbac   :  { %v17227_v42 = vcombine.low %v10969_v40, %v10973_v38  ;;  %v11013_v37 = vld [vmem:[#allocation19 + $0xc60] sm:$0xff] }
 0xbad   :  { %14016 = vmatpush1.bf16.msra.mxu1 %v17171_v57  ;;  %v17228_v57 = vcombine.high %v10969_v40, %v10973_v38 }
 0xbae   :  { %14188 = vmatpush1.bf16.msra.mxu0 %v17173_v8  ;;  %14017 = vmatprep.subr.bf16.mxu1 %v17180_v58  ;;  %v17230_v8 = vcombine.high %v10970_v63, %v10974_v55  ;;  %v10977_v58 = vld [vmem:[#allocation19 + $0xb40] sm:$0xff] }
 0xbaf   :  { %14189 = vmatprep.subr.bf16.mxu0 %v17182_v46  ;;  %v10981_v46 = vld [vmem:[#allocation19 + $0xb60] sm:$0xff] }
 0xbb0   :  { %v17235_v4 = vcombine.low %v10977_v58, %v10981_v46 }
 0xbb1   :  { %14018 = vmatpush1.bf16.msra.mxu1 %v17179_v49  ;;  %v17236_v49 = vcombine.high %v10977_v58, %v10981_v46  ;;  %v11017_v46 = vld [vmem:[#allocation19 + $0xc80] sm:$0xff] }
 0xbb2   :  { %14190 = vmatpush1.bf16.msra.mxu0 %v17181_v52  ;;  %14019 = vmatprep.subr.bf16.mxu1 %v17188_v19  ;;  %v17238_v52 = vcombine.high %v10978_v62, %v10982_v1  ;;  %v10985_v19 = vld [vmem:[#allocation19 + $0xb80] sm:$0xff] }
 0xbb3   :  { %14191 = vmatprep.subr.bf16.mxu0 %v17190_v61  ;;  %v10989_v61 = vld [vmem:[#allocation19 + $0xba0] sm:$0xff] }
 0xbb4   :  { %v17243_v13 = vcombine.low %v10985_v19, %v10989_v61  ;;  %v11021_v1 = vld [vmem:[#allocation19 + $0xca0] sm:$0xff] }
 0xbb5   :  { %14020 = vmatpush1.bf16.msra.mxu1 %v17187_v7  ;;  %v17244_v7 = vcombine.high %v10985_v19, %v10989_v61  ;;  %v17276_v19 = vcombine.high %v11017_v46, %v11021_v1 }
 0xbb6   :  { %14192 = vmatpush1.bf16.msra.mxu0 %v17189_v9  ;;  %14021 = vmatprep.subr.bf16.mxu1 %v17196_v10  ;;  %v17246_v9 = vcombine.high %v10986_v3, %v10990_v59  ;;  %v10993_v10 = vld [vmem:[#allocation19 + $0xbc0] sm:$0xff] }
 0xbb7   :  { %14193 = vmatprep.subr.bf16.mxu0 %v17198_v12  ;;  %v10997_v12 = vld [vmem:[#allocation19 + $0xbe0] sm:$0xff] }
 0xbb8   :  { %v17251_v45 = vcombine.low %v10993_v10, %v10997_v12  ;;  %v11025_v3 = vld [vmem:[#allocation19 + $0xcc0] sm:$0xff] }
 0xbb9   :  { %14022 = vmatpush1.bf16.msra.mxu1 %v17195_v14  ;;  %v17252_v14 = vcombine.high %v10993_v10, %v10997_v12  ;;  %v11029_v59 = vld [vmem:[#allocation19 + $0xce0] sm:$0xff] }
 0xbba   :  { %14194 = vmatpush1.bf16.msra.mxu0 %v17197_v15  ;;  %14023 = vmatprep.subr.bf16.mxu1 %v17204_v16  ;;  %v17254_v15 = vcombine.high %v10994_v0, %v10998_v11  ;;  %v11001_v16 = vld [vmem:[#allocation19 + $0xc00] sm:$0xff]  ;;  %v17284_v10 = vcombine.high %v11025_v3, %v11029_v59 }
 0xbbb   :  { %14195 = vmatprep.subr.bf16.mxu0 %v17206_v41  ;;  %v11005_v41 = vld [vmem:[#allocation19 + $0xc20] sm:$0xff] }
 0xbbc   :  { %v17259_v55 = vcombine.low %v11001_v16, %v11005_v41  ;;  %v11033_v0 = vld [vmem:[#allocation19 + $0xd00] sm:$0xff] }
 0xbbd   :  { %14024 = vmatpush1.bf16.msra.mxu1 %v17203_v5  ;;  %v17260_v5 = vcombine.high %v11001_v16, %v11005_v41  ;;  %v11037_v11 = vld [vmem:[#allocation19 + $0xd20] sm:$0xff] }
 0xbbe   :  { %14196 = vmatpush1.bf16.msra.mxu0 %v17205_v30  ;;  %14025 = vmatprep.subr.bf16.mxu1 %v17212_v32  ;;  %v17262_v30 = vcombine.high %v11002_v18, %v11006_v17  ;;  %v17292_v16 = vcombine.high %v11033_v0, %v11037_v11 }
 0xbbf   :  { %14197 = vmatprep.subr.bf16.mxu0 %v17214_v44 }
 0xbc1   :  { %14026 = vmatpush1.bf16.msra.mxu1 %v17211_v20  ;;  %v11010_v20 = vld [vmem:[#allocation19 + $0xc48] sm:$0xff] }
 0xbc2   :  { %14198 = vmatpush1.bf16.msra.mxu0 %v17213_v21  ;;  %14027 = vmatprep.subr.bf16.mxu1 %v17220_v23  ;;  %v11014_v21 = vld [vmem:[#allocation19 + $0xc68] sm:$0xff] }
 0xbc3   :  { %14199 = vmatprep.subr.bf16.mxu0 %v17222_v28  ;;  %v17270_v58 = vcombine.high %v11010_v20, %v11014_v21 }
 0xbc5   :  { %14028 = vmatpush1.bf16.msra.mxu1 %v17219_v53  ;;  %v17261_v53 = vcombine.low %v11002_v18, %v11006_v17  ;;  %v11041_v18 = vld [vmem:[#allocation19 + $0xd40] sm:$0xff] }
 0xbc6   :  { %14200 = vmatpush1.bf16.msra.mxu0 %v17221_v56  ;;  %14029 = vmatprep.subr.bf16.mxu1 %v17228_v57  ;;  %v11045_v17 = vld [vmem:[#allocation19 + $0xd60] sm:$0xff] }
 0xbc7   :  { %14201 = vmatprep.subr.bf16.mxu0 %v17230_v8  ;;  %v17268_v8 = vcombine.high %v11009_v36, %v11013_v37 }
 0xbc9   :  { %14030 = vmatpush1.bf16.msra.mxu1 %v17227_v42  ;;  %v11018_v42 = vld [vmem:[#allocation19 + $0xc88] sm:$0xff] }
 0xbca   :  { %14202 = vmatpush1.bf16.msra.mxu0 %v17229_v43  ;;  %14031 = vmatprep.subr.bf16.mxu1 %v17236_v49  ;;  %v11022_v43 = vld [vmem:[#allocation19 + $0xca8] sm:$0xff]  ;;  %v17267_v49 = vcombine.low %v11009_v36, %v11013_v37  ;;  %v11049_v36 = vld [vmem:[#allocation19 + $0xd80] sm:$0xff] }
 0xbcb   :  { %14203 = vmatprep.subr.bf16.mxu0 %v17238_v52  ;;  %v17269_v52 = vcombine.low %v11010_v20, %v11014_v21  ;;  %v17278_v61 = vcombine.high %v11018_v42, %v11022_v43  ;;  %v11054_v37 = vld [vmem:[#allocation19 + $0xda8] sm:$0xff]  ;;  %v17299_v20 = vcombine.low %v11041_v18, %v11045_v17 }
 0xbcd   :  { %14032 = vmatpush1.bf16.msra.mxu1 %v17235_v4  ;;  %v11026_v4 = vld [vmem:[#allocation19 + $0xcc8] sm:$0xff] }
 0xbce   :  { %14204 = vmatpush1.bf16.msra.mxu0 %v17237_v54  ;;  %14033 = vmatprep.subr.bf16.mxu1 %v17244_v7  ;;  %v11030_v54 = vld [vmem:[#allocation19 + $0xce8] sm:$0xff]  ;;  %v17275_v7 = vcombine.low %v11017_v46, %v11021_v1 }
 0xbcf   :  { %14205 = vmatprep.subr.bf16.mxu0 %v17246_v9  ;;  %v17277_v9 = vcombine.low %v11018_v42, %v11022_v43  ;;  %v17286_v12 = vcombine.high %v11026_v4, %v11030_v54  ;;  %v11065_v42 = vld [vmem:[#allocation19 + $0xe00] sm:$0xff] }
 0xbd0   :  { %v11069_v43 = vld [vmem:[#allocation19 + $0xe20] sm:$0xff] }
 0xbd1   :  { %14034 = vmatpush1.bf16.msra.mxu1 %v17243_v13  ;;  %v11034_v13 = vld [vmem:[#allocation19 + $0xd08] sm:$0xff] }
 0xbd2   :  { %14206 = vmatpush1.bf16.msra.mxu0 %v17245_v34  ;;  %14035 = vmatprep.subr.bf16.mxu1 %v17252_v14  ;;  %v11038_v34 = vld [vmem:[#allocation19 + $0xd28] sm:$0xff]  ;;  %v17283_v14 = vcombine.low %v11025_v3, %v11029_v59  ;;  %v17324_v3 = vcombine.high %v11065_v42, %v11069_v43 }
 0xbd3   :  { %14207 = vmatprep.subr.bf16.mxu0 %v17254_v15  ;;  %v17285_v15 = vcombine.low %v11026_v4, %v11030_v54  ;;  %v17294_v41 = vcombine.high %v11034_v13, %v11038_v34  ;;  %v11073_v4 = vld [vmem:[#allocation19 + $0xe40] sm:$0xff] }
 0xbd4   :  { %v11077_v54 = vld [vmem:[#allocation19 + $0xe60] sm:$0xff] }
 0xbd5   :  { %14036 = vmatpush1.bf16.msra.mxu1 %v17251_v45  ;;  %v11042_v45 = vld [vmem:[#allocation19 + $0xd48] sm:$0xff] }
 0xbd6   :  { %14208 = vmatpush1.bf16.msra.mxu0 %v17253_v29  ;;  %14048 = vmatprep.subr.bf16.mxu1 %v17260_v5  ;;  %v11046_v29 = vld [vmem:[#allocation19 + $0xd68] sm:$0xff]  ;;  %v17291_v5 = vcombine.low %v11033_v0, %v11037_v11  ;;  %v17332_v0 = vcombine.high %v11073_v4, %v11077_v54 }
 0xbd7   :  { %14220 = vmatprep.subr.bf16.mxu0 %v17262_v30  ;;  %v17293_v30 = vcombine.low %v11034_v13, %v11038_v34  ;;  %v17301_v21 = vcombine.low %v11042_v45, %v11046_v29  ;;  %v11081_v13 = vld [vmem:[#allocation19 + $0xe80] sm:$0xff] }
 0xbd8   :  { %v11085_v34 = vld [vmem:[#allocation19 + $0xea0] sm:$0xff] }
 0xbeb   :  { %v11258_v32 = vpop.f32.mrb[52].mxu1 }
 0xbec   :  { %v11260_v44 = vpop.f32.mrb[53].mxu1  ;;  %v11301_v33 = vpop.f32.mrb[56].mxu0 }
 0xbed   :  { %v11262_v35 = vpop.f32.mrb[54].mxu1  ;;  %v11303_v23 = vpop.f32.mrb[57].mxu0 }
 0xbee   :  { %v18804_v28 = vpack.c.bf16 %v11262_v35, %v11258_v32  ;;  %v11264_v40 = vpop.f32.mrb[55].mxu1  ;;  %v11305_v38 = vpop.f32.mrb[58].mxu0  ;;  %v17300_v32 = vcombine.high %v11041_v18, %v11045_v17  ;;  %v11050_v35 = vld [vmem:[#allocation19 + $0xd88] sm:$0xff]  ;;  %v17340_v18 = vcombine.high %v11081_v13, %v11085_v34 }
 0xbef   :  { %v18806_v63 = vpack.c.bf16 %v11264_v40, %v11260_v44  ;;  %v18808_v56 = vpack.c.bf16 %v11305_v38, %v11301_v33  ;;  %v11307_v57 = vpop.f32.mrb[59].mxu0  ;;  %v17302_v44 = vcombine.high %v11042_v45, %v11046_v29  ;;  %v11053_v33 = vld [vmem:[#allocation19 + $0xda0] sm:$0xff]  ;;  %v17310_v40 = vcombine.high %v11050_v35, %v11054_v37 }
 0xbf0   :  { %v18810_v62 = vpack.c.bf16 %v11307_v57, %v11303_v23  ;;  %v17308_v23 = vcombine.high %v11049_v36, %v11053_v33  ;;  %v11057_v38 = vld [vmem:[#allocation19 + $0xdc0] sm:$0xff]  ;;  %v11062_v57 = vld [vmem:[#allocation19 + $0xde8] sm:$0xff] }
 0xbf1   :  { %14037 = vmatprep.mubr.bf16.mxu1 %v18806_v63  ;;  %14209 = vmatprep.mubr.bf16.mxu0 %v18806_v63  ;;  %v11089_v45 = vld [vmem:[#allocation19 + $0xec0] sm:$0xff] }
 0xbf2   :  { %14038 = vmatmul.mubr.bf16.vlgmr.msra.gmra.mrb[56].mxu1 %v18804_v28  ;;  %14210 = vmatmul.mubr.bf16.vlgmr.msra.gmra.mrb[60].mxu0 %v18804_v28  ;;  %v11093_v29 = vld [vmem:[#allocation19 + $0xee0] sm:$0xff] }
 0xbf3   :  { %14049 = vmatpush1.bf16.msra.mxu1 %v17259_v55  ;;  %14221 = vmatpush1.bf16.msra.mxu0 %v17261_v53  ;;  %v11061_v55 = vld [vmem:[#allocation19 + $0xde0] sm:$0xff]  ;;  %v11058_v53 = vld [vmem:[#allocation19 + $0xdc8] sm:$0xff] }
 0xbf4   :  { %14050 = vmatprep.subr.bf16.mxu1 %v17268_v8  ;;  %14222 = vmatprep.subr.bf16.mxu0 %v17270_v58  ;;  %v17307_v8 = vcombine.low %v11049_v36, %v11053_v33  ;;  %v17309_v58 = vcombine.low %v11050_v35, %v11054_v37  ;;  %v17316_v46 = vcombine.high %v11057_v38, %v11061_v55  ;;  %v11097_v35 = vld [vmem:[#allocation19 + $0xf00] sm:$0xff] }
 0xbf5   :  { %14080 = vmatprep.mubr.bf16.mxu1 %v18810_v62  ;;  %14252 = vmatprep.mubr.bf16.mxu0 %v18810_v62  ;;  %v17318_v1 = vcombine.high %v11058_v53, %v11062_v57  ;;  %v17348_v36 = vcombine.high %v11089_v45, %v11093_v29  ;;  %v11101_v37 = vld [vmem:[#allocation19 + $0xf20] sm:$0xff] }
 0xbf7   :  { %14051 = vmatpush1.bf16.msra.mxu1 %v17267_v49  ;;  %14223 = vmatpush1.bf16.msra.mxu0 %v17269_v52  ;;  %v11066_v49 = vld [vmem:[#allocation19 + $0xe08] sm:$0xff] }
 0xbf8   :  { %14052 = vmatprep.subr.bf16.mxu1 %v17276_v19  ;;  %14224 = vmatprep.subr.bf16.mxu0 %v17278_v61  ;;  %v11070_v52 = vld [vmem:[#allocation19 + $0xe28] sm:$0xff]  ;;  %v17315_v19 = vcombine.low %v11057_v38, %v11061_v55  ;;  %v17317_v61 = vcombine.low %v11058_v53, %v11062_v57  ;;  %v17356_v38 = vcombine.high %v11097_v35, %v11101_v37  ;;  %v11105_v53 = vld [vmem:[#allocation19 + $0xf40] sm:$0xff] }
 0xbf9   :  { %v17326_v59 = vcombine.high %v11066_v49, %v11070_v52  ;;  %v11109_v57 = vld [vmem:[#allocation19 + $0xf60] sm:$0xff] }
 0xbfb   :  { %14053 = vmatpush1.bf16.msra.mxu1 %v17275_v7  ;;  %14225 = vmatpush1.bf16.msra.mxu0 %v17277_v9  ;;  %v11074_v7 = vld [vmem:[#allocation19 + $0xe48] sm:$0xff] }
 0xbfc   :  { %14054 = vmatprep.subr.bf16.mxu1 %v17284_v10  ;;  %14226 = vmatprep.subr.bf16.mxu0 %v17286_v12  ;;  %v11078_v9 = vld [vmem:[#allocation19 + $0xe68] sm:$0xff]  ;;  %v17323_v10 = vcombine.low %v11065_v42, %v11069_v43  ;;  %v17325_v12 = vcombine.low %v11066_v49, %v11070_v52  ;;  %v17364_v42 = vcombine.high %v11105_v53, %v11109_v57  ;;  %v11113_v49 = vld [vmem:[#allocation19 + $0xf80] sm:$0xff] }
 0xbfd   :  { %v17334_v11 = vcombine.high %v11074_v7, %v11078_v9  ;;  %v11117_v52 = vld [vmem:[#allocation19 + $0xfa0] sm:$0xff] }
 0xbff   :  { %14055 = vmatpush1.bf16.msra.mxu1 %v17283_v14  ;;  %14227 = vmatpush1.bf16.msra.mxu0 %v17285_v15  ;;  %v11082_v14 = vld [vmem:[#allocation19 + $0xe88] sm:$0xff] }
 0xc00   :  { %14056 = vmatprep.subr.bf16.mxu1 %v17292_v16  ;;  %14228 = vmatprep.subr.bf16.mxu0 %v17294_v41  ;;  %v11086_v15 = vld [vmem:[#allocation19 + $0xea8] sm:$0xff]  ;;  %v17331_v16 = vcombine.low %v11073_v4, %v11077_v54  ;;  %v17333_v41 = vcombine.low %v11074_v7, %v11078_v9  ;;  %v17372_v4 = vcombine.high %v11113_v49, %v11117_v52  ;;  %v11121_v7 = vld [vmem:[#allocation19 + $0xfc0] sm:$0xff] }
 0xc01   :  { %v17342_v17 = vcombine.high %v11082_v14, %v11086_v15  ;;  %v11125_v9 = vld [vmem:[#allocation19 + $0xfe0] sm:$0xff] }
 0xc03   :  { %14057 = vmatpush1.bf16.msra.mxu1 %v17291_v5  ;;  %14229 = vmatpush1.bf16.msra.mxu0 %v17293_v30  ;;  %v11090_v5 = vld [vmem:[#allocation19 + $0xec8] sm:$0xff] }
 0xc04   :  { %14058 = vmatprep.subr.bf16.mxu1 %v17300_v32  ;;  %14230 = vmatprep.subr.bf16.mxu0 %v17302_v44  ;;  %v11094_v30 = vld [vmem:[#allocation19 + $0xee8] sm:$0xff]  ;;  %v17339_v32 = vcombine.low %v11081_v13, %v11085_v34  ;;  %v17341_v44 = vcombine.low %v11082_v14, %v11086_v15  ;;  %v17380_v13 = vcombine.high %v11121_v7, %v11125_v9  ;;  %v10619_v14 = vld [vmem:[#allocation19 + $0x10] sm:$0xff] }
 0xc05   :  { %v17350_v33 = vcombine.high %v11090_v5, %v11094_v30  ;;  %v10623_v15 = vld [vmem:[#allocation19 + $0x30] sm:$0xff] }
 0xc07   :  { %14059 = vmatpush1.bf16.msra.mxu1 %v17299_v20  ;;  %14231 = vmatpush1.bf16.msra.mxu0 %v17301_v21  ;;  %v11098_v20 = vld [vmem:[#allocation19 + $0xf08] sm:$0xff] }
 0xc08   :  { %14060 = vmatprep.subr.bf16.mxu1 %v17308_v23  ;;  %14232 = vmatprep.subr.bf16.mxu0 %v17310_v40  ;;  %v11102_v21 = vld [vmem:[#allocation19 + $0xf28] sm:$0xff]  ;;  %v17347_v23 = vcombine.low %v11089_v45, %v11093_v29  ;;  %v17349_v40 = vcombine.low %v11090_v5, %v11094_v30  ;;  %v16880_v45 = vcombine.high %v10619_v14, %v10623_v15  ;;  %v10627_v5 = vld [vmem:[#allocation19 + $0x50] sm:$0xff] }
 0xc09   :  { %v17358_v55 = vcombine.high %v11098_v20, %v11102_v21  ;;  %v10631_v30 = vld [vmem:[#allocation19 + $0x70] sm:$0xff] }
 0xc0b   :  { %14061 = vmatpush1.bf16.msra.mxu1 %v17307_v8  ;;  %14233 = vmatpush1.bf16.msra.mxu0 %v17309_v58  ;;  %v11106_v8 = vld [vmem:[#allocation19 + $0xf48] sm:$0xff] }
 0xc0c   :  { %14062 = vmatprep.subr.bf16.mxu1 %v17316_v46  ;;  %14234 = vmatprep.subr.bf16.mxu0 %v17318_v1  ;;  %v11110_v58 = vld [vmem:[#allocation19 + $0xf68] sm:$0xff]  ;;  %v17355_v46 = vcombine.low %v11097_v35, %v11101_v37  ;;  %v17357_v1 = vcombine.low %v11098_v20, %v11102_v21  ;;  %v16888_v35 = vcombine.high %v10627_v5, %v10631_v30  ;;  %v10635_v20 = vld [vmem:[#allocation19 + $0x90] sm:$0xff] }
 0xc0d   :  { %v17366_v43 = vcombine.high %v11106_v8, %v11110_v58  ;;  %v10639_v21 = vld [vmem:[#allocation19 + $0xb0] sm:$0xff] }
 0xc0f   :  { %14063 = vmatpush1.bf16.msra.mxu1 %v17315_v19  ;;  %14235 = vmatpush1.bf16.msra.mxu0 %v17317_v61  ;;  %v11114_v19 = vld [vmem:[#allocation19 + $0xf88] sm:$0xff] }
 0xc10   :  { %14064 = vmatprep.subr.bf16.mxu1 %v17324_v3  ;;  %14236 = vmatprep.subr.bf16.mxu0 %v17326_v59  ;;  %v11118_v61 = vld [vmem:[#allocation19 + $0xfa8] sm:$0xff]  ;;  %v17363_v3 = vcombine.low %v11105_v53, %v11109_v57  ;;  %v17365_v59 = vcombine.low %v11106_v8, %v11110_v58  ;;  %v16896_v53 = vcombine.high %v10635_v20, %v10639_v21  ;;  %v10643_v8 = vld [vmem:[#allocation19 + $0xd0] sm:$0xff] }
 0xc11   :  { %v17374_v54 = vcombine.high %v11114_v19, %v11118_v61  ;;  %v10647_v58 = vld [vmem:[#allocation19 + $0xf0] sm:$0xff] }
 0xc13   :  { %14065 = vmatpush1.bf16.msra.mxu1 %v17323_v10  ;;  %14237 = vmatpush1.bf16.msra.mxu0 %v17325_v12  ;;  %v11122_v10 = vld [vmem:[#allocation19 + $0xfc8] sm:$0xff] }
 0xc14   :  { %14066 = vmatprep.subr.bf16.mxu1 %v17332_v0  ;;  %14238 = vmatprep.subr.bf16.mxu0 %v17334_v11  ;;  %v11126_v12 = vld [vmem:[#allocation19 + $0xfe8] sm:$0xff]  ;;  %v17371_v0 = vcombine.low %v11113_v49, %v11117_v52  ;;  %v17373_v11 = vcombine.low %v11114_v19, %v11118_v61  ;;  %v16904_v49 = vcombine.high %v10643_v8, %v10647_v58  ;;  %v10651_v19 = vld [vmem:[#allocation19 + $0x110] sm:$0xff] }
 0xc15   :  { %v17382_v34 = vcombine.high %v11122_v10, %v11126_v12  ;;  %v10655_v61 = vld [vmem:[#allocation19 + $0x130] sm:$0xff] }
 0xc17   :  { %14067 = vmatpush1.bf16.msra.mxu1 %v17331_v16  ;;  %14239 = vmatpush1.bf16.msra.mxu0 %v17333_v41  ;;  %v10620_v16 = vld [vmem:[#allocation19 + $0x18] sm:$0xff] }
 0xc18   :  { %14068 = vmatprep.subr.bf16.mxu1 %v17340_v18  ;;  %14240 = vmatprep.subr.bf16.mxu0 %v17342_v17  ;;  %v10624_v41 = vld [vmem:[#allocation19 + $0x38] sm:$0xff]  ;;  %v17379_v18 = vcombine.low %v11121_v7, %v11125_v9  ;;  %v17381_v17 = vcombine.low %v11122_v10, %v11126_v12  ;;  %v10659_v9 = vld [vmem:[#allocation19 + $0x150] sm:$0xff] }
 0xc19   :  { %v16882_v29 = vcombine.high %v10620_v16, %v10624_v41  ;;  %v10663_v10 = vld [vmem:[#allocation19 + $0x170] sm:$0xff]  ;;  %v10660_v12 = vld [vmem:[#allocation19 + $0x158] sm:$0xff] }
 0xc1b   :  { %14069 = vmatpush1.bf16.msra.mxu1 %v17339_v32  ;;  %14241 = vmatpush1.bf16.msra.mxu0 %v17341_v44  ;;  %v10628_v32 = vld [vmem:[#allocation19 + $0x58] sm:$0xff] }
 0xc1c   :  { %14070 = vmatprep.subr.bf16.mxu1 %v17348_v36  ;;  %14242 = vmatprep.subr.bf16.mxu0 %v17350_v33  ;;  %v10632_v44 = vld [vmem:[#allocation19 + $0x78] sm:$0xff]  ;;  %v16879_v36 = vcombine.low %v10619_v14, %v10623_v15  ;;  %v16881_v33 = vcombine.low %v10620_v16, %v10624_v41  ;;  %v10667_v15 = vld [vmem:[#allocation19 + $0x190] sm:$0xff] }
 0xc1d   :  { %v16890_v37 = vcombine.high %v10628_v32, %v10632_v44  ;;  %v10671_v16 = vld [vmem:[#allocation19 + $0x1b0] sm:$0xff]  ;;  %v10668_v41 = vld [vmem:[#allocation19 + $0x198] sm:$0xff] }
 0xc1f   :  { %14071 = vmatpush1.bf16.msra.mxu1 %v17347_v23  ;;  %14243 = vmatpush1.bf16.msra.mxu0 %v17349_v40  ;;  %v10636_v23 = vld [vmem:[#allocation19 + $0x98] sm:$0xff] }
 0xc20   :  { %14072 = vmatprep.subr.bf16.mxu1 %v17356_v38  ;;  %14244 = vmatprep.subr.bf16.mxu0 %v17358_v55  ;;  %v10640_v40 = vld [vmem:[#allocation19 + $0xb8] sm:$0xff]  ;;  %v16887_v38 = vcombine.low %v10627_v5, %v10631_v30  ;;  %v16889_v55 = vcombine.low %v10628_v32, %v10632_v44  ;;  %v10675_v30 = vld [vmem:[#allocation19 + $0x1d0] sm:$0xff] }
 0xc21   :  { %v16898_v57 = vcombine.high %v10636_v23, %v10640_v40  ;;  %v10679_v32 = vld [vmem:[#allocation19 + $0x1f0] sm:$0xff]  ;;  %v10676_v44 = vld [vmem:[#allocation19 + $0x1d8] sm:$0xff] }
 0xc23   :  { %14073 = vmatpush1.bf16.msra.mxu1 %v17355_v46  ;;  %14245 = vmatpush1.bf16.msra.mxu0 %v17357_v1  ;;  %v10644_v46 = vld [vmem:[#allocation19 + $0xd8] sm:$0xff] }
 0xc24   :  { %14074 = vmatprep.subr.bf16.mxu1 %v17364_v42  ;;  %14246 = vmatprep.subr.bf16.mxu0 %v17366_v43  ;;  %v10648_v1 = vld [vmem:[#allocation19 + $0xf8] sm:$0xff]  ;;  %v16895_v42 = vcombine.low %v10635_v20, %v10639_v21  ;;  %v16897_v43 = vcombine.low %v10636_v23, %v10640_v40  ;;  %v10683_v21 = vld [vmem:[#allocation19 + $0x210] sm:$0xff] }
 0xc25   :  { %v16906_v52 = vcombine.high %v10644_v46, %v10648_v1  ;;  %v10687_v23 = vld [vmem:[#allocation19 + $0x230] sm:$0xff]  ;;  %v10684_v40 = vld [vmem:[#allocation19 + $0x218] sm:$0xff] }
 0xc27   :  { %14075 = vmatpush1.bf16.msra.mxu1 %v17363_v3  ;;  %14247 = vmatpush1.bf16.msra.mxu0 %v17365_v59  ;;  %v10656_v3 = vld [vmem:[#allocation19 + $0x138] sm:$0xff]  ;;  %v16903_v59 = vcombine.low %v10643_v8, %v10647_v58  ;;  %v10691_v58 = vld [vmem:[#allocation19 + $0x250] sm:$0xff] }
 0xc28   :  { %14076 = vmatprep.subr.bf16.mxu1 %v17372_v4  ;;  %14248 = vmatprep.subr.bf16.mxu0 %v17374_v54  ;;  %v16905_v4 = vcombine.low %v10644_v46, %v10648_v1  ;;  %v16912_v54 = vcombine.high %v10651_v19, %v10655_v61  ;;  %v10695_v46 = vld [vmem:[#allocation19 + $0x270] sm:$0xff]  ;;  %v10692_v1 = vld [vmem:[#allocation19 + $0x258] sm:$0xff] }
 0xc2b   :  { %14077 = vmatpush1.bf16.msra.mxu1 %v17371_v0  ;;  %14249 = vmatpush1.bf16.msra.mxu0 %v17373_v11  ;;  %v10664_v0 = vld [vmem:[#allocation19 + $0x178] sm:$0xff]  ;;  %v16911_v11 = vcombine.low %v10651_v19, %v10655_v61  ;;  %v10699_v61 = vld [vmem:[#allocation19 + $0x290] sm:$0xff] }
 0xc2c   :  { %14078 = vmatprep.subr.bf16.mxu1 %v17380_v13  ;;  %14250 = vmatprep.subr.bf16.mxu0 %v17382_v34  ;;  %v16920_v34 = vcombine.high %v10659_v9, %v10663_v10  ;;  %v16922_v14 = vcombine.high %v10660_v12, %v10664_v0 }
 0xc2f   :  { %14079 = vmatpush1.bf16.msra.mxu1 %v17379_v18  ;;  %14251 = vmatpush1.bf16.msra.mxu0 %v17381_v17  ;;  %v10672_v18 = vld [vmem:[#allocation19 + $0x1b8] sm:$0xff]  ;;  %v16919_v17 = vcombine.low %v10659_v9, %v10663_v10  ;;  %v10707_v10 = vld [vmem:[#allocation19 + $0x2d0] sm:$0xff] }
 0xc30   :  { %14263 = vmatprep.subr.bf16.mxu1 %v16880_v45  ;;  %14435 = vmatprep.subr.bf16.mxu0 %v16882_v29  ;;  %v16921_v45 = vcombine.low %v10660_v12, %v10664_v0  ;;  %v16928_v29 = vcombine.high %v10667_v15, %v10671_v16  ;;  %v16930_v5 = vcombine.high %v10668_v41, %v10672_v18  ;;  %v10711_v12 = vld [vmem:[#allocation19 + $0x2f0] sm:$0xff]  ;;  %v10708_v0 = vld [vmem:[#allocation19 + $0x2d8] sm:$0xff] }
 0xc32   :  { %14081 = vmatmul.mubr.bf16.vlgmr.msra.gmra.mrb[56].mxu1 %v18808_v56  ;;  %14253 = vmatmul.mubr.bf16.vlgmr.msra.gmra.mrb[60].mxu0 %v18808_v56 }
 0xc33   :  { %14264 = vmatpush1.bf16.msra.mxu1 %v16879_v36  ;;  %14295 = vmatprep.mubr.bf16.mxu1 %v18786_v2  ;;  %v10680_v36 = vld [vmem:[#allocation19 + $0x1f8] sm:$0xff] }
 0xc34   :  { %14436 = vmatpush1.bf16.msra.mxu0 %v16881_v33  ;;  %14467 = vmatprep.mubr.bf16.mxu0 %v18786_v2  ;;  %v10652_v2 = vld [vmem:[#allocation19 + $0x118] sm:$0xff]  ;;  %v16927_v33 = vcombine.low %v10667_v15, %v10671_v16  ;;  %v16938_v20 = vcombine.high %v10676_v44, %v10680_v36  ;;  %v10715_v16 = vld [vmem:[#allocation19 + $0x310] sm:$0xff] }
 0xc35   :  { %14265 = vmatprep.subr.bf16.mxu1 %v16888_v35  ;;  %14437 = vmatprep.subr.bf16.mxu0 %v16890_v37  ;;  %v16914_v7 = vcombine.high %v10652_v2, %v10656_v3  ;;  %v16913_v13 = vcombine.low %v10652_v2, %v10656_v3  ;;  %v16929_v35 = vcombine.low %v10668_v41, %v10672_v18  ;;  %v10703_v2 = vld [vmem:[#allocation19 + $0x2b0] sm:$0xff]  ;;  %v10700_v3 = vld [vmem:[#allocation19 + $0x298] sm:$0xff] }
 0xc36   :  { %v16936_v37 = vcombine.high %v10675_v30, %v10679_v32  ;;  %v10719_v41 = vld [vmem:[#allocation19 + $0x330] sm:$0xff]  ;;  %v10716_v18 = vld [vmem:[#allocation19 + $0x318] sm:$0xff] }
 0xc37   :  { %14266 = vmatpush1.bf16.msra.mxu1 %v16887_v38  ;;  %v10688_v38 = vld [vmem:[#allocation19 + $0x238] sm:$0xff] }
 0xc38   :  { %14438 = vmatpush1.bf16.msra.mxu0 %v16889_v55  ;;  %14267 = vmatprep.subr.bf16.mxu1 %v16896_v53  ;;  %v16935_v55 = vcombine.low %v10675_v30, %v10679_v32  ;;  %v16937_v53 = vcombine.low %v10676_v44, %v10680_v36  ;;  %v16946_v8 = vcombine.high %v10684_v40, %v10688_v38  ;;  %v10723_v32 = vld [vmem:[#allocation19 + $0x350] sm:$0xff]  ;;  %v10724_v36 = vld [vmem:[#allocation19 + $0x358] sm:$0xff] }
 0xc39   :  { %14439 = vmatprep.subr.bf16.mxu0 %v16898_v57  ;;  %v16944_v57 = vcombine.high %v10683_v21, %v10687_v23  ;;  %v10727_v44 = vld [vmem:[#allocation19 + $0x370] sm:$0xff] }
 0xc3b   :  { %14268 = vmatpush1.bf16.msra.mxu1 %v16895_v42  ;;  %v10696_v42 = vld [vmem:[#allocation19 + $0x278] sm:$0xff] }
 0xc3c   :  { %14440 = vmatpush1.bf16.msra.mxu0 %v16897_v43  ;;  %14269 = vmatprep.subr.bf16.mxu1 %v16904_v49  ;;  %v16943_v43 = vcombine.low %v10683_v21, %v10687_v23  ;;  %v16945_v49 = vcombine.low %v10684_v40, %v10688_v38  ;;  %v16954_v19 = vcombine.high %v10692_v1, %v10696_v42  ;;  %v10731_v23 = vld [vmem:[#allocation19 + $0x390] sm:$0xff]  ;;  %v10732_v38 = vld [vmem:[#allocation19 + $0x398] sm:$0xff] }
 0xc3d   :  { %14441 = vmatprep.subr.bf16.mxu0 %v16906_v52  ;;  %v16952_v52 = vcombine.high %v10691_v58, %v10695_v46  ;;  %v10735_v40 = vld [vmem:[#allocation19 + $0x3b0] sm:$0xff] }
 0xc3f   :  { %14270 = vmatpush1.bf16.msra.mxu1 %v16903_v59  ;;  %v10704_v59 = vld [vmem:[#allocation19 + $0x2b8] sm:$0xff] }
 0xc40   :  { %14442 = vmatpush1.bf16.msra.mxu0 %v16905_v4  ;;  %14271 = vmatprep.subr.bf16.mxu1 %v16912_v54  ;;  %v16951_v4 = vcombine.low %v10691_v58, %v10695_v46  ;;  %v16953_v54 = vcombine.low %v10692_v1, %v10696_v42  ;;  %v16962_v9 = vcombine.high %v10700_v3, %v10704_v59  ;;  %v10739_v46 = vld [vmem:[#allocation19 + $0x3d0] sm:$0xff]  ;;  %v10740_v42 = vld [vmem:[#allocation19 + $0x3d8] sm:$0xff] }
 0xc41   :  { %14443 = vmatprep.subr.bf16.mxu0 %v16914_v7  ;;  %v16960_v7 = vcombine.high %v10699_v61, %v10703_v2  ;;  %v10743_v1 = vld [vmem:[#allocation19 + $0x3f0] sm:$0xff] }
 0xc43   :  { %14272 = vmatpush1.bf16.msra.mxu1 %v16911_v11  ;;  %v10712_v11 = vld [vmem:[#allocation19 + $0x2f8] sm:$0xff] }
 0xc44   :  { %14444 = vmatpush1.bf16.msra.mxu0 %v16913_v13  ;;  %14273 = vmatprep.subr.bf16.mxu1 %v16920_v34  ;;  %v16959_v13 = vcombine.low %v10699_v61, %v10703_v2  ;;  %v16961_v34 = vcombine.low %v10700_v3, %v10704_v59  ;;  %v16970_v15 = vcombine.high %v10708_v0, %v10712_v11  ;;  %v10747_v2 = vld [vmem:[#allocation19 + $0x410] sm:$0xff]  ;;  %v10748_v59 = vld [vmem:[#allocation19 + $0x418] sm:$0xff] }
 0xc45   :  { %14445 = vmatprep.subr.bf16.mxu0 %v16922_v14  ;;  %v16968_v14 = vcombine.high %v10707_v10, %v10711_v12  ;;  %v10751_v3 = vld [vmem:[#allocation19 + $0x430] sm:$0xff] }
 0xc47   :  { %14274 = vmatpush1.bf16.msra.mxu1 %v16919_v17  ;;  %v10720_v17 = vld [vmem:[#allocation19 + $0x338] sm:$0xff] }
 0xc48   :  { %14446 = vmatpush1.bf16.msra.mxu0 %v16921_v45  ;;  %14275 = vmatprep.subr.bf16.mxu1 %v16928_v29  ;;  %v16967_v45 = vcombine.low %v10707_v10, %v10711_v12  ;;  %v16969_v29 = vcombine.low %v10708_v0, %v10712_v11  ;;  %v16978_v30 = vcombine.high %v10716_v18, %v10720_v17  ;;  %v10755_v12 = vld [vmem:[#allocation19 + $0x450] sm:$0xff] }
 0xc49   :  { %14447 = vmatprep.subr.bf16.mxu0 %v16930_v5  ;;  %v16976_v5 = vcombine.high %v10715_v16, %v10719_v41  ;;  %v10759_v0 = vld [vmem:[#allocation19 + $0x470] sm:$0xff]  ;;  %v17007_v11 = vcombine.low %v10747_v2, %v10751_v3 }
 0xc4b   :  { %14276 = vmatpush1.bf16.msra.mxu1 %v16927_v33  ;;  %v10728_v33 = vld [vmem:[#allocation19 + $0x378] sm:$0xff] }
 0xc4c   :  { %14448 = vmatpush1.bf16.msra.mxu0 %v16929_v35  ;;  %14277 = vmatprep.subr.bf16.mxu1 %v16936_v37  ;;  %v16975_v35 = vcombine.low %v10715_v16, %v10719_v41  ;;  %v16977_v37 = vcombine.low %v10716_v18, %v10720_v17  ;;  %v16986_v21 = vcombine.high %v10724_v36, %v10728_v33  ;;  %v10763_v16 = vld [vmem:[#allocation19 + $0x490] sm:$0xff]  ;;  %v10764_v17 = vld [vmem:[#allocation19 + $0x498] sm:$0xff] }
 0xc4d   :  { %14449 = vmatprep.subr.bf16.mxu0 %v16938_v20  ;;  %v16984_v20 = vcombine.high %v10723_v32, %v10727_v44  ;;  %v10767_v41 = vld [vmem:[#allocation19 + $0x4b0] sm:$0xff] }
 0xc4f   :  { %14278 = vmatpush1.bf16.msra.mxu1 %v16935_v55  ;;  %v10736_v55 = vld [vmem:[#allocation19 + $0x3b8] sm:$0xff] }
 0xc50   :  { %14450 = vmatpush1.bf16.msra.mxu0 %v16937_v53  ;;  %14279 = vmatprep.subr.bf16.mxu1 %v16944_v57  ;;  %v16983_v53 = vcombine.low %v10723_v32, %v10727_v44  ;;  %v16985_v57 = vcombine.low %v10724_v36, %v10728_v33  ;;  %v16994_v58 = vcombine.high %v10732_v38, %v10736_v55  ;;  %v10771_v44 = vld [vmem:[#allocation19 + $0x4d0] sm:$0xff]  ;;  %v10772_v33 = vld [vmem:[#allocation19 + $0x4d8] sm:$0xff] }
 0xc51   :  { %14451 = vmatprep.subr.bf16.mxu0 %v16946_v8  ;;  %v16992_v8 = vcombine.high %v10731_v23, %v10735_v40  ;;  %v10775_v36 = vld [vmem:[#allocation19 + $0x4f0] sm:$0xff] }
 0xc53   :  { %14280 = vmatpush1.bf16.msra.mxu1 %v16943_v43  ;;  %v10744_v43 = vld [vmem:[#allocation19 + $0x3f8] sm:$0xff] }
 0xc54   :  { %14452 = vmatpush1.bf16.msra.mxu0 %v16945_v49  ;;  %14281 = vmatprep.subr.bf16.mxu1 %v16952_v52  ;;  %v16991_v49 = vcombine.low %v10731_v23, %v10735_v40  ;;  %v16993_v52 = vcombine.low %v10732_v38, %v10736_v55  ;;  %v17002_v61 = vcombine.high %v10740_v42, %v10744_v43  ;;  %v10779_v23 = vld [vmem:[#allocation19 + $0x510] sm:$0xff]  ;;  %v10780_v38 = vld [vmem:[#allocation19 + $0x518] sm:$0xff] }
 0xc55   :  { %14453 = vmatprep.subr.bf16.mxu0 %v16954_v19  ;;  %v17000_v19 = vcombine.high %v10739_v46, %v10743_v1  ;;  %v10783_v40 = vld [vmem:[#allocation19 + $0x530] sm:$0xff]  ;;  %v10784_v55 = vld [vmem:[#allocation19 + $0x538] sm:$0xff] }
 0xc57   :  { %14282 = vmatpush1.bf16.msra.mxu1 %v16951_v4  ;;  %v10752_v4 = vld [vmem:[#allocation19 + $0x438] sm:$0xff] }
 0xc58   :  { %14454 = vmatpush1.bf16.msra.mxu0 %v16953_v54  ;;  %14283 = vmatprep.subr.bf16.mxu1 %v16960_v7  ;;  %v16999_v54 = vcombine.low %v10739_v46, %v10743_v1  ;;  %v17001_v7 = vcombine.low %v10740_v42, %v10744_v43  ;;  %v17010_v10 = vcombine.high %v10748_v59, %v10752_v4  ;;  %v10791_v46 = vld [vmem:[#allocation19 + $0x570] sm:$0xff]  ;;  %v10788_v1 = vld [vmem:[#allocation19 + $0x558] sm:$0xff] }
 0xc59   :  { %14455 = vmatprep.subr.bf16.mxu0 %v16962_v9  ;;  %v17008_v9 = vcombine.high %v10747_v2, %v10751_v3  ;;  %v10792_v42 = vld [vmem:[#allocation19 + $0x578] sm:$0xff]  ;;  %v17039_v43 = vcombine.low %v10779_v23, %v10783_v40  ;;  %v10799_v2 = vld [vmem:[#allocation19 + $0x5b0] sm:$0xff] }
 0xc5a   :  { %v10796_v3 = vld [vmem:[#allocation19 + $0x598] sm:$0xff] }
 0xc5b   :  { %14284 = vmatpush1.bf16.msra.mxu1 %v16959_v13  ;;  %v10756_v13 = vld [vmem:[#allocation19 + $0x458] sm:$0xff] }
 0xc5c   :  { %14456 = vmatpush1.bf16.msra.mxu0 %v16961_v34  ;;  %14285 = vmatprep.subr.bf16.mxu1 %v16968_v14  ;;  %v10760_v34 = vld [vmem:[#allocation19 + $0x478] sm:$0xff]  ;;  %v17009_v14 = vcombine.low %v10748_v59, %v10752_v4 }
 0xc5d   :  { %14457 = vmatprep.subr.bf16.mxu0 %v16970_v15  ;;  %v17016_v15 = vcombine.high %v10755_v12, %v10759_v0  ;;  %v17018_v18 = vcombine.high %v10756_v13, %v10760_v34  ;;  %v10800_v59 = vld [vmem:[#allocation19 + $0x5b8] sm:$0xff] }
 0xc5f   :  { %14286 = vmatpush1.bf16.msra.mxu1 %v16967_v45  ;;  %v10768_v45 = vld [vmem:[#allocation19 + $0x4b8] sm:$0xff] }
 0xc60   :  { %14458 = vmatpush1.bf16.msra.mxu0 %v16969_v29  ;;  %14287 = vmatprep.subr.bf16.mxu1 %v16976_v5  ;;  %v17015_v29 = vcombine.low %v10755_v12, %v10759_v0  ;;  %v17017_v5 = vcombine.low %v10756_v13, %v10760_v34  ;;  %v17026_v32 = vcombine.high %v10764_v17, %v10768_v45  ;;  %v10807_v12 = vld [vmem:[#allocation19 + $0x5f0] sm:$0xff]  ;;  %v10804_v0 = vld [vmem:[#allocation19 + $0x5d8] sm:$0xff] }
 0xc61   :  { %14459 = vmatprep.subr.bf16.mxu0 %v16978_v30  ;;  %v17024_v30 = vcombine.high %v10763_v16, %v10767_v41  ;;  %v17057_v34 = vcombine.low %v10796_v3, %v10800_v59 }
 0xc63   :  { %14288 = vmatpush1.bf16.msra.mxu1 %v16975_v35  ;;  %v10776_v35 = vld [vmem:[#allocation19 + $0x4f8] sm:$0xff] }
 0xc64   :  { %14460 = vmatpush1.bf16.msra.mxu0 %v16977_v37  ;;  %14289 = vmatprep.subr.bf16.mxu1 %v16984_v20  ;;  %v17023_v37 = vcombine.low %v10763_v16, %v10767_v41  ;;  %v17032_v20 = vcombine.high %v10771_v44, %v10775_v36  ;;  %v10811_v16 = vld [vmem:[#allocation19 + $0x610] sm:$0xff] }
 0xc65   :  { %14461 = vmatprep.subr.bf16.mxu0 %v16986_v21  ;;  %v17034_v21 = vcombine.high %v10772_v33, %v10776_v35  ;;  %v10815_v41 = vld [vmem:[#allocation19 + $0x630] sm:$0xff] }
 0xc67   :  { %14290 = vmatpush1.bf16.msra.mxu1 %v16983_v53  ;;  %v17033_v53 = vcombine.low %v10772_v33, %v10776_v35  ;;  %v10824_v33 = vld [vmem:[#allocation19 + $0x678] sm:$0xff]  ;;  %v17071_v35 = vcombine.low %v10811_v16, %v10815_v41 }
 0xc68   :  { %14462 = vmatpush1.bf16.msra.mxu0 %v16985_v57  ;;  %14291 = vmatprep.subr.bf16.mxu1 %v16992_v8  ;;  %v17040_v57 = vcombine.high %v10779_v23, %v10783_v40  ;;  %v17042_v8 = vcombine.high %v10780_v38, %v10784_v55  ;;  %v10831_v23 = vld [vmem:[#allocation19 + $0x6b0] sm:$0xff]  ;;  %v10828_v40 = vld [vmem:[#allocation19 + $0x698] sm:$0xff] }
 0xc69   :  { %14463 = vmatprep.subr.bf16.mxu0 %v16994_v58  ;;  %v10787_v58 = vld [vmem:[#allocation19 + $0x550] sm:$0xff] }
 0xc6a   :  { %v17047_v4 = vcombine.low %v10787_v58, %v10791_v46 }
 0xc6b   :  { %14292 = vmatpush1.bf16.msra.mxu1 %v16991_v49  ;;  %v17041_v49 = vcombine.low %v10780_v38, %v10784_v55  ;;  %v10832_v38 = vld [vmem:[#allocation19 + $0x6b8] sm:$0xff] }
 0xc6c   :  { %14464 = vmatpush1.bf16.msra.mxu0 %v16993_v52  ;;  %14293 = vmatprep.subr.bf16.mxu1 %v17000_v19  ;;  %v17048_v52 = vcombine.high %v10787_v58, %v10791_v46  ;;  %v17050_v19 = vcombine.high %v10788_v1, %v10792_v42  ;;  %v10839_v58 = vld [vmem:[#allocation19 + $0x6f0] sm:$0xff]  ;;  %v10836_v46 = vld [vmem:[#allocation19 + $0x6d8] sm:$0xff] }
 0xc6d   :  { %14465 = vmatprep.subr.bf16.mxu0 %v17002_v61  ;;  %v10795_v61 = vld [vmem:[#allocation19 + $0x590] sm:$0xff] }
 0xc6e   :  { %v17055_v13 = vcombine.low %v10795_v61, %v10799_v2 }
 0xc6f   :  { %14294 = vmatpush1.bf16.msra.mxu1 %v16999_v54  ;;  %v17049_v54 = vcombine.low %v10788_v1, %v10792_v42  ;;  %v10840_v1 = vld [vmem:[#allocation19 + $0x6f8] sm:$0xff] }
 0xc70   :  { %14466 = vmatpush1.bf16.msra.mxu0 %v17001_v7  ;;  %14306 = vmatprep.subr.bf16.mxu1 %v17008_v9  ;;  %v17056_v7 = vcombine.high %v10795_v61, %v10799_v2  ;;  %v17058_v9 = vcombine.high %v10796_v3, %v10800_v59  ;;  %v10847_v61 = vld [vmem:[#allocation19 + $0x730] sm:$0xff]  ;;  %v10844_v2 = vld [vmem:[#allocation19 + $0x718] sm:$0xff] }
 0xc71   :  { %14478 = vmatprep.subr.bf16.mxu0 %v17010_v10  ;;  %v10803_v10 = vld [vmem:[#allocation19 + $0x5d0] sm:$0xff]  ;;  %v10848_v3 = vld [vmem:[#allocation19 + $0x738] sm:$0xff] }
 0xc72   :  { %14296 = vmatmul.mubr.bf16.vlgmr.msra.gmra.mrb[60].mxu1 %v18784_v60 }
 0xc73   :  { %14468 = vmatmul.mubr.bf16.vlgmr.msra.gmra.mrb[64].mxu0 %v18784_v60  ;;  %14307 = vmatpush1.bf16.msra.mxu1 %v17007_v11  ;;  %v17025_v60 = vcombine.low %v10764_v17, %v10768_v45  ;;  %v10808_v11 = vld [vmem:[#allocation19 + $0x5f8] sm:$0xff]  ;;  %v17063_v45 = vcombine.low %v10803_v10, %v10807_v12 }
 0xc74   :  { %14338 = vmatprep.mubr.bf16.mxu1 %v18790_v22  ;;  %14479 = vmatpush1.bf16.msra.mxu0 %v17009_v14  ;;  %v17064_v14 = vcombine.high %v10803_v10, %v10807_v12  ;;  %v10816_v17 = vld [vmem:[#allocation19 + $0x638] sm:$0xff]  ;;  %v10855_v10 = vld [vmem:[#allocation19 + $0x770] sm:$0xff] }
 0xc75   :  { %14510 = vmatprep.mubr.bf16.mxu0 %v18790_v22  ;;  %14308 = vmatprep.subr.bf16.mxu1 %v17016_v15  ;;  %v17031_v22 = vcombine.low %v10771_v44, %v10775_v36  ;;  %v17066_v15 = vcombine.high %v10804_v0, %v10808_v11  ;;  %v10823_v44 = vld [vmem:[#allocation19 + $0x670] sm:$0xff]  ;;  %v10820_v36 = vld [vmem:[#allocation19 + $0x658] sm:$0xff] }
 0xc76   :  { %14480 = vmatprep.subr.bf16.mxu0 %v17018_v18  ;;  %v10812_v18 = vld [vmem:[#allocation19 + $0x618] sm:$0xff] }
 0xc77   :  { %14309 = vmatpush1.bf16.msra.mxu1 %v17015_v29  ;;  %v17065_v29 = vcombine.low %v10804_v0, %v10808_v11  ;;  %v10852_v12 = vld [vmem:[#allocation19 + $0x758] sm:$0xff] }
 0xc78   :  { %14481 = vmatpush1.bf16.msra.mxu0 %v17017_v5  ;;  %14310 = vmatprep.subr.bf16.mxu1 %v17024_v30  ;;  %v17072_v5 = vcombine.high %v10811_v16, %v10815_v41  ;;  %v17074_v30 = vcombine.high %v10812_v18, %v10816_v17  ;;  %v10856_v0 = vld [vmem:[#allocation19 + $0x778] sm:$0xff]  ;;  %v10863_v16 = vld [vmem:[#allocation19 + $0x7b0] sm:$0xff] }
 0xc79   :  { %14482 = vmatprep.subr.bf16.mxu0 %v17026_v32  ;;  %v10819_v32 = vld [vmem:[#allocation19 + $0x650] sm:$0xff]  ;;  %v10860_v41 = vld [vmem:[#allocation19 + $0x798] sm:$0xff] }
 0xc7a   :  { %v17079_v55 = vcombine.low %v10819_v32, %v10823_v44 }
 0xc7b   :  { %14311 = vmatpush1.bf16.msra.mxu1 %v17023_v37  ;;  %v17073_v37 = vcombine.low %v10812_v18, %v10816_v17  ;;  %v10864_v18 = vld [vmem:[#allocation19 + $0x7b8] sm:$0xff] }
 0xc7c   :  { %14483 = vmatpush1.bf16.msra.mxu0 %v17025_v60  ;;  %14312 = vmatprep.subr.bf16.mxu1 %v17032_v20  ;;  %v17080_v60 = vcombine.high %v10819_v32, %v10823_v44  ;;  %v17082_v20 = vcombine.high %v10820_v36, %v10824_v33  ;;  %v10871_v32 = vld [vmem:[#allocation19 + $0x7f0] sm:$0xff]  ;;  %v10868_v44 = vld [vmem:[#allocation19 + $0x7d8] sm:$0xff] }
 0xc7d   :  { %14484 = vmatprep.subr.bf16.mxu0 %v17034_v21  ;;  %v10827_v21 = vld [vmem:[#allocation19 + $0x690] sm:$0xff] }
 0xc7e   :  { %v17087_v42 = vcombine.low %v10827_v21, %v10831_v23 }
 0xc7f   :  { %14313 = vmatpush1.bf16.msra.mxu1 %v17031_v22  ;;  %v17081_v22 = vcombine.low %v10820_v36, %v10824_v33  ;;  %v10872_v36 = vld [vmem:[#allocation19 + $0x7f8] sm:$0xff] }
 0xc80   :  { %14485 = vmatpush1.bf16.msra.mxu0 %v17033_v53  ;;  %14314 = vmatprep.subr.bf16.mxu1 %v17040_v57  ;;  %v17088_v53 = vcombine.high %v10827_v21, %v10831_v23  ;;  %v17090_v57 = vcombine.high %v10828_v40, %v10832_v38  ;;  %v10879_v21 = vld [vmem:[#allocation19 + $0x830] sm:$0xff]  ;;  %v10876_v23 = vld [vmem:[#allocation19 + $0x818] sm:$0xff] }
 0xc81   :  { %14486 = vmatprep.subr.bf16.mxu0 %v17042_v8  ;;  %v10835_v8 = vld [vmem:[#allocation19 + $0x6d0] sm:$0xff] }
 0xc82   :  { %v17095_v59 = vcombine.low %v10835_v8, %v10839_v58 }
 0xc83   :  { %14315 = vmatpush1.bf16.msra.mxu1 %v17039_v43  ;;  %v17089_v43 = vcombine.low %v10828_v40, %v10832_v38  ;;  %v10880_v40 = vld [vmem:[#allocation19 + $0x838] sm:$0xff] }
 0xc84   :  { %14487 = vmatpush1.bf16.msra.mxu0 %v17041_v49  ;;  %14316 = vmatprep.subr.bf16.mxu1 %v17048_v52  ;;  %v17096_v49 = vcombine.high %v10835_v8, %v10839_v58  ;;  %v17098_v52 = vcombine.high %v10836_v46, %v10840_v1  ;;  %v10887_v8 = vld [vmem:[#allocation19 + $0x870] sm:$0xff] }
 0xc85   :  { %14488 = vmatprep.subr.bf16.mxu0 %v17050_v19  ;;  %v10843_v19 = vld [vmem:[#allocation19 + $0x710] sm:$0xff] }
 0xc86   :  { %v17103_v11 = vcombine.low %v10843_v19, %v10847_v61 }
 0xc87   :  { %14317 = vmatpush1.bf16.msra.mxu1 %v17047_v4  ;;  %v17097_v4 = vcombine.low %v10836_v46, %v10840_v1  ;;  %v10884_v46 = vld [vmem:[#allocation19 + $0x858] sm:$0xff] }
 0xc88   :  { %14489 = vmatpush1.bf16.msra.mxu0 %v17049_v54  ;;  %14318 = vmatprep.subr.bf16.mxu1 %v17056_v7  ;;  %v17104_v54 = vcombine.high %v10843_v19, %v10847_v61  ;;  %v17106_v7 = vcombine.high %v10844_v2, %v10848_v3  ;;  %v10888_v1 = vld [vmem:[#allocation19 + $0x878] sm:$0xff] }
 0xc89   :  { %14490 = vmatprep.subr.bf16.mxu0 %v17058_v9  ;;  %v10851_v9 = vld [vmem:[#allocation19 + $0x750] sm:$0xff]  ;;  %v17146_v19 = vcombine.high %v10884_v46, %v10888_v1  ;;  %v10892_v61 = vld [vmem:[#allocation19 + $0x898] sm:$0xff] }
 0xc8a   :  { %v17111_v17 = vcombine.low %v10851_v9, %v10855_v10 }
 0xc8b   :  { %14319 = vmatpush1.bf16.msra.mxu1 %v17055_v13  ;;  %v17105_v13 = vcombine.low %v10844_v2, %v10848_v3  ;;  %v10896_v2 = vld [vmem:[#allocation19 + $0x8b8] sm:$0xff] }
 0xc8c   :  { %14491 = vmatpush1.bf16.msra.mxu0 %v17057_v34  ;;  %14320 = vmatprep.subr.bf16.mxu1 %v17064_v14  ;;  %v17112_v34 = vcombine.high %v10851_v9, %v10855_v10  ;;  %v17114_v14 = vcombine.high %v10852_v12, %v10856_v0  ;;  %v10903_v9 = vld [vmem:[#allocation19 + $0x8f0] sm:$0xff]  ;;  %v10900_v10 = vld [vmem:[#allocation19 + $0x8d8] sm:$0xff] }
 0xc8d   :  { %14492 = vmatprep.subr.bf16.mxu0 %v17066_v15  ;;  %v10859_v15 = vld [vmem:[#allocation19 + $0x790] sm:$0xff] }
 0xc8e   :  { %v17119_v33 = vcombine.low %v10859_v15, %v10863_v16 }
 0xc8f   :  { %14321 = vmatpush1.bf16.msra.mxu1 %v17063_v45  ;;  %v17113_v45 = vcombine.low %v10852_v12, %v10856_v0  ;;  %v10904_v12 = vld [vmem:[#allocation19 + $0x8f8] sm:$0xff] }
 0xc90   :  { %14493 = vmatpush1.bf16.msra.mxu0 %v17065_v29  ;;  %14322 = vmatprep.subr.bf16.mxu1 %v17072_v5  ;;  %v17120_v29 = vcombine.high %v10859_v15, %v10863_v16  ;;  %v17122_v5 = vcombine.high %v10860_v41, %v10864_v18  ;;  %v10908_v15 = vld [vmem:[#allocation19 + $0x918] sm:$0xff] }
 0xc91   :  { %14494 = vmatprep.subr.bf16.mxu0 %v17074_v30  ;;  %v10867_v30 = vld [vmem:[#allocation19 + $0x7d0] sm:$0xff]  ;;  %v10912_v16 = vld [vmem:[#allocation19 + $0x938] sm:$0xff] }
 0xc92   :  { %v17127_v38 = vcombine.low %v10867_v30, %v10871_v32 }
 0xc93   :  { %14323 = vmatpush1.bf16.msra.mxu1 %v17071_v35  ;;  %v17121_v35 = vcombine.low %v10860_v41, %v10864_v18  ;;  %v17161_v41 = vcombine.low %v10900_v10, %v10904_v12 }
 0xc94   :  { %14495 = vmatpush1.bf16.msra.mxu0 %v17073_v37  ;;  %14324 = vmatprep.subr.bf16.mxu1 %v17080_v60  ;;  %v17128_v37 = vcombine.high %v10867_v30, %v10871_v32  ;;  %v17130_v60 = vcombine.high %v10868_v44, %v10872_v36  ;;  %v10920_v30 = vld [vmem:[#allocation19 + $0x978] sm:$0xff] }
 0xc95   :  { %14496 = vmatprep.subr.bf16.mxu0 %v17082_v20  ;;  %v10875_v20 = vld [vmem:[#allocation19 + $0x810] sm:$0xff] }
 0xc96   :  { %v17135_v58 = vcombine.low %v10875_v20, %v10879_v21 }
 0xc97   :  { %14325 = vmatpush1.bf16.msra.mxu1 %v17079_v55  ;;  %v17129_v55 = vcombine.low %v10868_v44, %v10872_v36  ;;  %v17169_v44 = vcombine.low %v10908_v15, %v10912_v16 }
 0xc98   :  { %14497 = vmatpush1.bf16.msra.mxu0 %v17081_v22  ;;  %14326 = vmatprep.subr.bf16.mxu1 %v17088_v53  ;;  %v17136_v22 = vcombine.high %v10875_v20, %v10879_v21  ;;  %v17138_v53 = vcombine.high %v10876_v23, %v10880_v40  ;;  %v10928_v20 = vld [vmem:[#allocation19 + $0x9b8] sm:$0xff] }
 0xc99   :  { %14498 = vmatprep.subr.bf16.mxu0 %v17090_v57  ;;  %v10883_v57 = vld [vmem:[#allocation19 + $0x850] sm:$0xff] }
 0xc9a   :  { %v17143_v3 = vcombine.low %v10883_v57, %v10887_v8 }
 0xc9b   :  { %14327 = vmatpush1.bf16.msra.mxu1 %v17087_v42  ;;  %v17137_v42 = vcombine.low %v10876_v23, %v10880_v40 }
 0xc9c   :  { %14499 = vmatpush1.bf16.msra.mxu0 %v17089_v43  ;;  %14328 = vmatprep.subr.bf16.mxu1 %v17096_v49  ;;  %v17144_v43 = vcombine.high %v10883_v57, %v10887_v8  ;;  %v10891_v49 = vld [vmem:[#allocation19 + $0x890] sm:$0xff]  ;;  %v10936_v57 = vld [vmem:[#allocation19 + $0x9f8] sm:$0xff] }
 0xc9d   :  { %14500 = vmatprep.subr.bf16.mxu0 %v17098_v52  ;;  %v10895_v52 = vld [vmem:[#allocation19 + $0x8b0] sm:$0xff] }
 0xc9e   :  { %v17151_v0 = vcombine.low %v10891_v49, %v10895_v52 }
 0xc9f   :  { %14329 = vmatpush1.bf16.msra.mxu1 %v17095_v59  ;;  %v17145_v59 = vcombine.low %v10884_v46, %v10888_v1 }
 0xca0   :  { %14501 = vmatpush1.bf16.msra.mxu0 %v17097_v4  ;;  %14330 = vmatprep.subr.bf16.mxu1 %v17104_v54  ;;  %v17152_v4 = vcombine.high %v10891_v49, %v10895_v52  ;;  %v17154_v54 = vcombine.high %v10892_v61, %v10896_v2  ;;  %v10940_v49 = vld [vmem:[#allocation19 + $0xa18] sm:$0xff] }
 0xca1   :  { %14502 = vmatprep.subr.bf16.mxu0 %v17106_v7  ;;  %v10899_v7 = vld [vmem:[#allocation19 + $0x8d0] sm:$0xff]  ;;  %v10944_v52 = vld [vmem:[#allocation19 + $0xa38] sm:$0xff] }
 0xca3   :  { %14331 = vmatpush1.bf16.msra.mxu1 %v17103_v11  ;;  %v17160_v11 = vcombine.high %v10899_v7, %v10903_v9 }
 0xca4   :  { %14503 = vmatpush1.bf16.msra.mxu0 %v17105_v13  ;;  %14332 = vmatprep.subr.bf16.mxu1 %v17112_v34  ;;  %v17162_v13 = vcombine.high %v10900_v10, %v10904_v12  ;;  %v10907_v34 = vld [vmem:[#allocation19 + $0x910] sm:$0xff]  ;;  %v17201_v10 = vcombine.low %v10940_v49, %v10944_v52 }
 0xca5   :  { %14504 = vmatprep.subr.bf16.mxu0 %v17114_v14  ;;  %v10911_v14 = vld [vmem:[#allocation19 + $0x930] sm:$0xff] }
 0xca6   :  { %v17168_v18 = vcombine.high %v10907_v34, %v10911_v14  ;;  %v17167_v32 = vcombine.low %v10907_v34, %v10911_v14  ;;  %v10960_v34 = vld [vmem:[#allocation19 + $0xab8] sm:$0xff] }
 0xca7   :  { %14333 = vmatpush1.bf16.msra.mxu1 %v17111_v17  ;;  %v17170_v17 = vcombine.high %v10908_v15, %v10912_v16 }
 0xca8   :  { %14505 = vmatpush1.bf16.msra.mxu0 %v17113_v45  ;;  %14334 = vmatprep.subr.bf16.mxu1 %v17120_v29  ;;  %v10915_v45 = vld [vmem:[#allocation19 + $0x950] sm:$0xff] }
 0xca9   :  { %14506 = vmatprep.subr.bf16.mxu0 %v17122_v5  ;;  %v10919_v29 = vld [vmem:[#allocation19 + $0x970] sm:$0xff]  ;;  %v10916_v5 = vld [vmem:[#allocation19 + $0x958] sm:$0xff] }
 0xcaa   :  { %v17176_v36 = vcombine.high %v10915_v45, %v10919_v29  ;;  %v17175_v21 = vcombine.low %v10915_v45, %v10919_v29  ;;  %v17177_v23 = vcombine.low %v10916_v5, %v10920_v30  ;;  %v10968_v45 = vld [vmem:[#allocation19 + $0xaf8] sm:$0xff] }
 0xcab   :  { %14335 = vmatpush1.bf16.msra.mxu1 %v17119_v33  ;;  %v17178_v33 = vcombine.high %v10916_v5, %v10920_v30 }
 0xcac   :  { %14507 = vmatpush1.bf16.msra.mxu0 %v17121_v35  ;;  %14336 = vmatprep.subr.bf16.mxu1 %v17128_v37  ;;  %v10923_v35 = vld [vmem:[#allocation19 + $0x990] sm:$0xff] }
 0xcad   :  { %14508 = vmatprep.subr.bf16.mxu0 %v17130_v60  ;;  %v10927_v37 = vld [vmem:[#allocation19 + $0x9b0] sm:$0xff]  ;;  %v10924_v60 = vld [vmem:[#allocation19 + $0x998] sm:$0xff] }
 0xcae   :  { %v17184_v40 = vcombine.high %v10923_v35, %v10927_v37  ;;  %v17183_v8 = vcombine.low %v10923_v35, %v10927_v37  ;;  %v10976_v35 = vld [vmem:[#allocation19 + $0xb38] sm:$0xff] }
 0xcaf   :  { %14337 = vmatpush1.bf16.msra.mxu1 %v17127_v38  ;;  %v17186_v38 = vcombine.high %v10924_v60, %v10928_v20 }
 0xcb0   :  { %14509 = vmatpush1.bf16.msra.mxu0 %v17129_v55  ;;  %14349 = vmatprep.subr.bf16.mxu1 %v17136_v22  ;;  %v10931_v55 = vld [vmem:[#allocation19 + $0x9d0] sm:$0xff] }
 0xcb1   :  { %14521 = vmatprep.subr.bf16.mxu0 %v17138_v53  ;;  %v10935_v22 = vld [vmem:[#allocation19 + $0x9f0] sm:$0xff]  ;;  %v10932_v53 = vld [vmem:[#allocation19 + $0x9d8] sm:$0xff] }
 0xcb2   :  { %14339 = vmatmul.mubr.bf16.vlgmr.msra.gmra.mrb[60].mxu1 %v18788_v31  ;;  %v17192_v46 = vcombine.high %v10931_v55, %v10935_v22  ;;  %v17194_v1 = vcombine.high %v10932_v53, %v10936_v57 }
 0xcb3   :  { %14511 = vmatmul.mubr.bf16.vlgmr.msra.gmra.mrb[64].mxu0 %v18788_v31  ;;  %14350 = vmatpush1.bf16.msra.mxu1 %v17135_v58  ;;  %v17153_v31 = vcombine.low %v10892_v61, %v10896_v2  ;;  %v17185_v58 = vcombine.low %v10924_v60, %v10928_v20  ;;  %v17193_v61 = vcombine.low %v10932_v53, %v10936_v57 }
 0xcb4   :  { %14381 = vmatprep.mubr.bf16.mxu1 %v18806_v63  ;;  %14522 = vmatpush1.bf16.msra.mxu0 %v17137_v42  ;;  %v10939_v42 = vld [vmem:[#allocation19 + $0xa10] sm:$0xff] }
 0xcb5   :  { %14553 = vmatprep.mubr.bf16.mxu0 %v18806_v63  ;;  %14351 = vmatprep.subr.bf16.mxu1 %v17144_v43  ;;  %v17159_v63 = vcombine.low %v10899_v7, %v10903_v9  ;;  %v10943_v43 = vld [vmem:[#allocation19 + $0xa30] sm:$0xff]  ;;  %v10952_v7 = vld [vmem:[#allocation19 + $0xa78] sm:$0xff] }
 0xcb6   :  { %14523 = vmatprep.subr.bf16.mxu0 %v17146_v19  ;;  %v17191_v19 = vcombine.low %v10931_v55, %v10935_v22  ;;  %v17200_v2 = vcombine.high %v10939_v42, %v10943_v43  ;;  %v17199_v9 = vcombine.low %v10939_v42, %v10943_v43  ;;  %v10984_v55 = vld [vmem:[#allocation19 + $0xb78] sm:$0xff] }
 0xcb7   :  { %14352 = vmatpush1.bf16.msra.mxu1 %v17143_v3  ;;  %v17202_v3 = vcombine.high %v10940_v49, %v10944_v52  ;;  %v10992_v42 = vld [vmem:[#allocation19 + $0xbb8] sm:$0xff] }
 0xcb8   :  { %14524 = vmatpush1.bf16.msra.mxu0 %v17145_v59  ;;  %14353 = vmatprep.subr.bf16.mxu1 %v17152_v4  ;;  %v10947_v59 = vld [vmem:[#allocation19 + $0xa50] sm:$0xff] }
 0xcb9   :  { %14525 = vmatprep.subr.bf16.mxu0 %v17154_v54  ;;  %v10951_v4 = vld [vmem:[#allocation19 + $0xa70] sm:$0xff]  ;;  %v10948_v54 = vld [vmem:[#allocation19 + $0xa58] sm:$0xff] }
 0xcba   :  { %v17208_v12 = vcombine.high %v10947_v59, %v10951_v4  ;;  %v17207_v14 = vcombine.low %v10947_v59, %v10951_v4  ;;  %v17209_v15 = vcombine.low %v10948_v54, %v10952_v7  ;;  %v11000_v59 = vld [vmem:[#allocation19 + $0xbf8] sm:$0xff] }
 0xcbb   :  { %14354 = vmatpush1.bf16.msra.mxu1 %v17151_v0  ;;  %v17210_v0 = vcombine.high %v10948_v54, %v10952_v7 }
 0xcbc   :  { %14526 = vmatpush1.bf16.msra.mxu0 %v17153_v31  ;;  %14355 = vmatprep.subr.bf16.mxu1 %v17160_v11  ;;  %v10955_v31 = vld [vmem:[#allocation19 + $0xa90] sm:$0xff] }
 0xcbd   :  { %14527 = vmatprep.subr.bf16.mxu0 %v17162_v13  ;;  %v10959_v11 = vld [vmem:[#allocation19 + $0xab0] sm:$0xff]  ;;  %v10956_v13 = vld [vmem:[#allocation19 + $0xa98] sm:$0xff] }
 0xcbe   :  { %v17216_v16 = vcombine.high %v10955_v31, %v10959_v11  ;;  %v17215_v29 = vcombine.low %v10955_v31, %v10959_v11  ;;  %v17217_v5 = vcombine.low %v10956_v13, %v10960_v34  ;;  %v11008_v31 = vld [vmem:[#allocation19 + $0xc38] sm:$0xff] }
 0xcbf   :  { %14356 = vmatpush1.bf16.msra.mxu1 %v17159_v63  ;;  %v17218_v63 = vcombine.high %v10956_v13, %v10960_v34 }
 0xcc0   :  { %14528 = vmatpush1.bf16.msra.mxu0 %v17161_v41  ;;  %14357 = vmatprep.subr.bf16.mxu1 %v17168_v18  ;;  %v10963_v41 = vld [vmem:[#allocation19 + $0xad0] sm:$0xff] }
 0xcc1   :  { %14529 = vmatprep.subr.bf16.mxu0 %v17170_v17  ;;  %v10967_v18 = vld [vmem:[#allocation19 + $0xaf0] sm:$0xff]  ;;  %v10964_v17 = vld [vmem:[#allocation19 + $0xad8] sm:$0xff] }
 0xcc2   :  { %v17224_v30 = vcombine.high %v10963_v41, %v10967_v18  ;;  %v17223_v37 = vcombine.low %v10963_v41, %v10967_v18  ;;  %v17225_v60 = vcombine.low %v10964_v17, %v10968_v45  ;;  %v11012_v41 = vld [vmem:[#allocation19 + $0xc58] sm:$0xff] }
 0xcc3   :  { %14358 = vmatpush1.bf16.msra.mxu1 %v17167_v32  ;;  %v17226_v32 = vcombine.high %v10964_v17, %v10968_v45  ;;  %v11016_v18 = vld [vmem:[#allocation19 + $0xc78] sm:$0xff] }
 0xcc4   :  { %14530 = vmatpush1.bf16.msra.mxu0 %v17169_v44  ;;  %14359 = vmatprep.subr.bf16.mxu1 %v17176_v36  ;;  %v10971_v44 = vld [vmem:[#allocation19 + $0xb10] sm:$0xff] }
 0xcc5   :  { %14531 = vmatprep.subr.bf16.mxu0 %v17178_v33  ;;  %v10975_v36 = vld [vmem:[#allocation19 + $0xb30] sm:$0xff]  ;;  %v10972_v33 = vld [vmem:[#allocation19 + $0xb18] sm:$0xff] }
 0xcc6   :  { %v17232_v20 = vcombine.high %v10971_v44, %v10975_v36  ;;  %v17231_v22 = vcombine.low %v10971_v44, %v10975_v36  ;;  %v17233_v53 = vcombine.low %v10972_v33, %v10976_v35  ;;  %v11024_v44 = vld [vmem:[#allocation19 + $0xcb8] sm:$0xff] }
 0xcc7   :  { %14360 = vmatpush1.bf16.msra.mxu1 %v17175_v21  ;;  %v17234_v21 = vcombine.high %v10972_v33, %v10976_v35  ;;  %v17273_v33 = vcombine.low %v11012_v41, %v11016_v18 }
 0xcc8   :  { %14532 = vmatpush1.bf16.msra.mxu0 %v17177_v23  ;;  %14361 = vmatprep.subr.bf16.mxu1 %v17184_v40  ;;  %v10979_v23 = vld [vmem:[#allocation19 + $0xb50] sm:$0xff] }
 0xcc9   :  { %14533 = vmatprep.subr.bf16.mxu0 %v17186_v38  ;;  %v10983_v40 = vld [vmem:[#allocation19 + $0xb70] sm:$0xff]  ;;  %v10980_v38 = vld [vmem:[#allocation19 + $0xb58] sm:$0xff] }
 0xcca   :  { %v17240_v57 = vcombine.high %v10979_v23, %v10983_v40  ;;  %v17239_v43 = vcombine.low %v10979_v23, %v10983_v40  ;;  %v17241_v49 = vcombine.low %v10980_v38, %v10984_v55  ;;  %v11032_v23 = vld [vmem:[#allocation19 + $0xcf8] sm:$0xff] }
 0xccb   :  { %14362 = vmatpush1.bf16.msra.mxu1 %v17183_v8  ;;  %v17242_v8 = vcombine.high %v10980_v38, %v10984_v55 }
 0xccc   :  { %14534 = vmatpush1.bf16.msra.mxu0 %v17185_v58  ;;  %14363 = vmatprep.subr.bf16.mxu1 %v17192_v46  ;;  %v10987_v58 = vld [vmem:[#allocation19 + $0xb90] sm:$0xff] }
 0xccd   :  { %14535 = vmatprep.subr.bf16.mxu0 %v17194_v1  ;;  %v10991_v46 = vld [vmem:[#allocation19 + $0xbb0] sm:$0xff]  ;;  %v10988_v1 = vld [vmem:[#allocation19 + $0xb98] sm:$0xff] }
 0xcce   :  { %v17248_v52 = vcombine.high %v10987_v58, %v10991_v46  ;;  %v17247_v4 = vcombine.low %v10987_v58, %v10991_v46  ;;  %v17249_v54 = vcombine.low %v10988_v1, %v10992_v42 }
 0xccf   :  { %14364 = vmatpush1.bf16.msra.mxu1 %v17191_v19  ;;  %v17250_v19 = vcombine.high %v10988_v1, %v10992_v42  ;;  %v11043_v42 = vld [vmem:[#allocation19 + $0xd50] sm:$0xff] }
 0xcd0   :  { %14536 = vmatpush1.bf16.msra.mxu0 %v17193_v61  ;;  %14365 = vmatprep.subr.bf16.mxu1 %v17200_v2  ;;  %v10995_v61 = vld [vmem:[#allocation19 + $0xbd0] sm:$0xff] }
 0xcd1   :  { %14537 = vmatprep.subr.bf16.mxu0 %v17202_v3  ;;  %v10999_v2 = vld [vmem:[#allocation19 + $0xbf0] sm:$0xff]  ;;  %v10996_v3 = vld [vmem:[#allocation19 + $0xbd8] sm:$0xff] }
 0xcd2   :  { %v17256_v7 = vcombine.high %v10995_v61, %v10999_v2  ;;  %v17255_v11 = vcombine.low %v10995_v61, %v10999_v2  ;;  %v17257_v13 = vcombine.low %v10996_v3, %v11000_v59  ;;  %v18834_v61 = vld [vmem:[#allocation20] sm:$0xff] }
 0xcd3   :  { %14366 = vmatpush1.bf16.msra.mxu1 %v17199_v9  ;;  %v17258_v9 = vcombine.high %v10996_v3, %v11000_v59 }
 0xcd4   :  { %14538 = vmatpush1.bf16.msra.mxu0 %v17201_v10  ;;  %14367 = vmatprep.subr.bf16.mxu1 %v17208_v12  ;;  %v11003_v10 = vld [vmem:[#allocation19 + $0xc10] sm:$0xff] }
 0xcd5   :  { %14539 = vmatprep.subr.bf16.mxu0 %v17210_v0  ;;  %v11007_v12 = vld [vmem:[#allocation19 + $0xc30] sm:$0xff]  ;;  %v11004_v0 = vld [vmem:[#allocation19 + $0xc18] sm:$0xff] }
 0xcd6   :  { %v17264_v34 = vcombine.high %v11003_v10, %v11007_v12  ;;  %v17265_v17 = vcombine.low %v11004_v0, %v11008_v31 }
 0xcd7   :  { %14368 = vmatpush1.bf16.msra.mxu1 %v17207_v14  ;;  %v17266_v14 = vcombine.high %v11004_v0, %v11008_v31  ;;  %v11326_v0 = vrot.slane %v18834_v61, %v18539_v50  ;;  %v11334_v31 = vrot.slane %v18834_v61, %v18542_v51  ;;  %v11060_v50 = vld [vmem:[#allocation19 + $0xdd8] sm:$0xff] }
 0xcd8   :  { %14540 = vmatpush1.bf16.msra.mxu0 %v17209_v15  ;;  %14369 = vmatprep.subr.bf16.mxu1 %v17216_v16  ;;  %v11011_v15 = vld [vmem:[#allocation19 + $0xc50] sm:$0xff] }
 0xcd9   :  { %14541 = vmatprep.subr.bf16.mxu0 %v17218_v63  ;;  %v11015_v16 = vld [vmem:[#allocation19 + $0xc70] sm:$0xff]  ;;  %v17263_v63 = vcombine.low %v11003_v10, %v11007_v12  ;;  %v11052_v10 = vld [vmem:[#allocation19 + $0xd98] sm:$0xff] }
 0xcda   :  { %v17272_v45 = vcombine.high %v11011_v15, %v11015_v16  ;;  %v17271_v36 = vcombine.low %v11011_v15, %v11015_v16  ;;  %v11056_v12 = vld [vmem:[#allocation19 + $0xdb8] sm:$0xff]  ;;  %v11063_v15 = vld [vmem:[#allocation19 + $0xdf0] sm:$0xff] }
 0xcdb   :  { %14370 = vmatpush1.bf16.msra.mxu1 %v17215_v29  ;;  %v11019_v29 = vld [vmem:[#allocation19 + $0xc90] sm:$0xff] }
 0xcdc   :  { %14542 = vmatpush1.bf16.msra.mxu0 %v17217_v5  ;;  %14371 = vmatprep.subr.bf16.mxu1 %v17224_v30  ;;  %v11023_v5 = vld [vmem:[#allocation19 + $0xcb0] sm:$0xff]  ;;  %v17274_v30 = vcombine.high %v11012_v41, %v11016_v18 }
 0xcdd   :  { %14543 = vmatprep.subr.bf16.mxu0 %v17226_v32  ;;  %v11020_v32 = vld [vmem:[#allocation19 + $0xc98] sm:$0xff]  ;;  %v17280_v35 = vcombine.high %v11019_v29, %v11023_v5  ;;  %v17279_v40 = vcombine.low %v11019_v29, %v11023_v5 }
 0xcde   :  { %v11064_v29 = vld [vmem:[#allocation19 + $0xdf8] sm:$0xff] }
 0xcdf   :  { %14372 = vmatpush1.bf16.msra.mxu1 %v17223_v37  ;;  %v17282_v37 = vcombine.high %v11020_v32, %v11024_v44 }
 0xce0   :  { %14544 = vmatpush1.bf16.msra.mxu0 %v17225_v60  ;;  %14373 = vmatprep.subr.bf16.mxu1 %v17232_v20  ;;  %v11027_v60 = vld [vmem:[#allocation19 + $0xcd0] sm:$0xff] }
 0xce1   :  { %14545 = vmatprep.subr.bf16.mxu0 %v17234_v21  ;;  %v11031_v20 = vld [vmem:[#allocation19 + $0xcf0] sm:$0xff]  ;;  %v11028_v21 = vld [vmem:[#allocation19 + $0xcd8] sm:$0xff] }
 0xce2   :  { %v17288_v38 = vcombine.high %v11027_v60, %v11031_v20  ;;  %v17290_v55 = vcombine.high %v11028_v21, %v11032_v23  ;;  %v17289_v58 = vcombine.low %v11028_v21, %v11032_v23 }
 0xce3   :  { %14374 = vmatpush1.bf16.msra.mxu1 %v17231_v22  ;;  %v11035_v22 = vld [vmem:[#allocation19 + $0xd10] sm:$0xff] }
 0xce4   :  { %14546 = vmatpush1.bf16.msra.mxu0 %v17233_v53  ;;  %14375 = vmatprep.subr.bf16.mxu1 %v17240_v57  ;;  %v11039_v53 = vld [vmem:[#allocation19 + $0xd30] sm:$0xff]  ;;  %v11036_v57 = vld [vmem:[#allocation19 + $0xd18] sm:$0xff] }
 0xce5   :  { %14547 = vmatprep.subr.bf16.mxu0 %v17242_v8  ;;  %v11040_v8 = vld [vmem:[#allocation19 + $0xd38] sm:$0xff]  ;;  %v17296_v46 = vcombine.high %v11035_v22, %v11039_v53 }
 0xce6   :  { %v17298_v1 = vcombine.high %v11036_v57, %v11040_v8  ;;  %v17297_v2 = vcombine.low %v11036_v57, %v11040_v8 }
 0xce7   :  { %14376 = vmatpush1.bf16.msra.mxu1 %v17239_v43  ;;  %v11047_v43 = vld [vmem:[#allocation19 + $0xd70] sm:$0xff] }
 0xce8   :  { %14548 = vmatpush1.bf16.msra.mxu0 %v17241_v49  ;;  %14377 = vmatprep.subr.bf16.mxu1 %v17248_v52  ;;  %v11044_v49 = vld [vmem:[#allocation19 + $0xd58] sm:$0xff]  ;;  %v17304_v3 = vcombine.high %v11043_v42, %v11047_v43 }
 0xce9   :  { %14549 = vmatprep.subr.bf16.mxu0 %v17250_v19  ;;  %v11048_v52 = vld [vmem:[#allocation19 + $0xd78] sm:$0xff]  ;;  %v17295_v19 = vcombine.low %v11035_v22, %v11039_v53 }
 0xcea   :  { %v17306_v59 = vcombine.high %v11044_v49, %v11048_v52 }
 0xceb   :  { %14378 = vmatpush1.bf16.msra.mxu1 %v17247_v4  ;;  %v11051_v4 = vld [vmem:[#allocation19 + $0xd90] sm:$0xff] }
 0xcec   :  { %14550 = vmatpush1.bf16.msra.mxu0 %v17249_v54  ;;  %14379 = vmatprep.subr.bf16.mxu1 %v17256_v7  ;;  %v11055_v54 = vld [vmem:[#allocation19 + $0xdb0] sm:$0xff]  ;;  %v11322_v7 = vrot.slane %v18834_v61, %v18533_v47 }
 0xced   :  { %14551 = vmatprep.subr.bf16.mxu0 %v17258_v9  ;;  %v11330_v9 = vrot.slane %v18834_v61, %v18536_v48  ;;  %v17314_v48 = vcombine.high %v11052_v10, %v11056_v12 }
 0xcef   :  { %14380 = vmatpush1.bf16.msra.mxu1 %v17255_v11  ;;  %v17303_v11 = vcombine.low %v11043_v42, %v11047_v43 }
 0xcf0   :  { %14552 = vmatpush1.bf16.msra.mxu0 %v17257_v13  ;;  %14392 = vmatprep.subr.bf16.mxu1 %v17264_v34  ;;  %v17305_v13 = vcombine.low %v11044_v49, %v11048_v52  ;;  %v17312_v34 = vcombine.high %v11051_v4, %v11055_v54 }
 0xcf1   :  { %14564 = vmatprep.subr.bf16.mxu0 %v17266_v14  ;;  %v11059_v14 = vld [vmem:[#allocation19 + $0xdd0] sm:$0xff] }
 0xcf2   :  { %14382 = vmatmul.mubr.bf16.vlgmr.msra.gmra.mrb[60].mxu1 %v18804_v28 }
 0xcf3   :  { %14554 = vmatmul.mubr.bf16.vlgmr.msra.gmra.mrb[64].mxu0 %v18804_v28  ;;  %14393 = vmatpush1.bf16.msra.mxu1 %v17263_v63  ;;  %v17281_v28 = vcombine.low %v11020_v32, %v11024_v44  ;;  %v17313_v44 = vcombine.low %v11052_v10, %v11056_v12 }
 0xcf4   :  { %14424 = vmatprep.mubr.bf16.mxu1 %v18810_v62  ;;  %14565 = vmatpush1.bf16.msra.mxu0 %v17265_v17 }
 0xcf5   :  { %14596 = vmatprep.mubr.bf16.mxu0 %v18810_v62  ;;  %14394 = vmatprep.subr.bf16.mxu1 %v17272_v45  ;;  %v17287_v62 = vcombine.low %v11027_v60, %v11031_v20  ;;  %v17311_v45 = vcombine.low %v11051_v4, %v11055_v54  ;;  %v17320_v20 = vcombine.high %v11059_v14, %v11063_v15  ;;  %v11075_v4 = vld [vmem:[#allocation19 + $0xe50] sm:$0xff] }
 0xcf6   :  { %14566 = vmatprep.subr.bf16.mxu0 %v17274_v30  ;;  %v11079_v54 = vld [vmem:[#allocation19 + $0xe70] sm:$0xff] }
 0xcf7   :  { %14395 = vmatpush1.bf16.msra.mxu1 %v17271_v36  ;;  %v17319_v36 = vcombine.low %v11059_v14, %v11063_v15  ;;  %v11088_v14 = vld [vmem:[#allocation19 + $0xeb8] sm:$0xff]  ;;  %v17335_v15 = vcombine.low %v11075_v4, %v11079_v54 }
 0xcf8   :  { %14567 = vmatpush1.bf16.msra.mxu0 %v17273_v33  ;;  %14396 = vmatprep.subr.bf16.mxu1 %v17280_v35 }
 0xcf9   :  { %14568 = vmatprep.subr.bf16.mxu0 %v17282_v37 }
 0xcfb   :  { %14397 = vmatpush1.bf16.msra.mxu1 %v17279_v40  ;;  %v17321_v40 = vcombine.low %v11060_v50, %v11064_v29 }
 0xcfc   :  { %14569 = vmatpush1.bf16.msra.mxu0 %v17281_v28  ;;  %14398 = vmatprep.subr.bf16.mxu1 %v17288_v38  ;;  %v17322_v28 = vcombine.high %v11060_v50, %v11064_v29  ;;  %v11067_v38 = vld [vmem:[#allocation19 + $0xe10] sm:$0xff] }
 0xcfd   :  { %14570 = vmatprep.subr.bf16.mxu0 %v17290_v55  ;;  %v11071_v55 = vld [vmem:[#allocation19 + $0xe30] sm:$0xff] }
 0xcfe   :  { %v17327_v10 = vcombine.low %v11067_v38, %v11071_v55 }
 0xcff   :  { %14399 = vmatpush1.bf16.msra.mxu1 %v17287_v62  ;;  %v11068_v62 = vld [vmem:[#allocation19 + $0xe18] sm:$0xff] }
 0xd00   :  { %14571 = vmatpush1.bf16.msra.mxu0 %v17289_v58  ;;  %14400 = vmatprep.subr.bf16.mxu1 %v17296_v46  ;;  %v11072_v58 = vld [vmem:[#allocation19 + $0xe38] sm:$0xff] }
 0xd01   :  { %14572 = vmatprep.subr.bf16.mxu0 %v17298_v1  ;;  %v17329_v12 = vcombine.low %v11068_v62, %v11072_v58 }
 0xd03   :  { %14401 = vmatpush1.bf16.msra.mxu1 %v17295_v19  ;;  %v17328_v19 = vcombine.high %v11067_v38, %v11071_v55 }
 0xd04   :  { %14573 = vmatpush1.bf16.msra.mxu0 %v17297_v2  ;;  %14402 = vmatprep.subr.bf16.mxu1 %v17304_v3 }
 0xd05   :  { %v14082_v47 = vpop.f32.mrb[56].mxu1  ;;  %v14254_v16 = vpop.f32.mrb[60].mxu0  ;;  %14574 = vmatprep.subr.bf16.mxu0 %v17306_v59  ;;  %v17330_v59 = vcombine.high %v11068_v62, %v11072_v58 }
 0xd06   :  { %v17600_v63 = vadd.f32 %v14082_v47, %v11322_v7  ;;  %v17604_v41 = vadd.f32 %v14254_v16, %v11330_v9  ;;  %v14084_v18 = vpop.f32.mrb[57].mxu1  ;;  %v14256_v17 = vpop.f32.mrb[61].mxu0 }
 0xd07   :  { %v17601_v5 = vadd.f32 %v14084_v18, %v11326_v0  ;;  %v17605_v51 = vadd.f32 %v14256_v17, %v11334_v31  ;;  %v14086_v30 = vpop.f32.mrb[58].mxu1  ;;  %v14258_v32 = vpop.f32.mrb[62].mxu0  ;;  %14403 = vmatpush1.bf16.msra.mxu1 %v17303_v11  ;;  %v11083_v11 = vld [vmem:[#allocation19 + $0xe90] sm:$0xff]  ;;  %v11092_v18 = vld [vmem:[#allocation19 + $0xed8] sm:$0xff] }
 0xd08   :  { %v17602_v33 = vadd.f32 %v14086_v30, %v11322_v7  ;;  %v17606_v35 = vadd.f32 %v14258_v32, %v11330_v9  ;;  %14575 = vmatpush1.bf16.msra.mxu0 %v17305_v13  ;;  %v14088_v37 = vpop.f32.mrb[59].mxu1  ;;  %v14260_v60 = vpop.f32.mrb[63].mxu0  ;;  %14404 = vmatprep.subr.bf16.mxu1 %v17312_v34  ;;  %v14607_v22 = vmax.f32 %v17600_v63, 0.0  ;;  %v14609_v53 = vmax.f32 %v17604_v41, 0.0  ;;  %v11076_v7 = vld [vmem:[#allocation19 + $0xe58] sm:$0xff]  ;;  %v11087_v13 = vld [vmem:[#allocation19 + $0xeb0] sm:$0xff] }
 0xd09   :  { %v17603_v21 = vadd.f32 %v14088_v37, %v11326_v0  ;;  %v17607_v23 = vadd.f32 %v14260_v60, %v11334_v31  ;;  %14576 = vmatprep.subr.bf16.mxu0 %v17314_v48  ;;  %v14608_v46 = vmax.f32 %v17601_v5, 0.0  ;;  %v14610_v1 = vmax.f32 %v17605_v51, 0.0  ;;  %v11080_v9 = vld [vmem:[#allocation19 + $0xe78] sm:$0xff]  ;;  %v11091_v63 = vld [vmem:[#allocation19 + $0xed0] sm:$0xff] }
 0xd0a   :  { %v14615_v57 = vmax.f32 %v17602_v33, 0.0  ;;  %v14617_v8 = vmax.f32 %v17606_v35, 0.0  ;;  %v17336_v0 = vcombine.high %v11075_v4, %v11079_v54  ;;  %v17338_v31 = vcombine.high %v11076_v7, %v11080_v9  ;;  %v11084_v34 = vld [vmem:[#allocation19 + $0xe98] sm:$0xff]  ;;  %v11095_v41 = vld [vmem:[#allocation19 + $0xef0] sm:$0xff] }
 0xd0b   :  { %v14616_v42 = vmax.f32 %v17603_v21, 0.0  ;;  %v14618_v43 = vmax.f32 %v17607_v23, 0.0  ;;  %14405 = vmatpush1.bf16.msra.mxu1 %v17311_v45  ;;  %v17337_v47 = vcombine.low %v11076_v7, %v11080_v9  ;;  %v17344_v16 = vcombine.high %v11083_v11, %v11087_v13  ;;  %v11096_v17 = vld [vmem:[#allocation19 + $0xef8] sm:$0xff]  ;;  %v11099_v51 = vld [vmem:[#allocation19 + $0xf10] sm:$0xff] }
 0xd0c   :  { %v18844_v49 = vpack.c.bf16 %v14615_v57, %v14607_v22  ;;  %v18846_v52 = vpack.c.bf16 %v14617_v8, %v14609_v53  ;;  %14577 = vmatpush1.bf16.msra.mxu0 %v17313_v44  ;;  %14406 = vmatprep.subr.bf16.mxu1 %v17320_v20  ;;  %v17346_v48 = vcombine.high %v11084_v34, %v11088_v14  ;;  %v11103_v30 = vld [vmem:[#allocation19 + $0xf30] sm:$0xff]  ;;  %v11100_v32 = vld [vmem:[#allocation19 + $0xf18] sm:$0xff] }
 0xd0d   :  { %v18848_v2 = vpack.c.bf16 %v14616_v42, %v14608_v46  ;;  %v18850_v3 = vpack.c.bf16 %v14618_v43, %v14610_v1  ;;  %14578 = vmatprep.subr.bf16.mxu0 %v17322_v28  ;;  %v17343_v45 = vcombine.low %v11083_v11, %v11087_v13  ;;  %v17345_v50 = vcombine.low %v11084_v34, %v11088_v14  ;;  %v11104_v44 = vld [vmem:[#allocation19 + $0xf38] sm:$0xff]  ;;  %v11107_v60 = vld [vmem:[#allocation19 + $0xf50] sm:$0xff] }
 0xd0e   :  { %v17352_v29 = vcombine.high %v11091_v63, %v11095_v41  ;;  %v17354_v5 = vcombine.high %v11092_v18, %v11096_v17  ;;  %v17353_v33 = vcombine.low %v11092_v18, %v11096_v17  ;;  %v17360_v35 = vcombine.high %v11099_v51, %v11103_v30  ;;  %v11111_v20 = vld [vmem:[#allocation19 + $0xf70] sm:$0xff]  ;;  %v11108_v21 = vld [vmem:[#allocation19 + $0xf58] sm:$0xff] }
 0xd0f   :  { %14407 = vmatpush1.bf16.msra.mxu1 %v17319_v36  ;;  %v17351_v36 = vcombine.low %v11091_v63, %v11095_v41  ;;  %v17362_v37 = vcombine.high %v11100_v32, %v11104_v44  ;;  %v11112_v23 = vld [vmem:[#allocation19 + $0xf78] sm:$0xff]  ;;  %v17361_v28 = vcombine.low %v11100_v32, %v11104_v44  ;;  %v17368_v38 = vcombine.high %v11107_v60, %v11111_v20  ;;  %v11115_v22 = vld [vmem:[#allocation19 + $0xf90] sm:$0xff]  ;;  %v17847_v32 = vld [vmem:[%s19119_s12 + $0x40] sm:$0xff]  }
 0xd10   :  { %14579 = vmatpush1.bf16.msra.mxu0 %v17321_v40  ;;  %14408 = vmatprep.subr.bf16.mxu1 %v17328_v19  ;;  %v17359_v40 = vcombine.low %v11099_v51, %v11103_v30  ;;  %v17370_v55 = vcombine.high %v11108_v21, %v11112_v23  ;;  %v11119_v53 = vld [vmem:[#allocation19 + $0xfb0] sm:$0xff]  ;;  %v11116_v57 = vld [vmem:[#allocation19 + $0xf98] sm:$0xff]  ;;  %v17367_v62 = vcombine.low %v11107_v60, %v11111_v20 }
 0xd11   :  { %14580 = vmatprep.subr.bf16.mxu0 %v17330_v59  ;;  %v11120_v8 = vld [vmem:[#allocation19 + $0xfb8] sm:$0xff]  ;;  %v17369_v58 = vcombine.low %v11108_v21, %v11112_v23  ;;  %v17376_v46 = vcombine.high %v11115_v22, %v11119_v53  ;;  %v11123_v42 = vld [vmem:[#allocation19 + $0xfd0] sm:$0xff]  ;;  %v17375_v4 = vcombine.low %v11115_v22, %v11119_v53  ;;  %v17848_v21 = vld [vmem:[%s19119_s12] sm:$0xff]  }
 0xd12   :  { %v17378_v1 = vcombine.high %v11116_v57, %v11120_v8  ;;  %v11127_v43 = vld [vmem:[#allocation19 + $0xff0] sm:$0xff]  ;;  %v11124_v19 = vld [vmem:[#allocation19 + $0xfd8] sm:$0xff]  ;;  %v17377_v54 = vcombine.low %v11116_v57, %v11120_v8 }
 0xd13   :  { %14409 = vmatpush1.bf16.msra.mxu1 %v17327_v10  ;;  %v11128_v59 = vld [vmem:[#allocation19 + $0xff8] sm:$0xff]  ;;  %v17384_v7 = vcombine.high %v11123_v42, %v11127_v43  ;;  %v17383_v10 = vcombine.low %v11123_v42, %v11127_v43  ;;  %v17853_v8 = vld [vmem:[%s19119_s12 + $0xc8] sm:$0xff]  }
 0xd14   :  { %14581 = vmatpush1.bf16.msra.mxu0 %v17329_v12  ;;  %14410 = vmatprep.subr.bf16.mxu1 %v17336_v0  ;;  %v17386_v9 = vcombine.high %v11124_v19, %v11128_v59  ;;  %v17385_v12 = vcombine.low %v11124_v19, %v11128_v59  ;;  %v17856_v42 = vld [vmem:[%s19119_s12 + $0x10] sm:$0xff]   ;;  %v17859_v19 = vld [vmem:[%s19119_s12 + $0x58] sm:$0xff]  }
 0xd15   :  { %14582 = vmatprep.subr.bf16.mxu0 %v17338_v31  ;;  %v17858_v43 = vld [vmem:[%s19119_s12 + $0x90] sm:$0xff]   ;;  %v17861_v59 = vld [vmem:[%s19119_s12 + $0xd8] sm:$0xff]  }
 0xd17   :  { %14411 = vmatpush1.bf16.msra.mxu1 %v17335_v15 }
 0xd18   :  { %14583 = vmatpush1.bf16.msra.mxu0 %v17337_v47  ;;  %14412 = vmatprep.subr.bf16.mxu1 %v17344_v16 }
 0xd19   :  { %14584 = vmatprep.subr.bf16.mxu0 %v17346_v48 }
 0xd1b   :  { %14413 = vmatpush1.bf16.msra.mxu1 %v17343_v45 }
 0xd1c   :  { %14585 = vmatpush1.bf16.msra.mxu0 %v17345_v50  ;;  %14414 = vmatprep.subr.bf16.mxu1 %v17352_v29 }
 0xd1d   :  { %14586 = vmatprep.subr.bf16.mxu0 %v17354_v5 }
 0xd1f   :  { %14415 = vmatpush1.bf16.msra.mxu1 %v17351_v36 }
 0xd20   :  { %14587 = vmatpush1.bf16.msra.mxu0 %v17353_v33  ;;  %14416 = vmatprep.subr.bf16.mxu1 %v17360_v35  ;;  %v17849_v33 = vld [vmem:[%s19119_s12 + $0xc0] sm:$0xff]  }
 0xd21   :  { %14588 = vmatprep.subr.bf16.mxu0 %v17362_v37 }
 0xd23   :  { %14417 = vmatpush1.bf16.msra.mxu1 %v17359_v40 }
 0xd24   :  { %14589 = vmatpush1.bf16.msra.mxu0 %v17361_v28  ;;  %14418 = vmatprep.subr.bf16.mxu1 %v17368_v38  ;;  %v17850_v38 = vld [vmem:[%s19119_s12 + $0x80] sm:$0xff]  }
 0xd25   :  { %14590 = vmatprep.subr.bf16.mxu0 %v17370_v55  ;;  %v17851_v55 = vld [vmem:[%s19119_s12 + $0x48] sm:$0xff]  }
 0xd27   :  { %14419 = vmatpush1.bf16.msra.mxu1 %v17367_v62 }
 0xd28   :  { %14591 = vmatpush1.bf16.msra.mxu0 %v17369_v58  ;;  %14420 = vmatprep.subr.bf16.mxu1 %v17376_v46  ;;  %v17852_v58 = vld [vmem:[%s19119_s12 + $0x8] sm:$0xff]  }
 0xd29   :  { %14592 = vmatprep.subr.bf16.mxu0 %v17378_v1  ;;  %v17854_v46 = vld [vmem:[%s19119_s12 + $0x88] sm:$0xff]   ;;  %v17855_v1 = vld [vmem:[%s19119_s12 + $0x50] sm:$0xff]  }
 0xd2b   :  { %14421 = vmatpush1.bf16.msra.mxu1 %v17375_v4  ;;  %v17860_v4 = vld [vmem:[%s19119_s12 + $0x18] sm:$0xff]  }
 0xd2c   :  { %14593 = vmatpush1.bf16.msra.mxu0 %v17377_v54  ;;  %14422 = vmatprep.subr.bf16.mxu1 %v17384_v7  ;;  %v17862_v54 = vld [vmem:[%s19119_s12 + $0x98] sm:$0xff]   ;;  %v17863_v7 = vld [vmem:[%s19119_s12 + $0x60] sm:$0xff]  }
 0xd2d   :  { %14594 = vmatprep.subr.bf16.mxu0 %v17386_v9  ;;  %v17865_v9 = vld [vmem:[%s19119_s12 + $0xe0] sm:$0xff]  }
 0xd2f   :  { %14423 = vmatpush1.bf16.msra.mxu1 %v17383_v10  ;;  %v17864_v10 = vld [vmem:[%s19119_s12 + $0x20] sm:$0xff]  }
 0xd30   :  { %14595 = vmatpush1.bf16.msra.mxu0 %v17385_v12  ;;  %14760 = vmatprep.subr.bf16.mxu1 %v18848_v2  ;;  %v11350_v2 = vrot.slane %v18834_v61, %v18598_v27  ;;  %v17866_v12 = vld [vmem:[%s19119_s12 + $0xa0] sm:$0xff]  }
 0xd31   :  { %14803 = vmatprep.subr.bf16.mxu0 %v18850_v3 }
 0xd32   :  { %14425 = vmatmul.mubr.bf16.vlgmr.msra.gmra.mrb[60].mxu1 %v18808_v56 }
 0xd33   :  { %14597 = vmatmul.mubr.bf16.vlgmr.msra.gmra.mrb[64].mxu0 %v18808_v56  ;;  %14761 = vmatpush1.bf16.msra.mxu1 %v18844_v49  ;;  %v11338_v56 = vrot.slane %v18834_v61, %v18589_v24  ;;  %v11346_v49 = vrot.slane %v18834_v61, %v18592_v25 }
 0xd34   :  { %14804 = vmatpush1.bf16.msra.mxu0 %v18846_v52  ;;  %14792 = vmatprep.mubr.bf16.mxu1 %v18264_v39  ;;  %v11342_v52 = vrot.slane %v18834_v61, %v18595_v26 }
 0xd35   :  { %14835 = vmatprep.mubr.bf16.mxu0 %v18264_v39 }
 0xd3a   :  { %17387 = vmatmul.mubr.msk.bf16.vlgmr.msra.gmra.mrb[64].mxu1 %vm252_vm1, %v18522_v6 }
 0xd3b   :  { %17388 = vmatmul.mubr.msk.bf16.vlgmr.msra.gmra.mrb[68].mxu0 %vm252_vm1, %v18522_v6  ;;  %14878 = vmatprep.mubr.bf16.mxu1 %v18264_v39 }
 0xd3c   :  { %14921 = vmatprep.mubr.bf16.mxu0 %v18264_v39 }
 0xe05   :  { %v14426_v3 = vpop.f32.mrb[60].mxu1 }
 0xe06   :  { %v17608_v0 = vadd.f32 %v14426_v3, %v11338_v56  ;;  %v14598_v31 = vpop.f32.mrb[64].mxu0  ;;  %v14428_v11 = vpop.f32.mrb[61].mxu1  ;;  %v17871_v3 = vld [vmem:[%s19119_s12 + $0x70] sm:$0xff]  }
 0xe07   :  { %v17612_v13 = vadd.f32 %v14598_v31, %v11346_v49  ;;  %v17609_v34 = vadd.f32 %v14428_v11, %v11342_v52  ;;  %v14600_v14 = vpop.f32.mrb[65].mxu0  ;;  %v14430_v39 = vpop.f32.mrb[62].mxu1  ;;  %v17872_v31 = vld [vmem:[%s19119_s12 + $0x30] sm:$0xff]  }
 0xe08   :  { %v17613_v15 = vadd.f32 %v14600_v14, %v11350_v2  ;;  %v17610_v47 = vadd.f32 %v14430_v39, %v11338_v56  ;;  %v14602_v24 = vpop.f32.mrb[66].mxu0  ;;  %v14432_v16 = vpop.f32.mrb[63].mxu1  ;;  %v14611_v41 = vmax.f32 %v17608_v0, 0.0  ;;  %v17867_v56 = vld [vmem:[%s19119_s12 + $0x68] sm:$0xff]   ;;  %v17873_v0 = vld [vmem:[%s19119_s12 + $0xf0] sm:$0xff]   ;;  %v17876_v14 = vld [vmem:[%s19119_s12 + $0x38] sm:$0xff]  }
 0xe09   :  { %v17614_v48 = vadd.f32 %v14602_v24, %v11346_v49  ;;  %v17611_v25 = vadd.f32 %v14432_v16, %v11342_v52  ;;  %v14604_v63 = vpop.f32.mrb[67].mxu0  ;;  %v14613_v17 = vmax.f32 %v17612_v13, 0.0  ;;  %v14612_v27 = vmax.f32 %v17609_v34, 0.0  ;;  %v17869_v49 = vld [vmem:[%s19119_s12 + $0xe8] sm:$0xff]   ;;  %v17874_v11 = vld [vmem:[%s19119_s12 + $0xb0] sm:$0xff]   ;;  %v17875_v13 = vld [vmem:[%s19119_s12 + $0x78] sm:$0xff]  }
 0xe0a   :  { %v14619_v26 = vmax.f32 %v17610_v47, 0.0  ;;  %v17615_v18 = vadd.f32 %v14604_v63, %v11350_v2  ;;  %v14614_v50 = vmax.f32 %v17613_v15, 0.0  ;;  %v17868_v52 = vld [vmem:[%s19119_s12 + $0x28] sm:$0xff]   ;;  %v17877_v34 = vld [vmem:[%s19119_s12 + $0xf8] sm:$0xff]   ;;  %v17879_v15 = vld [vmem:[%s19119_s12 + $0x140] sm:$0xff]  }
 0xe0b   :  { %v14621_v61 = vmax.f32 %v17614_v48, 0.0  ;;  %v14620_v45 = vmax.f32 %v17611_v25, 0.0  ;;  %v17870_v2 = vld [vmem:[%s19119_s12 + $0xa8] sm:$0xff]   ;;  %v17878_v39 = vld [vmem:[%s19119_s12 + $0xb8] sm:$0xff]   ;;  %v17880_v47 = vld [vmem:[%s19119_s12 + $0x1c0] sm:$0xff]  }
 0xe0c   :  { %v14756_v29 = vpack.c.bf16 %v14619_v26, %v14611_v41  ;;  %v14622_v5 = vmax.f32 %v17615_v18, 0.0  ;;  %v17881_v24 = vld [vmem:[%s19119_s12 + $0x100] sm:$0xff]   ;;  %v17883_v48 = vld [vmem:[%s19119_s12 + $0x148] sm:$0xff]   ;;  %v17887_v26 = vld [vmem:[%s19119_s12 + $0x150] sm:$0xff]  }
 0xe0d   :  { %v14758_v51 = vpack.c.bf16 %v14621_v61, %v14613_v17  ;;  %v14757_v30 = vpack.c.bf16 %v14620_v45, %v14612_v27  ;;  %v18877_v44 = vpop.f32.mrb[64].mxu1  ;;  %v17882_v16 = vld [vmem:[%s19119_s12 + $0x180] sm:$0xff]   ;;  %v17884_v25 = vld [vmem:[%s19119_s12 + $0x1c8] sm:$0xff]   ;;  %v17888_v18 = vld [vmem:[%s19119_s12 + $0x1d0] sm:$0xff]  }
 0xe0e   :  { %v14759_v36 = vpack.c.bf16 %v14622_v5, %v14614_v50  ;;  %v14796_v35 = vpop.f32.mrb[65].mxu1  ;;  %v18882_v37 = vpop.f32.mrb[68].mxu0  ;;  %v17885_v63 = vld [vmem:[%s19119_s12 + $0x108] sm:$0xff]   ;;  %v17889_v17 = vld [vmem:[%s19119_s12 + $0x110] sm:$0xff]   ;;  %v17891_v61 = vld [vmem:[%s19119_s12 + $0x158] sm:$0xff]  }
 0xe0f   :  { %14846 = vmatprep.subr.bf16.mxu1 %v14757_v30  ;;  %v18884_v60 = vpop.f32.mrb[66].mxu1  ;;  %v14839_v20 = vpop.f32.mrb[69].mxu0  ;;  %v17886_v41 = vld [vmem:[%s19119_s12 + $0x188] sm:$0xff]   ;;  %v17890_v27 = vld [vmem:[%s19119_s12 + $0x190] sm:$0xff]   ;;  %v17892_v45 = vld [vmem:[%s19119_s12 + $0x1d8] sm:$0xff]  }
 0xe10   :  { %14889 = vmatprep.subr.bf16.mxu0 %v14759_v36  ;;  %14847 = vmatpush1.bf16.msra.mxu1 %v14756_v29  ;;  %v14932_v23 = vpack.c.bf16 %v18884_v60, %v18877_v44  ;;  %v14800_v40 = vpop.f32.mrb[67].mxu1  ;;  %v18891_v28 = vpop.f32.mrb[70].mxu0  ;;  %v17893_v50 = vld [vmem:[%s19119_s12 + $0x118] sm:$0xff]   ;;  %v17895_v5 = vld [vmem:[%s19119_s12 + $0x160] sm:$0xff]   ;;  %v17899_v44 = vld [vmem:[%s19119_s12 + $0x168] sm:$0xff]  }
 0xe11   :  { %14890 = vmatpush1.bf16.msra.mxu0 %v14758_v51  ;;  %17458 = vmatprep.subr.bf16.mxu1 %v17847_v32  ;;  %v14933_v22 = vpack.c.bf16 %v14800_v40, %v14796_v35  ;;  %v14934_v53 = vpack.c.bf16 %v18891_v28, %v18882_v37  ;;  %v14843_v57 = vpop.f32.mrb[71].mxu0  ;;  %v17894_v29 = vld [vmem:[%s19119_s12 + $0x198] sm:$0xff]   ;;  %v17896_v51 = vld [vmem:[%s19119_s12 + $0x1e0] sm:$0xff]   ;;  %v17900_v36 = vld [vmem:[%s19119_s12 + $0x1e8] sm:$0xff]  }
 0xe12   :  { %17480 = vmatprep.subr.bf16.mxu0 %v17849_v33  ;;  %v14935_v62 = vpack.c.bf16 %v14843_v57, %v14839_v20  ;;  %v17897_v30 = vld [vmem:[%s19119_s12 + $0x120] sm:$0xff]   ;;  %v17901_v33 = vld [vmem:[%s19119_s12 + $0x128] sm:$0xff]   ;;  %v17903_v37 = vld [vmem:[%s19119_s12 + $0x170] sm:$0xff]  }
 0xe13   :  { %17389 = vmatmul.mubr.msk.bf16.vlgmr.msra.gmra.mrb[68].mxu1 %vm252_vm1, %v18522_v6  ;;  %v17898_v32 = vld [vmem:[%s19119_s12 + $0x1a0] sm:$0xff]   ;;  %v17902_v35 = vld [vmem:[%s19119_s12 + $0x1a8] sm:$0xff]   ;;  %v17904_v60 = vld [vmem:[%s19119_s12 + $0x1f0] sm:$0xff]  }
 0xe14   :  { %17390 = vmatmul.mubr.msk.bf16.vlgmr.msra.gmra.mrb[72].mxu0 %vm252_vm1, %v18522_v6  ;;  %17459 = vmatpush3.bf16.msra.mxu1 %v17848_v21  ;;  %v17857_v6 = vld [vmem:[%s19119_s12 + $0xd0] sm:$0xff]   ;;  %v17908_v40 = vld [vmem:[%s19119_s12 + $0x1f8] sm:$0xff]  }
 0xe15   :  { %17481 = vmatpush3.bf16.msra.mxu0 %v17850_v38  ;;  %17460 = vmatprep.subr.bf16.mxu1 %v17851_v55  ;;  %v17905_v20 = vld [vmem:[%s19119_s12 + $0x130] sm:$0xff]   ;;  %v17909_v28 = vld [vmem:[%s19119_s12 + $0x138] sm:$0xff]  }
 0xe16   :  { %17482 = vmatprep.subr.bf16.mxu0 %v17853_v8  ;;  %15362 = vmatprep.mubr.bf16.mxu1 %v14933_v22  ;;  %v17906_v21 = vld [vmem:[%s19119_s12 + $0x1b0] sm:$0xff]   ;;  %v17910_v38 = vld [vmem:[%s19119_s12 + $0x1b8] sm:$0xff]  }
 0xe17   :  { %15403 = vmatprep.mubr.bf16.mxu0 %v14935_v62 }
 0xe18   :  { %17461 = vmatpush3.bf16.msra.mxu1 %v17852_v58 }
 0xe19   :  { %17483 = vmatpush3.bf16.msra.mxu0 %v17854_v46  ;;  %17462 = vmatprep.subr.bf16.mxu1 %v17855_v1 }
 0xe1a   :  { %17484 = vmatprep.subr.bf16.mxu0 %v17857_v6 }
 0xe1c   :  { %17463 = vmatpush3.bf16.msra.mxu1 %v17856_v42 }
 0xe1d   :  { %17485 = vmatpush3.bf16.msra.mxu0 %v17858_v43  ;;  %17464 = vmatprep.subr.bf16.mxu1 %v17859_v19 }
 0xe1e   :  { %17486 = vmatprep.subr.bf16.mxu0 %v17861_v59  ;;  %v17391_v59 = vld [vmem:[#allocation22] ss:$0 sm:$0xff] }
 0xe20   :  { %17465 = vmatpush3.bf16.msra.mxu1 %v17860_v4 }
 0xe21   :  { %17487 = vmatpush3.bf16.msra.mxu0 %v17862_v54  ;;  %17466 = vmatprep.subr.bf16.mxu1 %v17863_v7 }
 0xe22   :  { %17488 = vmatprep.subr.bf16.mxu0 %v17865_v9 }
 0xe24   :  { %17467 = vmatpush3.bf16.msra.mxu1 %v17864_v10 }
 0xe25   :  { %17489 = vmatpush3.bf16.msra.mxu0 %v17866_v12  ;;  %17468 = vmatprep.subr.bf16.mxu1 %v17867_v56 }
 0xe26   :  { %17490 = vmatprep.subr.bf16.mxu0 %v17869_v49 }
 0xe28   :  { %17469 = vmatpush3.bf16.msra.mxu1 %v17868_v52 }
 0xe29   :  { %17491 = vmatpush3.bf16.msra.mxu0 %v17870_v2  ;;  %17470 = vmatprep.subr.bf16.mxu1 %v17871_v3 }
 0xe2a   :  { %17492 = vmatprep.subr.bf16.mxu0 %v17873_v0 }
 0xe2c   :  { %17471 = vmatpush3.bf16.msra.mxu1 %v17872_v31 }
 0xe2d   :  { %17493 = vmatpush3.bf16.msra.mxu0 %v17874_v11  ;;  %17472 = vmatprep.subr.bf16.mxu1 %v17875_v13 }
 0xe2e   :  { %17494 = vmatprep.subr.bf16.mxu0 %v17877_v34 }
 0xe30   :  { %17473 = vmatpush3.bf16.msra.mxu1 %v17876_v14 }
 0xe31   :  { %17495 = vmatpush3.bf16.msra.mxu0 %v17878_v39  ;;  %17502 = vmatprep.subr.bf16.mxu1 %v17879_v15 }
 0xe32   :  { %17524 = vmatprep.subr.bf16.mxu0 %v17880_v47 }
 0xe33   :  { %15363 = vmatmul.mubr.bf16.vlgmr.msra.gmra.mrb[72].mxu1 %v14932_v23  ;;  %v17907_v23 = vld [vmem:[%s19119_s12 + $0x178] sm:$0xff]   ;;  %s18265_s12 = smov [#allocation23]  }
 0xe34   :  { %15404 = vmatmul.mubr.bf16.vlgmr.msra.gmra.mrb[76].mxu0 %v14934_v53  ;;  %17503 = vmatpush3.bf16.msra.mxu1 %v17881_v24  ;;  %s15530_s16 = sshll.u32 %s18265_s12, 4  ;;  %s15531_s16 = int_to_ptr.vmem [resolvable:$true] %s15530_s16 }
 0xe35   :  { %17525 = vmatpush3.bf16.msra.mxu0 %v17882_v16  ;;  %17504 = vmatprep.subr.bf16.mxu1 %v17883_v48  ;;  %s18205_s22 = scalar_lea.vmem %s15531_s16, 256  ;;  %p18210_p7 = scmp.lt.s32.totalorder %s15531_s16, %s15531_s16 }
 0xe36   :  { %17526 = vmatprep.subr.bf16.mxu0 %v17884_v25  ;;  %p18206_p6 = scmp.ne.s32.totalorder %s15531_s16, %s18205_s22  ;;  %p18211_p8 = scmp.lt.s32.totalorder %s18205_s22, %s18205_s22 }
 0xe38   :  { %17505 = vmatpush3.bf16.msra.mxu1 %v17885_v63  ;;  %p18212_p9 = por %p18211_p8, %p18210_p7 }
 0xe39   :  { %17527 = vmatpush3.bf16.msra.mxu0 %v17886_v41  ;;  %17506 = vmatprep.subr.bf16.mxu1 %v17887_v26 }
 0xe3a   :  { %17528 = vmatprep.subr.bf16.mxu0 %v17888_v18  ;;  %p18213_p10 = pnand %p18212_p9, %p18206_p6 }
 0xe3c   :  { %17507 = vmatpush3.bf16.msra.mxu1 %v17889_v17 }
 0xe3d   :  { %17529 = vmatpush3.bf16.msra.mxu0 %v17890_v27  ;;  %17508 = vmatprep.subr.bf16.mxu1 %v17891_v61 }
 0xe3e   :  { %17530 = vmatprep.subr.bf16.mxu0 %v17892_v45 }
 0xe40   :  { %17509 = vmatpush3.bf16.msra.mxu1 %v17893_v50 }
 0xe41   :  { %17531 = vmatpush3.bf16.msra.mxu0 %v17894_v29  ;;  %17510 = vmatprep.subr.bf16.mxu1 %v17895_v5 }
 0xe42   :  { %17532 = vmatprep.subr.bf16.mxu0 %v17896_v51 }
 0xe44   :  { %17511 = vmatpush3.bf16.msra.mxu1 %v17897_v30 }
 0xe45   :  { %17533 = vmatpush3.bf16.msra.mxu0 %v17898_v32  ;;  %17512 = vmatprep.subr.bf16.mxu1 %v17899_v44 }
 0xe46   :  { %17534 = vmatprep.subr.bf16.mxu0 %v17900_v36 }
 0xe48   :  { %17513 = vmatpush3.bf16.msra.mxu1 %v17901_v33 }
 0xe49   :  { %17535 = vmatpush3.bf16.msra.mxu0 %v17902_v35  ;;  %17514 = vmatprep.subr.bf16.mxu1 %v17903_v37 }
 0xe4a   :  { %17536 = vmatprep.subr.bf16.mxu0 %v17904_v60 }
 0xe4c   :  { %17515 = vmatpush3.bf16.msra.mxu1 %v17905_v20 }
 0xe4d   :  { %17537 = vmatpush3.bf16.msra.mxu0 %v17906_v21  ;;  %17516 = vmatprep.subr.bf16.mxu1 %v17907_v23 }
 0xe4e   :  { %17538 = vmatprep.subr.bf16.mxu0 %v17908_v40 }
 0xe50   :  { %17517 = vmatpush3.bf16.msra.mxu1 %v17909_v28 }
 0xe51   :  { %17539 = vmatpush3.bf16.msra.mxu0 %v17910_v38 }
 0xee6   :  { %v14880_v55 = vpop.f32.mrb[68].mxu1 }
 0xee7   :  { %v14923_v22 = vpop.f32.mrb[72].mxu0  ;;  %v14882_v53 = vpop.f32.mrb[69].mxu1 }
 0xee8   :  { %v14925_v57 = vpop.f32.mrb[73].mxu0  ;;  %v14884_v8 = vpop.f32.mrb[70].mxu1 }
 0xee9   :  { %v14936_v62 = vpack.c.bf16 %v14884_v8, %v14880_v55  ;;  %v14927_v58 = vpop.f32.mrb[74].mxu0  ;;  %v14886_v46 = vpop.f32.mrb[71].mxu1 }
 0xeea   :  { %v14938_v1 = vpack.c.bf16 %v14927_v58, %v14923_v22  ;;  %v14937_v6 = vpack.c.bf16 %v14886_v46, %v14882_v53  ;;  %v14929_v42 = vpop.f32.mrb[75].mxu0 }
 0xeeb   :  { %v14939_v43 = vpack.c.bf16 %v14929_v42, %v14925_v57 }
 0xeec   :  { %15444 = vmatprep.mubr.bf16.mxu1 %v14937_v6 }
 0xeed   :  { %15485 = vmatprep.mubr.bf16.mxu0 %v14939_v43  ;;  %15445 = vmatmul.mubr.bf16.vlgmr.msra.gmra.mrb[76].mxu1 %v14936_v62 }
 0xeee   :  { %15486 = vmatmul.mubr.bf16.vlgmr.msra.gmra.mrb[80].mxu0 %v14938_v1 }
 0xf06   :  { %v17474_v19 = vpop.f32.mrb[72].mxu1 }
 0xf07   :  { %v17475_v4 = vpop.f32.mrb[73].mxu1  ;;  %v17496_v54 = vpop.f32.mrb[76].mxu0 }
 0xf08   :  { %v17476_v7 = vadd.f32 %v17475_v4, %v17474_v19  ;;  %v17477_v9 = vpop.f32.mrb[74].mxu1  ;;  %v17497_v10 = vpop.f32.mrb[77].mxu0 }
 0xf09   :  { %v17478_v12 = vpop.f32.mrb[75].mxu1  ;;  %v17498_v56 = vadd.f32 %v17497_v10, %v17496_v54  ;;  %v17499_v49 = vpop.f32.mrb[78].mxu0 }
 0xf0a   :  { %v15365_v52 = vadd.f32 %v17476_v7, %v17391_v59  ;;  %v17479_v2 = vadd.f32 %v17478_v12, %v17477_v9  ;;  %v17500_v3 = vpop.f32.mrb[79].mxu0 }
 0xf0b   :  { %v17501_v0 = vadd.f32 %v17500_v3, %v17499_v49 }
 0xf0c   :  { %v15368_v31 = vadd.f32 %v17479_v2, %v17391_v59  ;;  %v15406_v11 = vadd.f32 %v17498_v56, %v15365_v52 }
 0xf0e   :  { %v15409_v13 = vadd.f32 %v17501_v0, %v15368_v31 }
 0xfc0   :  { %v17518_v34 = vpop.f32.mrb[76].mxu1 }
 0xfc1   :  { %v17540_v14 = vpop.f32.mrb[80].mxu0  ;;  %v17519_v39 = vpop.f32.mrb[77].mxu1 }
 0xfc2   :  { %v17520_v15 = vadd.f32 %v17519_v39, %v17518_v34  ;;  %v17541_v47 = vpop.f32.mrb[81].mxu0  ;;  %v17521_v24 = vpop.f32.mrb[78].mxu1 }
 0xfc3   :  { %v17542_v16 = vadd.f32 %v17541_v47, %v17540_v14  ;;  %v17543_v48 = vpop.f32.mrb[82].mxu0  ;;  %v17522_v25 = vpop.f32.mrb[79].mxu1 }
 0xfc4   :  { %v15447_v63 = vadd.f32 %v17520_v15, %v15406_v11  ;;  %v17523_v41 = vadd.f32 %v17522_v25, %v17521_v24  ;;  %v17544_v26 = vpop.f32.mrb[83].mxu0 }
 0xfc5   :  { %v17545_v18 = vadd.f32 %v17544_v26, %v17543_v48 }
 0xfc6   :  { %v15488_v17 = vadd.f32 %v17542_v16, %v15447_v63  ;;  %v15450_v27 = vadd.f32 %v17523_v41, %v15409_v13 }
 0xfc8   :  { %v15491_v61 = vadd.f32 %v17545_v18, %v15450_v27  ;;  %v15494_v45 = vmul.f32 %v15488_v17, %v15488_v17 }
 0xfca   :  { %v15497_v50 = vsel %vm15496_vm2, %v15494_v45, 0.0  ;;  %v15495_v29 = vmul.f32 %v15491_v61, %v15491_v61 }
 0xfcb   :  { %15498 = vadd.xlane.f32.xlu0 %v15497_v50 }
 0xfcc   :  { %v15500_v5 = vsel %vm15496_vm2, %v15495_v29, 0.0 }
 0xfcf   :  { %15501 = vadd.xlane.f32.xlu0 %v15500_v5 }
0x1058   :  { %v15499_v51 = vpop.xlane.xlu0 %15498 }
0x1059   :  { %17911 = vrsqrt.f32 %v15499_v51  ;;  %vm15505_vm3 = vcmp.eq.f32.partialorder %v15499_v51, inf  ;;  %v15508_v36 = vand.u32 2147483648, %v15499_v51  ;;  %vm15507_vm4 = vcmp.eq.f32.partialorder %v15499_v51, 0.0 }
0x105c   :  { %v15502_v30 = vpop.xlane.xlu0 %15501 }
0x105d   :  { %17913 = vrsqrt.f32 %v15502_v30  ;;  %vm15512_vm5 = vcmp.eq.f32.partialorder %v15502_v30, inf  ;;  %v15515_v21 = vand.u32 2147483648, %v15502_v30  ;;  %vm15514_vm6 = vcmp.eq.f32.partialorder %v15502_v30, 0.0 }
0x1063   :  { %v17912_v32 = vpop.eup %17911 }
0x1064   :  { %v15504_v44 = vmul.f32 %v17912_v32, %v15499_v51 }
0x1066   :  { %v15506_v33 = vsel %vm15505_vm3, %v15499_v51, %v15504_v44 }
0x1067   :  { %v17914_v35 = vpop.eup %17913  ;;  %v15509_v37 = vsel %vm15507_vm4, %v15508_v36, %v15506_v33 }
0x1068   :  { %v15517_v60 = vmax.f32 %v15509_v37, 1e-12  ;;  %v15511_v20 = vmul.f32 %v17914_v35, %v15502_v30 }
0x106a   :  { %17915 = vrcp.f32 %v15517_v60  ;;  %v15513_v23 = vsel %vm15512_vm5, %v15502_v30, %v15511_v20 }
0x106b   :  { %v15516_v40 = vsel %vm15514_vm6, %v15515_v21, %v15513_v23 }
0x106c   :  { %v15518_v28 = vmax.f32 %v15516_v40, 1e-12 }
0x106e   :  { %17917 = vrcp.f32 %v15518_v28 }
0x1074   :  { %v17916_v38 = vpop.eup %17915 }
0x1075   :  { %v15521_v55 = vmul.f32 %v17916_v38, %v15488_v17 }
0x1077   :  { %15523 = vst.msk [vmem:[#allocation23] sm:$0xff] %vm15496_vm2, %v15521_v55 }
0x1078   :  { %v17918_v22 = vpop.eup %17917 }
0x1079   :  { %v15522_v53 = vmul.f32 %v17918_v22, %v15491_v61 }
0x107b   :  { %15524 = vst.msk [vmem:[#allocation23 + $0x8] sm:$0xff] %vm15496_vm2, %v15522_v53 }
0x107c   :  { %18216 = shalt.err (!%p18213_p10)
}
0x107d   :  { %s18217_s20 = scalar_lea.hbm %s19121_s14, 256 }
0x107e   :  { %p18218_p11 = scmp.ne.s32.totalorder %s19121_s14, %s18217_s20  ;;  %p18221_p12 = scmp.lt.u32.totalorder %s18217_s20, %s19121_s14 }
0x1080   :  { %p18223_p13 = pnand %p18221_p12, %p18218_p11 }
0x1082   :  { %18226 = shalt.err (!%p18223_p13)
}
0x1083   :  { %15536 = dma.vmem_to_hbm [thread:$0]  %s15531_s16, 256, %s19121_s14, [#allocation4], %s18245_s25, %s18245_s25, %s18246_s26  }
0x1084   :  { %18241 = dma.done.wait [#allocation4], 256  }
0x1085   :  { %18242 = vsyncadd [#allocation4], 4294967040 }
0x1086   :  { %15540 = vsyncpa [#allocation3], 1 }
0x1087   :  { %15541 = vsyncpa [#allocation6], 1 }
0x1088   :  { %15542 = vsyncpa [#allocation9], 1 }
0x1089   :  { %15543 = vsyncpa [#allocation12], 1 }
0x108a   :  { %15544 = vsyncpa [#allocation15], 1 }
0x108b   :  { %15545 = vsyncpa [#allocation18], 1 }
0x108c   :  { %15546 = vsyncpa [#allocation21], 1 }
0x108d   :  { %15547 = vsyncpa [#allocation4], 1 }

</bundles_post_ra>
